<compile_context>
chip_gen: v5e
topology: v5e:2x2
jax: 0.10.0
libtpu: 0.0.40
codegen_flags: <defaults>
</compile_context>

<pallas_src>
import math

import jax
import jax.numpy as jnp
from jax.experimental import pallas as pl
from jax.experimental.pallas import tpu as pltpu


def _round128(x):
    return ((x + 127) // 128) * 128


def _const_layout(H, HID, O, TURN, NCLS):
    """Packed small-parameter slab layout: name -> (lane offset, width)."""
    fields = [
        ("ln_g", H), ("ln_b", H),
        ("glob_b", HID), ("conv_b", O),
        ("conv_turn_b", TURN), ("lstm_turn_b", TURN), ("avg_turn_b", TURN),
        ("lnl_g", TURN), ("lnl_b", TURN),
        ("score_vec", TURN),
        ("fc_b", NCLS),
        ("b_gates", 8 * HID),
    ]
    offs, cur = {}, 0
    for name, width in fields:
        offs[name] = (cur, width)
        cur += _round128(width)          # keep every piece 128-lane aligned
    return offs, cur


def _layernorm(x, g, b, eps=1e-5):
    mu = jnp.mean(x, axis=-1, keepdims=True)
    var = jnp.mean((x - mu) ** 2, axis=-1, keepdims=True)
    return (x - mu) * jax.lax.rsqrt(var + eps) * g + b


def _make_block_kernel(B, S, H, O, K, TOPK, TURN, NCLS, HID, OUTW):
    assert K % 2 == 1, "only odd kernel sizes supported for 'same' padding"
    PAD = (K - 1) // 2
    GOFF = 8 * HID + K * O               # start of globals columns in the packed weight
    OFFS, _ = _const_layout(H, HID, O, TURN, NCLS)

    def kernel(
        feat_ref, pos_ref, type_ref,          # bf16 activations
        consts_ref,                           # packed (1, N) f32 small params
        inw_ref, whh_ref,                     # packed input-proj weight, stacked W_hh
        convturn_hbm, lstmturn_hbm, avgturn_hbm,   # late-use weights (pl.ANY)
        fcw_ref,                              # (TURN, NCLS) bf16
        out_ref,                              # (B, OUTW) f32 merged output
        ctw_vmem, ltw_vmem, atw_vmem, dma_sems,    # scratch
    ):
        f32 = jnp.float32
        bf16 = jnp.bfloat16

        def cget(name):
            off, width = OFFS[name]
            return consts_ref[:, off:off + width]           # (1, width) f32

        # ---- kick off DMAs for late-use weights; hidden behind LSTM/conv/k-max ----
        cp_ct = pltpu.make_async_copy(convturn_hbm, ctw_vmem, dma_sems.at[0])
        cp_lt = pltpu.make_async_copy(lstmturn_hbm, ltw_vmem, dma_sems.at[1])
        cp_at = pltpu.make_async_copy(avgturn_hbm, atw_vmem, dma_sems.at[2])
        cp_ct.start()
        cp_lt.start()
        cp_at.start()

        # ---- fuse inputs + layernorm (f32 elementwise math) -----------------------
        x = (feat_ref[...].astype(f32) + pos_ref[...].astype(f32)
             + type_ref[...].astype(f32)[:, None, :])             # (B,S,H)
        bf = _layernorm(x, cget("ln_g"), cget("ln_b"))            # (B,S,H) f32
        bf2 = bf.reshape(B * S, H)                                # rows = b*S + s

        # ---- one hoisted matmul: LSTM gates (both dirs) | conv taps | globals -----
        proj = jnp.dot(bf2.astype(bf16), inw_ref[...],
                       preferred_element_type=f32)                # (B*S, 8*HID+K*O+HID)

        # globals head: mean over seq commutes with the affine map
        avg_out = (jnp.mean(proj[:, GOFF:GOFF + HID].reshape(B, S, HID), axis=1)
                   + cget("glob_b"))                              # (B, HID)

        # ---- bidirectional LSTM: fused fwd/rev, one matmul + one cell per step ----
        gates = proj[:, :8 * HID] + cget("b_gates")               # (B*S, 8*HID)
        gxv = gates.reshape(B, S, 8 * HID)
        # Per-step gate blocks hoisted off the recurrent chain; first B rows are the
        # forward direction at time t, last B rows the reverse direction at S-1-t.
        gx_steps = [
            jnp.concatenate([gxv[:, t, :4 * HID], gxv[:, S - 1 - t, 4 * HID:]], axis=0)
            for t in range(S)
        ]                                                          # each (2B, 4*HID)

        whh = whh_ref[...]                                         # (2*HID, 4*HID) bf16
        r2 = jax.lax.broadcasted_iota(jnp.int32, (2 * B, 2 * HID), 0)
        c2 = jax.lax.broadcasted_iota(jnp.int32, (2 * B, 2 * HID), 1)
        blkmask = ((r2 < B) == (c2 < HID)).astype(f32)             # block-diagonal mask

        h = jnp.zeros((2 * B, HID), f32)
        c = jnp.zeros((2 * B, HID), f32)
        for t in range(S):                                         # S static -> unrolled
            # h_pad = [[h_f, 0], [0, h_r]] -> one K=256 matmul for both directions
            hp = (jnp.concatenate([h, h], axis=1) * blkmask).astype(bf16)
            pre = gx_steps[t] + jnp.dot(hp, whh, preferred_element_type=f32)
            i = jax.nn.sigmoid(pre[:, :HID])
            f = jax.nn.sigmoid(pre[:, HID:2 * HID])
            g = jnp.tanh(pre[:, 2 * HID:3 * HID])
            o = jax.nn.sigmoid(pre[:, 3 * HID:])
            c = f * c + i * g
            h = o * jnp.tanh(c)
        # torch: lstm_hidden_all = cat((lstm_c[0], lstm_c[1]), 1) -> final CELL states
        lstm_hidden_all = jnp.concatenate([c[:B], c[B:]], axis=1)  # (B, 2*HID)

        # ---- Conv1d 'same': K shifted accumulating tap adds (no im2col concat) ----
        s_idx = jax.lax.broadcasted_iota(jnp.int32, (B * S, O), 0) % S
        conv_flat = jnp.zeros((B * S, O), f32)
        for k in range(K):
            d = k - PAD
            y_k = proj[:, 8 * HID + k * O: 8 * HID + (k + 1) * O]  # (B*S, O)
            if d == 0:
                conv_flat = conv_flat + y_k
            elif d < 0:
                sh = jnp.concatenate([jnp.zeros((-d, O), f32), y_k[:d, :]], axis=0)
                conv_flat = conv_flat + jnp.where(s_idx >= -d, sh, 0.0)
            else:
                sh = jnp.concatenate([y_k[d:, :], jnp.zeros((d, O), f32)], axis=0)
                conv_flat = conv_flat + jnp.where(s_idx <= S - 1 - d, sh, 0.0)
        conv_flat = conv_flat + cget("conv_b")
        conv_bso = conv_flat.reshape(B, S, O)                      # torch conv_out^T

        # ---- k-max pooling along seq, kept values in original time order ---------
        # rank[b,t,o] = #{t' beating t} with earlier-index tie-break.
        iota_t = jax.lax.broadcasted_iota(jnp.int32, (B, S, O), 1)
        rank = jnp.zeros((B, S, O), f32)
        for tp in range(S):
            xp = conv_bso[:, tp:tp + 1, :]                         # (B,1,O)
            beats = (xp > conv_bso) | ((xp == conv_bso) & (iota_t > tp))
            rank = rank + beats.astype(f32)
        sel = (rank < float(TOPK)).astype(f32)                     # selected positions
        val = conv_bso * sel

        # exclusive prefix count of selections over time (vectorized scatter)
        run = jnp.zeros((B, 1, O), f32)
        excl_parts = []
        for t in range(S):
            excl_parts.append(run)
            run = run + sel[:, t:t + 1, :]
        excl = jnp.concatenate(excl_parts, axis=1)                 # (B,S,O)
        res = [jnp.sum(jnp.where(excl == float(j), val, 0.0), axis=1)
               for j in range(TOPK)]                               # TOPK x (B,O)
        topk_stack = jnp.concatenate(res, axis=1)                  # (B, TOPK*O)

        # ---- turn projections (deferred weights arrive here) ----------------------
        cp_ct.wait()
        cp_lt.wait()
        cp_at.wait()
        conv_proj = (jnp.dot(topk_stack.astype(bf16), ctw_vmem[...],
                             preferred_element_type=f32) + cget("conv_turn_b"))
        lstm_proj = (jnp.dot(lstm_hidden_all.astype(bf16), ltw_vmem[...],
                             preferred_element_type=f32) + cget("lstm_turn_b"))
        avg_proj = (jnp.dot(avg_out.astype(bf16), atw_vmem[...],
                            preferred_element_type=f32) + cget("avg_turn_b"))
        # TODO(synk): nn.Dropout treated as identity (inference semantics).

        # ---- score heads: one batched layernorm + one matvec ----------------------
        # scores_arrays = rate_turn(eye) = W^T + b; the sum over the 4 score columns
        # is pre-folded on the host into score_vec (lives in the consts slab).
        msgs = jnp.concatenate([conv_proj, lstm_proj, avg_proj], axis=0)   # (3B,TURN)
        ln_msgs = _layernorm(msgs, cget("lnl_g"), cget("lnl_b"))
        inv_sqrt3 = 1.0 / math.sqrt(3.0)            # sqrt(all_message.shape[1]) == 3
        w_all = (jnp.sum(ln_msgs * cget("score_vec"), axis=-1, keepdims=True)
                 * inv_sqrt3)                                             # (3B, 1)
        weighted = jnp.concatenate(
            [w_all[0:B, :], w_all[B:2 * B, :], w_all[2 * B:3 * B, :]], axis=1)  # (B,3)

        # softmax over the 3 messages -> attention weights
        wmax = jnp.max(weighted, axis=-1, keepdims=True)
        e = jnp.exp(weighted - wmax)
        rating = e / jnp.sum(e, axis=-1, keepdims=True)                   # (B,3)

        merged = (conv_proj * rating[:, 0:1]
                  + lstm_proj * rating[:, 1:2]
                  + avg_proj * rating[:, 2:3])                            # (B,TURN)

        logits = (jnp.dot(merged.astype(bf16), fcw_ref[...],
                          preferred_element_type=f32) + cget("fc_b"))     # (B,NCLS)

        # second return value: softmax(weighted, dim=0)  (over the batch axis)
        bmax = jnp.max(weighted, axis=0, keepdims=True)
        eb = jnp.exp(weighted - bmax)
        soft0 = eb / jnp.sum(eb, axis=0, keepdims=True)                   # (B,3)

        # single lane-dense output slab: [logits | soft0 | zero pad]
        out_ref[...] = jnp.concatenate(
            [logits, soft0, jnp.zeros((B, OUTW - NCLS - 3), f32)], axis=1)

    return kernel


def block_forward(batch_feature, pos_embedding, type_embed, params):
    B, S, H = batch_feature.shape
    dims = params["dims"]
    O, K, TOPK = dims["O"], dims["K"], dims["TOPK"]
    HID = params["whh"].shape[0] // 2
    TURN = params["conv_turn_w"].shape[1]
    NCLS = params["fc_w"].shape[1]
    OUTW = 128
    assert S >= TOPK and NCLS + 3 <= OUTW
    assert params["inputs_proj_w"].shape == (H, 8 * HID + K * O + HID)

    kernel = _make_block_kernel(B, S, H, O, K, TOPK, TURN, NCLS, HID, OUTW)

    bf16 = jnp.bfloat16
    args = (
        batch_feature.astype(bf16), pos_embedding.astype(bf16), type_embed.astype(bf16),
        params["consts"],
        params["inputs_proj_w"], params["whh"],
        params["conv_turn_w"], params["lstm_turn_w"], params["avg_turn_w"],
        params["fc_w"],
    )
    vmem = pl.BlockSpec(memory_space=pltpu.MemorySpace.VMEM)
    anyspec = pl.BlockSpec(memory_space=pl.ANY)          # late-use weights stay in HBM
    in_specs = [vmem] * 6 + [anyspec] * 3 + [vmem]

    out = pl.pallas_call(
        kernel,
        out_shape=jax.ShapeDtypeStruct((B, OUTW), jnp.float32),
        in_specs=in_specs,
        out_specs=vmem,
        scratch_shapes=[
            pltpu.VMEM((TOPK * O, TURN), bf16),          # conv_turn_w landing buffer
            pltpu.VMEM((2 * HID, TURN), bf16),           # lstm_turn_w landing buffer
            pltpu.VMEM((HID, TURN), bf16),               # avg_turn_w landing buffer
            pltpu.SemaphoreType.DMA((3,)),
        ],
    )(*args)

    logits = out[:, :NCLS]
    soft0 = out[:, NCLS:NCLS + 3]
    return logits, soft0


def init_params(key, H=128, O=128, K=3, TOPK=5, TURN=128, NCLS=2):
    HID = H
    keys = iter(jax.random.split(key, 24))

    def w(shape, scale=0.05):
        return (scale * jax.random.normal(next(keys), shape)).astype(jnp.float32)

    bf16 = jnp.bfloat16

    # dense weights, stored pre-transposed as (in, out)
    wih = w((H, 8 * HID))                    # [W_ih_fwd^T | W_ih_rev^T], gates i,f,g,o
    conv_w_wide = w((H, K * O))              # col k*O+o == torch conv W[o, :, k]
    glob_w = w((H, HID))
    whh_f = w((HID, 4 * HID))
    whh_r = w((HID, 4 * HID))
    conv_turn_w = w((TOPK * O, TURN))        # row j*O+o == torch conv_turn W[:, o*TOPK+j]
    lstm_turn_w = w((2 * HID, TURN))
    avg_turn_w = w((HID, TURN))
    fc_w = w((TURN, NCLS))
    rate_w = w((TURN, 4))                    # rate_turn weight, stored (in, out)
    rate_b = w((1, 4))

    params = {
        "inputs_proj_w": jnp.concatenate([wih, conv_w_wide, glob_w], axis=1).astype(bf16),
        "whh": jnp.concatenate([whh_f, whh_r], axis=0).astype(bf16),
        "conv_turn_w": conv_turn_w.astype(bf16),
        "lstm_turn_w": lstm_turn_w.astype(bf16),
        "avg_turn_w": avg_turn_w.astype(bf16),
        "fc_w": fc_w.astype(bf16),
        "dims": dict(O=O, K=K, TOPK=TOPK),
    }

    # pack all tiny (1,N) parameters into one lane-aligned f32 slab (single DMA)
    offs, total = _const_layout(H, HID, O, TURN, NCLS)
    vals = {
        "ln_g": jnp.ones((H,), jnp.float32),
        "ln_b": jnp.zeros((H,), jnp.float32),
        "glob_b": w((HID,)),
        "conv_b": w((O,)),
        "conv_turn_b": w((TURN,)),
        "lstm_turn_b": w((TURN,)),
        "avg_turn_b": w((TURN,)),
        "lnl_g": jnp.ones((TURN,), jnp.float32),
        "lnl_b": jnp.zeros((TURN,), jnp.float32),
        # scores_arrays = rate_turn(eye) = W^T + b; weighted sums its 4 columns,
        # so fold that reduction into one (TURN,) score vector on the host.
        "score_vec": jnp.sum(rate_w + rate_b, axis=1),
        "fc_b": w((NCLS,)),
        "b_gates": w((8 * HID,)),            # (b_ih + b_hh), both directions
    }
    slab = jnp.zeros((1, total), jnp.float32)
    for name, (off, width) in offs.items():
        slab = slab.at[0, off:off + width].set(vals[name])
    params["consts"] = slab
    return params


if __name__ == "__main__":
    B, S, H = 2, 8, 128        # small batch/seq; feature dims follow the module (h_dim=128)
    key = jax.random.PRNGKey(0)
    k1, k2, k3, kp = jax.random.split(key, 4)
    batch_feature = jax.random.normal(k1, (B, S, H), jnp.float32).astype(jnp.bfloat16)
    pos_embedding = jax.random.normal(k2, (B, S, H), jnp.float32).astype(jnp.bfloat16)
    type_embed = jax.random.normal(k3, (B, H), jnp.float32).astype(jnp.bfloat16)
    params = init_params(kp, H=H, O=128, K=3, TOPK=5, TURN=128, NCLS=2)

    logits, soft0 = block_forward(batch_feature, pos_embedding, type_embed, params)
    jax.block_until_ready((logits, soft0))

    assert logits.shape == (B, 2) and soft0.shape == (B, 3)
    assert bool(jnp.all(jnp.isfinite(logits))) and bool(jnp.all(jnp.isfinite(soft0)))
    print("KERNEL_OK")
</pallas_src>

<mosaic_0001>
module attributes {stable_mosaic.version = 11 : i64} {
  func.func @kernel(%arg0: memref<2x8x128xbf16, #tpu.memory_space<vmem>>, %arg1: memref<2x8x128xbf16, #tpu.memory_space<vmem>>, %arg2: memref<2x128xbf16, #tpu.memory_space<vmem>>, %arg3: memref<1x2432xf32, #tpu.memory_space<vmem>>, %arg4: memref<128x1536xbf16, #tpu.memory_space<vmem>>, %arg5: memref<256x512xbf16, #tpu.memory_space<vmem>>, %arg6: memref<640x128xbf16, #tpu.memory_space<any>>, %arg7: memref<256x128xbf16, #tpu.memory_space<any>>, %arg8: memref<128x128xbf16, #tpu.memory_space<any>>, %arg9: memref<128x2xbf16, #tpu.memory_space<vmem>>, %arg10: memref<2x128xf32, #tpu.memory_space<vmem>>, %arg11: memref<640x128xbf16, #tpu.memory_space<vmem>>, %arg12: memref<256x128xbf16, #tpu.memory_space<vmem>>, %arg13: memref<128x128xbf16, #tpu.memory_space<vmem>>, %arg14: memref<3x!tpu.dma_semaphore, #tpu.memory_space<semaphore_mem>>) attributes {dimension_semantics = [], scalar_prefetch = 0 : i64, scratch_operands = 4 : i64, tpu.core_type = #tpu.core_type<tc>} {
    %c0_i32 = arith.constant 0 : i32
    %0 = tpu.memref_slice %arg14[%c0_i32] : memref<3x!tpu.dma_semaphore, #tpu.memory_space<semaphore_mem>> -> memref<1x!tpu.dma_semaphore, #tpu.memory_space<semaphore_mem>>
    %1 = tpu.memref_squeeze %0 : memref<1x!tpu.dma_semaphore, #tpu.memory_space<semaphore_mem>> -> memref<!tpu.dma_semaphore, #tpu.memory_space<semaphore_mem>>
    tpu.enqueue_dma source(%arg6 : memref<640x128xbf16, #tpu.memory_space<any>>) target(%arg11 : memref<640x128xbf16, #tpu.memory_space<vmem>>) target_semaphore(%1 : memref<!tpu.dma_semaphore, #tpu.memory_space<semaphore_mem>>)
    %c1_i32 = arith.constant 1 : i32
    %2 = tpu.memref_slice %arg14[%c1_i32] : memref<3x!tpu.dma_semaphore, #tpu.memory_space<semaphore_mem>> -> memref<1x!tpu.dma_semaphore, #tpu.memory_space<semaphore_mem>>
    %3 = tpu.memref_squeeze %2 : memref<1x!tpu.dma_semaphore, #tpu.memory_space<semaphore_mem>> -> memref<!tpu.dma_semaphore, #tpu.memory_space<semaphore_mem>>
    tpu.enqueue_dma source(%arg7 : memref<256x128xbf16, #tpu.memory_space<any>>) target(%arg12 : memref<256x128xbf16, #tpu.memory_space<vmem>>) target_semaphore(%3 : memref<!tpu.dma_semaphore, #tpu.memory_space<semaphore_mem>>)
    %c2_i32 = arith.constant 2 : i32
    %4 = tpu.memref_slice %arg14[%c2_i32] : memref<3x!tpu.dma_semaphore, #tpu.memory_space<semaphore_mem>> -> memref<1x!tpu.dma_semaphore, #tpu.memory_space<semaphore_mem>>
    %5 = tpu.memref_squeeze %4 : memref<1x!tpu.dma_semaphore, #tpu.memory_space<semaphore_mem>> -> memref<!tpu.dma_semaphore, #tpu.memory_space<semaphore_mem>>
    tpu.enqueue_dma source(%arg8 : memref<128x128xbf16, #tpu.memory_space<any>>) target(%arg13 : memref<128x128xbf16, #tpu.memory_space<vmem>>) target_semaphore(%5 : memref<!tpu.dma_semaphore, #tpu.memory_space<semaphore_mem>>)
    %c0 = arith.constant 0 : index
    %c0_0 = arith.constant 0 : index
    %c0_1 = arith.constant 0 : index
    %6 = vector.load %arg0[%c0, %c0_0, %c0_1] : memref<2x8x128xbf16, #tpu.memory_space<vmem>>, vector<2x8x128xbf16>
    %7 = arith.extf %6 : vector<2x8x128xbf16> to vector<2x8x128xf32>
    %c0_2 = arith.constant 0 : index
    %c0_3 = arith.constant 0 : index
    %c0_4 = arith.constant 0 : index
    %8 = vector.load %arg1[%c0_2, %c0_3, %c0_4] : memref<2x8x128xbf16, #tpu.memory_space<vmem>>, vector<2x8x128xbf16>
    %9 = arith.extf %8 : vector<2x8x128xbf16> to vector<2x8x128xf32>
    %10 = arith.addf %7, %9 : vector<2x8x128xf32>
    %c0_5 = arith.constant 0 : index
    %c0_6 = arith.constant 0 : index
    %11 = vector.load %arg2[%c0_5, %c0_6] : memref<2x128xbf16, #tpu.memory_space<vmem>>, vector<2x128xbf16>
    %12 = arith.extf %11 : vector<2x128xbf16> to vector<2x128xf32>
    %13 = vector.shape_cast %12 : vector<2x128xf32> to vector<2x1x128xf32>
    %14 = vector.broadcast %13 : vector<2x1x128xf32> to vector<2x8x128xf32>
    %15 = arith.addf %10, %14 : vector<2x8x128xf32>
    %c0_7 = arith.constant 0 : index
    %c0_8 = arith.constant 0 : index
    %16 = vector.load %arg3[%c0_7, %c0_8] : memref<1x2432xf32, #tpu.memory_space<vmem>>, vector<1x128xf32>
    %c0_9 = arith.constant 0 : index
    %c128 = arith.constant 128 : index
    %17 = vector.load %arg3[%c0_9, %c128] : memref<1x2432xf32, #tpu.memory_space<vmem>>, vector<1x128xf32>
    %cst = arith.constant dense<0.000000e+00> : vector<2x8xf32>
    %18 = vector.multi_reduction <add>, %15, %cst [2] : vector<2x8x128xf32> to vector<2x8xf32>
    %19 = vector.shape_cast %18 : vector<2x8xf32> to vector<2x8x1xf32>
    %cst_10 = arith.constant 1.280000e+02 : f32
    %20 = vector.broadcast %cst_10 : f32 to vector<2x8x1xf32>
    %21 = arith.divf %19, %20 : vector<2x8x1xf32>
    %22 = vector.broadcast %21 : vector<2x8x1xf32> to vector<2x8x128xf32>
    %23 = arith.subf %15, %22 : vector<2x8x128xf32>
    %24 = arith.mulf %23, %23 : vector<2x8x128xf32>
    %cst_11 = arith.constant dense<0.000000e+00> : vector<2x8xf32>
    %25 = vector.multi_reduction <add>, %24, %cst_11 [2] : vector<2x8x128xf32> to vector<2x8xf32>
    %26 = vector.shape_cast %25 : vector<2x8xf32> to vector<2x8x1xf32>
    %cst_12 = arith.constant 1.280000e+02 : f32
    %27 = vector.broadcast %cst_12 : f32 to vector<2x8x1xf32>
    %28 = arith.divf %26, %27 : vector<2x8x1xf32>
    %29 = vector.broadcast %21 : vector<2x8x1xf32> to vector<2x8x128xf32>
    %30 = arith.subf %15, %29 : vector<2x8x128xf32>
    %cst_13 = arith.constant 9.99999974E-6 : f32
    %31 = vector.broadcast %cst_13 : f32 to vector<2x8x1xf32>
    %32 = arith.addf %28, %31 : vector<2x8x1xf32>
    %33 = math.rsqrt %32 : vector<2x8x1xf32>
    %34 = vector.broadcast %33 : vector<2x8x1xf32> to vector<2x8x128xf32>
    %35 = arith.mulf %30, %34 : vector<2x8x128xf32>
    %36 = vector.shape_cast %16 : vector<1x128xf32> to vector<1x1x128xf32>
    %37 = vector.broadcast %36 : vector<1x1x128xf32> to vector<2x8x128xf32>
    %38 = arith.mulf %35, %37 : vector<2x8x128xf32>
    %39 = vector.shape_cast %17 : vector<1x128xf32> to vector<1x1x128xf32>
    %40 = vector.broadcast %39 : vector<1x1x128xf32> to vector<2x8x128xf32>
    %41 = arith.addf %38, %40 : vector<2x8x128xf32>
    %42 = vector.shape_cast %41 : vector<2x8x128xf32> to vector<16x128xf32>
    %43 = arith.truncf %42 : vector<16x128xf32> to vector<16x128xbf16>
    %c0_14 = arith.constant 0 : index
    %c0_15 = arith.constant 0 : index
    %44 = vector.load %arg4[%c0_14, %c0_15] : memref<128x1536xbf16, #tpu.memory_space<vmem>>, vector<128x1536xbf16>
    %cst_16 = arith.constant dense<0.000000e+00> : vector<16x1536xf32>
    %45 = tpu.matmul %43, %44, %cst_16 {dimension_numbers = #tpu.dot_dimension_numbers<[1], [0], [0], [1], [0, 0, 1, 1], [], []>} : vector<16x128xbf16>, vector<128x1536xbf16>, vector<16x1536xf32> -> vector<16x1536xf32>
    %46 = vector.extract_strided_slice %45 {offsets = [0, 1408], sizes = [16, 128], strides = [1, 1]} : vector<16x1536xf32> to vector<16x128xf32>
    %47 = vector.shape_cast %46 : vector<16x128xf32> to vector<2x8x128xf32>
    %cst_17 = arith.constant dense<0.000000e+00> : vector<2x128xf32>
    %48 = vector.multi_reduction <add>, %47, %cst_17 [1] : vector<2x8x128xf32> to vector<2x128xf32>
    %cst_18 = arith.constant 8.000000e+00 : f32
    %49 = vector.broadcast %cst_18 : f32 to vector<2x128xf32>
    %50 = arith.divf %48, %49 : vector<2x128xf32>
    %c0_19 = arith.constant 0 : index
    %c256 = arith.constant 256 : index
    %51 = vector.load %arg3[%c0_19, %c256] : memref<1x2432xf32, #tpu.memory_space<vmem>>, vector<1x128xf32>
    %52 = vector.broadcast %51 : vector<1x128xf32> to vector<2x128xf32>
    %53 = arith.addf %50, %52 : vector<2x128xf32>
    %54 = vector.extract_strided_slice %45 {offsets = [0, 0], sizes = [16, 1024], strides = [1, 1]} : vector<16x1536xf32> to vector<16x1024xf32>
    %c0_20 = arith.constant 0 : index
    %c1408 = arith.constant 1408 : index
    %55 = vector.load %arg3[%c0_20, %c1408] : memref<1x2432xf32, #tpu.memory_space<vmem>>, vector<1x1024xf32>
    %56 = vector.broadcast %55 : vector<1x1024xf32> to vector<16x1024xf32>
    %57 = arith.addf %54, %56 : vector<16x1024xf32>
    %58 = vector.shape_cast %57 : vector<16x1024xf32> to vector<2x8x1024xf32>
    %59 = vector.extract_strided_slice %58 {offsets = [0, 0, 0], sizes = [2, 1, 512], strides = [1, 1, 1]} : vector<2x8x1024xf32> to vector<2x1x512xf32>
    %60 = vector.shape_cast %59 : vector<2x1x512xf32> to vector<2x512xf32>
    %61 = vector.extract_strided_slice %58 {offsets = [0, 7, 512], sizes = [2, 1, 512], strides = [1, 1, 1]} : vector<2x8x1024xf32> to vector<2x1x512xf32>
    %62 = vector.shape_cast %61 : vector<2x1x512xf32> to vector<2x512xf32>
    %63 = tpu.concatenate %60, %62 in 0 : vector<2x512xf32>, vector<2x512xf32> -> vector<4x512xf32>
    %64 = vector.extract_strided_slice %58 {offsets = [0, 1, 0], sizes = [2, 1, 512], strides = [1, 1, 1]} : vector<2x8x1024xf32> to vector<2x1x512xf32>
    %65 = vector.shape_cast %64 : vector<2x1x512xf32> to vector<2x512xf32>
    %66 = vector.extract_strided_slice %58 {offsets = [0, 6, 512], sizes = [2, 1, 512], strides = [1, 1, 1]} : vector<2x8x1024xf32> to vector<2x1x512xf32>
    %67 = vector.shape_cast %66 : vector<2x1x512xf32> to vector<2x512xf32>
    %68 = tpu.concatenate %65, %67 in 0 : vector<2x512xf32>, vector<2x512xf32> -> vector<4x512xf32>
    %69 = vector.extract_strided_slice %58 {offsets = [0, 2, 0], sizes = [2, 1, 512], strides = [1, 1, 1]} : vector<2x8x1024xf32> to vector<2x1x512xf32>
    %70 = vector.shape_cast %69 : vector<2x1x512xf32> to vector<2x512xf32>
    %71 = vector.extract_strided_slice %58 {offsets = [0, 5, 512], sizes = [2, 1, 512], strides = [1, 1, 1]} : vector<2x8x1024xf32> to vector<2x1x512xf32>
    %72 = vector.shape_cast %71 : vector<2x1x512xf32> to vector<2x512xf32>
    %73 = tpu.concatenate %70, %72 in 0 : vector<2x512xf32>, vector<2x512xf32> -> vector<4x512xf32>
    %74 = vector.extract_strided_slice %58 {offsets = [0, 3, 0], sizes = [2, 1, 512], strides = [1, 1, 1]} : vector<2x8x1024xf32> to vector<2x1x512xf32>
    %75 = vector.shape_cast %74 : vector<2x1x512xf32> to vector<2x512xf32>
    %76 = vector.extract_strided_slice %58 {offsets = [0, 4, 512], sizes = [2, 1, 512], strides = [1, 1, 1]} : vector<2x8x1024xf32> to vector<2x1x512xf32>
    %77 = vector.shape_cast %76 : vector<2x1x512xf32> to vector<2x512xf32>
    %78 = tpu.concatenate %75, %77 in 0 : vector<2x512xf32>, vector<2x512xf32> -> vector<4x512xf32>
    %79 = vector.extract_strided_slice %58 {offsets = [0, 4, 0], sizes = [2, 1, 512], strides = [1, 1, 1]} : vector<2x8x1024xf32> to vector<2x1x512xf32>
    %80 = vector.shape_cast %79 : vector<2x1x512xf32> to vector<2x512xf32>
    %81 = vector.extract_strided_slice %58 {offsets = [0, 3, 512], sizes = [2, 1, 512], strides = [1, 1, 1]} : vector<2x8x1024xf32> to vector<2x1x512xf32>
    %82 = vector.shape_cast %81 : vector<2x1x512xf32> to vector<2x512xf32>
    %83 = tpu.concatenate %80, %82 in 0 : vector<2x512xf32>, vector<2x512xf32> -> vector<4x512xf32>
    %84 = vector.extract_strided_slice %58 {offsets = [0, 5, 0], sizes = [2, 1, 512], strides = [1, 1, 1]} : vector<2x8x1024xf32> to vector<2x1x512xf32>
    %85 = vector.shape_cast %84 : vector<2x1x512xf32> to vector<2x512xf32>
    %86 = vector.extract_strided_slice %58 {offsets = [0, 2, 512], sizes = [2, 1, 512], strides = [1, 1, 1]} : vector<2x8x1024xf32> to vector<2x1x512xf32>
    %87 = vector.shape_cast %86 : vector<2x1x512xf32> to vector<2x512xf32>
    %88 = tpu.concatenate %85, %87 in 0 : vector<2x512xf32>, vector<2x512xf32> -> vector<4x512xf32>
    %89 = vector.extract_strided_slice %58 {offsets = [0, 6, 0], sizes = [2, 1, 512], strides = [1, 1, 1]} : vector<2x8x1024xf32> to vector<2x1x512xf32>
    %90 = vector.shape_cast %89 : vector<2x1x512xf32> to vector<2x512xf32>
    %91 = vector.extract_strided_slice %58 {offsets = [0, 1, 512], sizes = [2, 1, 512], strides = [1, 1, 1]} : vector<2x8x1024xf32> to vector<2x1x512xf32>
    %92 = vector.shape_cast %91 : vector<2x1x512xf32> to vector<2x512xf32>
    %93 = tpu.concatenate %90, %92 in 0 : vector<2x512xf32>, vector<2x512xf32> -> vector<4x512xf32>
    %94 = vector.extract_strided_slice %58 {offsets = [0, 7, 0], sizes = [2, 1, 512], strides = [1, 1, 1]} : vector<2x8x1024xf32> to vector<2x1x512xf32>
    %95 = vector.shape_cast %94 : vector<2x1x512xf32> to vector<2x512xf32>
    %96 = vector.extract_strided_slice %58 {offsets = [0, 0, 512], sizes = [2, 1, 512], strides = [1, 1, 1]} : vector<2x8x1024xf32> to vector<2x1x512xf32>
    %97 = vector.shape_cast %96 : vector<2x1x512xf32> to vector<2x512xf32>
    %98 = tpu.concatenate %95, %97 in 0 : vector<2x512xf32>, vector<2x512xf32> -> vector<4x512xf32>
    %c0_21 = arith.constant 0 : index
    %c0_22 = arith.constant 0 : index
    %99 = vector.load %arg5[%c0_21, %c0_22] : memref<256x512xbf16, #tpu.memory_space<vmem>>, vector<256x512xbf16>
    %100 = tpu.iota {dimensions = array<i32: 0>} : vector<4x256xi32>
    %101 = tpu.iota {dimensions = array<i32: 1>} : vector<4x256xi32>
    %c2_i32_23 = arith.constant 2 : i32
    %102 = vector.broadcast %c2_i32_23 : i32 to vector<4x256xi32>
    %103 = arith.cmpi slt, %100, %102 : vector<4x256xi32>
    %c128_i32 = arith.constant 128 : i32
    %104 = vector.broadcast %c128_i32 : i32 to vector<4x256xi32>
    %105 = arith.cmpi slt, %101, %104 : vector<4x256xi32>
    %106 = arith.xori %103, %105 : vector<4x256xi1>
    %cst_24 = arith.constant dense<true> : vector<4x256xi1>
    %107 = arith.xori %106, %cst_24 : vector<4x256xi1>
    %108 = arith.extui %107 : vector<4x256xi1> to vector<4x256xi32>
    %109 = arith.sitofp %108 : vector<4x256xi32> to vector<4x256xf32>
    %cst_25 = arith.constant 0.000000e+00 : f32
    %110 = vector.broadcast %cst_25 : f32 to vector<4x128xf32>
    %cst_26 = arith.constant 0.000000e+00 : f32
    %111 = vector.broadcast %cst_26 : f32 to vector<4x128xf32>
    %112 = tpu.concatenate %110, %110 in 1 : vector<4x128xf32>, vector<4x128xf32> -> vector<4x256xf32>
    %113 = arith.mulf %112, %109 : vector<4x256xf32>
    %114 = arith.truncf %113 : vector<4x256xf32> to vector<4x256xbf16>
    %cst_27 = arith.constant dense<0.000000e+00> : vector<4x512xf32>
    %115 = tpu.matmul %114, %99, %cst_27 {dimension_numbers = #tpu.dot_dimension_numbers<[1], [0], [0], [1], [0, 0, 1, 1], [], []>} : vector<4x256xbf16>, vector<256x512xbf16>, vector<4x512xf32> -> vector<4x512xf32>
    %116 = arith.addf %63, %115 : vector<4x512xf32>
    %117 = vector.extract_strided_slice %116 {offsets = [0, 0], sizes = [4, 128], strides = [1, 1]} : vector<4x512xf32> to vector<4x128xf32>
    %118 = arith.negf %117 : vector<4x128xf32>
    %119 = math.exp %118 : vector<4x128xf32>
    %cst_28 = arith.constant 1.000000e+00 : f32
    %120 = vector.broadcast %cst_28 : f32 to vector<4x128xf32>
    %121 = arith.addf %120, %119 : vector<4x128xf32>
    %122 = arith.divf %120, %121 : vector<4x128xf32>
    %123 = vector.extract_strided_slice %116 {offsets = [0, 128], sizes = [4, 128], strides = [1, 1]} : vector<4x512xf32> to vector<4x128xf32>
    %124 = arith.negf %123 : vector<4x128xf32>
    %125 = math.exp %124 : vector<4x128xf32>
    %cst_29 = arith.constant 1.000000e+00 : f32
    %126 = vector.broadcast %cst_29 : f32 to vector<4x128xf32>
    %127 = arith.addf %126, %125 : vector<4x128xf32>
    %128 = arith.divf %126, %127 : vector<4x128xf32>
    %129 = vector.extract_strided_slice %116 {offsets = [0, 256], sizes = [4, 128], strides = [1, 1]} : vector<4x512xf32> to vector<4x128xf32>
    %130 = math.tanh %129 : vector<4x128xf32>
    %131 = vector.extract_strided_slice %116 {offsets = [0, 384], sizes = [4, 128], strides = [1, 1]} : vector<4x512xf32> to vector<4x128xf32>
    %132 = arith.negf %131 : vector<4x128xf32>
    %133 = math.exp %132 : vector<4x128xf32>
    %cst_30 = arith.constant 1.000000e+00 : f32
    %134 = vector.broadcast %cst_30 : f32 to vector<4x128xf32>
    %135 = arith.addf %134, %133 : vector<4x128xf32>
    %136 = arith.divf %134, %135 : vector<4x128xf32>
    %137 = arith.mulf %128, %111 : vector<4x128xf32>
    %138 = arith.mulf %122, %130 : vector<4x128xf32>
    %139 = arith.addf %137, %138 : vector<4x128xf32>
    %140 = math.tanh %139 : vector<4x128xf32>
    %141 = arith.mulf %136, %140 : vector<4x128xf32>
    %142 = tpu.concatenate %141, %141 in 1 : vector<4x128xf32>, vector<4x128xf32> -> vector<4x256xf32>
    %143 = arith.mulf %142, %109 : vector<4x256xf32>
    %144 = arith.truncf %143 : vector<4x256xf32> to vector<4x256xbf16>
    %cst_31 = arith.constant dense<0.000000e+00> : vector<4x512xf32>
    %145 = tpu.matmul %144, %99, %cst_31 {dimension_numbers = #tpu.dot_dimension_numbers<[1], [0], [0], [1], [0, 0, 1, 1], [], []>} : vector<4x256xbf16>, vector<256x512xbf16>, vector<4x512xf32> -> vector<4x512xf32>
    %146 = arith.addf %68, %145 : vector<4x512xf32>
    %147 = vector.extract_strided_slice %146 {offsets = [0, 0], sizes = [4, 128], strides = [1, 1]} : vector<4x512xf32> to vector<4x128xf32>
    %148 = arith.negf %147 : vector<4x128xf32>
    %149 = math.exp %148 : vector<4x128xf32>
    %cst_32 = arith.constant 1.000000e+00 : f32
    %150 = vector.broadcast %cst_32 : f32 to vector<4x128xf32>
    %151 = arith.addf %150, %149 : vector<4x128xf32>
    %152 = arith.divf %150, %151 : vector<4x128xf32>
    %153 = vector.extract_strided_slice %146 {offsets = [0, 128], sizes = [4, 128], strides = [1, 1]} : vector<4x512xf32> to vector<4x128xf32>
    %154 = arith.negf %153 : vector<4x128xf32>
    %155 = math.exp %154 : vector<4x128xf32>
    %cst_33 = arith.constant 1.000000e+00 : f32
    %156 = vector.broadcast %cst_33 : f32 to vector<4x128xf32>
    %157 = arith.addf %156, %155 : vector<4x128xf32>
    %158 = arith.divf %156, %157 : vector<4x128xf32>
    %159 = vector.extract_strided_slice %146 {offsets = [0, 256], sizes = [4, 128], strides = [1, 1]} : vector<4x512xf32> to vector<4x128xf32>
    %160 = math.tanh %159 : vector<4x128xf32>
    %161 = vector.extract_strided_slice %146 {offsets = [0, 384], sizes = [4, 128], strides = [1, 1]} : vector<4x512xf32> to vector<4x128xf32>
    %162 = arith.negf %161 : vector<4x128xf32>
    %163 = math.exp %162 : vector<4x128xf32>
    %cst_34 = arith.constant 1.000000e+00 : f32
    %164 = vector.broadcast %cst_34 : f32 to vector<4x128xf32>
    %165 = arith.addf %164, %163 : vector<4x128xf32>
    %166 = arith.divf %164, %165 : vector<4x128xf32>
    %167 = arith.mulf %158, %139 : vector<4x128xf32>
    %168 = arith.mulf %152, %160 : vector<4x128xf32>
    %169 = arith.addf %167, %168 : vector<4x128xf32>
    %170 = math.tanh %169 : vector<4x128xf32>
    %171 = arith.mulf %166, %170 : vector<4x128xf32>
    %172 = tpu.concatenate %171, %171 in 1 : vector<4x128xf32>, vector<4x128xf32> -> vector<4x256xf32>
    %173 = arith.mulf %172, %109 : vector<4x256xf32>
    %174 = arith.truncf %173 : vector<4x256xf32> to vector<4x256xbf16>
    %cst_35 = arith.constant dense<0.000000e+00> : vector<4x512xf32>
    %175 = tpu.matmul %174, %99, %cst_35 {dimension_numbers = #tpu.dot_dimension_numbers<[1], [0], [0], [1], [0, 0, 1, 1], [], []>} : vector<4x256xbf16>, vector<256x512xbf16>, vector<4x512xf32> -> vector<4x512xf32>
    %176 = arith.addf %73, %175 : vector<4x512xf32>
    %177 = vector.extract_strided_slice %176 {offsets = [0, 0], sizes = [4, 128], strides = [1, 1]} : vector<4x512xf32> to vector<4x128xf32>
    %178 = arith.negf %177 : vector<4x128xf32>
    %179 = math.exp %178 : vector<4x128xf32>
    %cst_36 = arith.constant 1.000000e+00 : f32
    %180 = vector.broadcast %cst_36 : f32 to vector<4x128xf32>
    %181 = arith.addf %180, %179 : vector<4x128xf32>
    %182 = arith.divf %180, %181 : vector<4x128xf32>
    %183 = vector.extract_strided_slice %176 {offsets = [0, 128], sizes = [4, 128], strides = [1, 1]} : vector<4x512xf32> to vector<4x128xf32>
    %184 = arith.negf %183 : vector<4x128xf32>
    %185 = math.exp %184 : vector<4x128xf32>
    %cst_37 = arith.constant 1.000000e+00 : f32
    %186 = vector.broadcast %cst_37 : f32 to vector<4x128xf32>
    %187 = arith.addf %186, %185 : vector<4x128xf32>
    %188 = arith.divf %186, %187 : vector<4x128xf32>
    %189 = vector.extract_strided_slice %176 {offsets = [0, 256], sizes = [4, 128], strides = [1, 1]} : vector<4x512xf32> to vector<4x128xf32>
    %190 = math.tanh %189 : vector<4x128xf32>
    %191 = vector.extract_strided_slice %176 {offsets = [0, 384], sizes = [4, 128], strides = [1, 1]} : vector<4x512xf32> to vector<4x128xf32>
    %192 = arith.negf %191 : vector<4x128xf32>
    %193 = math.exp %192 : vector<4x128xf32>
    %cst_38 = arith.constant 1.000000e+00 : f32
    %194 = vector.broadcast %cst_38 : f32 to vector<4x128xf32>
    %195 = arith.addf %194, %193 : vector<4x128xf32>
    %196 = arith.divf %194, %195 : vector<4x128xf32>
    %197 = arith.mulf %188, %169 : vector<4x128xf32>
    %198 = arith.mulf %182, %190 : vector<4x128xf32>
    %199 = arith.addf %197, %198 : vector<4x128xf32>
    %200 = math.tanh %199 : vector<4x128xf32>
    %201 = arith.mulf %196, %200 : vector<4x128xf32>
    %202 = tpu.concatenate %201, %201 in 1 : vector<4x128xf32>, vector<4x128xf32> -> vector<4x256xf32>
    %203 = arith.mulf %202, %109 : vector<4x256xf32>
    %204 = arith.truncf %203 : vector<4x256xf32> to vector<4x256xbf16>
    %cst_39 = arith.constant dense<0.000000e+00> : vector<4x512xf32>
    %205 = tpu.matmul %204, %99, %cst_39 {dimension_numbers = #tpu.dot_dimension_numbers<[1], [0], [0], [1], [0, 0, 1, 1], [], []>} : vector<4x256xbf16>, vector<256x512xbf16>, vector<4x512xf32> -> vector<4x512xf32>
    %206 = arith.addf %78, %205 : vector<4x512xf32>
    %207 = vector.extract_strided_slice %206 {offsets = [0, 0], sizes = [4, 128], strides = [1, 1]} : vector<4x512xf32> to vector<4x128xf32>
    %208 = arith.negf %207 : vector<4x128xf32>
    %209 = math.exp %208 : vector<4x128xf32>
    %cst_40 = arith.constant 1.000000e+00 : f32
    %210 = vector.broadcast %cst_40 : f32 to vector<4x128xf32>
    %211 = arith.addf %210, %209 : vector<4x128xf32>
    %212 = arith.divf %210, %211 : vector<4x128xf32>
    %213 = vector.extract_strided_slice %206 {offsets = [0, 128], sizes = [4, 128], strides = [1, 1]} : vector<4x512xf32> to vector<4x128xf32>
    %214 = arith.negf %213 : vector<4x128xf32>
    %215 = math.exp %214 : vector<4x128xf32>
    %cst_41 = arith.constant 1.000000e+00 : f32
    %216 = vector.broadcast %cst_41 : f32 to vector<4x128xf32>
    %217 = arith.addf %216, %215 : vector<4x128xf32>
    %218 = arith.divf %216, %217 : vector<4x128xf32>
    %219 = vector.extract_strided_slice %206 {offsets = [0, 256], sizes = [4, 128], strides = [1, 1]} : vector<4x512xf32> to vector<4x128xf32>
    %220 = math.tanh %219 : vector<4x128xf32>
    %221 = vector.extract_strided_slice %206 {offsets = [0, 384], sizes = [4, 128], strides = [1, 1]} : vector<4x512xf32> to vector<4x128xf32>
    %222 = arith.negf %221 : vector<4x128xf32>
    %223 = math.exp %222 : vector<4x128xf32>
    %cst_42 = arith.constant 1.000000e+00 : f32
    %224 = vector.broadcast %cst_42 : f32 to vector<4x128xf32>
    %225 = arith.addf %224, %223 : vector<4x128xf32>
    %226 = arith.divf %224, %225 : vector<4x128xf32>
    %227 = arith.mulf %218, %199 : vector<4x128xf32>
    %228 = arith.mulf %212, %220 : vector<4x128xf32>
    %229 = arith.addf %227, %228 : vector<4x128xf32>
    %230 = math.tanh %229 : vector<4x128xf32>
    %231 = arith.mulf %226, %230 : vector<4x128xf32>
    %232 = tpu.concatenate %231, %231 in 1 : vector<4x128xf32>, vector<4x128xf32> -> vector<4x256xf32>
    %233 = arith.mulf %232, %109 : vector<4x256xf32>
    %234 = arith.truncf %233 : vector<4x256xf32> to vector<4x256xbf16>
    %cst_43 = arith.constant dense<0.000000e+00> : vector<4x512xf32>
    %235 = tpu.matmul %234, %99, %cst_43 {dimension_numbers = #tpu.dot_dimension_numbers<[1], [0], [0], [1], [0, 0, 1, 1], [], []>} : vector<4x256xbf16>, vector<256x512xbf16>, vector<4x512xf32> -> vector<4x512xf32>
    %236 = arith.addf %83, %235 : vector<4x512xf32>
    %237 = vector.extract_strided_slice %236 {offsets = [0, 0], sizes = [4, 128], strides = [1, 1]} : vector<4x512xf32> to vector<4x128xf32>
    %238 = arith.negf %237 : vector<4x128xf32>
    %239 = math.exp %238 : vector<4x128xf32>
    %cst_44 = arith.constant 1.000000e+00 : f32
    %240 = vector.broadcast %cst_44 : f32 to vector<4x128xf32>
    %241 = arith.addf %240, %239 : vector<4x128xf32>
    %242 = arith.divf %240, %241 : vector<4x128xf32>
    %243 = vector.extract_strided_slice %236 {offsets = [0, 128], sizes = [4, 128], strides = [1, 1]} : vector<4x512xf32> to vector<4x128xf32>
    %244 = arith.negf %243 : vector<4x128xf32>
    %245 = math.exp %244 : vector<4x128xf32>
    %cst_45 = arith.constant 1.000000e+00 : f32
    %246 = vector.broadcast %cst_45 : f32 to vector<4x128xf32>
    %247 = arith.addf %246, %245 : vector<4x128xf32>
    %248 = arith.divf %246, %247 : vector<4x128xf32>
    %249 = vector.extract_strided_slice %236 {offsets = [0, 256], sizes = [4, 128], strides = [1, 1]} : vector<4x512xf32> to vector<4x128xf32>
    %250 = math.tanh %249 : vector<4x128xf32>
    %251 = vector.extract_strided_slice %236 {offsets = [0, 384], sizes = [4, 128], strides = [1, 1]} : vector<4x512xf32> to vector<4x128xf32>
    %252 = arith.negf %251 : vector<4x128xf32>
    %253 = math.exp %252 : vector<4x128xf32>
    %cst_46 = arith.constant 1.000000e+00 : f32
    %254 = vector.broadcast %cst_46 : f32 to vector<4x128xf32>
    %255 = arith.addf %254, %253 : vector<4x128xf32>
    %256 = arith.divf %254, %255 : vector<4x128xf32>
    %257 = arith.mulf %248, %229 : vector<4x128xf32>
    %258 = arith.mulf %242, %250 : vector<4x128xf32>
    %259 = arith.addf %257, %258 : vector<4x128xf32>
    %260 = math.tanh %259 : vector<4x128xf32>
    %261 = arith.mulf %256, %260 : vector<4x128xf32>
    %262 = tpu.concatenate %261, %261 in 1 : vector<4x128xf32>, vector<4x128xf32> -> vector<4x256xf32>
    %263 = arith.mulf %262, %109 : vector<4x256xf32>
    %264 = arith.truncf %263 : vector<4x256xf32> to vector<4x256xbf16>
    %cst_47 = arith.constant dense<0.000000e+00> : vector<4x512xf32>
    %265 = tpu.matmul %264, %99, %cst_47 {dimension_numbers = #tpu.dot_dimension_numbers<[1], [0], [0], [1], [0, 0, 1, 1], [], []>} : vector<4x256xbf16>, vector<256x512xbf16>, vector<4x512xf32> -> vector<4x512xf32>
    %266 = arith.addf %88, %265 : vector<4x512xf32>
    %267 = vector.extract_strided_slice %266 {offsets = [0, 0], sizes = [4, 128], strides = [1, 1]} : vector<4x512xf32> to vector<4x128xf32>
    %268 = arith.negf %267 : vector<4x128xf32>
    %269 = math.exp %268 : vector<4x128xf32>
    %cst_48 = arith.constant 1.000000e+00 : f32
    %270 = vector.broadcast %cst_48 : f32 to vector<4x128xf32>
    %271 = arith.addf %270, %269 : vector<4x128xf32>
    %272 = arith.divf %270, %271 : vector<4x128xf32>
    %273 = vector.extract_strided_slice %266 {offsets = [0, 128], sizes = [4, 128], strides = [1, 1]} : vector<4x512xf32> to vector<4x128xf32>
    %274 = arith.negf %273 : vector<4x128xf32>
    %275 = math.exp %274 : vector<4x128xf32>
    %cst_49 = arith.constant 1.000000e+00 : f32
    %276 = vector.broadcast %cst_49 : f32 to vector<4x128xf32>
    %277 = arith.addf %276, %275 : vector<4x128xf32>
    %278 = arith.divf %276, %277 : vector<4x128xf32>
    %279 = vector.extract_strided_slice %266 {offsets = [0, 256], sizes = [4, 128], strides = [1, 1]} : vector<4x512xf32> to vector<4x128xf32>
    %280 = math.tanh %279 : vector<4x128xf32>
    %281 = vector.extract_strided_slice %266 {offsets = [0, 384], sizes = [4, 128], strides = [1, 1]} : vector<4x512xf32> to vector<4x128xf32>
    %282 = arith.negf %281 : vector<4x128xf32>
    %283 = math.exp %282 : vector<4x128xf32>
    %cst_50 = arith.constant 1.000000e+00 : f32
    %284 = vector.broadcast %cst_50 : f32 to vector<4x128xf32>
    %285 = arith.addf %284, %283 : vector<4x128xf32>
    %286 = arith.divf %284, %285 : vector<4x128xf32>
    %287 = arith.mulf %278, %259 : vector<4x128xf32>
    %288 = arith.mulf %272, %280 : vector<4x128xf32>
    %289 = arith.addf %287, %288 : vector<4x128xf32>
    %290 = math.tanh %289 : vector<4x128xf32>
    %291 = arith.mulf %286, %290 : vector<4x128xf32>
    %292 = tpu.concatenate %291, %291 in 1 : vector<4x128xf32>, vector<4x128xf32> -> vector<4x256xf32>
    %293 = arith.mulf %292, %109 : vector<4x256xf32>
    %294 = arith.truncf %293 : vector<4x256xf32> to vector<4x256xbf16>
    %cst_51 = arith.constant dense<0.000000e+00> : vector<4x512xf32>
    %295 = tpu.matmul %294, %99, %cst_51 {dimension_numbers = #tpu.dot_dimension_numbers<[1], [0], [0], [1], [0, 0, 1, 1], [], []>} : vector<4x256xbf16>, vector<256x512xbf16>, vector<4x512xf32> -> vector<4x512xf32>
    %296 = arith.addf %93, %295 : vector<4x512xf32>
    %297 = vector.extract_strided_slice %296 {offsets = [0, 0], sizes = [4, 128], strides = [1, 1]} : vector<4x512xf32> to vector<4x128xf32>
    %298 = arith.negf %297 : vector<4x128xf32>
    %299 = math.exp %298 : vector<4x128xf32>
    %cst_52 = arith.constant 1.000000e+00 : f32
    %300 = vector.broadcast %cst_52 : f32 to vector<4x128xf32>
    %301 = arith.addf %300, %299 : vector<4x128xf32>
    %302 = arith.divf %300, %301 : vector<4x128xf32>
    %303 = vector.extract_strided_slice %296 {offsets = [0, 128], sizes = [4, 128], strides = [1, 1]} : vector<4x512xf32> to vector<4x128xf32>
    %304 = arith.negf %303 : vector<4x128xf32>
    %305 = math.exp %304 : vector<4x128xf32>
    %cst_53 = arith.constant 1.000000e+00 : f32
    %306 = vector.broadcast %cst_53 : f32 to vector<4x128xf32>
    %307 = arith.addf %306, %305 : vector<4x128xf32>
    %308 = arith.divf %306, %307 : vector<4x128xf32>
    %309 = vector.extract_strided_slice %296 {offsets = [0, 256], sizes = [4, 128], strides = [1, 1]} : vector<4x512xf32> to vector<4x128xf32>
    %310 = math.tanh %309 : vector<4x128xf32>
    %311 = vector.extract_strided_slice %296 {offsets = [0, 384], sizes = [4, 128], strides = [1, 1]} : vector<4x512xf32> to vector<4x128xf32>
    %312 = arith.negf %311 : vector<4x128xf32>
    %313 = math.exp %312 : vector<4x128xf32>
    %cst_54 = arith.constant 1.000000e+00 : f32
    %314 = vector.broadcast %cst_54 : f32 to vector<4x128xf32>
    %315 = arith.addf %314, %313 : vector<4x128xf32>
    %316 = arith.divf %314, %315 : vector<4x128xf32>
    %317 = arith.mulf %308, %289 : vector<4x128xf32>
    %318 = arith.mulf %302, %310 : vector<4x128xf32>
    %319 = arith.addf %317, %318 : vector<4x128xf32>
    %320 = math.tanh %319 : vector<4x128xf32>
    %321 = arith.mulf %316, %320 : vector<4x128xf32>
    %322 = tpu.concatenate %321, %321 in 1 : vector<4x128xf32>, vector<4x128xf32> -> vector<4x256xf32>
    %323 = arith.mulf %322, %109 : vector<4x256xf32>
    %324 = arith.truncf %323 : vector<4x256xf32> to vector<4x256xbf16>
    %cst_55 = arith.constant dense<0.000000e+00> : vector<4x512xf32>
    %325 = tpu.matmul %324, %99, %cst_55 {dimension_numbers = #tpu.dot_dimension_numbers<[1], [0], [0], [1], [0, 0, 1, 1], [], []>} : vector<4x256xbf16>, vector<256x512xbf16>, vector<4x512xf32> -> vector<4x512xf32>
    %326 = arith.addf %98, %325 : vector<4x512xf32>
    %327 = vector.extract_strided_slice %326 {offsets = [0, 0], sizes = [4, 128], strides = [1, 1]} : vector<4x512xf32> to vector<4x128xf32>
    %328 = arith.negf %327 : vector<4x128xf32>
    %329 = math.exp %328 : vector<4x128xf32>
    %cst_56 = arith.constant 1.000000e+00 : f32
    %330 = vector.broadcast %cst_56 : f32 to vector<4x128xf32>
    %331 = arith.addf %330, %329 : vector<4x128xf32>
    %332 = arith.divf %330, %331 : vector<4x128xf32>
    %333 = vector.extract_strided_slice %326 {offsets = [0, 128], sizes = [4, 128], strides = [1, 1]} : vector<4x512xf32> to vector<4x128xf32>
    %334 = arith.negf %333 : vector<4x128xf32>
    %335 = math.exp %334 : vector<4x128xf32>
    %cst_57 = arith.constant 1.000000e+00 : f32
    %336 = vector.broadcast %cst_57 : f32 to vector<4x128xf32>
    %337 = arith.addf %336, %335 : vector<4x128xf32>
    %338 = arith.divf %336, %337 : vector<4x128xf32>
    %339 = vector.extract_strided_slice %326 {offsets = [0, 256], sizes = [4, 128], strides = [1, 1]} : vector<4x512xf32> to vector<4x128xf32>
    %340 = math.tanh %339 : vector<4x128xf32>
    %341 = arith.mulf %338, %319 : vector<4x128xf32>
    %342 = arith.mulf %332, %340 : vector<4x128xf32>
    %343 = arith.addf %341, %342 : vector<4x128xf32>
    %344 = vector.extract_strided_slice %343 {offsets = [0, 0], sizes = [2, 128], strides = [1, 1]} : vector<4x128xf32> to vector<2x128xf32>
    %345 = vector.extract_strided_slice %343 {offsets = [2, 0], sizes = [2, 128], strides = [1, 1]} : vector<4x128xf32> to vector<2x128xf32>
    %346 = tpu.concatenate %344, %345 in 1 : vector<2x128xf32>, vector<2x128xf32> -> vector<2x256xf32>
    %347 = tpu.iota {dimensions = array<i32: 0>} : vector<16x128xi32>
    %c8_i32 = arith.constant 8 : i32
    %c0_i32_58 = arith.constant 0 : i32
    %348 = arith.cmpi eq, %c8_i32, %c0_i32_58 : i32
    %c1_i32_59 = arith.constant 1 : i32
    %349 = arith.select %348, %c1_i32_59, %c8_i32 : i32
    %350 = vector.broadcast %349 : i32 to vector<16x128xi32>
    %351 = arith.remsi %347, %350 : vector<16x128xi32>
    %c0_i32_60 = arith.constant 0 : i32
    %352 = vector.broadcast %c0_i32_60 : i32 to vector<16x128xi32>
    %353 = arith.cmpi ne, %351, %352 : vector<16x128xi32>
    %c0_i32_61 = arith.constant 0 : i32
    %354 = vector.broadcast %c0_i32_61 : i32 to vector<16x128xi32>
    %355 = arith.cmpi slt, %351, %354 : vector<16x128xi32>
    %c0_i32_62 = arith.constant 0 : i32
    %356 = arith.cmpi slt, %349, %c0_i32_62 : i32
    %357 = vector.broadcast %356 : i1 to vector<16x128xi1>
    %358 = vector.broadcast %357 : vector<16x128xi1> to vector<16x128xi1>
    %359 = arith.xori %355, %358 : vector<16x128xi1>
    %360 = arith.andi %359, %353 : vector<16x128xi1>
    %361 = vector.broadcast %349 : i32 to vector<16x128xi32>
    %362 = arith.addi %351, %361 : vector<16x128xi32>
    %363 = arith.select %360, %362, %351 : vector<16x128xi1>, vector<16x128xi32>
    %cst_63 = arith.constant 0.000000e+00 : f32
    %364 = vector.broadcast %cst_63 : f32 to vector<16x128xf32>
    %365 = vector.extract_strided_slice %45 {offsets = [0, 1024], sizes = [16, 128], strides = [1, 1]} : vector<16x1536xf32> to vector<16x128xf32>
    %cst_64 = arith.constant 0.000000e+00 : f32
    %366 = vector.broadcast %cst_64 : f32 to vector<1x128xf32>
    %367 = vector.extract_strided_slice %365 {offsets = [0, 0], sizes = [15, 128], strides = [1, 1]} : vector<16x128xf32> to vector<15x128xf32>
    %368 = tpu.concatenate %366, %367 in 0 : vector<1x128xf32>, vector<15x128xf32> -> vector<16x128xf32>
    %c1_i32_65 = arith.constant 1 : i32
    %369 = vector.broadcast %c1_i32_65 : i32 to vector<16x128xi32>
    %370 = arith.cmpi sge, %363, %369 : vector<16x128xi32>
    %cst_66 = arith.constant 0.000000e+00 : f32
    %371 = vector.broadcast %cst_66 : f32 to vector<16x128xf32>
    %372 = arith.select %370, %368, %371 : vector<16x128xi1>, vector<16x128xf32>
    %373 = arith.addf %364, %372 : vector<16x128xf32>
    %374 = vector.extract_strided_slice %45 {offsets = [0, 1152], sizes = [16, 128], strides = [1, 1]} : vector<16x1536xf32> to vector<16x128xf32>
    %375 = arith.addf %373, %374 : vector<16x128xf32>
    %376 = vector.extract_strided_slice %45 {offsets = [0, 1280], sizes = [16, 128], strides = [1, 1]} : vector<16x1536xf32> to vector<16x128xf32>
    %377 = vector.extract_strided_slice %376 {offsets = [1, 0], sizes = [15, 128], strides = [1, 1]} : vector<16x128xf32> to vector<15x128xf32>
    %cst_67 = arith.constant 0.000000e+00 : f32
    %378 = vector.broadcast %cst_67 : f32 to vector<1x128xf32>
    %379 = tpu.concatenate %377, %378 in 0 : vector<15x128xf32>, vector<1x128xf32> -> vector<16x128xf32>
    %c6_i32 = arith.constant 6 : i32
    %380 = vector.broadcast %c6_i32 : i32 to vector<16x128xi32>
    %381 = arith.cmpi sle, %363, %380 : vector<16x128xi32>
    %cst_68 = arith.constant 0.000000e+00 : f32
    %382 = vector.broadcast %cst_68 : f32 to vector<16x128xf32>
    %383 = arith.select %381, %379, %382 : vector<16x128xi1>, vector<16x128xf32>
    %384 = arith.addf %375, %383 : vector<16x128xf32>
    %c0_69 = arith.constant 0 : index
    %c384 = arith.constant 384 : index
    %385 = vector.load %arg3[%c0_69, %c384] : memref<1x2432xf32, #tpu.memory_space<vmem>>, vector<1x128xf32>
    %386 = vector.broadcast %385 : vector<1x128xf32> to vector<16x128xf32>
    %387 = arith.addf %384, %386 : vector<16x128xf32>
    %388 = vector.shape_cast %387 : vector<16x128xf32> to vector<2x8x128xf32>
    %389 = tpu.iota {dimensions = array<i32: 1>} : vector<2x8x128xi32>
    %cst_70 = arith.constant 0.000000e+00 : f32
    %390 = vector.broadcast %cst_70 : f32 to vector<2x8x128xf32>
    %391 = vector.extract_strided_slice %388 {offsets = [0, 0, 0], sizes = [2, 1, 128], strides = [1, 1, 1]} : vector<2x8x128xf32> to vector<2x1x128xf32>
    %392 = vector.broadcast %391 : vector<2x1x128xf32> to vector<2x8x128xf32>
    %393 = arith.cmpf ogt, %392, %388 : vector<2x8x128xf32>
    %394 = vector.broadcast %391 : vector<2x1x128xf32> to vector<2x8x128xf32>
    %395 = arith.cmpf oeq, %394, %388 : vector<2x8x128xf32>
    %c0_i32_71 = arith.constant 0 : i32
    %396 = vector.broadcast %c0_i32_71 : i32 to vector<2x8x128xi32>
    %397 = arith.cmpi sgt, %389, %396 : vector<2x8x128xi32>
    %398 = arith.andi %395, %397 : vector<2x8x128xi1>
    %399 = arith.ori %393, %398 : vector<2x8x128xi1>
    %400 = arith.extui %399 : vector<2x8x128xi1> to vector<2x8x128xi32>
    %401 = arith.sitofp %400 : vector<2x8x128xi32> to vector<2x8x128xf32>
    %402 = arith.addf %390, %401 : vector<2x8x128xf32>
    %403 = vector.extract_strided_slice %388 {offsets = [0, 1, 0], sizes = [2, 1, 128], strides = [1, 1, 1]} : vector<2x8x128xf32> to vector<2x1x128xf32>
    %404 = vector.broadcast %403 : vector<2x1x128xf32> to vector<2x8x128xf32>
    %405 = arith.cmpf ogt, %404, %388 : vector<2x8x128xf32>
    %406 = vector.broadcast %403 : vector<2x1x128xf32> to vector<2x8x128xf32>
    %407 = arith.cmpf oeq, %406, %388 : vector<2x8x128xf32>
    %c1_i32_72 = arith.constant 1 : i32
    %408 = vector.broadcast %c1_i32_72 : i32 to vector<2x8x128xi32>
    %409 = arith.cmpi sgt, %389, %408 : vector<2x8x128xi32>
    %410 = arith.andi %407, %409 : vector<2x8x128xi1>
    %411 = arith.ori %405, %410 : vector<2x8x128xi1>
    %412 = arith.extui %411 : vector<2x8x128xi1> to vector<2x8x128xi32>
    %413 = arith.sitofp %412 : vector<2x8x128xi32> to vector<2x8x128xf32>
    %414 = arith.addf %402, %413 : vector<2x8x128xf32>
    %415 = vector.extract_strided_slice %388 {offsets = [0, 2, 0], sizes = [2, 1, 128], strides = [1, 1, 1]} : vector<2x8x128xf32> to vector<2x1x128xf32>
    %416 = vector.broadcast %415 : vector<2x1x128xf32> to vector<2x8x128xf32>
    %417 = arith.cmpf ogt, %416, %388 : vector<2x8x128xf32>
    %418 = vector.broadcast %415 : vector<2x1x128xf32> to vector<2x8x128xf32>
    %419 = arith.cmpf oeq, %418, %388 : vector<2x8x128xf32>
    %c2_i32_73 = arith.constant 2 : i32
    %420 = vector.broadcast %c2_i32_73 : i32 to vector<2x8x128xi32>
    %421 = arith.cmpi sgt, %389, %420 : vector<2x8x128xi32>
    %422 = arith.andi %419, %421 : vector<2x8x128xi1>
    %423 = arith.ori %417, %422 : vector<2x8x128xi1>
    %424 = arith.extui %423 : vector<2x8x128xi1> to vector<2x8x128xi32>
    %425 = arith.sitofp %424 : vector<2x8x128xi32> to vector<2x8x128xf32>
    %426 = arith.addf %414, %425 : vector<2x8x128xf32>
    %427 = vector.extract_strided_slice %388 {offsets = [0, 3, 0], sizes = [2, 1, 128], strides = [1, 1, 1]} : vector<2x8x128xf32> to vector<2x1x128xf32>
    %428 = vector.broadcast %427 : vector<2x1x128xf32> to vector<2x8x128xf32>
    %429 = arith.cmpf ogt, %428, %388 : vector<2x8x128xf32>
    %430 = vector.broadcast %427 : vector<2x1x128xf32> to vector<2x8x128xf32>
    %431 = arith.cmpf oeq, %430, %388 : vector<2x8x128xf32>
    %c3_i32 = arith.constant 3 : i32
    %432 = vector.broadcast %c3_i32 : i32 to vector<2x8x128xi32>
    %433 = arith.cmpi sgt, %389, %432 : vector<2x8x128xi32>
    %434 = arith.andi %431, %433 : vector<2x8x128xi1>
    %435 = arith.ori %429, %434 : vector<2x8x128xi1>
    %436 = arith.extui %435 : vector<2x8x128xi1> to vector<2x8x128xi32>
    %437 = arith.sitofp %436 : vector<2x8x128xi32> to vector<2x8x128xf32>
    %438 = arith.addf %426, %437 : vector<2x8x128xf32>
    %439 = vector.extract_strided_slice %388 {offsets = [0, 4, 0], sizes = [2, 1, 128], strides = [1, 1, 1]} : vector<2x8x128xf32> to vector<2x1x128xf32>
    %440 = vector.broadcast %439 : vector<2x1x128xf32> to vector<2x8x128xf32>
    %441 = arith.cmpf ogt, %440, %388 : vector<2x8x128xf32>
    %442 = vector.broadcast %439 : vector<2x1x128xf32> to vector<2x8x128xf32>
    %443 = arith.cmpf oeq, %442, %388 : vector<2x8x128xf32>
    %c4_i32 = arith.constant 4 : i32
    %444 = vector.broadcast %c4_i32 : i32 to vector<2x8x128xi32>
    %445 = arith.cmpi sgt, %389, %444 : vector<2x8x128xi32>
    %446 = arith.andi %443, %445 : vector<2x8x128xi1>
    %447 = arith.ori %441, %446 : vector<2x8x128xi1>
    %448 = arith.extui %447 : vector<2x8x128xi1> to vector<2x8x128xi32>
    %449 = arith.sitofp %448 : vector<2x8x128xi32> to vector<2x8x128xf32>
    %450 = arith.addf %438, %449 : vector<2x8x128xf32>
    %451 = vector.extract_strided_slice %388 {offsets = [0, 5, 0], sizes = [2, 1, 128], strides = [1, 1, 1]} : vector<2x8x128xf32> to vector<2x1x128xf32>
    %452 = vector.broadcast %451 : vector<2x1x128xf32> to vector<2x8x128xf32>
    %453 = arith.cmpf ogt, %452, %388 : vector<2x8x128xf32>
    %454 = vector.broadcast %451 : vector<2x1x128xf32> to vector<2x8x128xf32>
    %455 = arith.cmpf oeq, %454, %388 : vector<2x8x128xf32>
    %c5_i32 = arith.constant 5 : i32
    %456 = vector.broadcast %c5_i32 : i32 to vector<2x8x128xi32>
    %457 = arith.cmpi sgt, %389, %456 : vector<2x8x128xi32>
    %458 = arith.andi %455, %457 : vector<2x8x128xi1>
    %459 = arith.ori %453, %458 : vector<2x8x128xi1>
    %460 = arith.extui %459 : vector<2x8x128xi1> to vector<2x8x128xi32>
    %461 = arith.sitofp %460 : vector<2x8x128xi32> to vector<2x8x128xf32>
    %462 = arith.addf %450, %461 : vector<2x8x128xf32>
    %463 = vector.extract_strided_slice %388 {offsets = [0, 6, 0], sizes = [2, 1, 128], strides = [1, 1, 1]} : vector<2x8x128xf32> to vector<2x1x128xf32>
    %464 = vector.broadcast %463 : vector<2x1x128xf32> to vector<2x8x128xf32>
    %465 = arith.cmpf ogt, %464, %388 : vector<2x8x128xf32>
    %466 = vector.broadcast %463 : vector<2x1x128xf32> to vector<2x8x128xf32>
    %467 = arith.cmpf oeq, %466, %388 : vector<2x8x128xf32>
    %c6_i32_74 = arith.constant 6 : i32
    %468 = vector.broadcast %c6_i32_74 : i32 to vector<2x8x128xi32>
    %469 = arith.cmpi sgt, %389, %468 : vector<2x8x128xi32>
    %470 = arith.andi %467, %469 : vector<2x8x128xi1>
    %471 = arith.ori %465, %470 : vector<2x8x128xi1>
    %472 = arith.extui %471 : vector<2x8x128xi1> to vector<2x8x128xi32>
    %473 = arith.sitofp %472 : vector<2x8x128xi32> to vector<2x8x128xf32>
    %474 = arith.addf %462, %473 : vector<2x8x128xf32>
    %475 = vector.extract_strided_slice %388 {offsets = [0, 7, 0], sizes = [2, 1, 128], strides = [1, 1, 1]} : vector<2x8x128xf32> to vector<2x1x128xf32>
    %476 = vector.broadcast %475 : vector<2x1x128xf32> to vector<2x8x128xf32>
    %477 = arith.cmpf ogt, %476, %388 : vector<2x8x128xf32>
    %478 = vector.broadcast %475 : vector<2x1x128xf32> to vector<2x8x128xf32>
    %479 = arith.cmpf oeq, %478, %388 : vector<2x8x128xf32>
    %c7_i32 = arith.constant 7 : i32
    %480 = vector.broadcast %c7_i32 : i32 to vector<2x8x128xi32>
    %481 = arith.cmpi sgt, %389, %480 : vector<2x8x128xi32>
    %482 = arith.andi %479, %481 : vector<2x8x128xi1>
    %483 = arith.ori %477, %482 : vector<2x8x128xi1>
    %484 = arith.extui %483 : vector<2x8x128xi1> to vector<2x8x128xi32>
    %485 = arith.sitofp %484 : vector<2x8x128xi32> to vector<2x8x128xf32>
    %486 = arith.addf %474, %485 : vector<2x8x128xf32>
    %cst_75 = arith.constant 5.000000e+00 : f32
    %487 = vector.broadcast %cst_75 : f32 to vector<2x8x128xf32>
    %488 = arith.cmpf olt, %486, %487 : vector<2x8x128xf32>
    %489 = arith.extui %488 : vector<2x8x128xi1> to vector<2x8x128xi32>
    %490 = arith.sitofp %489 : vector<2x8x128xi32> to vector<2x8x128xf32>
    %491 = arith.mulf %388, %490 : vector<2x8x128xf32>
    %cst_76 = arith.constant 0.000000e+00 : f32
    %492 = vector.broadcast %cst_76 : f32 to vector<2x1x128xf32>
    %493 = vector.extract_strided_slice %490 {offsets = [0, 0, 0], sizes = [2, 1, 128], strides = [1, 1, 1]} : vector<2x8x128xf32> to vector<2x1x128xf32>
    %494 = arith.addf %492, %493 : vector<2x1x128xf32>
    %495 = vector.extract_strided_slice %490 {offsets = [0, 1, 0], sizes = [2, 1, 128], strides = [1, 1, 1]} : vector<2x8x128xf32> to vector<2x1x128xf32>
    %496 = arith.addf %494, %495 : vector<2x1x128xf32>
    %497 = vector.extract_strided_slice %490 {offsets = [0, 2, 0], sizes = [2, 1, 128], strides = [1, 1, 1]} : vector<2x8x128xf32> to vector<2x1x128xf32>
    %498 = arith.addf %496, %497 : vector<2x1x128xf32>
    %499 = vector.extract_strided_slice %490 {offsets = [0, 3, 0], sizes = [2, 1, 128], strides = [1, 1, 1]} : vector<2x8x128xf32> to vector<2x1x128xf32>
    %500 = arith.addf %498, %499 : vector<2x1x128xf32>
    %501 = vector.extract_strided_slice %490 {offsets = [0, 4, 0], sizes = [2, 1, 128], strides = [1, 1, 1]} : vector<2x8x128xf32> to vector<2x1x128xf32>
    %502 = arith.addf %500, %501 : vector<2x1x128xf32>
    %503 = vector.extract_strided_slice %490 {offsets = [0, 5, 0], sizes = [2, 1, 128], strides = [1, 1, 1]} : vector<2x8x128xf32> to vector<2x1x128xf32>
    %504 = arith.addf %502, %503 : vector<2x1x128xf32>
    %505 = vector.extract_strided_slice %490 {offsets = [0, 6, 0], sizes = [2, 1, 128], strides = [1, 1, 1]} : vector<2x8x128xf32> to vector<2x1x128xf32>
    %506 = arith.addf %504, %505 : vector<2x1x128xf32>
    %507 = tpu.concatenate %492, %494, %496, %498, %500, %502, %504, %506 in 1 : vector<2x1x128xf32>, vector<2x1x128xf32>, vector<2x1x128xf32>, vector<2x1x128xf32>, vector<2x1x128xf32>, vector<2x1x128xf32>, vector<2x1x128xf32>, vector<2x1x128xf32> -> vector<2x8x128xf32>
    %cst_77 = arith.constant 0.000000e+00 : f32
    %508 = vector.broadcast %cst_77 : f32 to vector<2x8x128xf32>
    %509 = arith.cmpf oeq, %507, %508 : vector<2x8x128xf32>
    %cst_78 = arith.constant 0.000000e+00 : f32
    %510 = vector.broadcast %cst_78 : f32 to vector<2x8x128xf32>
    %511 = arith.select %509, %491, %510 : vector<2x8x128xi1>, vector<2x8x128xf32>
    %cst_79 = arith.constant dense<0.000000e+00> : vector<2x128xf32>
    %512 = vector.multi_reduction <add>, %511, %cst_79 [1] : vector<2x8x128xf32> to vector<2x128xf32>
    %cst_80 = arith.constant 1.000000e+00 : f32
    %513 = vector.broadcast %cst_80 : f32 to vector<2x8x128xf32>
    %514 = arith.cmpf oeq, %507, %513 : vector<2x8x128xf32>
    %cst_81 = arith.constant 0.000000e+00 : f32
    %515 = vector.broadcast %cst_81 : f32 to vector<2x8x128xf32>
    %516 = arith.select %514, %491, %515 : vector<2x8x128xi1>, vector<2x8x128xf32>
    %cst_82 = arith.constant dense<0.000000e+00> : vector<2x128xf32>
    %517 = vector.multi_reduction <add>, %516, %cst_82 [1] : vector<2x8x128xf32> to vector<2x128xf32>
    %cst_83 = arith.constant 2.000000e+00 : f32
    %518 = vector.broadcast %cst_83 : f32 to vector<2x8x128xf32>
    %519 = arith.cmpf oeq, %507, %518 : vector<2x8x128xf32>
    %cst_84 = arith.constant 0.000000e+00 : f32
    %520 = vector.broadcast %cst_84 : f32 to vector<2x8x128xf32>
    %521 = arith.select %519, %491, %520 : vector<2x8x128xi1>, vector<2x8x128xf32>
    %cst_85 = arith.constant dense<0.000000e+00> : vector<2x128xf32>
    %522 = vector.multi_reduction <add>, %521, %cst_85 [1] : vector<2x8x128xf32> to vector<2x128xf32>
    %cst_86 = arith.constant 3.000000e+00 : f32
    %523 = vector.broadcast %cst_86 : f32 to vector<2x8x128xf32>
    %524 = arith.cmpf oeq, %507, %523 : vector<2x8x128xf32>
    %cst_87 = arith.constant 0.000000e+00 : f32
    %525 = vector.broadcast %cst_87 : f32 to vector<2x8x128xf32>
    %526 = arith.select %524, %491, %525 : vector<2x8x128xi1>, vector<2x8x128xf32>
    %cst_88 = arith.constant dense<0.000000e+00> : vector<2x128xf32>
    %527 = vector.multi_reduction <add>, %526, %cst_88 [1] : vector<2x8x128xf32> to vector<2x128xf32>
    %cst_89 = arith.constant 4.000000e+00 : f32
    %528 = vector.broadcast %cst_89 : f32 to vector<2x8x128xf32>
    %529 = arith.cmpf oeq, %507, %528 : vector<2x8x128xf32>
    %cst_90 = arith.constant 0.000000e+00 : f32
    %530 = vector.broadcast %cst_90 : f32 to vector<2x8x128xf32>
    %531 = arith.select %529, %491, %530 : vector<2x8x128xi1>, vector<2x8x128xf32>
    %cst_91 = arith.constant dense<0.000000e+00> : vector<2x128xf32>
    %532 = vector.multi_reduction <add>, %531, %cst_91 [1] : vector<2x8x128xf32> to vector<2x128xf32>
    %533 = tpu.concatenate %512, %517, %522, %527, %532 in 1 : vector<2x128xf32>, vector<2x128xf32>, vector<2x128xf32>, vector<2x128xf32>, vector<2x128xf32> -> vector<2x640xf32>
    %c0_i32_92 = arith.constant 0 : i32
    %534 = tpu.memref_slice %arg14[%c0_i32_92] : memref<3x!tpu.dma_semaphore, #tpu.memory_space<semaphore_mem>> -> memref<1x!tpu.dma_semaphore, #tpu.memory_space<semaphore_mem>>
    %535 = tpu.memref_squeeze %534 : memref<1x!tpu.dma_semaphore, #tpu.memory_space<semaphore_mem>> -> memref<!tpu.dma_semaphore, #tpu.memory_space<semaphore_mem>>
    tpu.wait_dma2 semaphore(%535 : memref<!tpu.dma_semaphore, #tpu.memory_space<semaphore_mem>>) src(%arg6 : memref<640x128xbf16, #tpu.memory_space<any>>) dst(%arg11 : memref<640x128xbf16, #tpu.memory_space<vmem>>)
    %c1_i32_93 = arith.constant 1 : i32
    %536 = tpu.memref_slice %arg14[%c1_i32_93] : memref<3x!tpu.dma_semaphore, #tpu.memory_space<semaphore_mem>> -> memref<1x!tpu.dma_semaphore, #tpu.memory_space<semaphore_mem>>
    %537 = tpu.memref_squeeze %536 : memref<1x!tpu.dma_semaphore, #tpu.memory_space<semaphore_mem>> -> memref<!tpu.dma_semaphore, #tpu.memory_space<semaphore_mem>>
    tpu.wait_dma2 semaphore(%537 : memref<!tpu.dma_semaphore, #tpu.memory_space<semaphore_mem>>) src(%arg7 : memref<256x128xbf16, #tpu.memory_space<any>>) dst(%arg12 : memref<256x128xbf16, #tpu.memory_space<vmem>>)
    %c2_i32_94 = arith.constant 2 : i32
    %538 = tpu.memref_slice %arg14[%c2_i32_94] : memref<3x!tpu.dma_semaphore, #tpu.memory_space<semaphore_mem>> -> memref<1x!tpu.dma_semaphore, #tpu.memory_space<semaphore_mem>>
    %539 = tpu.memref_squeeze %538 : memref<1x!tpu.dma_semaphore, #tpu.memory_space<semaphore_mem>> -> memref<!tpu.dma_semaphore, #tpu.memory_space<semaphore_mem>>
    tpu.wait_dma2 semaphore(%539 : memref<!tpu.dma_semaphore, #tpu.memory_space<semaphore_mem>>) src(%arg8 : memref<128x128xbf16, #tpu.memory_space<any>>) dst(%arg13 : memref<128x128xbf16, #tpu.memory_space<vmem>>)
    %540 = arith.truncf %533 : vector<2x640xf32> to vector<2x640xbf16>
    %c0_95 = arith.constant 0 : index
    %c0_96 = arith.constant 0 : index
    %541 = vector.load %arg11[%c0_95, %c0_96] : memref<640x128xbf16, #tpu.memory_space<vmem>>, vector<640x128xbf16>
    %cst_97 = arith.constant dense<0.000000e+00> : vector<2x128xf32>
    %542 = tpu.matmul %540, %541, %cst_97 {dimension_numbers = #tpu.dot_dimension_numbers<[1], [0], [0], [1], [0, 0, 1, 1], [], []>} : vector<2x640xbf16>, vector<640x128xbf16>, vector<2x128xf32> -> vector<2x128xf32>
    %c0_98 = arith.constant 0 : index
    %c512 = arith.constant 512 : index
    %543 = vector.load %arg3[%c0_98, %c512] : memref<1x2432xf32, #tpu.memory_space<vmem>>, vector<1x128xf32>
    %544 = vector.broadcast %543 : vector<1x128xf32> to vector<2x128xf32>
    %545 = arith.addf %542, %544 : vector<2x128xf32>
    %546 = arith.truncf %346 : vector<2x256xf32> to vector<2x256xbf16>
    %c0_99 = arith.constant 0 : index
    %c0_100 = arith.constant 0 : index
    %547 = vector.load %arg12[%c0_99, %c0_100] : memref<256x128xbf16, #tpu.memory_space<vmem>>, vector<256x128xbf16>
    %cst_101 = arith.constant dense<0.000000e+00> : vector<2x128xf32>
    %548 = tpu.matmul %546, %547, %cst_101 {dimension_numbers = #tpu.dot_dimension_numbers<[1], [0], [0], [1], [0, 0, 1, 1], [], []>} : vector<2x256xbf16>, vector<256x128xbf16>, vector<2x128xf32> -> vector<2x128xf32>
    %c0_102 = arith.constant 0 : index
    %c640 = arith.constant 640 : index
    %549 = vector.load %arg3[%c0_102, %c640] : memref<1x2432xf32, #tpu.memory_space<vmem>>, vector<1x128xf32>
    %550 = vector.broadcast %549 : vector<1x128xf32> to vector<2x128xf32>
    %551 = arith.addf %548, %550 : vector<2x128xf32>
    %552 = arith.truncf %53 : vector<2x128xf32> to vector<2x128xbf16>
    %c0_103 = arith.constant 0 : index
    %c0_104 = arith.constant 0 : index
    %553 = vector.load %arg13[%c0_103, %c0_104] : memref<128x128xbf16, #tpu.memory_space<vmem>>, vector<128x128xbf16>
    %cst_105 = arith.constant dense<0.000000e+00> : vector<2x128xf32>
    %554 = tpu.matmul %552, %553, %cst_105 {dimension_numbers = #tpu.dot_dimension_numbers<[1], [0], [0], [1], [0, 0, 1, 1], [], []>} : vector<2x128xbf16>, vector<128x128xbf16>, vector<2x128xf32> -> vector<2x128xf32>
    %c0_106 = arith.constant 0 : index
    %c768 = arith.constant 768 : index
    %555 = vector.load %arg3[%c0_106, %c768] : memref<1x2432xf32, #tpu.memory_space<vmem>>, vector<1x128xf32>
    %556 = vector.broadcast %555 : vector<1x128xf32> to vector<2x128xf32>
    %557 = arith.addf %554, %556 : vector<2x128xf32>
    %558 = tpu.concatenate %545, %551, %557 in 0 : vector<2x128xf32>, vector<2x128xf32>, vector<2x128xf32> -> vector<6x128xf32>
    %c0_107 = arith.constant 0 : index
    %c896 = arith.constant 896 : index
    %559 = vector.load %arg3[%c0_107, %c896] : memref<1x2432xf32, #tpu.memory_space<vmem>>, vector<1x128xf32>
    %c0_108 = arith.constant 0 : index
    %c1024 = arith.constant 1024 : index
    %560 = vector.load %arg3[%c0_108, %c1024] : memref<1x2432xf32, #tpu.memory_space<vmem>>, vector<1x128xf32>
    %cst_109 = arith.constant dense<0.000000e+00> : vector<6xf32>
    %561 = vector.multi_reduction <add>, %558, %cst_109 [1] : vector<6x128xf32> to vector<6xf32>
    %562 = vector.shape_cast %561 : vector<6xf32> to vector<6x1xf32>
    %cst_110 = arith.constant 1.280000e+02 : f32
    %563 = vector.broadcast %cst_110 : f32 to vector<6x1xf32>
    %564 = arith.divf %562, %563 : vector<6x1xf32>
    %565 = vector.broadcast %564 : vector<6x1xf32> to vector<6x128xf32>
    %566 = arith.subf %558, %565 : vector<6x128xf32>
    %567 = arith.mulf %566, %566 : vector<6x128xf32>
    %cst_111 = arith.constant dense<0.000000e+00> : vector<6xf32>
    %568 = vector.multi_reduction <add>, %567, %cst_111 [1] : vector<6x128xf32> to vector<6xf32>
    %569 = vector.shape_cast %568 : vector<6xf32> to vector<6x1xf32>
    %cst_112 = arith.constant 1.280000e+02 : f32
    %570 = vector.broadcast %cst_112 : f32 to vector<6x1xf32>
    %571 = arith.divf %569, %570 : vector<6x1xf32>
    %572 = vector.broadcast %564 : vector<6x1xf32> to vector<6x128xf32>
    %573 = arith.subf %558, %572 : vector<6x128xf32>
    %cst_113 = arith.constant 9.99999974E-6 : f32
    %574 = vector.broadcast %cst_113 : f32 to vector<6x1xf32>
    %575 = arith.addf %571, %574 : vector<6x1xf32>
    %576 = math.rsqrt %575 : vector<6x1xf32>
    %577 = vector.broadcast %576 : vector<6x1xf32> to vector<6x128xf32>
    %578 = arith.mulf %573, %577 : vector<6x128xf32>
    %579 = vector.broadcast %559 : vector<1x128xf32> to vector<6x128xf32>
    %580 = arith.mulf %578, %579 : vector<6x128xf32>
    %581 = vector.broadcast %560 : vector<1x128xf32> to vector<6x128xf32>
    %582 = arith.addf %580, %581 : vector<6x128xf32>
    %c0_114 = arith.constant 0 : index
    %c1152 = arith.constant 1152 : index
    %583 = vector.load %arg3[%c0_114, %c1152] : memref<1x2432xf32, #tpu.memory_space<vmem>>, vector<1x128xf32>
    %584 = vector.broadcast %583 : vector<1x128xf32> to vector<6x128xf32>
    %585 = arith.mulf %582, %584 : vector<6x128xf32>
    %cst_115 = arith.constant dense<0.000000e+00> : vector<6xf32>
    %586 = vector.multi_reduction <add>, %585, %cst_115 [1] : vector<6x128xf32> to vector<6xf32>
    %587 = vector.shape_cast %586 : vector<6xf32> to vector<6x1xf32>
    %cst_116 = arith.constant 0.577350259 : f32
    %588 = vector.broadcast %cst_116 : f32 to vector<6x1xf32>
    %589 = arith.mulf %587, %588 : vector<6x1xf32>
    %590 = vector.extract_strided_slice %589 {offsets = [0, 0], sizes = [2, 1], strides = [1, 1]} : vector<6x1xf32> to vector<2x1xf32>
    %591 = vector.extract_strided_slice %589 {offsets = [2, 0], sizes = [2, 1], strides = [1, 1]} : vector<6x1xf32> to vector<2x1xf32>
    %592 = vector.extract_strided_slice %589 {offsets = [4, 0], sizes = [2, 1], strides = [1, 1]} : vector<6x1xf32> to vector<2x1xf32>
    %593 = tpu.concatenate %590, %591, %592 in 1 : vector<2x1xf32>, vector<2x1xf32>, vector<2x1xf32> -> vector<2x3xf32>
    %cst_117 = arith.constant dense<0xFF800000> : vector<2xf32>
    %594 = vector.multi_reduction <maximumf>, %593, %cst_117 [1] : vector<2x3xf32> to vector<2xf32>
    %595 = vector.shape_cast %594 : vector<2xf32> to vector<2x1xf32>
    %596 = vector.broadcast %595 : vector<2x1xf32> to vector<2x3xf32>
    %597 = arith.subf %593, %596 : vector<2x3xf32>
    %598 = math.exp %597 : vector<2x3xf32>
    %cst_118 = arith.constant dense<0.000000e+00> : vector<2xf32>
    %599 = vector.multi_reduction <add>, %598, %cst_118 [1] : vector<2x3xf32> to vector<2xf32>
    %600 = vector.shape_cast %599 : vector<2xf32> to vector<2x1xf32>
    %601 = vector.broadcast %600 : vector<2x1xf32> to vector<2x3xf32>
    %602 = arith.divf %598, %601 : vector<2x3xf32>
    %603 = vector.extract_strided_slice %602 {offsets = [0, 0], sizes = [2, 1], strides = [1, 1]} : vector<2x3xf32> to vector<2x1xf32>
    %604 = vector.broadcast %603 : vector<2x1xf32> to vector<2x128xf32>
    %605 = arith.mulf %545, %604 : vector<2x128xf32>
    %606 = vector.extract_strided_slice %602 {offsets = [0, 1], sizes = [2, 1], strides = [1, 1]} : vector<2x3xf32> to vector<2x1xf32>
    %607 = vector.broadcast %606 : vector<2x1xf32> to vector<2x128xf32>
    %608 = arith.mulf %551, %607 : vector<2x128xf32>
    %609 = arith.addf %605, %608 : vector<2x128xf32>
    %610 = vector.extract_strided_slice %602 {offsets = [0, 2], sizes = [2, 1], strides = [1, 1]} : vector<2x3xf32> to vector<2x1xf32>
    %611 = vector.broadcast %610 : vector<2x1xf32> to vector<2x128xf32>
    %612 = arith.mulf %557, %611 : vector<2x128xf32>
    %613 = arith.addf %609, %612 : vector<2x128xf32>
    %614 = arith.truncf %613 : vector<2x128xf32> to vector<2x128xbf16>
    %c0_119 = arith.constant 0 : index
    %c0_120 = arith.constant 0 : index
    %615 = vector.load %arg9[%c0_119, %c0_120] : memref<128x2xbf16, #tpu.memory_space<vmem>>, vector<128x2xbf16>
    %cst_121 = arith.constant dense<0.000000e+00> : vector<2x2xf32>
    %616 = tpu.matmul %614, %615, %cst_121 {dimension_numbers = #tpu.dot_dimension_numbers<[1], [0], [0], [1], [0, 0, 1, 1], [], []>} : vector<2x128xbf16>, vector<128x2xbf16>, vector<2x2xf32> -> vector<2x2xf32>
    %c0_122 = arith.constant 0 : index
    %c1280 = arith.constant 1280 : index
    %617 = vector.load %arg3[%c0_122, %c1280] : memref<1x2432xf32, #tpu.memory_space<vmem>>, vector<1x2xf32>
    %618 = vector.broadcast %617 : vector<1x2xf32> to vector<2x2xf32>
    %619 = arith.addf %616, %618 : vector<2x2xf32>
    %cst_123 = arith.constant dense<0xFF800000> : vector<3xf32>
    %620 = vector.multi_reduction <maximumf>, %593, %cst_123 [0] : vector<2x3xf32> to vector<3xf32>
    %621 = vector.shape_cast %620 : vector<3xf32> to vector<1x3xf32>
    %622 = vector.broadcast %621 : vector<1x3xf32> to vector<2x3xf32>
    %623 = arith.subf %593, %622 : vector<2x3xf32>
    %624 = math.exp %623 : vector<2x3xf32>
    %cst_124 = arith.constant dense<0.000000e+00> : vector<3xf32>
    %625 = vector.multi_reduction <add>, %624, %cst_124 [0] : vector<2x3xf32> to vector<3xf32>
    %626 = vector.shape_cast %625 : vector<3xf32> to vector<1x3xf32>
    %627 = vector.broadcast %626 : vector<1x3xf32> to vector<2x3xf32>
    %628 = arith.divf %624, %627 : vector<2x3xf32>
    %cst_125 = arith.constant 0.000000e+00 : f32
    %629 = vector.broadcast %cst_125 : f32 to vector<2x123xf32>
    %630 = tpu.concatenate %619, %628, %629 in 1 : vector<2x2xf32>, vector<2x3xf32>, vector<2x123xf32> -> vector<2x128xf32>
    %c0_126 = arith.constant 0 : index
    %c0_127 = arith.constant 0 : index
    %631 = vector.load %arg10[%c0_126, %c0_127] : memref<2x128xf32, #tpu.memory_space<vmem>>, vector<2x128xf32>
    tpu.vector_store %arg10[%c0_126, %c0_127], %630 {strides = array<i32>} : memref<2x128xf32, #tpu.memory_space<vmem>>, vector<2x128xf32>,
    return
  }
}

</mosaic_0001>

<bundles_post_ra>
// kernel: tpu_custom_call.1
= control target key start
LH: loop header
LB: loop body
LE: loop exit
PB: predicated region body
PF: predicated region fallthrough
CT: control target
= control target key end

     0   :  { %15 = vsyncpa [#allocation7], 0  ;;  %s7748_s0 = inlined_call_operand.hbm [shape: bf16[2,8,128], index: 0, kind: input, shape index: {}]   ;;  %s7749_s1 = inlined_call_operand.hbm [shape: bf16[2,8,128], index: 1, kind: input, shape index: {}]   ;;  %s7750_s2 = inlined_call_operand.vmem [shape: bf16[2,128], index: 2, kind: input, shape index: {}]   ;;  %s7751_s3 = inlined_call_operand.hbm [shape: f32[1,2432], index: 3, kind: input, shape index: {}]   ;;  %s7752_s4 = inlined_call_operand.hbm [shape: bf16[128,1536], index: 4, kind: input, shape index: {}]   ;;  %s7753_s5 = inlined_call_operand.hbm [shape: bf16[256,512], index: 5, kind: input, shape index: {}]   ;;  %s7754_s6 = inlined_call_operand.hbm [shape: bf16[640,128], index: 6, kind: input, shape index: {}]   ;;  %s7755_s7 = inlined_call_operand.hbm [shape: bf16[256,128], index: 7, kind: input, shape index: {}]   ;;  %s7756_s8 = inlined_call_operand.vmem [shape: bf16[128,128], index: 8, kind: input, shape index: {}]   ;;  %s7757_s9 = inlined_call_operand.vmem [shape: bf16[128,2], index: 9, kind: input, shape index: {}]   ;;  %s7758_s10 = inlined_call_operand.hbm [shape: f32[2,128], index: 10, kind: output, shape index: {}]  }
   0x1   :  { %16 = vsyncpa [#allocation10], 0 }
   0x2   :  { %17 = vsyncpa [#allocation13], 0 }
   0x3   :  { %18 = vsyncpa [#allocation8], 0  ;;  %s36_s15 = sshll.u32 %s7749_s1, 4  ;;  %s6025_s16 = smov [#allocation9]   ;;  %s37_s15 = int_to_ptr.hbm [resolvable:$true] %s36_s15 }
   0x4   :  { %s38_s17 = sshll.u32 %s6025_s16, 4  ;;  %s62_s20 = sshll.u32 %s7752_s4, 4  ;;  %s39_s17 = int_to_ptr.vmem [resolvable:$true] %s38_s17  ;;  %s63_s20 = int_to_ptr.hbm [resolvable:$true] %s62_s20 }
   0x5   :  { %s6026_s21 = smov 64   ;;  %s6027_s22 = smov 4  }
   0x6   :  { %44 = dma.hbm_to_vmem [thread:$0]  %s37_s15, 128, %s39_s17, [#allocation10], %s6026_s21, %s6026_s21, %s6027_s22  }
   0x7   :  { %s6028_s23 = smov [#allocation12]   ;;  %s6029_s25 = smov 768  }
   0x8   :  { %s64_s24 = sshll.u32 %s6028_s23, 4  ;;  %s6030_s26 = smov 48   ;;  %s65_s24 = int_to_ptr.vmem [resolvable:$true] %s64_s24 }
   0x9   :  { %70 = dma.hbm_to_vmem [thread:$0]  %s63_s20, 12288, %s65_s24, [#allocation13], %s6029_s25, %s6029_s25, %s6030_s26  }
   0xa   :  { %s23_s28 = sshll.u32 %s7748_s0, 4  ;;  %s6031_s29 = smov [#allocation6]   ;;  %s24_s28 = int_to_ptr.hbm [resolvable:$true] %s23_s28 }
   0xb   :  { %s25_s30 = sshll.u32 %s6031_s29, 4  ;;  %s52_s12 = sshll.u32 %s7751_s3, 4  ;;  %s26_s30 = int_to_ptr.vmem [resolvable:$true] %s25_s30  ;;  %s53_s12 = int_to_ptr.hbm [resolvable:$true] %s52_s12 }
   0xc   :  { %31 = dma.hbm_to_vmem [thread:$0]  %s24_s28, 128, %s26_s30, [#allocation7], %s6026_s21, %s6026_s21, %s6027_s22  }
   0xd   :  { %s6032_s13 = smov [#allocation11]   ;;  %s75_s17 = sshll.u32 %s7753_s5, 4  ;;  %s76_s17 = int_to_ptr.hbm [resolvable:$true] %s75_s17 }
   0xe   :  { %s54_s14 = sshll.u32 %s6032_s13, 4  ;;  %s6033_s0 = smov [#allocation14]   ;;  %s55_s14 = int_to_ptr.vmem [resolvable:$true] %s54_s14 }
   0xf   :  { %57 = dma.hbm_to_vmem [thread:$0]  %s53_s12, 304, %s55_s14, [#allocation10]  }
  0x10   :  { %s77_s18 = sshll.u32 %s6033_s0, 4  ;;  %s6034_s19 = smov 256   ;;  %s78_s18 = int_to_ptr.vmem [resolvable:$true] %s77_s18 }
  0x11   :  { %s6035_s20 = smov 16  }
  0x12   :  { %83 = dma.hbm_to_vmem [thread:$0]  %s76_s17, 8192, %s78_s18, [#allocation13], %s6034_s19, %s6034_s19, %s6035_s20  }
  0x13   :  { %6011 = dma.done.wait [#allocation7], 128  }
  0x14   :  { %6012 = vsyncadd [#allocation7], 4294967168 }
  0x15   :  { %6013 = dma.done.wait [#allocation10], 432  }
  0x16   :  { %6014 = vsyncadd [#allocation10], 4294966864 }
  0x17   :  { %6015 = dma.done.wait [#allocation13], 20480  }
  0x18   :  { %6016 = vsyncadd [#allocation13], 4294946816  ;;  %s113_s22 = sshll.u32 %s7754_s6, 4  ;;  %s6036_s5 = smov [#allocation2]   ;;  %v144_v0 = vld [vmem:[%s7756_s8] sm:$0xff]  ;;  %v146_v1 = vld [vmem:[%s7756_s8 + $0x8] sm:$0xff]  ;;  %s114_s22 = int_to_ptr.hbm [resolvable:$true] %s113_s22 }
  0x19   :  { %s115_s23 = sshll.u32 %s6036_s5, 4  ;;  %s127_s26 = sshll.u32 %s7755_s7, 4  ;;  %v148_v2 = vld [vmem:[%s7756_s8 + $0x10] sm:$0xff]  ;;  %145 = vst [vmem:[#allocation4 + $0x30] sm:$0xff] %v144_v0  ;;  %v150_v3 = vld [vmem:[%s7756_s8 + $0x18] sm:$0xff]  ;;  %v152_v4 = vld [vmem:[%s7756_s8 + $0x20] sm:$0xff]  ;;  %s116_s23 = int_to_ptr.vmem [resolvable:$true] %s115_s23  ;;  %s128_s26 = int_to_ptr.hbm [resolvable:$true] %s127_s26 }
  0x1a   :  { %118 = dma.hbm_to_vmem [thread:$0]  %s114_s22, 5120, %s116_s23, [#allocation5]  ;;  %147 = vst [vmem:[#allocation4] sm:$0xff] %v146_v1  ;;  %v154_v5 = vld [vmem:[%s7756_s8 + $0x28] sm:$0xff]  ;;  %v156_v6 = vld [vmem:[%s7756_s8 + $0x30] sm:$0xff]  ;;  %v158_v7 = vld [vmem:[%s7756_s8 + $0x38] sm:$0xff] }
  0x1b   :  { %s6037_s27 = smov [#allocation3]   ;;  %149 = vst [vmem:[#allocation4 + $0x18] sm:$0xff] %v148_v2  ;;  %v5635_v8 = vld [vmem:[#allocation6] sm:$0xff]   ;;  %v5639_v9 = vld [vmem:[#allocation9] sm:$0xff]   ;;  %vm7856_vm0 = vcmask 1040384   ;;  %vm184_vm1 = vcmask 1042434  }
  0x1c   :  { %s129_s1 = sshll.u32 %s6037_s27, 4  ;;  %151 = vst [vmem:[#allocation4 + $0x10] sm:$0xff] %v150_v3  ;;  %v176_v10 = vld [vmem:[%s7750_s2] sm:$0x1]  ;;  %v5636_v11 = vunpack.c.l.bf16 %v5635_v8  ;;  %v5640_v12 = vunpack.c.l.bf16 %v5639_v9  ;;  %s130_s1 = int_to_ptr.vmem [resolvable:$true] %s129_s1 }
  0x1d   :  { %132 = dma.hbm_to_vmem [thread:$0]  %s128_s26, 2048, %s130_s1, [#allocation5 + $0x1]  ;;  %153 = vst [vmem:[#allocation4 + $0x8] sm:$0xff] %v152_v4  ;;  %v177_v13 = vunpack.c.l.bf16 %v176_v10 }
  0x1e   :  { %155 = vst [vmem:[#allocation4 + $0x20] sm:$0xff] %v154_v5 }
  0x1f   :  { %157 = vst [vmem:[#allocation4 + $0x28] sm:$0xff] %v156_v6 }
  0x20   :  { %159 = vst [vmem:[#allocation4 + $0x38] sm:$0xff] %v158_v7 }
  0x21   :  { %165 = vsyncadd [#allocation5 + $0x2], 1024  ;;  %vm188_vm2 = vcmask 1041409   ;;  %vm190_vm3 = vcmask 1043459   ;;  %v179_v14 = vrot.slane %v177_v13, 1  ;;  %v180_v15 = vrot.slane %v177_v13, 2 }
  0x22   :  { %v181_v16 = vrot.slane %v177_v13, 3  ;;  %vm7861_vm4 = vcmask 1041408   ;;  %v174_v17 = vadd.f32 %v5640_v12, %v5636_v11  ;;  %vm192_vm5 = vcmask 1042433   ;;  %v4766_v36 = vld [vmem:[#allocation12 + $0x2a0] sm:$0xf] }
  0x23   :  { %v183_v18 = vsel %vm7856_vm0, %v177_v13, %v179_v14  ;;  %v189_v20 = vsel %vm188_vm2, %v177_v13, %v179_v14  ;;  %v5637_v25 = vunpack.c.h.bf16 %v5635_v8  ;;  %v5641_v26 = vunpack.c.h.bf16 %v5639_v9  ;;  %v5492_v37 = vld [vmem:[#allocation12 + $0x2cc] sm:$0xf0]  ;;  %v5486_v38 = vld [vmem:[#allocation12 + $0x2a4] sm:$0xf]  ;;  %v4768_v40 = vld [vmem:[#allocation12 + $0x2d0] sm:$0xf0] }
  0x24   :  { %v185_v19 = vsel %vm184_vm1, %v180_v15, %v181_v16  ;;  %v191_v21 = vsel %vm190_vm3, %v180_v15, %v181_v16  ;;  %v6038_v32 = vmov 128.0   ;;  %v4767_v39 = vor.u32 %v5492_v37, %v4766_v36  ;;  %v4774_v41 = vld [vmem:[#allocation12 + $0x2a8] sm:$0xf]  ;;  %v5493_v42 = vld [vmem:[#allocation12 + $0x2d4] sm:$0xf0] }
  0x25   :  { %v187_v22 = vsel %vm7861_vm4, %v183_v18, %v185_v19  ;;  %v193_v23 = vsel %vm192_vm5, %v189_v20, %v191_v21  ;;  %v175_v29 = vadd.f32 %v5641_v26, %v5637_v25  ;;  %5668 = vrcp.f32 %v6038_v32  ;;  %v5487_v45 = vld [vmem:[#allocation12 + $0x2ac] sm:$0xf]  ;;  %v4776_v46 = vld [vmem:[#allocation12 + $0x2d8] sm:$0xf0]  ;;  %v4718_v47 = vld [vmem:[#allocation12 + $0x240] sm:$0xf] }
  0x26   :  { %v195_v24 = vperm.slane %v187_v22, 0  ;;  %v194_v27 = vrot.slane %v193_v23, 1  ;;  %v4771_v43 = vor.u32 %v5486_v38, %v4768_v40  ;;  %v4775_v44 = vor.u32 %v5493_v42, %v4774_v41  ;;  %837 = vmatpush.bf16.msra.mxu0 %v4767_v39  ;;  %v5480_v49 = vld [vmem:[#allocation12 + $0x26c] sm:$0xf0]  ;;  %v5474_v50 = vld [vmem:[#allocation12 + $0x244] sm:$0xf] }
  0x27   :  { %v4779_v48 = vor.u32 %v5487_v45, %v4776_v46  ;;  %v4720_v51 = vld [vmem:[#allocation12 + $0x270] sm:$0xf0]  ;;  %v4719_v52 = vor.u32 %v5480_v49, %v4718_v47  ;;  %v4726_v54 = vld [vmem:[#allocation12 + $0x248] sm:$0xf]  ;;  %v5481_v55 = vld [vmem:[#allocation12 + $0x274] sm:$0xf0] }
  0x28   :  { %v6154_v28 = vadd.f32 %v195_v24, %v174_v17  ;;  %v196_v30 = vperm.slane %v194_v27, 0  ;;  %851 = vmatpush.bf16.msra.mxu1 %v4771_v43  ;;  %865 = vmatpush.bf16.msra.mxu2 %v4775_v44  ;;  %v4723_v53 = vor.u32 %v5474_v50, %v4720_v51  ;;  %v5475_v56 = vld [vmem:[#allocation12 + $0x24c] sm:$0xf]  ;;  %v4727_v57 = vor.u32 %v5481_v55, %v4726_v54  ;;  %v4728_v58 = vld [vmem:[#allocation12 + $0x278] sm:$0xf0] }
  0x29   :  { %879 = vmatpush.bf16.msra.mxu3 %v4779_v48  ;;  %v4670_v59 = vld [vmem:[#allocation12 + $0x1e0] sm:$0xf]  ;;  %v5468_v60 = vld [vmem:[#allocation12 + $0x20c] sm:$0xf0]  ;;  %v4731_v61 = vor.u32 %v5475_v56, %v4728_v58  ;;  %v5462_v62 = vld [vmem:[#allocation12 + $0x1e4] sm:$0xf] }
  0x2a   :  { %203 = vadd.xlane.f32.xlu0 %v6154_v28  ;;  %v6157_v31 = vadd.f32 %v196_v30, %v175_v29  ;;  %v4672_v63 = vld [vmem:[#allocation12 + $0x210] sm:$0xf0]  ;;  %v4678_v0 = vld [vmem:[#allocation12 + $0x1e8] sm:$0xf]  ;;  %838 = vmatpush.bf16.msra.mxu0 %v4719_v52  ;;  %v4671_v2 = vor.u32 %v5468_v60, %v4670_v59  ;;  %v5469_v3 = vld [vmem:[#allocation12 + $0x214] sm:$0xf0] }
  0x2b   :  { %v6160_v33 = vpop.eup %5668  ;;  %v5463_v4 = vld [vmem:[#allocation12 + $0x1ec] sm:$0xf]  ;;  %v4680_v5 = vld [vmem:[#allocation12 + $0x218] sm:$0xf0]  ;;  %v4675_v6 = vor.u32 %v5462_v62, %v4672_v63  ;;  %v4679_v7 = vor.u32 %v5469_v3, %v4678_v0  ;;  %v4622_v8 = vld [vmem:[#allocation12 + $0x180] sm:$0xf] }
  0x2c   :  { %v208_v34 = vmul.f32 128.0, %v6160_v33  ;;  %852 = vmatpush.bf16.msra.mxu1 %v4723_v53  ;;  %866 = vmatpush.bf16.msra.mxu2 %v4727_v57  ;;  %v5456_v9 = vld [vmem:[#allocation12 + $0x1ac] sm:$0xf0]  ;;  %v5450_v10 = vld [vmem:[#allocation12 + $0x184] sm:$0xf]  ;;  %v4683_v11 = vor.u32 %v5463_v4, %v4680_v5  ;;  %vm212_vm6 = vweird.f32 %v6160_v33  ;;  %vm6039_vm14 = vmmov 1  }
  0x2d   :  { %880 = vmatpush.bf16.msra.mxu3 %v4731_v61  ;;  %v4624_v12 = vld [vmem:[#allocation12 + $0x1b0] sm:$0xf0]  ;;  %v4630_v13 = vld [vmem:[#allocation12 + $0x188] sm:$0xf]  ;;  %v5457_v14 = vld [vmem:[#allocation12 + $0x1b4] sm:$0xf0]  ;;  %v4623_v18 = vor.u32 %v5456_v9, %v4622_v8 }
  0x2e   :  { %v209_v35 = vsub.f32 1.0, %v208_v34  ;;  %v5451_v15 = vld [vmem:[#allocation12 + $0x18c] sm:$0xf]  ;;  %v4632_v16 = vld [vmem:[#allocation12 + $0x1b8] sm:$0xf0]  ;;  %839 = vmatpush.bf16.msra.mxu0 %v4671_v2  ;;  %v4627_v19 = vor.u32 %v5450_v10, %v4624_v12  ;;  %v4631_v20 = vor.u32 %v5457_v14, %v4630_v13 }
  0x2f   :  { %v4574_v21 = vld [vmem:[#allocation12 + $0x120] sm:$0xf]  ;;  %v5444_v22 = vld [vmem:[#allocation12 + $0x14c] sm:$0xf0]  ;;  %v5438_v23 = vld [vmem:[#allocation12 + $0x124] sm:$0xf]  ;;  %v4635_v24 = vor.u32 %v5451_v15, %v4632_v16 }
  0x30   :  { %v210_v1 = vmul.f32 %v6160_v33, %v209_v35  ;;  %853 = vmatpush.bf16.msra.mxu1 %v4675_v6  ;;  %867 = vmatpush.bf16.msra.mxu2 %v4679_v7  ;;  %v4576_v25 = vld [vmem:[#allocation12 + $0x150] sm:$0xf0]  ;;  %v4582_v26 = vld [vmem:[#allocation12 + $0x128] sm:$0xf]  ;;  %v5445_v27 = vld [vmem:[#allocation12 + $0x154] sm:$0xf0]  ;;  %v4575_v34 = vor.u32 %v5444_v22, %v4574_v21 }
  0x31   :  { %881 = vmatpush.bf16.msra.mxu3 %v4683_v11  ;;  %v5439_v29 = vld [vmem:[#allocation12 + $0x12c] sm:$0xf]  ;;  %v4584_v30 = vld [vmem:[#allocation12 + $0x158] sm:$0xf0]  ;;  %v4579_v35 = vor.u32 %v5438_v23, %v4576_v25  ;;  %v4583_v36 = vor.u32 %v5445_v27, %v4582_v26  ;;  %v4526_v45 = vld [vmem:[#allocation12 + $0xc0] sm:$0xf] }
  0x32   :  { %205 = vadd.xlane.f32.xlu0 %v6157_v31  ;;  %v211_v17 = vadd.f32 %v6160_v33, %v210_v1  ;;  %840 = vmatpush.bf16.msra.mxu0 %v4623_v18  ;;  %v4587_v38 = vor.u32 %v5439_v29, %v4584_v30  ;;  %v5426_v46 = vld [vmem:[#allocation12 + $0xc4] sm:$0xf]  ;;  %v4528_v48 = vld [vmem:[#allocation12 + $0xf0] sm:$0xf0]  ;;  %v4534_v49 = vld [vmem:[#allocation12 + $0xc8] sm:$0xf] }
  0x33   :  { %v5433_v50 = vld [vmem:[#allocation12 + $0xf4] sm:$0xf0]  ;;  %v4531_v51 = vor.u32 %v5426_v46, %v4528_v48  ;;  %v5427_v53 = vld [vmem:[#allocation12 + $0xcc] sm:$0xf]  ;;  %v4536_v54 = vld [vmem:[#allocation12 + $0xf8] sm:$0xf0] }
  0x34   :  { %v6167_v32 = vsel %vm212_vm6, %v6160_v33, %v211_v17  ;;  %854 = vmatpush.bf16.msra.mxu1 %v4627_v19  ;;  %868 = vmatpush.bf16.msra.mxu2 %v4631_v20  ;;  %v4535_v52 = vor.u32 %v5433_v50, %v4534_v49  ;;  %v4539_v55 = vor.u32 %v5427_v53, %v4536_v54  ;;  %v5420_v56 = vld [vmem:[#allocation12 + $0x8c] sm:$0xf0]  ;;  %v5414_v57 = vld [vmem:[#allocation12 + $0x64] sm:$0xf]  ;;  %v4480_v59 = vld [vmem:[#allocation12 + $0x90] sm:$0xf0] }
  0x35   :  { %7902 = vst [vmem:[#allocation30_spill] sm:$0xff] %v6167_v32  ;;  %882 = vmatpush.bf16.msra.mxu3 %v4635_v24  ;;  %v4486_v60 = vld [vmem:[#allocation12 + $0x68] sm:$0xf]  ;;  %v5421_v61 = vld [vmem:[#allocation12 + $0x94] sm:$0xf0]  ;;  %v4483_v62 = vor.u32 %v5414_v57, %v4480_v59 }
  0x36   :  { %841 = vmatpush.bf16.msra.mxu0 %v4575_v34  ;;  %v4487_v63 = vor.u32 %v5421_v61, %v4486_v60  ;;  %v5415_v0 = vld [vmem:[#allocation12 + $0x6c] sm:$0xf]  ;;  %v4488_v1 = vld [vmem:[#allocation12 + $0x98] sm:$0xf0]  ;;  %v4430_v3 = vld [vmem:[#allocation12] sm:$0xf] }
  0x37   :  { %v4491_v2 = vor.u32 %v5415_v0, %v4488_v1  ;;  %v5408_v4 = vld [vmem:[#allocation12 + $0x2c] sm:$0xf0]  ;;  %v5402_v5 = vld [vmem:[#allocation12 + $0x4] sm:$0xf]  ;;  %v4432_v7 = vld [vmem:[#allocation12 + $0x30] sm:$0xf0] }
  0x38   :  { %855 = vmatpush.bf16.msra.mxu1 %v4579_v35  ;;  %869 = vmatpush.bf16.msra.mxu2 %v4583_v36  ;;  %v4431_v6 = vor.u32 %v5408_v4, %v4430_v3  ;;  %v4438_v8 = vld [vmem:[#allocation12 + $0x8] sm:$0xf]  ;;  %v5409_v9 = vld [vmem:[#allocation12 + $0x34] sm:$0xf0]  ;;  %v4435_v10 = vor.u32 %v5402_v5, %v4432_v7  ;;  %v5403_v12 = vld [vmem:[#allocation12 + $0xc] sm:$0xf] }
  0x39   :  { %883 = vmatpush.bf16.msra.mxu3 %v4587_v38  ;;  %v4439_v11 = vor.u32 %v5409_v9, %v4438_v8  ;;  %v4440_v13 = vld [vmem:[#allocation12 + $0x38] sm:$0xf0]  ;;  %v4782_v14 = vld [vmem:[#allocation12 + $0x2b0] sm:$0xf]  ;;  %v5494_v16 = vld [vmem:[#allocation12 + $0x2dc] sm:$0xf0] }
  0x3a   :  { %v4443_v15 = vor.u32 %v5403_v12, %v4440_v13  ;;  %v5488_v17 = vld [vmem:[#allocation12 + $0x2b4] sm:$0xf]  ;;  %v4784_v18 = vld [vmem:[#allocation12 + $0x2e0] sm:$0xf0]  ;;  %v4783_v19 = vor.u32 %v5494_v16, %v4782_v14  ;;  %v4790_v21 = vld [vmem:[#allocation12 + $0x2b8] sm:$0xf] }
  0x3b   :  { %v4787_v20 = vor.u32 %v5488_v17, %v4784_v18  ;;  %v5495_v22 = vld [vmem:[#allocation12 + $0x2e4] sm:$0xf0]  ;;  %v5489_v23 = vld [vmem:[#allocation12 + $0x2bc] sm:$0xf]  ;;  %v4792_v25 = vld [vmem:[#allocation12 + $0x2e8] sm:$0xf0] }
  0x3c   :  { %856 = vmatpush.bf16.msra.mxu1 %v4531_v51  ;;  %870 = vmatpush.bf16.msra.mxu2 %v4535_v52  ;;  %v4791_v24 = vor.u32 %v5495_v22, %v4790_v21  ;;  %v4734_v26 = vld [vmem:[#allocation12 + $0x250] sm:$0xf]  ;;  %v5482_v27 = vld [vmem:[#allocation12 + $0x27c] sm:$0xf0]  ;;  %v4795_v29 = vor.u32 %v5489_v23, %v4792_v25  ;;  %v5476_v34 = vld [vmem:[#allocation12 + $0x254] sm:$0xf] }
  0x3d   :  { %884 = vmatpush.bf16.msra.mxu3 %v4539_v55  ;;  %v4735_v30 = vor.u32 %v5482_v27, %v4734_v26  ;;  %v4736_v35 = vld [vmem:[#allocation12 + $0x280] sm:$0xf0]  ;;  %v4742_v36 = vld [vmem:[#allocation12 + $0x258] sm:$0xf]  ;;  %v5483_v38 = vld [vmem:[#allocation12 + $0x284] sm:$0xf0] }
  0x3e   :  { %v4694_v48 = vld [vmem:[#allocation12 + $0x1f8] sm:$0xf]  ;;  %v5471_v49 = vld [vmem:[#allocation12 + $0x224] sm:$0xf0]  ;;  %v5465_v52 = vld [vmem:[#allocation12 + $0x1fc] sm:$0xf] }
  0x3f   :  { %v4695_v51 = vor.u32 %v5471_v49, %v4694_v48  ;;  %v4696_v53 = vld [vmem:[#allocation12 + $0x228] sm:$0xf0]  ;;  %v4638_v55 = vld [vmem:[#allocation12 + $0x190] sm:$0xf]  ;;  %v4646_v59 = vld [vmem:[#allocation12 + $0x198] sm:$0xf] }
  0x40   :  { %857 = vmatpush.bf16.msra.mxu1 %v4483_v62  ;;  %871 = vmatpush.bf16.msra.mxu2 %v4487_v63  ;;  %v4699_v54 = vor.u32 %v5465_v52, %v4696_v53  ;;  %v5459_v60 = vld [vmem:[#allocation12 + $0x1c4] sm:$0xf0]  ;;  %v5453_v63 = vld [vmem:[#allocation12 + $0x19c] sm:$0xf]  ;;  %v4648_v0 = vld [vmem:[#allocation12 + $0x1c8] sm:$0xf0] }
  0x41   :  { %885 = vmatpush.bf16.msra.mxu3 %v4491_v2  ;;  %v4647_v62 = vor.u32 %v5459_v60, %v4646_v59  ;;  %v4651_v1 = vor.u32 %v5453_v63, %v4648_v0  ;;  %v4590_v2 = vld [vmem:[#allocation12 + $0x130] sm:$0xf]  ;;  %v5446_v3 = vld [vmem:[#allocation12 + $0x15c] sm:$0xf0]  ;;  %v5440_v4 = vld [vmem:[#allocation12 + $0x134] sm:$0xf] }
  0x42   :  { %v4591_v5 = vor.u32 %v5446_v3, %v4590_v2  ;;  %v4598_v7 = vld [vmem:[#allocation12 + $0x138] sm:$0xf]  ;;  %v5447_v8 = vld [vmem:[#allocation12 + $0x164] sm:$0xf0]  ;;  %v4600_v12 = vld [vmem:[#allocation12 + $0x168] sm:$0xf0] }
  0x43   :  { %v4542_v14 = vld [vmem:[#allocation12 + $0xd0] sm:$0xf]  ;;  %v5428_v16 = vld [vmem:[#allocation12 + $0xd4] sm:$0xf]  ;;  %v4544_v18 = vld [vmem:[#allocation12 + $0x100] sm:$0xf0] }
  0x44   :  { %858 = vmatpush.bf16.msra.mxu1 %v4435_v10  ;;  %872 = vmatpush.bf16.msra.mxu2 %v4439_v11  ;;  %v4599_v10 = vor.u32 %v5447_v8, %v4598_v7  ;;  %v5441_v11 = vld [vmem:[#allocation12 + $0x13c] sm:$0xf]  ;;  %v4547_v21 = vor.u32 %v5428_v16, %v4544_v18  ;;  %v4494_v26 = vld [vmem:[#allocation12 + $0x70] sm:$0xf]  ;;  %v5422_v27 = vld [vmem:[#allocation12 + $0x9c] sm:$0xf0] }
  0x45   :  { %886 = vmatpush.bf16.msra.mxu3 %v4443_v15  ;;  %v4603_v13 = vor.u32 %v5441_v11, %v4600_v12  ;;  %v5434_v15 = vld [vmem:[#allocation12 + $0xfc] sm:$0xf0]  ;;  %v5429_v23 = vld [vmem:[#allocation12 + $0xdc] sm:$0xf]  ;;  %v5404_v48 = vld [vmem:[#allocation12 + $0x14] sm:$0xf] }
  0x46   :  { %v4543_v17 = vor.u32 %v5434_v15, %v4542_v14  ;;  %v4448_v49 = vld [vmem:[#allocation12 + $0x40] sm:$0xf0]  ;;  %v5411_v52 = vld [vmem:[#allocation12 + $0x44] sm:$0xf0]  ;;  %v5405_v53 = vld [vmem:[#allocation12 + $0x1c] sm:$0xf] }
  0x47   :  { %v5664_v7 = vld [vmem:[#allocation11] ss:$0 sm:$0xff]  ;;  %v5665_v11 = vld [vmem:[#allocation11 + $0x1] ss:$0 sm:$0xff]  ;;  %v4798_v15 = vld [vmem:[#allocation12 + $0x2c0] sm:$0xf] }
  0x48   :  { %907 = vmatpush.bf16.msrb.mxu1 %v4787_v20  ;;  %921 = vmatpush.bf16.msrb.mxu2 %v4791_v24  ;;  %v5435_v20 = vld [vmem:[#allocation12 + $0x104] sm:$0xf0]  ;;  %v4552_v24 = vld [vmem:[#allocation12 + $0x108] sm:$0xf0]  ;;  %v5496_v16 = vld [vmem:[#allocation12 + $0x2ec] sm:$0xf0] }
  0x49   :  { %935 = vmatpush.bf16.msrb.mxu3 %v4795_v29  ;;  %v4555_v25 = vor.u32 %v5429_v23, %v4552_v24  ;;  %v5416_v29 = vld [vmem:[#allocation12 + $0x74] sm:$0xf]  ;;  %v5491_v23 = vld [vmem:[#allocation12 + $0x2cc] sm:$0xf]  ;;  %v4808_v24 = vld [vmem:[#allocation12 + $0x2f8] sm:$0xf0] }
  0x4a   :  { %v4800_v18 = vld [vmem:[#allocation12 + $0x2f0] sm:$0xf0] }
  0x9d   :  { %v204_v37 = vpop.xlane.xlu0 %203 }
  0x9e   :  { %v214_v39 = vmul.f32 %v6167_v32, %v204_v37  ;;  %v4739_v37 = vor.u32 %v5476_v34, %v4736_v35  ;;  %v4495_v34 = vor.u32 %v5422_v27, %v4494_v26  ;;  %v4496_v35 = vld [vmem:[#allocation12 + $0xa0] sm:$0xf0]  ;;  %v4750_v27 = vld [vmem:[#allocation12 + $0x260] sm:$0xf] }
  0xa0   :  { %v6171_v40 = vsub.f32 %v6154_v28, %v214_v39  ;;  %v5432_v28 = vld [vmem:[#allocation12 + $0xec] sm:$0xf0]  ;;  %v5477_v39 = vld [vmem:[#allocation12 + $0x25c] sm:$0xf]  ;;  %908 = vmatpush.bf16.msrb.mxu1 %v4739_v37  ;;  %v5423_v37 = vld [vmem:[#allocation12 + $0xa4] sm:$0xf0] }
  0xa1   :  { %v4527_v47 = vor.u32 %v5432_v28, %v4526_v45  ;;  %v5470_v45 = vld [vmem:[#allocation12 + $0x21c] sm:$0xf0]  ;;  %v5464_v28 = vld [vmem:[#allocation12 + $0x1f4] sm:$0xf] }
  0xa2   :  { %v218_v33 = vmul.f32 %v6171_v40, %v6171_v40 }
  0xa3   :  { %842 = vmatpush.bf16.msra.mxu0 %v4527_v47  ;;  %v4688_v47 = vld [vmem:[#allocation12 + $0x220] sm:$0xf0] }
  0xa4   :  { %220 = vadd.xlane.f32.xlu1 %v218_v33  ;;  %v4744_v33 = vld [vmem:[#allocation12 + $0x288] sm:$0xf0]  ;;  %v4691_v50 = vor.u32 %v5464_v28, %v4688_v47  ;;  %v4446_v28 = vld [vmem:[#allocation12 + $0x10] sm:$0xf] }
  0xa5   :  { %v206_v41 = vpop.xlane.xlu0 %205 }
  0xa6   :  { %v215_v42 = vmul.f32 %v6167_v32, %v206_v41  ;;  %v4743_v41 = vor.u32 %v5483_v38, %v4742_v36  ;;  %909 = vmatpush.bf16.msrb.mxu1 %v4691_v50  ;;  %v4502_v36 = vld [vmem:[#allocation12 + $0x78] sm:$0xf] }
  0xa7   :  { %v4454_v50 = vld [vmem:[#allocation12 + $0x18] sm:$0xf] }
  0xa8   :  { %v6177_v43 = vsub.f32 %v6157_v31, %v215_v42  ;;  %v4478_v31 = vld [vmem:[#allocation12 + $0x60] sm:$0xf]  ;;  %v4747_v42 = vor.u32 %v5477_v39, %v4744_v33  ;;  %922 = vmatpush.bf16.msrb.mxu2 %v4743_v41  ;;  %v4499_v39 = vor.u32 %v5416_v29, %v4496_v35  ;;  %v4503_v33 = vor.u32 %v5423_v37, %v4502_v36  ;;  %v5417_v41 = vld [vmem:[#allocation12 + $0x7c] sm:$0xf]  ;;  %v5484_v29 = vld [vmem:[#allocation12 + $0x28c] sm:$0xf0] }
  0xa9   :  { %v4479_v58 = vor.u32 %v5420_v56, %v4478_v31  ;;  %v5458_v31 = vld [vmem:[#allocation12 + $0x1bc] sm:$0xf0]  ;;  %v5452_v56 = vld [vmem:[#allocation12 + $0x194] sm:$0xf]  ;;  %v4758_v36 = vld [vmem:[#allocation12 + $0x268] sm:$0xf] }
  0xaa   :  { %v219_v44 = vmul.f32 %v6177_v43, %v6177_v43  ;;  %936 = vmatpush.bf16.msrb.mxu3 %v4747_v42  ;;  %v4639_v57 = vor.u32 %v5458_v31, %v4638_v55  ;;  %v4504_v42 = vld [vmem:[#allocation12 + $0xa8] sm:$0xf0]  ;;  %v4455_v55 = vor.u32 %v5411_v52, %v4454_v50  ;;  %v4752_v35 = vld [vmem:[#allocation12 + $0x290] sm:$0xf0]  ;;  %v5485_v37 = vld [vmem:[#allocation12 + $0x294] sm:$0xf0] }
  0xab   :  { %843 = vmatpush.bf16.msra.mxu0 %v4479_v58  ;;  %v4640_v58 = vld [vmem:[#allocation12 + $0x1c0] sm:$0xf0]  ;;  %v5467_v50 = vld [vmem:[#allocation12 + $0x20c] sm:$0xf] }
  0xac   :  { %222 = vadd.xlane.f32.xlu1 %v219_v44  ;;  %v4686_v44 = vld [vmem:[#allocation12 + $0x1f0] sm:$0xf]  ;;  %923 = vmatpush.bf16.msrb.mxu2 %v4695_v51  ;;  %v4643_v61 = vor.u32 %v5452_v56, %v4640_v58  ;;  %v4451_v51 = vor.u32 %v5404_v48, %v4448_v49  ;;  %v4710_v48 = vld [vmem:[#allocation12 + $0x208] sm:$0xf]  ;;  %v5473_v49 = vld [vmem:[#allocation12 + $0x234] sm:$0xf0] }
  0xad   :  { %v4687_v46 = vor.u32 %v5470_v45, %v4686_v44  ;;  %v4507_v44 = vor.u32 %v5417_v41, %v4504_v42  ;;  %v4702_v42 = vld [vmem:[#allocation12 + $0x200] sm:$0xf] }
  0xae   :  { %937 = vmatpush.bf16.msrb.mxu3 %v4699_v54  ;;  %910 = vmatpush.bf16.msrb.mxu1 %v4643_v61  ;;  %v4456_v54 = vld [vmem:[#allocation12 + $0x48] sm:$0xf0] }
  0xaf   :  { %844 = vmatpush.bf16.msra.mxu0 %v4431_v6  ;;  %v4592_v6 = vld [vmem:[#allocation12 + $0x160] sm:$0xf0]  ;;  %v4459_v31 = vor.u32 %v5405_v53, %v4456_v54  ;;  %v4654_v54 = vld [vmem:[#allocation12 + $0x1a0] sm:$0xf] }
  0xb0   :  { %924 = vmatpush.bf16.msrb.mxu2 %v4647_v62  ;;  %v4595_v9 = vor.u32 %v5440_v4, %v4592_v6 }
  0xb2   :  { %938 = vmatpush.bf16.msrb.mxu3 %v4651_v1  ;;  %911 = vmatpush.bf16.msrb.mxu1 %v4595_v9 }
  0xb3   :  { %893 = vmatpush.bf16.msrb.mxu0 %v4783_v19  ;;  %v4550_v19 = vld [vmem:[#allocation12 + $0xd8] sm:$0xf] }
  0xb4   :  { %925 = vmatpush.bf16.msrb.mxu2 %v4599_v10  ;;  %v4551_v22 = vor.u32 %v5435_v20, %v4550_v19  ;;  %v4806_v19 = vld [vmem:[#allocation12 + $0x2c8] sm:$0xf] }
  0xb6   :  { %939 = vmatpush.bf16.msrb.mxu3 %v4603_v13  ;;  %912 = vmatpush.bf16.msrb.mxu1 %v4547_v21 }
  0xb7   :  { %894 = vmatpush.bf16.msrb.mxu0 %v4735_v30 }
  0xb8   :  { %926 = vmatpush.bf16.msrb.mxu2 %v4551_v22  ;;  %v5497_v22 = vld [vmem:[#allocation12 + $0x2f4] sm:$0xf0] }
  0xba   :  { %940 = vmatpush.bf16.msrb.mxu3 %v4555_v25  ;;  %913 = vmatpush.bf16.msrb.mxu1 %v4499_v39  ;;  %v4799_v25 = vor.u32 %v5496_v16, %v4798_v15  ;;  %v4760_v39 = vld [vmem:[#allocation12 + $0x298] sm:$0xf0] }
  0xbb   :  { %895 = vmatpush.bf16.msrb.mxu0 %v4687_v46  ;;  %v5410_v46 = vld [vmem:[#allocation12 + $0x3c] sm:$0xf0] }
  0xbc   :  { %v4447_v47 = vor.u32 %v5410_v46, %v4446_v28  ;;  %927 = vmatpush.bf16.msrb.mxu2 %v4503_v33  ;;  %v4751_v33 = vor.u32 %v5484_v29, %v4750_v27  ;;  %v5466_v46 = vld [vmem:[#allocation12 + $0x204] sm:$0xf] }
  0xbe   :  { %941 = vmatpush.bf16.msrb.mxu3 %v4507_v44  ;;  %914 = vmatpush.bf16.msrb.mxu1 %v4451_v51  ;;  %v5472_v44 = vld [vmem:[#allocation12 + $0x22c] sm:$0xf0]  ;;  %v4712_v51 = vld [vmem:[#allocation12 + $0x238] sm:$0xf0] }
  0xbf   :  { %896 = vmatpush.bf16.msrb.mxu0 %v4639_v57  ;;  %v4703_v52 = vor.u32 %v5472_v44, %v4702_v42  ;;  %v5406_v42 = vld [vmem:[#allocation12 + $0x24] sm:$0xf]  ;;  %v4464_v44 = vld [vmem:[#allocation12 + $0x50] sm:$0xf0] }
  0xc0   :  { %928 = vmatpush.bf16.msrb.mxu2 %v4455_v55  ;;  %v5460_v55 = vld [vmem:[#allocation12 + $0x1cc] sm:$0xf0] }
  0xc2   :  { %942 = vmatpush.bf16.msrb.mxu3 %v4459_v31  ;;  %v4711_v31 = vor.u32 %v5473_v49, %v4710_v48  ;;  %v5407_v48 = vld [vmem:[#allocation12 + $0x2c] sm:$0xf]  ;;  %v4472_v49 = vld [vmem:[#allocation12 + $0x58] sm:$0xf0] }
  0xc3   :  { %897 = vmatpush.bf16.msrb.mxu0 %v4591_v5 }
  0xc7   :  { %898 = vmatpush.bf16.msrb.mxu0 %v4543_v17  ;;  %v5490_v17 = vld [vmem:[#allocation12 + $0x2c4] sm:$0xf] }
  0xc8   :  { %v4803_v26 = vor.u32 %v5490_v17, %v4800_v18  ;;  %v5430_v17 = vld [vmem:[#allocation12 + $0xe4] sm:$0xf]  ;;  %v4560_v18 = vld [vmem:[#allocation12 + $0x110] sm:$0xf0] }
  0xcb   :  { %899 = vmatpush.bf16.msrb.mxu0 %v4495_v34  ;;  %v4811_v34 = vor.u32 %v5491_v23, %v4808_v24  ;;  %v4563_v24 = vor.u32 %v5430_v17, %v4560_v18  ;;  %v5518_v17 = vld [vmem:[#allocation14 + $0xa4] sm:$0xf]  ;;  %v4898_v18 = vld [vmem:[#allocation14 + $0xb0] sm:$0xf0] }
  0xcf   :  { %900 = vmatpush.bf16.msrb.mxu0 %v4447_v47  ;;  %v4704_v47 = vld [vmem:[#allocation12 + $0x230] sm:$0xf0] }
  0xd0   :  { %v4707_v53 = vor.u32 %v5466_v46, %v4704_v47  ;;  %v4470_v46 = vld [vmem:[#allocation12 + $0x28] sm:$0xf]  ;;  %v5413_v47 = vld [vmem:[#allocation12 + $0x54] sm:$0xf0] }
 0x117   :  { %v221_v30 = vpop.xlane.xlu1 %220 }
 0x118   :  { %v224_v38 = vmul.f32 %v221_v30, %v6167_v32  ;;  %v4807_v30 = vor.u32 %v5497_v22, %v4806_v19  ;;  %v4566_v19 = vld [vmem:[#allocation12 + $0xe8] sm:$0xf]  ;;  %v4568_v22 = vld [vmem:[#allocation12 + $0x118] sm:$0xf0] }
 0x11a   :  { %v226_v45 = vadd.f32 1e-05, %v224_v38  ;;  %v5479_v38 = vld [vmem:[#allocation12 + $0x26c] sm:$0xf] }
 0x11b   :  { %v4763_v28 = vor.u32 %v5479_v38, %v4760_v39  ;;  %v4462_v38 = vld [vmem:[#allocation12 + $0x20] sm:$0xf] }
 0x11c   :  { %5670 = vrsqrt.f32 %v226_v45  ;;  %vm234_vm8 = vweird.f32 %v226_v45 }
 0x11f   :  { %v223_v56 = vpop.xlane.xlu1 %222 }
 0x120   :  { %v225_v57 = vmul.f32 %v223_v56, %v6167_v32  ;;  %v4715_v56 = vor.u32 %v5467_v50, %v4712_v51  ;;  %v4928_v50 = vld [vmem:[#allocation14 + $0xe0] sm:$0xf]  ;;  %v5528_v51 = vld [vmem:[#allocation14 + $0xec] sm:$0xf0]  ;;  %v5547_v32 = vld [vmem:[#allocation14 + $0x18c] sm:$0xf] }
 0x122   :  { %v5671_v58 = vpop.eup %5670  ;;  %v227_v59 = vadd.f32 1e-05, %v225_v57  ;;  %v5454_v57 = vld [vmem:[#allocation12 + $0x1a4] sm:$0xf] }
 0x123   :  { %v229_v60 = vmul.f32 %v5671_v58, %v226_v45  ;;  %vm235_vm7 = vweird.f32 %v5671_v58  ;;  %v4759_v45 = vor.u32 %v5485_v37, %v4758_v36  ;;  %v5419_v36 = vld [vmem:[#allocation12 + $0x8c] sm:$0xf]  ;;  %v4520_v37 = vld [vmem:[#allocation12 + $0xb8] sm:$0xf0] }
 0x124   :  { %5672 = vrsqrt.f32 %v227_v59  ;;  %vm236_vm9 = vmor %vm234_vm8, %vm235_vm7  ;;  %vm244_vm11 = vweird.f32 %v227_v59 }
 0x125   :  { %v230_v61 = vmul.f32 %v5671_v58, %v229_v60  ;;  %v5461_v60 = vld [vmem:[#allocation12 + $0x1d4] sm:$0xf0] }
 0x127   :  { %v231_v62 = vmul.f32 0.5, %v230_v61  ;;  %v5455_v61 = vld [vmem:[#allocation12 + $0x1ac] sm:$0xf] }
 0x129   :  { %v232_v63 = vsub.f32 1.5, %v231_v62  ;;  %v4664_v62 = vld [vmem:[#allocation12 + $0x1d8] sm:$0xf0] }
 0x12a   :  { %v5673_v0 = vpop.eup %5672 }
 0x12b   :  { %v233_v1 = vmul.f32 %v5671_v58, %v232_v63  ;;  %v239_v2 = vmul.f32 %v5673_v0, %v227_v59  ;;  %vm245_vm10 = vweird.f32 %v5673_v0  ;;  %v4662_v59 = vld [vmem:[#allocation12 + $0x1a8] sm:$0xf]  ;;  %v4655_v63 = vor.u32 %v5460_v55, %v4654_v54  ;;  %v5526_v54 = vld [vmem:[#allocation14 + $0xe4] sm:$0xf] }
 0x12c   :  { %vm246_vm12 = vmor %vm244_vm11, %vm245_vm10 }
 0x12d   :  { %v240_v3 = vmul.f32 %v5673_v0, %v239_v2  ;;  %v237_v4 = vsel %vm236_vm9, %v5671_v58, %v233_v1  ;;  %v4656_v58 = vld [vmem:[#allocation12 + $0x1d0] sm:$0xf0]  ;;  %v4606_v1 = vld [vmem:[#allocation12 + $0x140] sm:$0xf]  ;;  %v5448_v2 = vld [vmem:[#allocation12 + $0x16c] sm:$0xf0] }
 0x12e   :  { %v248_v8 = vmul.f32 %v237_v4, %v6171_v40  ;;  %v4667_v4 = vor.u32 %v5455_v61, %v4664_v62  ;;  %v6195_v61 = vor.u32 %v5528_v51, %v4928_v50  ;;  %v4848_v51 = vld [vmem:[#allocation14 + $0x40] sm:$0xf]  ;;  %vm7855_vm9 = vcmask 1046528  }
 0x12f   :  { %v241_v5 = vmul.f32 0.5, %v240_v3  ;;  %v4663_v3 = vor.u32 %v5461_v60, %v4662_v59  ;;  %v4471_v59 = vor.u32 %v5413_v47, %v4470_v46  ;;  %v4475_v60 = vor.u32 %v5407_v48, %v4472_v49  ;;  %v4866_v46 = vld [vmem:[#allocation14 + $0x70] sm:$0xf0]  ;;  %v5542_v47 = vld [vmem:[#allocation14 + $0x164] sm:$0xf] }
 0x130   :  { %v253_v12 = vmul.f32 %v5664_v7, %v248_v8  ;;  %v5449_v8 = vld [vmem:[#allocation12 + $0x174] sm:$0xf0]  ;;  %v4994_v48 = vld [vmem:[#allocation14 + $0x170] sm:$0xf0] }
 0x131   :  { %v242_v6 = vsub.f32 1.5, %v241_v5  ;;  %v5442_v5 = vld [vmem:[#allocation12 + $0x144] sm:$0xf] }
 0x132   :  { %v258_v20 = vadd.f32 %v5665_v11, %v253_v12 }
 0x133   :  { %v243_v9 = vmul.f32 %v5673_v0, %v242_v6  ;;  %v4608_v6 = vld [vmem:[#allocation12 + $0x170] sm:$0xf0] }
 0x134   :  { %v4611_v12 = vor.u32 %v5442_v5, %v4608_v6  ;;  %v5522_v5 = vld [vmem:[#allocation14 + $0xc4] sm:$0xf]  ;;  %v4914_v6 = vld [vmem:[#allocation14 + $0xd0] sm:$0xf0] }
 0x135   :  { %v247_v10 = vsel %vm246_vm12, %v5673_v0, %v243_v9  ;;  %v4659_v0 = vor.u32 %v5454_v57, %v4656_v58  ;;  %v5443_v9 = vld [vmem:[#allocation12 + $0x14c] sm:$0xf]  ;;  %v5558_v57 = vld [vmem:[#allocation14 + $0x1e4] sm:$0xf]  ;;  %v5058_v58 = vld [vmem:[#allocation14 + $0x1f0] sm:$0xf0] }
 0x136   :  { %v249_v13 = vmul.f32 %v247_v10, %v6177_v43  ;;  %v5478_v43 = vld [vmem:[#allocation12 + $0x264] sm:$0xf]  ;;  %v4616_v10 = vld [vmem:[#allocation12 + $0x178] sm:$0xf0] }
 0x137   :  { %v4755_v41 = vor.u32 %v5478_v43, %v4752_v35  ;;  %v4619_v16 = vor.u32 %v5443_v9, %v4616_v10  ;;  %v4518_v43 = vld [vmem:[#allocation12 + $0x88] sm:$0xf]  ;;  %v5425_v35 = vld [vmem:[#allocation12 + $0xb4] sm:$0xf0] }
 0x138   :  { %v254_v14 = vmul.f32 %v5664_v7, %v249_v13  ;;  %v4614_v7 = vld [vmem:[#allocation12 + $0x148] sm:$0xf]  ;;  %v4558_v13 = vld [vmem:[#allocation12 + $0xe0] sm:$0xf] }
 0x139   :  { %v4615_v15 = vor.u32 %v5449_v8, %v4614_v7  ;;  %v5554_v7 = vld [vmem:[#allocation14 + $0x1c4] sm:$0xf]  ;;  %v5042_v8 = vld [vmem:[#allocation14 + $0x1d0] sm:$0xf0] }
 0x13a   :  { %v259_v21 = vadd.f32 %v5665_v11, %v254_v14  ;;  %v4607_v11 = vor.u32 %v5448_v2, %v4606_v1  ;;  %v5436_v14 = vld [vmem:[#allocation12 + $0x10c] sm:$0xf0]  ;;  %v6201_v2 = vor.u32 %v5558_v57, %v5058_v58  ;;  %v4850_v57 = vld [vmem:[#allocation14 + $0x50] sm:$0xf0]  ;;  %v5538_v58 = vld [vmem:[#allocation14 + $0x144] sm:$0xf] }
 0x13b   :  { %v4559_v23 = vor.u32 %v5436_v14, %v4558_v13  ;;  %v6211_v13 = vor.u32 %v5522_v5, %v4914_v6  ;;  %v6213_v14 = vor.u32 %v5554_v7, %v5042_v8  ;;  %v4960_v5 = vld [vmem:[#allocation14 + $0x120] sm:$0xf]  ;;  %v5536_v8 = vld [vmem:[#allocation14 + $0x12c] sm:$0xf0] }
 0x13c   :  { %v6185_v40 = vpack.c.bf16 %v259_v21, %v258_v20  ;;  %v5437_v20 = vld [vmem:[#allocation12 + $0x114] sm:$0xf0]  ;;  %v5431_v21 = vld [vmem:[#allocation12 + $0xec] sm:$0xf] }
 0x13d   :  { %v4567_v27 = vor.u32 %v5437_v20, %v4566_v19  ;;  %v4571_v29 = vor.u32 %v5431_v21, %v4568_v22  ;;  %v5550_v19 = vld [vmem:[#allocation14 + $0x1a4] sm:$0xf]  ;;  %v5026_v20 = vld [vmem:[#allocation14 + $0x1b0] sm:$0xf0] }
 0x13e   :  { %845 = vmatmul.bf16.vlgmr.msra.gmra.mxu0 %v6185_v40  ;;  %859 = vmatmul.bf16.vlgmr.msra.gmra.mxu1 %v6185_v40 }
 0x13f   :  { %873 = vmatmul.bf16.vlgmr.msra.gmra.mxu2 %v6185_v40  ;;  %887 = vmatmul.bf16.vlgmr.msra.gmra.mxu3 %v6185_v40 }
 0x140   :  { %949 = vmatpush.bf16.msra.mxu0 %v4799_v25  ;;  %963 = vmatpush.bf16.msra.mxu1 %v4803_v26  ;;  %v4510_v25 = vld [vmem:[#allocation12 + $0x80] sm:$0xf]  ;;  %v5424_v26 = vld [vmem:[#allocation12 + $0xac] sm:$0xf0] }
 0x141   :  { %977 = vmatpush.bf16.msra.mxu2 %v4807_v30  ;;  %991 = vmatpush.bf16.msra.mxu3 %v4811_v34  ;;  %v5418_v30 = vld [vmem:[#allocation12 + $0x84] sm:$0xf]  ;;  %v4512_v34 = vld [vmem:[#allocation12 + $0xb0] sm:$0xf0]  ;;  %v4511_v39 = vor.u32 %v5424_v26, %v4510_v25  ;;  %v1409_v25 = vlaneseq  ;;  %v6227_v26 = vor.u32 %v5518_v17, %v4898_v18  ;;  %v4816_v18 = vld [vmem:[#allocation14] sm:$0xf] }
 0x142   :  { %v5523_v17 = vld [vmem:[#allocation14 + $0xcc] sm:$0xf] }
 0x144   :  { %950 = vmatpush.bf16.msra.mxu0 %v4751_v33  ;;  %964 = vmatpush.bf16.msra.mxu1 %v4755_v41  ;;  %v4515_v33 = vor.u32 %v5418_v30, %v4512_v34  ;;  %v5412_v41 = vld [vmem:[#allocation12 + $0x4c] sm:$0xf0]  ;;  %v5514_v30 = vld [vmem:[#allocation14 + $0x84] sm:$0xf]  ;;  %v4882_v34 = vld [vmem:[#allocation14 + $0x90] sm:$0xf0] }
 0x145   :  { %978 = vmatpush.bf16.msra.mxu2 %v4759_v45  ;;  %992 = vmatpush.bf16.msra.mxu3 %v4763_v28  ;;  %v4519_v45 = vor.u32 %v5425_v35, %v4518_v43  ;;  %v4523_v28 = vor.u32 %v5419_v36, %v4520_v37  ;;  %v4463_v55 = vor.u32 %v5412_v41, %v4462_v38  ;;  %v5546_v43 = vld [vmem:[#allocation14 + $0x184] sm:$0xf]  ;;  %v5010_v35 = vld [vmem:[#allocation14 + $0x190] sm:$0xf0]  ;;  %v4864_v38 = vld [vmem:[#allocation14 + $0x60] sm:$0xf] }
 0x146   :  { %v6241_v41 = vor.u32 %v5514_v30, %v4882_v34 }
 0x148   :  { %951 = vmatpush.bf16.msra.mxu0 %v4703_v52  ;;  %965 = vmatpush.bf16.msra.mxu1 %v4707_v53  ;;  %v5056_v52 = vld [vmem:[#allocation14 + $0x1e0] sm:$0xf]  ;;  %v5560_v53 = vld [vmem:[#allocation14 + $0x1ec] sm:$0xf0] }
 0x149   :  { %979 = vmatpush.bf16.msra.mxu2 %v4711_v31  ;;  %993 = vmatpush.bf16.msra.mxu3 %v4715_v56  ;;  %v4467_v31 = vor.u32 %v5406_v42, %v4464_v44  ;;  %v4930_v56 = vld [vmem:[#allocation14 + $0xf0] sm:$0xf0]  ;;  %v6197_v62 = vor.u32 %v5560_v53, %v5056_v52  ;;  %v6243_v42 = vor.u32 %v5546_v43, %v5010_v35  ;;  %v4992_v44 = vld [vmem:[#allocation14 + $0x160] sm:$0xf]  ;;  %v5508_v52 = vld [vmem:[#allocation14 + $0x4c] sm:$0xf0] }
 0x14a   :  { %v6199_v1 = vor.u32 %v5526_v54, %v4930_v56  ;;  %v6256_v54 = vor.u32 %v5542_v47, %v4994_v48  ;;  %v5506_v56 = vld [vmem:[#allocation14 + $0x44] sm:$0xf]  ;;  %v4946_v35 = vld [vmem:[#allocation14 + $0x110] sm:$0xf0]  ;;  %v5561_v47 = vld [vmem:[#allocation14 + $0x1f4] sm:$0xf0] }
 0x14b   :  { %7904 = vst [vmem:[#allocation32_spill] sm:$0xff] %v6243_v42  ;;  %v6271_v6 = vor.u32 %v5506_v56, %v4850_v57  ;;  %v5530_v43 = vld [vmem:[#allocation14 + $0x104] sm:$0xf]  ;;  %v5527_v48 = vld [vmem:[#allocation14 + $0xec] sm:$0xf] }
 0x14c   :  { %952 = vmatpush.bf16.msra.mxu0 %v4655_v63  ;;  %966 = vmatpush.bf16.msra.mxu1 %v4659_v0  ;;  %v4912_v63 = vld [vmem:[#allocation14 + $0xc0] sm:$0xf]  ;;  %v5524_v0 = vld [vmem:[#allocation14 + $0xcc] sm:$0xf0]  ;;  %7908 = vst [vmem:[#allocation36_spill] sm:$0xff] %v6256_v54 }
 0x14d   :  { %980 = vmatpush.bf16.msra.mxu2 %v4663_v3  ;;  %994 = vmatpush.bf16.msra.mxu3 %v4667_v4  ;;  %v5040_v3 = vld [vmem:[#allocation14 + $0x1c0] sm:$0xf]  ;;  %v5556_v4 = vld [vmem:[#allocation14 + $0x1cc] sm:$0xf0]  ;;  %v6205_v9 = vor.u32 %v5524_v0, %v4912_v63  ;;  %v6265_v63 = vor.u32 %v5508_v52, %v4848_v51  ;;  %7913 = vst [vmem:[#allocation39_spill] sm:$0xff] %v6271_v6 }
 0x14e   :  { %901 = vmatmul.bf16.vlgmr.msrb.gmra.mxu0 %v6185_v40  ;;  %915 = vmatmul.bf16.vlgmr.msrb.gmra.mxu1 %v6185_v40  ;;  %v6207_v10 = vor.u32 %v5556_v4, %v5040_v3  ;;  %v4832_v3 = vld [vmem:[#allocation14 + $0x20] sm:$0xf]  ;;  %v5504_v4 = vld [vmem:[#allocation14 + $0x2c] sm:$0xf0]  ;;  %v4938_v51 = vld [vmem:[#allocation14 + $0xf8] sm:$0xf0] }
 0x14f   :  { %929 = vmatmul.bf16.vlgmr.msrb.gmra.mxu2 %v6185_v40  ;;  %943 = vmatmul.bf16.vlgmr.msrb.gmra.mxu3 %v6185_v40  ;;  %7911 = vst [vmem:[#allocation37_spill] sm:$0xff] %v6265_v63  ;;  %v5066_v56 = vld [vmem:[#allocation14 + $0x1f8] sm:$0xf0] }
 0x150   :  { %953 = vmatpush.bf16.msra.mxu0 %v4607_v11  ;;  %967 = vmatpush.bf16.msra.mxu1 %v4611_v12  ;;  %v4896_v11 = vld [vmem:[#allocation14 + $0xa0] sm:$0xf]  ;;  %v5520_v12 = vld [vmem:[#allocation14 + $0xac] sm:$0xf0] }
 0x151   :  { %981 = vmatpush.bf16.msra.mxu2 %v4615_v15  ;;  %995 = vmatpush.bf16.msra.mxu3 %v4619_v16  ;;  %v5024_v15 = vld [vmem:[#allocation14 + $0x1a0] sm:$0xf]  ;;  %v5552_v16 = vld [vmem:[#allocation14 + $0x1ac] sm:$0xf0]  ;;  %v6221_v21 = vor.u32 %v5520_v12, %v4896_v11  ;;  %v5502_v11 = vld [vmem:[#allocation14 + $0x24] sm:$0xf] }
 0x152   :  { %v6223_v22 = vor.u32 %v5552_v16, %v5024_v15  ;;  %v4834_v12 = vld [vmem:[#allocation14 + $0x30] sm:$0xf0]  ;;  %v5534_v15 = vld [vmem:[#allocation14 + $0x124] sm:$0xf] }
 0x153   :  { %v4962_v16 = vld [vmem:[#allocation14 + $0x130] sm:$0xf0]  ;;  %v6290_v30 = vor.u32 %v5502_v11, %v4834_v12  ;;  %v6322_v11 = vor.u32 %v5527_v48, %v4938_v51  ;;  %v5553_v48 = vld [vmem:[#allocation14 + $0x1b4] sm:$0xf0]  ;;  %v5519_v51 = vld [vmem:[#allocation14 + $0xac] sm:$0xf] }
 0x154   :  { %954 = vmatpush.bf16.msra.mxu0 %v4559_v23  ;;  %968 = vmatpush.bf16.msra.mxu1 %v4563_v24  ;;  %v4880_v23 = vld [vmem:[#allocation14 + $0x80] sm:$0xf]  ;;  %v5516_v24 = vld [vmem:[#allocation14 + $0x8c] sm:$0xf0]  ;;  %v6292_v34 = vor.u32 %v5534_v15, %v4962_v16  ;;  %v5048_v15 = vld [vmem:[#allocation14 + $0x1c8] sm:$0xf] }
 0x155   :  { %982 = vmatpush.bf16.msra.mxu2 %v4567_v27  ;;  %996 = vmatpush.bf16.msra.mxu3 %v4571_v29  ;;  %v6229_v27 = vor.u32 %v5550_v19, %v5026_v20  ;;  %v5548_v29 = vld [vmem:[#allocation14 + $0x18c] sm:$0xf0]  ;;  %v6233_v36 = vor.u32 %v5516_v24, %v4880_v23  ;;  %v4944_v20 = vld [vmem:[#allocation14 + $0x100] sm:$0xf]  ;;  %v6284_v23 = vor.u32 %v5504_v4, %v4832_v3  ;;  %v5557_v16 = vld [vmem:[#allocation14 + $0x1d4] sm:$0xf0] }
 0x156   :  { %v5500_v19 = vld [vmem:[#allocation14 + $0xc] sm:$0xf0]  ;;  %v6286_v24 = vor.u32 %v5536_v8, %v4960_v5  ;;  %7919 = vst [vmem:[#allocation43_spill] sm:$0xff] %v6290_v30  ;;  %v4920_v5 = vld [vmem:[#allocation14 + $0xc8] sm:$0xf] }
 0x157   :  { %7917 = vst [vmem:[#allocation41_spill] sm:$0xff] %v6284_v23  ;;  %v6306_v52 = vor.u32 %v5500_v19, %v4816_v18  ;;  %v5525_v8 = vld [vmem:[#allocation14 + $0xd4] sm:$0xf0] }
 0x158   :  { %955 = vmatpush.bf16.msra.mxu0 %v4511_v39  ;;  %969 = vmatpush.bf16.msra.mxu1 %v4515_v33  ;;  %v5512_v39 = vld [vmem:[#allocation14 + $0x6c] sm:$0xf0]  ;;  %v6237_v33 = vshrl.u32 %v1409_v25, 7  ;;  %7918 = vst [vmem:[#allocation42_spill] sm:$0xff] %v6286_v24 }
 0x159   :  { %983 = vmatpush.bf16.msra.mxu2 %v4519_v45  ;;  %997 = vmatpush.bf16.msra.mxu3 %v4523_v28  ;;  %v5544_v45 = vld [vmem:[#allocation14 + $0x16c] sm:$0xf0]  ;;  %v5510_v28 = vld [vmem:[#allocation14 + $0x64] sm:$0xf]  ;;  %v6247_v49 = vor.u32 %v5512_v39, %v4864_v38  ;;  %7920 = vst [vmem:[#allocation44_spill] sm:$0xff] %v6292_v34  ;;  %v7759_v38 = vmov 0.0  }
 0x15a   :  { %7903 = vst [vmem:[#allocation31_spill] sm:$0xff] %v6237_v33  ;;  %v6249_v50 = vor.u32 %v5544_v45, %v4992_v44  ;;  %vm1414_vm13 = vcmp.lt.s32.totalorder %v6237_v33, 2  ;;  %v6254_v53 = vor.u32 %v5510_v28, %v4866_v46  ;;  %v5532_v25 = vld [vmem:[#allocation14 + $0x10c] sm:$0xf0]  ;;  %v4936_v45 = vld [vmem:[#allocation14 + $0xe8] sm:$0xf] }
 0x15b   :  { %7905 = vst [vmem:[#allocation33_spill] sm:$0xff] %v6247_v49  ;;  %vm6259_vm15 = vmxor %vm1414_vm13, %vm6039_vm14  ;;  %v5529_v28 = vld [vmem:[#allocation14 + $0xf4] sm:$0xf0]  ;;  %v5064_v46 = vld [vmem:[#allocation14 + $0x1e8] sm:$0xf] }
 0x15c   :  { %956 = vmatpush.bf16.msra.mxu0 %v4463_v55  ;;  %970 = vmatpush.bf16.msra.mxu1 %v4467_v31  ;;  %7906 = vst [vmem:[#allocation34_spill] sm:$0xff] %v6249_v50  ;;  %v4976_v55 = vld [vmem:[#allocation14 + $0x140] sm:$0xf]  ;;  %v5540_v31 = vld [vmem:[#allocation14 + $0x14c] sm:$0xf0]  ;;  %vm6278_vm1 = vmxor %vm6259_vm15, %vm6039_vm14  ;;  %v6302_v44 = vsel %vm6259_vm15, 1.0, %v7759_v38  ;;  %v6318_v3 = vor.u32 %v5529_v28, %v4936_v45  ;;  %v6320_v4 = vor.u32 %v5561_v47, %v5064_v46 }
 0x15d   :  { %984 = vmatpush.bf16.msra.mxu2 %v4471_v59  ;;  %998 = vmatpush.bf16.msra.mxu3 %v4475_v60  ;;  %7907 = vst [vmem:[#allocation35_spill] sm:$0xff] %v6254_v53  ;;  %v4978_v59 = vld [vmem:[#allocation14 + $0x150] sm:$0xf0]  ;;  %v6267_v0 = vor.u32 %v5540_v31, %v4976_v55  ;;  %v6297_v39 = vsel %vm6278_vm1, 1.0, %v7759_v38  ;;  %v6308_v55 = vor.u32 %v5532_v25, %v4944_v20  ;;  %v5559_v31 = vld [vmem:[#allocation14 + $0x1ec] sm:$0xf] }
 0x15e   :  { %v6273_v7 = vor.u32 %v5538_v58, %v4978_v59  ;;  %7921 = vst [vmem:[#allocation45_spill] sm:$0xff] %v6297_v39  ;;  %v1425_v57 = vmul.f32 0.0, %v6297_v39  ;;  %v1426_v58 = vmul.f32 0.0, %v6302_v44  ;;  %v6316_v60 = vor.u32 %v5530_v43, %v4946_v35  ;;  %v4922_v20 = vld [vmem:[#allocation14 + $0xd8] sm:$0xf0] }
 0x15f   :  { %957 = vmatmul.bf16.vlgmr.msra.gmra.mxu0 %v6185_v40  ;;  %971 = vmatmul.bf16.vlgmr.msra.gmra.mxu1 %v6185_v40  ;;  %7912 = vst [vmem:[#allocation38_spill] sm:$0xff] %v6267_v0  ;;  %v6324_v12 = vor.u32 %v5559_v31, %v5066_v56  ;;  %v5555_v25 = vld [vmem:[#allocation14 + $0x1cc] sm:$0xf]  ;;  %v6338_v43 = vor.u32 %v5557_v16, %v5048_v15  ;;  %v4904_v35 = vld [vmem:[#allocation14 + $0xa8] sm:$0xf] }
 0x160   :  { %1749 = vmatpush.bf16.msrb.mxu0 %v6195_v61  ;;  %1762 = vmatpush.bf16.msrb.mxu1 %v6197_v62  ;;  %7914 = vst [vmem:[#allocation40_spill] sm:$0xff] %v6273_v7  ;;  %v6328_v18 = vpack.c.bf16 %v1425_v57, %v1425_v57  ;;  %v6330_v19 = vpack.c.bf16 %v1426_v58, %v1426_v58  ;;  %v5521_v45 = vld [vmem:[#allocation14 + $0xb4] sm:$0xf0]  ;;  %v5032_v47 = vld [vmem:[#allocation14 + $0x1a8] sm:$0xf] }
 0x161   :  { %1775 = vmatpush.bf16.msrb.mxu2 %v6199_v1  ;;  %1788 = vmatpush.bf16.msrb.mxu3 %v6201_v2  ;;  %7922 = vst [vmem:[#allocation46_spill] sm:$0xff] %v6302_v44  ;;  %v6342_v28 = vor.u32 %v5523_v17, %v4922_v20  ;;  %v4906_v31 = vld [vmem:[#allocation14 + $0xb8] sm:$0xf0]  ;;  %v5551_v56 = vld [vmem:[#allocation14 + $0x1ac] sm:$0xf]  ;;  %v6352_v58 = vor.u32 %v5521_v45, %v4904_v35 }
 0x162   :  { %985 = vmatmul.bf16.vlgmr.msra.gmra.mxu2 %v6185_v40  ;;  %999 = vmatmul.bf16.vlgmr.msra.gmra.mxu3 %v6185_v40  ;;  %v5008_v40 = vld [vmem:[#allocation14 + $0x180] sm:$0xf]  ;;  %7923 = vst [vmem:[#allocation47_spill] sm:$0xff] %v6306_v52  ;;  %v5034_v57 = vld [vmem:[#allocation14 + $0x1b8] sm:$0xf0]  ;;  %v6358_v16 = vor.u32 %v5519_v51, %v4906_v31 }
 0x163   :  { %v6235_v37 = vor.u32 %v5548_v29, %v5008_v40  ;;  %v5498_v40 = vld [vmem:[#allocation14 + $0x4] sm:$0xf]  ;;  %v4818_v29 = vld [vmem:[#allocation14 + $0x10] sm:$0xf0]  ;;  %7924 = vst [vmem:[#allocation48_spill] sm:$0xff] %v6308_v55  ;;  %v6360_v17 = vor.u32 %v5551_v56, %v5034_v57 }
 0x164   :  { %1750 = vmatpush.bf16.msrb.mxu0 %v6205_v9  ;;  %1763 = vmatpush.bf16.msrb.mxu1 %v6207_v10  ;;  %v6314_v59 = vor.u32 %v5498_v40, %v4818_v29  ;;  %7926 = vst [vmem:[#allocation50_spill] sm:$0xff] %v6316_v60  ;;  %v5050_v40 = vld [vmem:[#allocation14 + $0x1d8] sm:$0xf0]  ;;  %v6336_v29 = vor.u32 %v5525_v8, %v4920_v5  ;;  %v4888_v8 = vld [vmem:[#allocation14 + $0x88] sm:$0xf] }
 0x165   :  { %1776 = vmatpush.bf16.msrb.mxu2 %v6211_v13  ;;  %1789 = vmatpush.bf16.msrb.mxu3 %v6213_v14  ;;  %7927 = vst [vmem:[#allocation51_spill] sm:$0xff] %v6318_v3  ;;  %v6344_v46 = vor.u32 %v5555_v25, %v5050_v40  ;;  %v6354_v5 = vor.u32 %v5553_v48, %v5032_v47  ;;  %v5517_v15 = vld [vmem:[#allocation14 + $0x94] sm:$0xf0]  ;;  %v5016_v20 = vld [vmem:[#allocation14 + $0x188] sm:$0xf] }
 0x166   :  { %7925 = vst [vmem:[#allocation49_spill] sm:$0xff] %v6314_v59  ;;  %v5549_v25 = vld [vmem:[#allocation14 + $0x194] sm:$0xf0]  ;;  %v5515_v40 = vld [vmem:[#allocation14 + $0x8c] sm:$0xf]  ;;  %v6364_v35 = vor.u32 %v5517_v15, %v4888_v8 }
 0x167   :  { %7928 = vst [vmem:[#allocation52_spill] sm:$0xff] %v6320_v4  ;;  %v4890_v38 = vld [vmem:[#allocation14 + $0x98] sm:$0xf0]  ;;  %v6366_v45 = vor.u32 %v5549_v25, %v5016_v20  ;;  %v4872_v47 = vld [vmem:[#allocation14 + $0x68] sm:$0xf] }
 0x168   :  { %1751 = vmatpush.bf16.msrb.mxu0 %v6221_v21  ;;  %1764 = vmatpush.bf16.msrb.mxu1 %v6223_v22  ;;  %7929 = vst [vmem:[#allocation53_spill] sm:$0xff] %v6322_v11  ;;  %v5018_v44 = vld [vmem:[#allocation14 + $0x198] sm:$0xf0]  ;;  %v5513_v48 = vld [vmem:[#allocation14 + $0x74] sm:$0xf0]  ;;  %v6370_v51 = vor.u32 %v5515_v40, %v4890_v38 }
 0x169   :  { %1777 = vmatpush.bf16.msrb.mxu2 %v6227_v26  ;;  %1790 = vmatpush.bf16.msrb.mxu3 %v6229_v27  ;;  %7930 = vst [vmem:[#allocation54_spill] sm:$0xff] %v6324_v12  ;;  %v6372_v31 = vor.u32 %v5547_v32, %v5018_v44  ;;  %v5000_v56 = vld [vmem:[#allocation14 + $0x168] sm:$0xf]  ;;  %v5545_v57 = vld [vmem:[#allocation14 + $0x174] sm:$0xf0]  ;;  %v6376_v8 = vor.u32 %v5513_v48, %v4872_v47 }
 0x16a   :  { %7931 = vst [vmem:[#allocation55_spill] sm:$0xff] %v6336_v29  ;;  %v5511_v39 = vld [vmem:[#allocation14 + $0x6c] sm:$0xf]  ;;  %v4874_v33 = vld [vmem:[#allocation14 + $0x78] sm:$0xf0]  ;;  %v6378_v15 = vor.u32 %v5545_v57, %v5000_v56 }
 0x16b   :  { %7932 = vst [vmem:[#allocation56_spill] sm:$0xff] %v6338_v43  ;;  %v4856_v20 = vld [vmem:[#allocation14 + $0x48] sm:$0xf]  ;;  %v5509_v25 = vld [vmem:[#allocation14 + $0x54] sm:$0xf0]  ;;  %v6382_v32 = vor.u32 %v5511_v39, %v4874_v33 }
 0x16c   :  { %1752 = vmatpush.bf16.msrb.mxu0 %v6233_v36  ;;  %1765 = vmatpush.bf16.msrb.mxu1 %v6235_v37  ;;  %7933 = vst [vmem:[#allocation57_spill] sm:$0xff] %v6342_v28  ;;  %v4984_v44 = vld [vmem:[#allocation14 + $0x148] sm:$0xf]  ;;  %v5541_v40 = vld [vmem:[#allocation14 + $0x154] sm:$0xf0]  ;;  %v6388_v47 = vor.u32 %v5509_v25, %v4856_v20 }
 0x16d   :  { %1778 = vmatpush.bf16.msrb.mxu2 %v6241_v41  ;;  %1791 = vmatpush.bf16.msrb.mxu3 %v6243_v42  ;;  %7934 = vst [vmem:[#allocation58_spill] sm:$0xff] %v6344_v46  ;;  %v6390_v48 = vor.u32 %v5541_v40, %v4984_v44  ;;  %v4840_v56 = vld [vmem:[#allocation14 + $0x28] sm:$0xf]  ;;  %v5505_v57 = vld [vmem:[#allocation14 + $0x34] sm:$0xf0] }
 0x16e   :  { %7935 = vst [vmem:[#allocation59_spill] sm:$0xff] %v6352_v58  ;;  %v6400_v20 = vor.u32 %v5505_v57, %v4840_v56  ;;  %v4824_v44 = vld [vmem:[#allocation14 + $0x8] sm:$0xf]  ;;  %v5501_v40 = vld [vmem:[#allocation14 + $0x14] sm:$0xf0] }
 0x16f   :  { %7936 = vst [vmem:[#allocation60_spill] sm:$0xff] %v6354_v5  ;;  %v6412_v56 = vor.u32 %v5501_v40, %v4824_v44 }
 0x170   :  { %1753 = vmatpush.bf16.msrb.mxu0 %v6247_v49  ;;  %1766 = vmatpush.bf16.msrb.mxu1 %v6249_v50  ;;  %7937 = vst [vmem:[#allocation61_spill] sm:$0xff] %v6358_v16 }
 0x171   :  { %1779 = vmatpush.bf16.msrb.mxu2 %v6254_v53  ;;  %1792 = vmatpush.bf16.msrb.mxu3 %v6256_v54  ;;  %7938 = vst [vmem:[#allocation62_spill] sm:$0xff] %v6360_v17 }
 0x172   :  { %7939 = vst [vmem:[#allocation63_spill] sm:$0xff] %v6364_v35 }
 0x173   :  { %7940 = vst [vmem:[#allocation64_spill] sm:$0xff] %v6366_v45 }
 0x174   :  { %1754 = vmatpush.bf16.msrb.mxu0 %v6265_v63  ;;  %1767 = vmatpush.bf16.msrb.mxu1 %v6267_v0  ;;  %7941 = vst [vmem:[#allocation65_spill] sm:$0xff] %v6370_v51 }
 0x175   :  { %1780 = vmatpush.bf16.msrb.mxu2 %v6271_v6  ;;  %1793 = vmatpush.bf16.msrb.mxu3 %v6273_v7  ;;  %7942 = vst [vmem:[#allocation66_spill] sm:$0xff] %v6372_v31 }
 0x176   :  { %7943 = vst [vmem:[#allocation67_spill] sm:$0xff] %v6376_v8 }
 0x177   :  { %7944 = vst [vmem:[#allocation68_spill] sm:$0xff] %v6378_v15 }
 0x178   :  { %1755 = vmatpush.bf16.msrb.mxu0 %v6284_v23  ;;  %1768 = vmatpush.bf16.msrb.mxu1 %v6286_v24  ;;  %7945 = vst [vmem:[#allocation69_spill] sm:$0xff] %v6382_v32 }
 0x179   :  { %1781 = vmatpush.bf16.msrb.mxu2 %v6290_v30  ;;  %1794 = vmatpush.bf16.msrb.mxu3 %v6292_v34  ;;  %7947 = vst [vmem:[#allocation71_spill] sm:$0xff] %v6388_v47  ;;  %v7963_v44 = vld [vmem:[#allocation63_spill] sm:$0xff] }
 0x17a   :  { %7948 = vst [vmem:[#allocation72_spill] sm:$0xff] %v6390_v48  ;;  %v7964_v40 = vld [vmem:[#allocation64_spill] sm:$0xff] }
 0x17b   :  { %7951 = vst [vmem:[#allocation75_spill] sm:$0xff] %v6400_v20 }
 0x17c   :  { %1756 = vmatpush.bf16.msrb.mxu0 %v6306_v52  ;;  %1769 = vmatpush.bf16.msrb.mxu1 %v6308_v55  ;;  %7955 = vst [vmem:[#allocation79_spill] sm:$0xff] %v6412_v56 }
 0x17d   :  { %1782 = vmatpush.bf16.msrb.mxu2 %v6314_v59  ;;  %1795 = vmatpush.bf16.msrb.mxu3 %v6316_v60 }
 0x17f   :  { %1757 = vmatmul.bf16.vlgmr.msrb.gmra.mxu0 %v6328_v18  ;;  %1770 = vmatmul.bf16.vlgmr.msrb.gmra.mxu1 %v6330_v19 }
 0x180   :  { %1801 = vmatpush.bf16.msra.mxu0 %v6318_v3  ;;  %1814 = vmatpush.bf16.msra.mxu1 %v6320_v4 }
 0x181   :  { %1827 = vmatpush.bf16.msra.mxu2 %v6322_v11  ;;  %1840 = vmatpush.bf16.msra.mxu3 %v6324_v12 }
 0x182   :  { %1783 = vmatmul.bf16.vlgmr.msrb.gmra.mxu2 %v6328_v18  ;;  %1796 = vmatmul.bf16.vlgmr.msrb.gmra.mxu3 %v6330_v19 }
 0x184   :  { %1802 = vmatpush.bf16.msra.mxu0 %v6336_v29  ;;  %1815 = vmatpush.bf16.msra.mxu1 %v6338_v43 }
 0x185   :  { %1828 = vmatpush.bf16.msra.mxu2 %v6342_v28  ;;  %1841 = vmatpush.bf16.msra.mxu3 %v6344_v46 }
 0x188   :  { %1803 = vmatpush.bf16.msra.mxu0 %v6352_v58  ;;  %1816 = vmatpush.bf16.msra.mxu1 %v6354_v5  ;;  %v5543_v58 = vld [vmem:[#allocation14 + $0x16c] sm:$0xf]  ;;  %v5002_v5 = vld [vmem:[#allocation14 + $0x178] sm:$0xf0] }
 0x189   :  { %1829 = vmatpush.bf16.msra.mxu2 %v6358_v16  ;;  %1842 = vmatpush.bf16.msra.mxu3 %v6360_v17  ;;  %v6384_v38 = vor.u32 %v5543_v58, %v5002_v5  ;;  %v5507_v17 = vld [vmem:[#allocation14 + $0x4c] sm:$0xf]  ;;  %v4968_v58 = vld [vmem:[#allocation14 + $0x128] sm:$0xf]  ;;  %v5537_v5 = vld [vmem:[#allocation14 + $0x134] sm:$0xf0] }
 0x18a   :  { %v5539_v16 = vld [vmem:[#allocation14 + $0x14c] sm:$0xf]  ;;  %v6402_v25 = vor.u32 %v5537_v5, %v4968_v58 }
 0x18b   :  { %7946 = vst [vmem:[#allocation70_spill] sm:$0xff] %v6384_v38 }
 0x18c   :  { %1804 = vmatpush.bf16.msra.mxu0 %v6364_v35  ;;  %1817 = vmatpush.bf16.msra.mxu1 %v6366_v45  ;;  %v4858_v35 = vld [vmem:[#allocation14 + $0x58] sm:$0xf0]  ;;  %7952 = vst [vmem:[#allocation76_spill] sm:$0xff] %v6402_v25 }
 0x18d   :  { %1830 = vmatpush.bf16.msra.mxu2 %v6370_v51  ;;  %1843 = vmatpush.bf16.msra.mxu3 %v6372_v31  ;;  %v4986_v45 = vld [vmem:[#allocation14 + $0x158] sm:$0xf0]  ;;  %v6394_v33 = vor.u32 %v5507_v17, %v4858_v35  ;;  %v5503_v31 = vld [vmem:[#allocation14 + $0x2c] sm:$0xf]  ;;  %v4952_v35 = vld [vmem:[#allocation14 + $0x108] sm:$0xf] }
 0x18e   :  { %v6396_v39 = vor.u32 %v5539_v16, %v4986_v45  ;;  %v5535_v51 = vld [vmem:[#allocation14 + $0x12c] sm:$0xf]  ;;  %v5533_v45 = vld [vmem:[#allocation14 + $0x114] sm:$0xf0] }
 0x18f   :  { %7949 = vst [vmem:[#allocation73_spill] sm:$0xff] %v6394_v33  ;;  %v6414_v57 = vor.u32 %v5533_v45, %v4952_v35  ;;  %v7965_v35 = vld [vmem:[#allocation65_spill] sm:$0xff]  ;;  %v7966_v45 = vld [vmem:[#allocation66_spill] sm:$0xff] }
 0x190   :  { %1805 = vmatpush.bf16.msra.mxu0 %v6376_v8  ;;  %1818 = vmatpush.bf16.msra.mxu1 %v6378_v15  ;;  %7950 = vst [vmem:[#allocation74_spill] sm:$0xff] %v6396_v39  ;;  %v4842_v8 = vld [vmem:[#allocation14 + $0x38] sm:$0xf0] }
 0x191   :  { %1831 = vmatpush.bf16.msra.mxu2 %v6382_v32  ;;  %1844 = vmatpush.bf16.msra.mxu3 %v6384_v38  ;;  %v4970_v15 = vld [vmem:[#allocation14 + $0x138] sm:$0xf0]  ;;  %v6406_v16 = vor.u32 %v5503_v31, %v4842_v8  ;;  %v5499_v38 = vld [vmem:[#allocation14 + $0xc] sm:$0xf]  ;;  %7956 = vst [vmem:[#allocation80_spill] sm:$0xff] %v6414_v57 }
 0x192   :  { %v6408_v17 = vor.u32 %v5535_v51, %v4970_v15  ;;  %v5531_v32 = vld [vmem:[#allocation14 + $0x10c] sm:$0xf]  ;;  %v7960_v15 = vld [vmem:[#allocation60_spill] sm:$0xff] }
 0x193   :  { %7953 = vst [vmem:[#allocation77_spill] sm:$0xff] %v6406_v16  ;;  %v7959_v8 = vld [vmem:[#allocation59_spill] sm:$0xff] }
 0x194   :  { %1806 = vmatpush.bf16.msra.mxu0 %v6388_v47  ;;  %1819 = vmatpush.bf16.msra.mxu1 %v6390_v48  ;;  %7954 = vst [vmem:[#allocation78_spill] sm:$0xff] %v6408_v17  ;;  %v4826_v47 = vld [vmem:[#allocation14 + $0x18] sm:$0xf0] }
 0x195   :  { %1832 = vmatpush.bf16.msra.mxu2 %v6394_v33  ;;  %1845 = vmatpush.bf16.msra.mxu3 %v6396_v39  ;;  %v4954_v48 = vld [vmem:[#allocation14 + $0x118] sm:$0xf0]  ;;  %v6418_v51 = vor.u32 %v5499_v38, %v4826_v47 }
 0x196   :  { %v6420_v31 = vor.u32 %v5531_v32, %v4954_v48  ;;  %v7961_v47 = vld [vmem:[#allocation61_spill] sm:$0xff]  ;;  %v7962_v48 = vld [vmem:[#allocation62_spill] sm:$0xff] }
 0x197   :  { %7957 = vst [vmem:[#allocation81_spill] sm:$0xff] %v6418_v51 }
 0x198   :  { %1807 = vmatpush.bf16.msra.mxu0 %v6400_v20  ;;  %1820 = vmatpush.bf16.msra.mxu1 %v6402_v25  ;;  %7958 = vst [vmem:[#allocation82_spill] sm:$0xff] %v6420_v31 }
 0x199   :  { %1833 = vmatpush.bf16.msra.mxu2 %v6406_v16  ;;  %1846 = vmatpush.bf16.msra.mxu3 %v6408_v17 }
 0x19c   :  { %1808 = vmatpush.bf16.msra.mxu0 %v6412_v56  ;;  %1821 = vmatpush.bf16.msra.mxu1 %v6414_v57 }
 0x19d   :  { %1834 = vmatpush.bf16.msra.mxu2 %v6418_v51  ;;  %1847 = vmatpush.bf16.msra.mxu3 %v6420_v31 }
 0x19f   :  { %1809 = vmatmul.bf16.vlgmr.msra.gmra.mxu0 %v6328_v18  ;;  %1822 = vmatmul.bf16.vlgmr.msra.gmra.mxu1 %v6330_v19 }
 0x1a0   :  { %1924 = vmatpush.bf16.msrb.mxu0 %v6195_v61  ;;  %1937 = vmatpush.bf16.msrb.mxu1 %v6197_v62 }
 0x1a1   :  { %1835 = vmatmul.bf16.vlgmr.msra.gmra.mxu2 %v6328_v18  ;;  %1848 = vmatmul.bf16.vlgmr.msra.gmra.mxu3 %v6330_v19 }
 0x1a2   :  { %1950 = vmatpush.bf16.msrb.mxu2 %v6199_v1  ;;  %1963 = vmatpush.bf16.msrb.mxu3 %v6201_v2 }
 0x1a4   :  { %1925 = vmatpush.bf16.msrb.mxu0 %v6205_v9  ;;  %1938 = vmatpush.bf16.msrb.mxu1 %v6207_v10 }
 0x1a6   :  { %1951 = vmatpush.bf16.msrb.mxu2 %v6211_v13  ;;  %1964 = vmatpush.bf16.msrb.mxu3 %v6213_v14 }
 0x1a8   :  { %1926 = vmatpush.bf16.msrb.mxu0 %v6221_v21  ;;  %1939 = vmatpush.bf16.msrb.mxu1 %v6223_v22 }
 0x1aa   :  { %1952 = vmatpush.bf16.msrb.mxu2 %v6227_v26  ;;  %1965 = vmatpush.bf16.msrb.mxu3 %v6229_v27 }
 0x1ac   :  { %1927 = vmatpush.bf16.msrb.mxu0 %v6233_v36  ;;  %1940 = vmatpush.bf16.msrb.mxu1 %v6235_v37 }
 0x1ae   :  { %1953 = vmatpush.bf16.msrb.mxu2 %v6241_v41  ;;  %1966 = vmatpush.bf16.msrb.mxu3 %v6243_v42 }
 0x1b0   :  { %1928 = vmatpush.bf16.msrb.mxu0 %v6247_v49  ;;  %1941 = vmatpush.bf16.msrb.mxu1 %v6249_v50 }
 0x1b2   :  { %1954 = vmatpush.bf16.msrb.mxu2 %v6254_v53  ;;  %1967 = vmatpush.bf16.msrb.mxu3 %v6256_v54 }
 0x1b4   :  { %1929 = vmatpush.bf16.msrb.mxu0 %v6265_v63  ;;  %1942 = vmatpush.bf16.msrb.mxu1 %v6267_v0 }
 0x1b6   :  { %1955 = vmatpush.bf16.msrb.mxu2 %v6271_v6  ;;  %1968 = vmatpush.bf16.msrb.mxu3 %v6273_v7 }
 0x1b8   :  { %1930 = vmatpush.bf16.msrb.mxu0 %v6284_v23  ;;  %1943 = vmatpush.bf16.msrb.mxu1 %v6286_v24 }
 0x1ba   :  { %1956 = vmatpush.bf16.msrb.mxu2 %v6290_v30  ;;  %1969 = vmatpush.bf16.msrb.mxu3 %v6292_v34 }
 0x1bb   :  { %v6466_v18 = vpop.f32.mrf.mxu0  ;;  %v6468_v19 = vpop.f32.mrf.mxu1 }
 0x1bc   :  { %1931 = vmatpush.bf16.msrb.mxu0 %v6306_v52  ;;  %1944 = vmatpush.bf16.msrb.mxu1 %v6308_v55 }
 0x1be   :  { %1957 = vmatpush.bf16.msrb.mxu2 %v6314_v59  ;;  %1970 = vmatpush.bf16.msrb.mxu3 %v6316_v60 }
 0x1c0   :  { %1976 = vmatpush.bf16.msra.mxu0 %v6318_v3  ;;  %1989 = vmatpush.bf16.msra.mxu1 %v6320_v4 }
 0x1c2   :  { %2002 = vmatpush.bf16.msra.mxu2 %v6322_v11  ;;  %2015 = vmatpush.bf16.msra.mxu3 %v6324_v12  ;;  %v6476_v32 = vpop.f32.mrf.mxu2  ;;  %v6478_v38 = vpop.f32.mrf.mxu3 }
 0x1c3   :  { %v6482_v58 = vpop.f32.mrf.mxu0  ;;  %v6484_v5 = vpop.f32.mrf.mxu1 }
 0x1c4   :  { %1977 = vmatpush.bf16.msra.mxu0 %v6336_v29  ;;  %1990 = vmatpush.bf16.msra.mxu1 %v6338_v43 }
 0x1c6   :  { %2003 = vmatpush.bf16.msra.mxu2 %v6342_v28  ;;  %2016 = vmatpush.bf16.msra.mxu3 %v6344_v46  ;;  %v7970_v28 = vld [vmem:[#allocation70_spill] sm:$0xff] }
 0x1c8   :  { %1978 = vmatpush.bf16.msra.mxu0 %v7959_v8  ;;  %1991 = vmatpush.bf16.msra.mxu1 %v7960_v15  ;;  %v7967_v15 = vld [vmem:[#allocation67_spill] sm:$0xff]  ;;  %v7968_v8 = vld [vmem:[#allocation68_spill] sm:$0xff] }
 0x1ca   :  { %2004 = vmatpush.bf16.msra.mxu2 %v7961_v47  ;;  %2017 = vmatpush.bf16.msra.mxu3 %v7962_v48  ;;  %v6492_v46 = vpop.f32.mrf.mxu2  ;;  %v6494_v47 = vpop.f32.mrf.mxu3  ;;  %v7969_v48 = vld [vmem:[#allocation69_spill] sm:$0xff] }
 0x1cb   :  { %v6498_v43 = vpop.f32.mrf.mxu0 }
 0x1cc   :  { %1979 = vmatpush.bf16.msra.mxu0 %v7963_v44  ;;  %1992 = vmatpush.bf16.msra.mxu1 %v7964_v40  ;;  %v7971_v44 = vld [vmem:[#allocation71_spill] sm:$0xff]  ;;  %v7972_v40 = vld [vmem:[#allocation72_spill] sm:$0xff] }
 0x1ce   :  { %2005 = vmatpush.bf16.msra.mxu2 %v7965_v35  ;;  %2018 = vmatpush.bf16.msra.mxu3 %v7966_v45  ;;  %v6502_v35 = vpop.f32.mrf.mxu1 }
 0x1d0   :  { %1980 = vmatpush.bf16.msra.mxu0 %v7967_v15  ;;  %1993 = vmatpush.bf16.msra.mxu1 %v7968_v8 }
 0x1d2   :  { %2006 = vmatpush.bf16.msra.mxu2 %v7969_v48  ;;  %2019 = vmatpush.bf16.msra.mxu3 %v7970_v28  ;;  %v6508_v8 = vpop.f32.mrf.mxu2  ;;  %v6510_v48 = vpop.f32.mrf.mxu3 }
 0x1d4   :  { %1981 = vmatpush.bf16.msra.mxu0 %v7971_v44  ;;  %1994 = vmatpush.bf16.msra.mxu1 %v7972_v40  ;;  %v6514_v44 = vpop.f32.mrf.mxu0 }
 0x1d6   :  { %2007 = vmatpush.bf16.msra.mxu2 %v6394_v33  ;;  %2020 = vmatpush.bf16.msra.mxu3 %v6396_v39  ;;  %v6041_v33 = vmov 8.0  }
 0x1d7   :  { %5674 = vrcp.f32 %v6041_v33 }
 0x1d8   :  { %1982 = vmatpush.bf16.msra.mxu0 %v6400_v20  ;;  %1995 = vmatpush.bf16.msra.mxu1 %v6402_v25  ;;  %v6520_v25 = vpop.f32.mrf.mxu1 }
 0x1da   :  { %2008 = vmatpush.bf16.msra.mxu2 %v6406_v16  ;;  %2021 = vmatpush.bf16.msra.mxu3 %v6408_v17  ;;  %v6522_v20 = vpop.f32.mrf.mxu2  ;;  %v6524_v39 = vpop.f32.mrf.mxu3  ;;  %v7973_v16 = vld [vmem:[#allocation31_spill] sm:$0xff] }
 0x1db   :  { %v3105_v17 = vand.u32 7, %v7973_v16  ;;  %vm3168_vm11 = vcmp.gt.s32.totalorder %v7973_v16, 0 }
 0x1dc   :  { %1983 = vmatpush.bf16.msra.mxu0 %v6412_v56  ;;  %1996 = vmatpush.bf16.msra.mxu1 %v6414_v57  ;;  %v958_v28 = vpop.f32.mrf.mxu0 }
 0x1dd   :  { %v5675_v40 = vpop.eup %5674  ;;  %v3127_v15 = vrot.slane %v958_v28, 7  ;;  %vm3133_vm5 = vcmp.ge.s32.totalorder %v3105_v17, 1  ;;  %vm6534_vm8 = vcmp.le.s32.totalorder %v3105_v17, 6  ;;  %v6544_v17 = vld [vmem:[#allocation11 + $0x2] ss:$0 sm:$0xff] }
 0x1de   :  { %2009 = vmatpush.bf16.msra.mxu2 %v6418_v51  ;;  %2022 = vmatpush.bf16.msra.mxu3 %v6420_v31  ;;  %v1018_v56 = vmul.f32 8.0, %v5675_v40  ;;  %v3100_v51 = vadd.s32 8, %v7973_v16  ;;  %vm1022_vm7 = vweird.f32 %v5675_v40 }
 0x1df   :  { %v3132_v57 = vsel %vm7856_vm0, 0.0, %v3127_v15 }
 0x1e0   :  { %v972_v33 = vpop.f32.mrf.mxu1  ;;  %v3135_v45 = vsel %vm3133_vm5, %v3132_v57, 0.0  ;;  %v1019_v29 = vsub.f32 1.0, %v1018_v56  ;;  %v3112_v60 = vand.u32 7, %v3100_v51 }
 0x1e1   :  { %v3139_v31 = vadd.f32 %v3135_v45, %v972_v33 }
 0x1e2   :  { %v1020_v59 = vmul.f32 %v5675_v40, %v1019_v29  ;;  %vm6530_vm6 = vcmp.ge.s32.totalorder %v3112_v60, 1  ;;  %vm3151_vm10 = vcmp.le.s32.totalorder %v3112_v60, 6 }
 0x1e4   :  { %v960_v3 = vpop.f32.mrf.mxu0  ;;  %v1021_v57 = vadd.f32 %v5675_v40, %v1020_v59 }
 0x1e5   :  { %v986_v12 = vpop.f32.mrf.mxu2  ;;  %v1000_v11 = vpop.f32.mrf.mxu3  ;;  %v3128_v55 = vrot.slane %v960_v3, 7  ;;  %v6540_v3 = vld [vmem:[#allocation11 + $0xb] sm:$0xff] }
 0x1e6   :  { %v1005_v4 = vrot.slane %v1000_v11, 4  ;;  %v1034_v23 = vperm.slane %v6540_v3, 0  ;;  %v1038_v56 = vperm.slane %v6540_v3, 4 }
 0x1e7   :  { %v3129_v28 = vsel %vm7856_vm0, %v3127_v15, %v3128_v55  ;;  %v6542_v15 = vsel %vm1022_vm7, %v5675_v40, %v1021_v57  ;;  %vm3185_vm7 = vcmp.gt.s32.totalorder %v7973_v16, 1  ;;  %vm3202_vm0 = vcmp.gt.s32.totalorder %v7973_v16, 2 }
 0x1e8   :  { %v1006_v52 = vadd.f32 %v1005_v4, %v1000_v11  ;;  %v3136_v51 = vsel %vm6530_vm6, %v3129_v28, 0.0  ;;  %v3144_v4 = vrot.slane %v986_v12, 1  ;;  %v974_v59 = vpop.f32.mrf.mxu1  ;;  %v5667_v28 = vld [vmem:[#allocation11 + $0x3] ss:$0 sm:$0xff] }
 0x1e9   :  { %v3140_v45 = vadd.f32 %v3136_v51, %v974_v59  ;;  %v1039_v59 = vperm.slane %v6540_v3, 5 }
 0x1ea   :  { %v1007_v34 = vrot.slane %v1006_v52, 2 }
 0x1ec   :  { %v1008_v24 = vadd.f32 %v1007_v34, %v1006_v52 }
 0x1ed   :  { %v988_v29 = vpop.f32.mrf.mxu2  ;;  %v1002_v34 = vpop.f32.mrf.mxu3 }
 0x1ee   :  { %v1009_v55 = vrot.slane %v1008_v24, 1  ;;  %v3145_v11 = vrot.slane %v988_v29, 1  ;;  %v1011_v7 = vrot.slane %v1002_v34, 4 }
 0x1f0   :  { %v1010_v52 = vadd.f32 %v1009_v55, %v1008_v24  ;;  %v3146_v33 = vsel %vm7855_vm9, %v3144_v4, %v3145_v11  ;;  %v3149_v30 = vsel %vm7855_vm9, %v3145_v11, 0.0  ;;  %v6553_v24 = vadd.f32 %v1034_v23, %v6482_v58 }
 0x1f1   :  { %v3152_v12 = vsel %vm6534_vm8, %v3146_v33, 0.0  ;;  %v3153_v29 = vsel %vm3151_vm10, %v3149_v30, 0.0  ;;  %v1035_v11 = vperm.slane %v6540_v3, 1  ;;  %v6573_v30 = vadd.f32 %v1038_v56, %v6514_v44 }
 0x1f2   :  { %v1024_v60 = vmul.f32 %v6542_v15, %v1010_v52  ;;  %v3154_v40 = vadd.f32 %v3152_v12, %v3139_v31  ;;  %v3155_v57 = vadd.f32 %v3153_v29, %v3140_v45  ;;  %7978 = vst [vmem:[#allocation31_spill] sm:$0xff] %v6553_v24  ;;  %v1012_v45 = vadd.f32 %v1011_v7, %v1002_v34 }
 0x1f3   :  { %v6570_v33 = vadd.f32 %v1035_v11, %v6484_v5  ;;  %7981 = vst [vmem:[#allocation85_spill] sm:$0xff] %v6573_v30  ;;  %v1074_v12 = vrot.slane %v6553_v24, 7  ;;  %v6578_v29 = vadd.f32 %v1039_v59, %v6520_v25  ;;  %v6588_v7 = vadd.f32 %v1034_v23, %v6466_v18 }
 0x1f4   :  { %v6556_v51 = vadd.f32 %v6544_v17, %v1024_v60  ;;  %v6558_v4 = vadd.f32 %v5667_v28, %v3154_v40  ;;  %v6560_v55 = vadd.f32 %v5667_v28, %v3155_v57  ;;  %v6591_v5 = vadd.f32 %v1038_v56, %v6498_v43 }
 0x1f5   :  { %7980 = vst [vmem:[#allocation84_spill] sm:$0xff] %v6570_v33  ;;  %v6594_v44 = vadd.f32 %v1039_v59, %v6502_v35  ;;  %v1013_v35 = vrot.slane %v1012_v45, 2  ;;  %v6621_v40 = vadd.f32 %v1035_v11, %v6468_v19  ;;  %v1076_v59 = vrot.slane %v6570_v33, 7 }
 0x1f6   :  { %7979 = vst [vmem:[#allocation83_spill] sm:$0xff] %v6556_v51  ;;  %v3162_v31 = vperm.slane %v6558_v4, 0  ;;  %v3163_v58 = vperm.slane %v6560_v55, 0  ;;  %v3179_v52 = vperm.slane %v6558_v4, 1  ;;  %v3180_v28 = vperm.slane %v6560_v55, 1 }
 0x1f7   :  { %7982 = vst [vmem:[#allocation86_spill] sm:$0xff] %v6578_v29  ;;  %v3196_v18 = vperm.slane %v6558_v4, 2  ;;  %v3197_v56 = vperm.slane %v6560_v55, 2  ;;  %v1098_v24 = vrot.slane %v6578_v29, 4  ;;  %v8005_v29 = vmov 0.0  }
 0x1f8   :  { %vm6581_vm12 = vcmp.gt.f32.partialorder %v3162_v31, %v6558_v4  ;;  %vm3166_vm13 = vcmp.eq.f32.partialorder %v3162_v31, %v6558_v4  ;;  %vm3167_vm14 = vcmp.eq.f32.partialorder %v3163_v58, %v6560_v55  ;;  %7985 = vst [vmem:[#allocation87_spill] sm:$0xff] %v6588_v7  ;;  %vm6597_vm15 = vcmp.gt.f32.partialorder %v3163_v58, %v6560_v55 }
 0x1f9   :  { %7986 = vst [vmem:[#allocation88_spill] sm:$0xff] %v6591_v5  ;;  %vm6603_vm1 = vmand %vm3166_vm13, %vm3168_vm11  ;;  %vm6614_vm6 = vcmp.eq.f32.partialorder %v3179_v52, %v6558_v4  ;;  %vm6628_vm10 = vcmp.eq.f32.partialorder %v3180_v28, %v6560_v55  ;;  %vm6639_vm13 = vcmp.gt.f32.partialorder %v3179_v52, %v6558_v4  ;;  %v1075_v31 = vsel %vm188_vm2, %v1074_v12, %v6588_v7 }
 0x1fa   :  { %7987 = vst [vmem:[#allocation89_spill] sm:$0xff] %v6594_v44  ;;  %vm6609_vm5 = vmand %vm3167_vm14, %vm3168_vm11  ;;  %v1095_v58 = vrot.slane %v6573_v30, 4  ;;  %vm6648_vm14 = vcmp.gt.f32.partialorder %v3180_v28, %v6560_v55  ;;  %v1094_v12 = vrot.slane %v6591_v5, 5  ;;  %v1097_v7 = vrot.slane %v6594_v44, 5 }
 0x1fb   :  { %7996 = vst [vmem:[#allocation90_spill] sm:$0xff] %v6621_v40  ;;  %vm3171_vm8 = vmor %vm6581_vm12, %vm6603_vm1  ;;  %vm6674_vm4 = vcmp.eq.f32.partialorder %v3196_v18, %v6558_v4  ;;  %v3213_v5 = vperm.slane %v6558_v4, 3  ;;  %v1014_v44 = vadd.f32 %v1013_v35, %v1012_v45  ;;  %vm3201_vm1 = vcmp.eq.f32.partialorder %v3197_v56, %v6560_v55 }
 0x1fc   :  { %vm3172_vm11 = vmor %vm6597_vm15, %vm6609_vm5  ;;  %v1758_v11 = vpop.f32.mrf.mxu0  ;;  %v1771_v51 = vpop.f32.mrf.mxu1  ;;  %v5093_v28 = vsel %vm3171_vm8, 1.0, %v8005_v29  ;;  %v3214_v34 = vperm.slane %v6560_v55, 3  ;;  %v1077_v57 = vsel %vm188_vm2, %v1076_v59, %v6621_v40  ;;  %vm6697_vm15 = vcmp.gt.f32.partialorder %v3196_v18, %v6558_v4 }
 0x1fd   :  { %vm6656_vm9 = vmand %vm6614_vm6, %vm3185_vm7  ;;  %v5094_v60 = vsel %vm3172_vm11, 1.0, %v8005_v29  ;;  %v1096_v23 = vsel %vm190_vm3, %v1095_v58, %v1094_v12  ;;  %v1099_v35 = vsel %vm190_vm3, %v1098_v24, %v1097_v7  ;;  %vm3219_vm8 = vcmp.gt.s32.totalorder %v7973_v16, 3 }
 0x1fe   :  { %vm3187_vm6 = vmand %vm6628_vm10, %vm3185_vm7  ;;  %vm6725_vm11 = vcmp.eq.f32.partialorder %v3213_v5, %v6558_v4  ;;  %v1015_v58 = vrot.slane %v1014_v44, 1 }
 0x1ff   :  { %vm3188_vm12 = vmor %vm6639_vm13, %vm6656_vm9  ;;  %vm6705_vm9 = vcmp.gt.f32.partialorder %v3197_v56, %v6560_v55  ;;  %v3230_v56 = vperm.slane %v6558_v4, 4  ;;  %vm6735_vm13 = vcmp.eq.f32.partialorder %v3214_v34, %v6560_v55 }
 0x200   :  { %vm3189_vm7 = vmor %vm6648_vm14, %vm3187_vm6  ;;  %v5095_v45 = vsel %vm3188_vm12, 1.0, %v8005_v29  ;;  %vm6747_vm6 = vcmp.gt.f32.partialorder %v3213_v5, %v6558_v4  ;;  %vm3236_vm12 = vcmp.gt.s32.totalorder %v7973_v16, 4  ;;  %v1016_v40 = vadd.f32 %v1015_v58, %v1014_v44 }
 0x201   :  { %v5096_v19 = vsel %vm3189_vm7, 1.0, %v8005_v29  ;;  %v3194_v52 = vadd.f32 %v5095_v45, %v5093_v28  ;;  %vm6713_vm5 = vmand %vm6674_vm4, %vm3202_vm0  ;;  %v3231_v28 = vperm.slane %v6560_v55, 4  ;;  %v3247_v5 = vperm.slane %v6558_v4, 5 }
 0x202   :  { %v3195_v18 = vadd.f32 %v5096_v19, %v5094_v60  ;;  %vm6720_vm10 = vmand %vm3201_vm1, %vm3202_vm0  ;;  %vm8020_vm0 = vcmask 1041408   ;;  %v1772_v60 = vadd.f32 %v1771_v51, %v1758_v11  ;;  %vm6754_vm1 = vcmp.gt.f32.partialorder %v3214_v34, %v6560_v55 }
 0x203   :  { %vm3205_vm4 = vmor %vm6697_vm15, %vm6713_vm5  ;;  %v1110_v43 = vsel %vm8020_vm0, %v1075_v31, %v1096_v23  ;;  %v1025_v44 = vmul.f32 %v6542_v15, %v1016_v40 }
 0x204   :  { %vm3206_vm14 = vmor %vm6705_vm9, %vm6720_vm10  ;;  %v5097_v25 = vsel %vm3205_vm4, 1.0, %v8005_v29  ;;  %v1760_v30 = vpop.f32.mrf.mxu0  ;;  %v1773_v31 = vpop.f32.mrf.mxu1  ;;  %vm6768_vm9 = vcmp.eq.f32.partialorder %v3230_v56, %v6558_v4  ;;  %vm3235_vm10 = vcmp.eq.f32.partialorder %v3231_v28, %v6560_v55  ;;  %vm6782_vm4 = vcmp.gt.f32.partialorder %v3230_v56, %v6558_v4 }
 0x205   :  { %v1784_v45 = vpop.f32.mrf.mxu2  ;;  %v1797_v19 = vpop.f32.mrf.mxu3  ;;  %v5098_v51 = vsel %vm3206_vm14, 1.0, %v8005_v29  ;;  %v3211_v11 = vadd.f32 %v5097_v25, %v3194_v52  ;;  %vm3220_vm7 = vmand %vm6725_vm11, %vm3219_vm8  ;;  %v3248_v52 = vperm.slane %v6560_v55, 5  ;;  %v6787_v15 = vadd.f32 %v6544_v17, %v1025_v44 }
 0x206   :  { %v3212_v59 = vadd.f32 %v5098_v51, %v3195_v18  ;;  %vm3221_vm15 = vmand %vm6735_vm13, %vm3219_vm8  ;;  %v1798_v34 = vadd.f32 %v1797_v19, %v1784_v45  ;;  %v1853_v18 = vadd.f32 %v1772_v60, %v1110_v43  ;;  %vm6791_vm13 = vcmp.gt.f32.partialorder %v3231_v28, %v6560_v55 }
 0x207   :  { %vm3222_vm5 = vmor %vm6747_vm6, %vm3220_vm7  ;;  %8030 = vst [vmem:[#allocation91_spill] sm:$0xff] %v6787_v15  ;;  %vm6802_vm6 = vcmp.eq.f32.partialorder %v3247_v5, %v6558_v4  ;;  %v3264_v56 = vperm.slane %v6558_v4, 6  ;;  %v3265_v28 = vperm.slane %v6560_v55, 6 }
 0x208   :  { %vm8027_vm11 = vmmov %vm8020_vm0  ;;  %v5099_v7 = vsel %vm3222_vm5, 1.0, %v8005_v29  ;;  %v5070_v43 = vmul.f32 -1.442695, %v1853_v18  ;;  %vm6822_vm5 = vcmp.gt.f32.partialorder %v3248_v52, %v6560_v55 }
 0x209   :  { %v1111_v24 = vsel %vm8027_vm11, %v1077_v57, %v1099_v35  ;;  %vm3223_vm8 = vmor %vm6754_vm1, %vm3221_vm15  ;;  %v3228_v45 = vadd.f32 %v5099_v7, %v3211_v11  ;;  %vm3253_vm1 = vcmp.gt.s32.totalorder %v7973_v16, 5  ;;  %vm3252_vm15 = vcmp.eq.f32.partialorder %v3248_v52, %v6560_v55 }
 0x20a   :  { %v1854_v40 = vadd.f32 %v1798_v34, %v1111_v24  ;;  %v5100_v12 = vsel %vm3223_vm8, 1.0, %v8005_v29  ;;  %vm3237_vm0 = vmand %vm6768_vm9, %vm3236_vm12  ;;  %vm6816_vm9 = vcmp.gt.f32.partialorder %v3247_v5, %v6558_v4  ;;  %vm3268_vm8 = vcmp.eq.f32.partialorder %v3264_v56, %v6558_v4 }
 0x20b   :  { %v3229_v35 = vadd.f32 %v5100_v12, %v3212_v59  ;;  %vm3238_vm14 = vmand %vm3235_vm10, %vm3236_vm12  ;;  %v3281_v5 = vperm.slane %v6558_v4, 7  ;;  %5676 = vpow2.f32 %v5070_v43  ;;  %v3282_v34 = vperm.slane %v6560_v55, 7 }
 0x20c   :  { %vm3239_vm7 = vmor %vm6782_vm4, %vm3237_vm0  ;;  %v5071_v31 = vmul.f32 -1.442695, %v1854_v40  ;;  %vm3270_vm4 = vcmp.gt.s32.totalorder %v7973_v16, 6  ;;  %vm3269_vm0 = vcmp.eq.f32.partialorder %v3265_v28, %v6560_v55  ;;  %v1040_v7 = vperm.slane %v6540_v3, 6 }
 0x20d   :  { %v1786_v60 = vpop.f32.mrf.mxu2  ;;  %v1799_v19 = vpop.f32.mrf.mxu3  ;;  %vm3240_vm12 = vmor %vm6791_vm13, %vm3238_vm14  ;;  %v5101_v25 = vsel %vm3239_vm7, 1.0, %v8005_v29  ;;  %v1036_v40 = vperm.slane %v6540_v3, 2  ;;  %v1037_v12 = vperm.slane %v6540_v3, 3 }
 0x20e   :  { %v5102_v51 = vsel %vm3240_vm12, 1.0, %v8005_v29  ;;  %v3245_v11 = vadd.f32 %v5101_v25, %v3228_v45  ;;  %vm3254_vm10 = vmand %vm6802_vm6, %vm3253_vm1  ;;  %vm6842_vm6 = vcmp.gt.f32.partialorder %v3264_v56, %v6558_v4  ;;  %5678 = vpow2.f32 %v5071_v31 }
 0x20f   :  { %v3246_v59 = vadd.f32 %v5102_v51, %v3229_v35  ;;  %vm3255_vm11 = vmand %vm3252_vm15, %vm3253_vm1  ;;  %vm6849_vm1 = vcmp.gt.f32.partialorder %v3265_v28, %v6560_v55  ;;  %v1041_v45 = vperm.slane %v6540_v3, 7  ;;  %v6869_v35 = vadd.f32 %v1036_v40, %v6492_v46 }
 0x210   :  { %vm3256_vm13 = vmor %vm6816_vm9, %vm3254_vm10  ;;  %vm3283_vm9 = vcmp.gt.f32.partialorder %v3281_v5, %v6558_v4  ;;  %vm3284_vm10 = vcmp.gt.f32.partialorder %v3282_v34, %v6560_v55  ;;  %v6872_v17 = vadd.f32 %v1037_v12, %v6494_v47  ;;  %v6876_v3 = vadd.f32 %v1040_v7, %v6508_v8 }
 0x211   :  { %vm3257_vm14 = vmor %vm6822_vm5, %vm3255_vm11  ;;  %v5103_v30 = vsel %vm3256_vm13, 1.0, %v8005_v29  ;;  %v5677_v16 = vpop.eup %5676  ;;  %v5107_v19 = vsel %vm3283_vm9, 1.0, %v8005_v29  ;;  %v6880_v25 = vadd.f32 %v1040_v7, %v6522_v20  ;;  %v6883_v33 = vadd.f32 %v1041_v45, %v6524_v39 }
 0x212   :  { %v5104_v52 = vsel %vm3257_vm14, 1.0, %v8005_v29  ;;  %v3262_v18 = vadd.f32 %v5103_v30, %v3245_v11  ;;  %vm3271_vm7 = vmand %vm3268_vm8, %vm3270_vm4  ;;  %8043 = vst [vmem:[#allocation92_spill] sm:$0xff] %v6872_v17  ;;  %v5108_v46 = vsel %vm3284_vm10, 1.0, %v8005_v29  ;;  %v6887_v31 = vadd.f32 %v1036_v40, %v6476_v32 }
 0x213   :  { %v3263_v58 = vadd.f32 %v5104_v52, %v3246_v59  ;;  %vm3272_vm15 = vmand %vm3269_vm0, %vm3270_vm4  ;;  %8044 = vst [vmem:[#allocation93_spill] sm:$0xff] %v6876_v3  ;;  %v6890_v51 = vadd.f32 %v1037_v12, %v6478_v38  ;;  %v6892_v11 = vadd.f32 1.0, %v5677_v16  ;;  %v6903_v32 = vadd.f32 %v1041_v45, %v6510_v48 }
 0x214   :  { %vm3273_vm12 = vmor %vm6842_vm6, %vm3271_vm7  ;;  %v5679_v43 = vpop.eup %5678  ;;  %8045 = vst [vmem:[#allocation94_spill] sm:$0xff] %v6880_v25  ;;  %vm3392_vm4 = vcmask 1042432   ;;  %vm3395_vm13 = vcmask 1043456   ;;  %vm3398_vm0 = vcmask 1044480   ;;  %vm3401_vm14 = vcmask 1045504  }
 0x215   :  { %vm3274_vm5 = vmor %vm6849_vm1, %vm3272_vm15  ;;  %v5105_v57 = vsel %vm3273_vm12, 1.0, %v8005_v29  ;;  %8046 = vst [vmem:[#allocation95_spill] sm:$0xff] %v6883_v33  ;;  %v6894_v23 = vadd.f32 1.0, %v5679_v43  ;;  %5680 = vrcp.f32 %v6892_v11  ;;  %vm8049_vm6 = vcmask 1040384  }
 0x216   :  { %v5106_v56 = vsel %vm3274_vm5, 1.0, %v8005_v29  ;;  %v3279_v28 = vadd.f32 %v5105_v57, %v3262_v18  ;;  %8047 = vst [vmem:[#allocation96_spill] sm:$0xff] %v6890_v51  ;;  %vm8050_vm1 = vmmov %vm8049_vm6  ;;  %vm8051_vm7 = vcmask 1041408   ;;  %vm8057_vm12 = vcmask 1046528  }
 0x217   :  { %v3280_v60 = vadd.f32 %v5106_v56, %v3263_v58  ;;  %8048 = vst [vmem:[#allocation97_spill] sm:$0xff] %v6903_v32  ;;  %5682 = vrcp.f32 %v6894_v23  ;;  %vm8052_vm15 = vmmov %vm8051_vm7 }
 0x218   :  { %v3296_v47 = vadd.f32 %v5107_v19, %v3279_v28  ;;  %vm8058_vm9 = vmmov %vm8057_vm12 }
 0x219   :  { %v3297_v8 = vadd.f32 %v5108_v46, %v3280_v60 }
 0x21a   :  { %vm3298_vm11 = vcmp.lt.f32.partialorder %v3296_v47, 5.0 }
 0x21b   :  { %vm3299_vm8 = vcmp.lt.f32.partialorder %v3297_v8, 5.0  ;;  %v6906_v38 = vsel %vm3298_vm11, 1.0, %v8005_v29  ;;  %v6930_v52 = vpop.eup %5680 }
 0x21c   :  { %v6896_v20 = vpop.f32.mrf.mxu0  ;;  %v6899_v59 = vpop.f32.mrf.mxu1  ;;  %v6910_v44 = vsel %vm3299_vm8, 1.0, %v8005_v29  ;;  %v3310_v34 = vrot.slane %v6906_v38, 1  ;;  %v3316_v7 = vrot.slane %v6906_v38, 2  ;;  %v3322_v40 = vrot.slane %v6906_v38, 3 }
 0x21d   :  { %v3311_v24 = vrot.slane %v6910_v44, 1  ;;  %v3317_v58 = vrot.slane %v6910_v44, 2  ;;  %v3323_v12 = vrot.slane %v6910_v44, 3  ;;  %v3328_v57 = vrot.slane %v6906_v38, 4 }
 0x21e   :  { %v3314_v48 = vadd.f32 %v6906_v38, %v3310_v34  ;;  %v3348_v16 = vrot.slane %v6906_v38, 7  ;;  %v3349_v56 = vrot.slane %v6910_v44, 7  ;;  %v3329_v43 = vrot.slane %v6910_v44, 4 }
 0x21f   :  { %v3315_v29 = vadd.f32 %v6910_v44, %v3311_v24 }
 0x220   :  { %v3320_v45 = vadd.f32 %v3316_v7, %v3314_v48  ;;  %v3354_v60 = vrot.slane %v3314_v48, 6  ;;  %v3388_v24 = vsel %vm8049_vm6, 0.0, %v3348_v16  ;;  %v3389_v39 = vsel %vm8050_vm1, 0.0, %v3349_v56  ;;  %v6934_v48 = vpop.eup %5682 }
 0x221   :  { %v3321_v28 = vadd.f32 %v3317_v58, %v3315_v29  ;;  %v3355_v19 = vrot.slane %v3315_v29, 6  ;;  %v3335_v56 = vrot.slane %v6910_v44, 5 }
 0x222   :  { %v3326_v8 = vadd.f32 %v3322_v40, %v3320_v45  ;;  %v3360_v34 = vrot.slane %v3320_v45, 5  ;;  %v3390_v58 = vsel %vm8051_vm7, %v3388_v24, %v3354_v60  ;;  %v3334_v40 = vrot.slane %v6906_v38, 5 }
 0x223   :  { %v3327_v30 = vadd.f32 %v3323_v12, %v3321_v28  ;;  %v3361_v5 = vrot.slane %v3321_v28, 5  ;;  %v3391_v15 = vsel %vm8052_vm15, %v3389_v39, %v3355_v19  ;;  %v3340_v28 = vrot.slane %v6906_v38, 6 }
 0x224   :  { %v1836_v46 = vpop.f32.mrf.mxu2  ;;  %v1849_v47 = vpop.f32.mrf.mxu3  ;;  %v3332_v29 = vadd.f32 %v3328_v57, %v3326_v8  ;;  %v3366_v45 = vrot.slane %v3326_v8, 4  ;;  %v3393_v16 = vsel %vm3392_vm4, %v3390_v58, %v3360_v34  ;;  %v3341_v57 = vrot.slane %v6910_v44, 6 }
 0x225   :  { %v1812_v7 = vpop.f32.mrf.mxu0  ;;  %v1825_v18 = vpop.f32.mrf.mxu1  ;;  %v3333_v6 = vadd.f32 %v3329_v43, %v3327_v30 }
 0x226   :  { %v3367_v18 = vrot.slane %v3327_v30, 4  ;;  %v3394_v7 = vsel %vm3392_vm4, %v3391_v15, %v3361_v5  ;;  %v3338_v12 = vadd.f32 %v3334_v40, %v3332_v29  ;;  %v3372_v60 = vrot.slane %v3332_v29, 3 }
 0x227   :  { %v3396_v39 = vsel %vm3395_vm13, %v3393_v16, %v3366_v45  ;;  %v3339_v19 = vadd.f32 %v3335_v56, %v3333_v6  ;;  %v3373_v24 = vrot.slane %v3333_v6, 3  ;;  %v1103_v30 = vrot.slane %v6903_v32, 5 }
 0x228   :  { %v3397_v8 = vsel %vm3395_vm13, %v3394_v7, %v3367_v18  ;;  %v3344_v0 = vadd.f32 %v3340_v28, %v3338_v12  ;;  %v3378_v34 = vrot.slane %v3338_v12, 2  ;;  %v3399_v43 = vsel %vm3398_vm0, %v3396_v39, %v3372_v60 }
 0x229   :  { %v3345_v58 = vadd.f32 %v3341_v57, %v3339_v19  ;;  %v3379_v15 = vrot.slane %v3339_v19, 2  ;;  %v3400_v5 = vsel %vm3398_vm0, %v3397_v8, %v3373_v24  ;;  %v8053_v29 = vrot.slane %v6872_v17, 7 }
 0x22a   :  { %v3384_v16 = vrot.slane %v3344_v0, 1  ;;  %v3402_v56 = vsel %vm3401_vm14, %v3399_v43, %v3378_v34  ;;  %v8054_v18 = vrot.slane %v6876_v3, 5  ;;  %v8055_v7 = vrot.slane %v6880_v25, 4 }
 0x22b   :  { %v6951_v40 = vsel %vm188_vm2, %v8053_v29, %v6890_v51  ;;  %v8056_v28 = vrot.slane %v6883_v33, 4  ;;  %v6968_v39 = vmul.f32 %v6906_v38, %v6558_v4  ;;  %v3385_v19 = vrot.slane %v3345_v58, 1 }
 0x22c   :  { %v1838_v45 = vpop.f32.mrf.mxu2  ;;  %v1851_v6 = vpop.f32.mrf.mxu3  ;;  %v6959_v12 = vsel %vm190_vm3, %v8055_v7, %v8054_v18  ;;  %v3403_v0 = vsel %vm3401_vm14, %v3400_v5, %v3379_v15  ;;  %v6973_v57 = vmul.f32 %v6930_v52, %v6892_v11  ;;  %v6977_v24 = vmul.f32 %v6910_v44, %v6560_v55 }
 0x22d   :  { %v6964_v60 = vsel %vm190_vm3, %v8056_v28, %v1103_v30  ;;  %v6980_v8 = vsel %vm8057_vm12, %v3402_v56, %v3384_v16  ;;  %v6984_v34 = vmul.f32 %v6934_v48, %v6894_v23  ;;  %v6986_v4 = vadd.f32 %v1849_v47, %v1836_v46 }
 0x22e   :  { %v6989_v38 = vsel %vm8058_vm9, %v3403_v0, %v3385_v19  ;;  %vm3406_vm5 = vcmp.eq.f32.partialorder %v6980_v8, 0.0  ;;  %vm3422_vm10 = vcmp.eq.f32.partialorder %v6980_v8, 1.0  ;;  %vm3438_vm11 = vcmp.eq.f32.partialorder %v6980_v8, 2.0 }
 0x22f   :  { %vm3407_vm8 = vcmp.eq.f32.partialorder %v6989_v38, 0.0  ;;  %v3408_v55 = vsel %vm3406_vm5, %v6968_v39, 0.0  ;;  %vm3423_vm4 = vcmp.eq.f32.partialorder %v6989_v38, 1.0  ;;  %v3424_v44 = vsel %vm3422_vm10, %v6968_v39, 0.0 }
 0x230   :  { %v3409_v46 = vsel %vm3407_vm8, %v6977_v24, 0.0  ;;  %v3410_v47 = vrot.slane %v3408_v55, 4  ;;  %v3425_v43 = vsel %vm3423_vm4, %v6977_v24, 0.0  ;;  %v3426_v30 = vrot.slane %v3424_v44, 4 }
 0x231   :  { %v3416_v58 = vrot.slane %v3409_v46, 4  ;;  %v3432_v15 = vrot.slane %v3425_v43, 4  ;;  %vm3439_vm0 = vcmp.eq.f32.partialorder %v6989_v38, 2.0  ;;  %v3440_v5 = vsel %vm3438_vm11, %v6968_v39, 0.0 }
 0x232   :  { %v3411_v29 = vadd.f32 %v3410_v47, %v3408_v55  ;;  %v3427_v45 = vadd.f32 %v3426_v30, %v3424_v44  ;;  %v3441_v6 = vsel %vm3439_vm0, %v6977_v24, 0.0  ;;  %v3442_v16 = vrot.slane %v3440_v5, 4 }
 0x233   :  { %v3417_v56 = vadd.f32 %v3416_v58, %v3409_v46  ;;  %v3433_v18 = vadd.f32 %v3432_v15, %v3425_v43  ;;  %v3448_v7 = vrot.slane %v3441_v6, 4  ;;  %vm3454_vm6 = vcmp.eq.f32.partialorder %v6980_v8, 3.0 }
 0x234   :  { %v3412_v28 = vrot.slane %v3411_v29, 2  ;;  %v3428_v19 = vrot.slane %v3427_v45, 2  ;;  %v3443_v0 = vadd.f32 %v3442_v16, %v3440_v5  ;;  %vm3455_vm1 = vcmp.eq.f32.partialorder %v6989_v38, 3.0 }
 0x235   :  { %v3418_v3 = vrot.slane %v3417_v56, 2  ;;  %v3434_v17 = vrot.slane %v3433_v18, 2  ;;  %v3449_v25 = vadd.f32 %v3448_v7, %v3441_v6  ;;  %v3456_v51 = vsel %vm3454_vm6, %v6968_v39, 0.0 }
 0x236   :  { %v3413_v55 = vadd.f32 %v3412_v28, %v3411_v29  ;;  %v3429_v44 = vadd.f32 %v3428_v19, %v3427_v45  ;;  %v3444_v47 = vrot.slane %v3443_v0, 2  ;;  %v3457_v30 = vsel %vm3455_vm1, %v6977_v24, 0.0 }
 0x237   :  { %v3419_v46 = vadd.f32 %v3418_v3, %v3417_v56  ;;  %v3435_v43 = vadd.f32 %v3434_v17, %v3433_v18  ;;  %v3450_v58 = vrot.slane %v3449_v25, 2  ;;  %v3458_v15 = vrot.slane %v3456_v51, 4 }
 0x238   :  { %v3414_v32 = vrot.slane %v3413_v55, 1  ;;  %v3430_v33 = vrot.slane %v3429_v44, 1  ;;  %v3445_v63 = vadd.f32 %v3444_v47, %v3443_v0  ;;  %v3464_v5 = vrot.slane %v3457_v30, 4 }
 0x239   :  { %v3420_v16 = vrot.slane %v3419_v46, 1  ;;  %v3436_v54 = vrot.slane %v3435_v43, 1  ;;  %v3451_v53 = vadd.f32 %v3450_v58, %v3449_v25  ;;  %v3459_v50 = vadd.f32 %v3458_v15, %v3456_v51 }
 0x23a   :  { %v3415_v6 = vadd.f32 %v3414_v32, %v3413_v55  ;;  %v3431_v7 = vadd.f32 %v3430_v33, %v3429_v44  ;;  %v3446_v49 = vrot.slane %v3445_v63, 1  ;;  %v3465_v29 = vadd.f32 %v3464_v5, %v3457_v30 }
 0x23b   :  { %v3421_v45 = vadd.f32 %v3420_v16, %v3419_v46  ;;  %v3437_v28 = vadd.f32 %v3436_v54, %v3435_v43  ;;  %v3452_v19 = vrot.slane %v3451_v53, 1  ;;  %v3460_v42 = vrot.slane %v3459_v50, 2 }
 0x23c   :  { %v3447_v3 = vadd.f32 %v3446_v49, %v3445_v63  ;;  %v3466_v17 = vrot.slane %v3465_v29, 2  ;;  %vm3470_vm7 = vcmp.eq.f32.partialorder %v6980_v8, 4.0  ;;  %vm3471_vm15 = vcmp.eq.f32.partialorder %v6989_v38, 4.0 }
 0x23d   :  { %v3453_v56 = vadd.f32 %v3452_v19, %v3451_v53  ;;  %v3461_v18 = vadd.f32 %v3460_v42, %v3459_v50  ;;  %v3472_v0 = vsel %vm3470_vm7, %v6968_v39, 0.0  ;;  %v3473_v25 = vsel %vm3471_vm15, %v6977_v24, 0.0 }
 0x23e   :  { %v3467_v51 = vadd.f32 %v3466_v17, %v3465_v29  ;;  %v3474_v33 = vrot.slane %v3472_v0, 4  ;;  %v3480_v32 = vrot.slane %v3473_v25, 4  ;;  %v7012_v55 = vsel %vm188_vm2, %v3421_v45, %v3415_v6 }
 0x23f   :  { %8059 = vst [vmem:[#allocation98_spill] sm:$0xff] %v7012_v55  ;;  %v3462_v54 = vrot.slane %v3461_v18, 1  ;;  %v7015_v49 = vsel %vm188_vm2, %v3437_v28, %v3431_v7  ;;  %v7018_v63 = vsel %vm188_vm2, %v3453_v56, %v3447_v3  ;;  %vm8062_vm12 = vcmask 1041408   ;;  %v8111_v55 = vld [vmem:[#allocation76_spill] sm:$0xff] }
 0x240   :  { %8060 = vst [vmem:[#allocation99_spill] sm:$0xff] %v7015_v49  ;;  %v1113_v42 = vsel %vm8062_vm12, %v6951_v40, %v6964_v60  ;;  %v3468_v50 = vrot.slane %v3467_v51, 1  ;;  %v3475_v53 = vadd.f32 %v3474_v33, %v3472_v0  ;;  %v3481_v39 = vadd.f32 %v3480_v32, %v3473_v25  ;;  %vm8064_vm9 = vmmov %vm8062_vm12  ;;  %v8112_v49 = vld [vmem:[#allocation77_spill] sm:$0xff] }
 0x241   :  { %8061 = vst [vmem:[#allocation100_spill] sm:$0xff] %v7018_v63  ;;  %v1824_v24 = vadd.f32 %v6899_v59, %v6896_v20  ;;  %v3463_v8 = vadd.f32 %v3462_v54, %v3461_v18  ;;  %v1863_v38 = vsub.f32 1.0, %v6973_v57  ;;  %v1882_v44 = vsub.f32 1.0, %v6984_v34  ;;  %v8110_v63 = vld [vmem:[#allocation75_spill] sm:$0xff] }
 0x242   :  { %v1856_v47 = vadd.f32 %v6986_v4, %v1113_v42  ;;  %v3469_v30 = vadd.f32 %v3468_v50, %v3467_v51  ;;  %v3476_v46 = vrot.slane %v3475_v53, 2  ;;  %v3482_v43 = vrot.slane %v3481_v39, 2 }
 0x243   :  { %v8063_v58 = vrot.slane %v6869_v35, 7  ;;  %v1883_v4 = vmul.f32 %v6934_v48, %v1882_v44  ;;  %v1864_v5 = vmul.f32 %v6930_v52, %v1863_v38  ;;  %vm1867_vm5 = vweird.f32 %v6930_v52 }
 0x244   :  { %v5072_v15 = vmul.f32 -1.442695, %v1856_v47  ;;  %v3477_v20 = vadd.f32 %v3476_v46, %v3475_v53  ;;  %v3483_v59 = vadd.f32 %v3482_v43, %v3481_v39  ;;  %v7035_v57 = vsel %vm188_vm2, %v3469_v30, %v3463_v8 }
 0x245   :  { %v1079_v40 = vsel %vm188_vm2, %v8063_v58, %v6887_v31  ;;  %8065 = vst [vmem:[#allocation101_spill] sm:$0xff] %v7035_v57  ;;  %v1884_v45 = vadd.f32 %v6934_v48, %v1883_v4  ;;  %vm1886_vm10 = vweird.f32 %v6934_v48  ;;  %v1891_v19 = vand.u32 2147483648, %v6894_v23  ;;  %v8069_v4 = vld [vmem:[#allocation32_spill] sm:$0xff]  ;;  %v8109_v57 = vld [vmem:[#allocation74_spill] sm:$0xff] }
 0x246   :  { %v1112_v60 = vsel %vm8064_vm9, %v1079_v40, %v6959_v12  ;;  %v3478_v16 = vrot.slane %v3477_v20, 1  ;;  %v3484_v6 = vrot.slane %v3483_v59, 1  ;;  %5684 = vpow2.f32 %v5072_v15  ;;  %v8067_v40 = vld [vmem:[#allocation45_spill] sm:$0xff]  ;;  %v8068_v15 = vld [vmem:[#allocation46_spill] sm:$0xff] }
 0x247   :  { %v1855_v34 = vadd.f32 %v1824_v24, %v1112_v60  ;;  %v1865_v12 = vadd.f32 %v6930_v52, %v1864_v5  ;;  %vm1866_vm11 = vweird.f32 %v6892_v11  ;;  %v1872_v3 = vand.u32 2147483648, %v6892_v11  ;;  %v8070_v5 = vld [vmem:[#allocation33_spill] sm:$0xff] }
 0x248   :  { %v3479_v7 = vadd.f32 %v3478_v16, %v3477_v20  ;;  %v3485_v29 = vadd.f32 %v3484_v6, %v3483_v59  ;;  %vm1885_vm8 = vweird.f32 %v6894_v23  ;;  %vm1868_vm4 = vmor %vm1866_vm11, %vm1867_vm5  ;;  %v1870_v17 = vand.u32 2147483647, %v6892_v11  ;;  %v8071_v16 = vld [vmem:[#allocation34_spill] sm:$0xff]  ;;  %v8072_v6 = vld [vmem:[#allocation35_spill] sm:$0xff] }
 0x249   :  { %5686 = vtanh.f32 %v1855_v34  ;;  %v1889_v56 = vand.u32 2147483647, %v6894_v23  ;;  %vm1887_vm0 = vmor %vm1885_vm8, %vm1886_vm10  ;;  %v1869_v0 = vsel %vm1868_vm4, %v6930_v52, %v1865_v12  ;;  %v1892_v32 = vor.u32 1.1754944e-38, %v1891_v19  ;;  %v8075_v12 = vld [vmem:[#allocation38_spill] sm:$0xff]  ;;  %v8077_v19 = vld [vmem:[#allocation40_spill] sm:$0xff] }
 0x24a   :  { %v7044_v28 = vsel %vm188_vm2, %v3485_v29, %v3479_v7  ;;  %v1888_v25 = vsel %vm1887_vm0, %v6934_v48, %v1884_v45  ;;  %v1873_v54 = vor.u32 1.1754944e-38, %v1872_v3  ;;  %vm1871_vm6 = vcmp.eq.f32.partialorder %v1870_v17, 8.507059e+37  ;;  %v8073_v7 = vld [vmem:[#allocation36_spill] sm:$0xff]  ;;  %v8074_v29 = vld [vmem:[#allocation37_spill] sm:$0xff]  ;;  %v8076_v45 = vld [vmem:[#allocation39_spill] sm:$0xff] }
 0x24b   :  { %8066 = vst [vmem:[#allocation102_spill] sm:$0xff] %v7044_v28  ;;  %vm1890_vm1 = vcmp.eq.f32.partialorder %v1889_v56, 8.507059e+37  ;;  %v8078_v3 = vld [vmem:[#allocation41_spill] sm:$0xff]  ;;  %v8079_v17 = vld [vmem:[#allocation42_spill] sm:$0xff]  ;;  %v8080_v56 = vld [vmem:[#allocation43_spill] sm:$0xff]  ;;  %vm8122_vm5 = vcmask 1041408  }
 0x24c   :  { %v5685_v18 = vpop.eup %5684  ;;  %v1874_v42 = vsel %vm1871_vm6, %v1873_v54, %v1869_v0  ;;  %v1893_v50 = vsel %vm1890_vm1, %v1892_v32, %v1888_v25  ;;  %v8082_v0 = vld [vmem:[#allocation47_spill] sm:$0xff]  ;;  %v8083_v25 = vld [vmem:[#allocation48_spill] sm:$0xff]  ;;  %v8108_v28 = vld [vmem:[#allocation73_spill] sm:$0xff] }
 0x24d   :  { %v1899_v51 = vadd.f32 1.0, %v5685_v18  ;;  %v1915_v39 = vmul.f32 0.0, %v1893_v50  ;;  %v8081_v18 = vld [vmem:[#allocation44_spill] sm:$0xff]  ;;  %v8086_v32 = vld [vmem:[#allocation51_spill] sm:$0xff]  ;;  %v8089_v50 = vld [vmem:[#allocation54_spill] sm:$0xff] }
 0x24e   :  { %v8087_v54 = vld [vmem:[#allocation52_spill] sm:$0xff]  ;;  %vm8127_vm10 = vmmov %vm8122_vm5 }
 0x24f   :  { %v5687_v33 = vpop.eup %5686  ;;  %5688 = vrcp.f32 %v1899_v51  ;;  %v1911_v52 = vand.u32 2147483648, %v1899_v51  ;;  %v1909_v38 = vand.u32 2147483647, %v1899_v51  ;;  %vm1905_vm15 = vweird.f32 %v1899_v51  ;;  %vm8133_vm11 = vmmov %vm8122_vm5 }
 0x250   :  { %v1916_v53 = vmul.f32 %v5687_v33, %v1874_v42  ;;  %v8085_v33 = vld [vmem:[#allocation50_spill] sm:$0xff]  ;;  %v8088_v42 = vld [vmem:[#allocation53_spill] sm:$0xff]  ;;  %vm8135_vm8 = vmmov %vm8122_vm5 }
 0x251   :  { %v1912_v47 = vor.u32 1.1754944e-38, %v1911_v52  ;;  %vm1910_vm9 = vcmp.eq.f32.partialorder %v1909_v38, 8.507059e+37  ;;  %v8095_v52 = vld [vmem:[#allocation60_spill] sm:$0xff]  ;;  %v8097_v38 = vld [vmem:[#allocation62_spill] sm:$0xff] }
 0x252   :  { %v7054_v24 = vadd.f32 %v1916_v53, %v1915_v39  ;;  %v8090_v53 = vld [vmem:[#allocation55_spill] sm:$0xff]  ;;  %v8091_v39 = vld [vmem:[#allocation56_spill] sm:$0xff] }
 0x254   :  { %5690 = vtanh.f32 %v7054_v24 }
 0x255   :  { %v5689_v11 = vpop.eup %5688 }
 0x256   :  { %v1901_v23 = vmul.f32 %v5689_v11, %v1899_v51  ;;  %vm1906_vm7 = vweird.f32 %v5689_v11  ;;  %v8084_v51 = vld [vmem:[#allocation49_spill] sm:$0xff] }
 0x257   :  { %vm1907_vm12 = vmor %vm1905_vm15, %vm1906_vm7 }
 0x258   :  { %v1902_v8 = vsub.f32 1.0, %v1901_v23  ;;  %v8093_v23 = vld [vmem:[#allocation58_spill] sm:$0xff] }
 0x25a   :  { %v1903_v48 = vmul.f32 %v5689_v11, %v1902_v8  ;;  %v5691_v46 = vpop.eup %5690  ;;  %v8094_v8 = vld [vmem:[#allocation59_spill] sm:$0xff] }
 0x25c   :  { %v1904_v44 = vadd.f32 %v5689_v11, %v1903_v48  ;;  %v8096_v48 = vld [vmem:[#allocation61_spill] sm:$0xff] }
 0x25e   :  { %v1908_v30 = vsel %vm1907_vm12, %v5689_v11, %v1904_v44  ;;  %v8092_v11 = vld [vmem:[#allocation57_spill] sm:$0xff]  ;;  %v8098_v44 = vld [vmem:[#allocation63_spill] sm:$0xff] }
 0x25f   :  { %v1913_v43 = vsel %vm1910_vm9, %v1912_v47, %v1908_v30  ;;  %v8099_v47 = vld [vmem:[#allocation64_spill] sm:$0xff]  ;;  %v8100_v30 = vld [vmem:[#allocation65_spill] sm:$0xff] }
 0x260   :  { %v1919_v58 = vmul.f32 %v5691_v46, %v1913_v43  ;;  %v8101_v46 = vld [vmem:[#allocation66_spill] sm:$0xff]  ;;  %v8102_v43 = vld [vmem:[#allocation67_spill] sm:$0xff] }
 0x262   :  { %v1920_v60 = vmul.f32 %v8067_v40, %v1919_v58  ;;  %v1921_v20 = vmul.f32 %v8068_v15, %v1919_v58  ;;  %v8103_v58 = vld [vmem:[#allocation68_spill] sm:$0xff] }
 0x264   :  { %v1922_v59 = vpack.c.bf16 %v1920_v60, %v1920_v60  ;;  %v1923_v34 = vpack.c.bf16 %v1921_v20, %v1921_v20  ;;  %v8104_v60 = vld [vmem:[#allocation69_spill] sm:$0xff]  ;;  %v8105_v20 = vld [vmem:[#allocation70_spill] sm:$0xff] }
 0x266   :  { %1932 = vmatmul.bf16.vlgmr.msrb.gmra.mxu0 %v1922_v59  ;;  %1945 = vmatmul.bf16.vlgmr.msrb.gmra.mxu1 %v1923_v34 }
 0x267   :  { %1958 = vmatmul.bf16.vlgmr.msrb.gmra.mxu2 %v1922_v59  ;;  %1971 = vmatmul.bf16.vlgmr.msrb.gmra.mxu3 %v1923_v34 }
 0x268   :  { %2099 = vmatpush.bf16.msrb.mxu0 %v6195_v61  ;;  %2112 = vmatpush.bf16.msrb.mxu1 %v6197_v62 }
 0x269   :  { %2125 = vmatpush.bf16.msrb.mxu2 %v6199_v1  ;;  %2138 = vmatpush.bf16.msrb.mxu3 %v6201_v2 }
 0x26c   :  { %2100 = vmatpush.bf16.msrb.mxu0 %v6205_v9  ;;  %2113 = vmatpush.bf16.msrb.mxu1 %v6207_v10 }
 0x26d   :  { %2126 = vmatpush.bf16.msrb.mxu2 %v6211_v13  ;;  %2139 = vmatpush.bf16.msrb.mxu3 %v6213_v14 }
 0x270   :  { %2101 = vmatpush.bf16.msrb.mxu0 %v6221_v21  ;;  %2114 = vmatpush.bf16.msrb.mxu1 %v6223_v22 }
 0x271   :  { %2127 = vmatpush.bf16.msrb.mxu2 %v6227_v26  ;;  %2140 = vmatpush.bf16.msrb.mxu3 %v6229_v27 }
 0x274   :  { %2102 = vmatpush.bf16.msrb.mxu0 %v6233_v36  ;;  %2115 = vmatpush.bf16.msrb.mxu1 %v6235_v37 }
 0x275   :  { %2128 = vmatpush.bf16.msrb.mxu2 %v6241_v41  ;;  %2141 = vmatpush.bf16.msrb.mxu3 %v8069_v4 }
 0x276   :  { %1984 = vmatmul.bf16.vlgmr.msra.gmra.mxu0 %v1922_v59  ;;  %1997 = vmatmul.bf16.vlgmr.msra.gmra.mxu1 %v1923_v34 }
 0x277   :  { %2010 = vmatmul.bf16.vlgmr.msra.gmra.mxu2 %v1922_v59  ;;  %2023 = vmatmul.bf16.vlgmr.msra.gmra.mxu3 %v1923_v34  ;;  %v8106_v59 = vld [vmem:[#allocation71_spill] sm:$0xff]  ;;  %v8107_v34 = vld [vmem:[#allocation72_spill] sm:$0xff] }
 0x278   :  { %2103 = vmatpush.bf16.msrb.mxu0 %v8070_v5  ;;  %2116 = vmatpush.bf16.msrb.mxu1 %v8071_v16 }
 0x279   :  { %2129 = vmatpush.bf16.msrb.mxu2 %v8072_v6  ;;  %2142 = vmatpush.bf16.msrb.mxu3 %v8073_v7 }
 0x27c   :  { %2104 = vmatpush.bf16.msrb.mxu0 %v8074_v29  ;;  %2117 = vmatpush.bf16.msrb.mxu1 %v8075_v12 }
 0x27d   :  { %2130 = vmatpush.bf16.msrb.mxu2 %v8076_v45  ;;  %2143 = vmatpush.bf16.msrb.mxu3 %v8077_v19 }
 0x280   :  { %2105 = vmatpush.bf16.msrb.mxu0 %v8078_v3  ;;  %2118 = vmatpush.bf16.msrb.mxu1 %v8079_v17 }
 0x281   :  { %2131 = vmatpush.bf16.msrb.mxu2 %v8080_v56  ;;  %2144 = vmatpush.bf16.msrb.mxu3 %v8081_v18 }
 0x284   :  { %2106 = vmatpush.bf16.msrb.mxu0 %v8082_v0  ;;  %2119 = vmatpush.bf16.msrb.mxu1 %v8083_v25 }
 0x285   :  { %2132 = vmatpush.bf16.msrb.mxu2 %v8084_v51  ;;  %2145 = vmatpush.bf16.msrb.mxu3 %v8085_v33 }
 0x288   :  { %2151 = vmatpush.bf16.msra.mxu0 %v8086_v32  ;;  %2164 = vmatpush.bf16.msra.mxu1 %v8087_v54 }
 0x289   :  { %2177 = vmatpush.bf16.msra.mxu2 %v8088_v42  ;;  %2190 = vmatpush.bf16.msra.mxu3 %v8089_v50 }
 0x28c   :  { %2152 = vmatpush.bf16.msra.mxu0 %v8090_v53  ;;  %2165 = vmatpush.bf16.msra.mxu1 %v8091_v39  ;;  %v8129_v39 = vld [vmem:[#allocation97_spill] sm:$0xff] }
 0x28d   :  { %2178 = vmatpush.bf16.msra.mxu2 %v8092_v11  ;;  %2191 = vmatpush.bf16.msra.mxu3 %v8093_v23  ;;  %v8126_v23 = vld [vmem:[#allocation84_spill] sm:$0xff] }
 0x290   :  { %2153 = vmatpush.bf16.msra.mxu0 %v8094_v8  ;;  %2166 = vmatpush.bf16.msra.mxu1 %v8095_v52  ;;  %v8125_v8 = vld [vmem:[#allocation90_spill] sm:$0xff] }
 0x291   :  { %2179 = vmatpush.bf16.msra.mxu2 %v8096_v48  ;;  %2192 = vmatpush.bf16.msra.mxu3 %v8097_v38  ;;  %v8123_v38 = vld [vmem:[#allocation86_spill] sm:$0xff] }
 0x294   :  { %2154 = vmatpush.bf16.msra.mxu0 %v8098_v44  ;;  %2167 = vmatpush.bf16.msra.mxu1 %v8099_v47  ;;  %v8121_v44 = vld [vmem:[#allocation31_spill] sm:$0xff] }
 0x295   :  { %2180 = vmatpush.bf16.msra.mxu2 %v8100_v30  ;;  %2193 = vmatpush.bf16.msra.mxu3 %v8101_v46  ;;  %v8119_v46 = vld [vmem:[#allocation88_spill] sm:$0xff]  ;;  %v8120_v30 = vld [vmem:[#allocation87_spill] sm:$0xff] }
 0x298   :  { %2155 = vmatpush.bf16.msra.mxu0 %v8102_v43  ;;  %2168 = vmatpush.bf16.msra.mxu1 %v8103_v58  ;;  %v8113_v43 = vld [vmem:[#allocation78_spill] sm:$0xff]  ;;  %v8114_v58 = vld [vmem:[#allocation79_spill] sm:$0xff] }
 0x299   :  { %2181 = vmatpush.bf16.msra.mxu2 %v8104_v60  ;;  %2194 = vmatpush.bf16.msra.mxu3 %v8105_v20  ;;  %v8115_v60 = vld [vmem:[#allocation80_spill] sm:$0xff]  ;;  %v8116_v20 = vld [vmem:[#allocation81_spill] sm:$0xff] }
 0x29c   :  { %2156 = vmatpush.bf16.msra.mxu0 %v8106_v59  ;;  %2169 = vmatpush.bf16.msra.mxu1 %v8107_v34  ;;  %v8117_v59 = vld [vmem:[#allocation82_spill] sm:$0xff]  ;;  %v8118_v34 = vld [vmem:[#allocation85_spill] sm:$0xff] }
 0x29d   :  { %2182 = vmatpush.bf16.msra.mxu2 %v8108_v28  ;;  %2195 = vmatpush.bf16.msra.mxu3 %v8109_v57  ;;  %v1127_v28 = vrot.slane %v8118_v34, 3  ;;  %v1126_v57 = vrot.slane %v8119_v46, 4  ;;  %v1116_v46 = vrot.slane %v8125_v8, 1 }
 0x29f   :  { %v1117_v11 = vsel %vm188_vm2, %v8126_v23, %v1116_v46  ;;  %v1135_v46 = vrot.slane %v8129_v39, 4  ;;  %v8134_v39 = vld [vmem:[#allocation93_spill] sm:$0xff] }
 0x2a0   :  { %2157 = vmatpush.bf16.msra.mxu0 %v8110_v63  ;;  %2170 = vmatpush.bf16.msra.mxu1 %v8111_v55  ;;  %v1114_v63 = vrot.slane %v8120_v30, 1  ;;  %v1128_v55 = vsel %vm190_vm3, %v1127_v28, %v1126_v57  ;;  %v1132_v50 = vrot.slane %v8134_v39, 4 }
 0x2a1   :  { %2183 = vmatpush.bf16.msra.mxu2 %v8112_v49  ;;  %2196 = vmatpush.bf16.msra.mxu3 %v8113_v43 }
 0x2a2   :  { %v1115_v43 = vsel %vm188_vm2, %v8121_v44, %v1114_v63 }
 0x2a4   :  { %2158 = vmatpush.bf16.msra.mxu0 %v8114_v58  ;;  %2171 = vmatpush.bf16.msra.mxu1 %v8115_v60  ;;  %v1142_v60 = vsel %vm8122_vm5, %v1115_v43, %v1128_v55 }
 0x2a5   :  { %2184 = vmatpush.bf16.msra.mxu2 %v8116_v20  ;;  %2197 = vmatpush.bf16.msra.mxu3 %v8117_v59  ;;  %v1130_v20 = vrot.slane %v8123_v38, 3  ;;  %v8124_v59 = vld [vmem:[#allocation89_spill] sm:$0xff] }
 0x2a6   :  { %v1129_v52 = vrot.slane %v8124_v59, 4 }
 0x2a8   :  { %v1131_v30 = vsel %vm190_vm3, %v1130_v20, %v1129_v52 }
 0x2a9   :  { %v1143_v55 = vsel %vm8127_vm10, %v1117_v11, %v1131_v30 }
 0x2e3   :  { %v1933_v47 = vpop.f32.mrf.mxu0  ;;  %v1946_v49 = vpop.f32.mrf.mxu1 }
 0x2e4   :  { %v1947_v58 = vadd.f32 %v1946_v49, %v1933_v47 }
 0x2e6   :  { %v2028_v48 = vadd.f32 %v1947_v58, %v1142_v60 }
 0x2e8   :  { %v5073_v34 = vmul.f32 -1.442695, %v2028_v48 }
 0x2ea   :  { %5692 = vpow2.f32 %v5073_v34  ;;  %v1959_v57 = vpop.f32.mrf.mxu2  ;;  %v1972_v28 = vpop.f32.mrf.mxu3  ;;  %v8128_v34 = vld [vmem:[#allocation95_spill] sm:$0xff] }
 0x2eb   :  { %v1973_v63 = vadd.f32 %v1972_v28, %v1959_v57  ;;  %v1935_v49 = vpop.f32.mrf.mxu0  ;;  %v1948_v47 = vpop.f32.mrf.mxu1  ;;  %v1136_v38 = vrot.slane %v8128_v34, 3 }
 0x2ec   :  { %v8130_v49 = vld [vmem:[#allocation96_spill] sm:$0xff] }
 0x2ed   :  { %v2029_v43 = vadd.f32 %v1973_v63, %v1143_v55  ;;  %v1120_v47 = vrot.slane %v8130_v49, 1  ;;  %v1137_v11 = vsel %vm190_vm3, %v1136_v38, %v1135_v46  ;;  %v1118_v38 = vrot.slane %v6887_v31, 1 }
 0x2ef   :  { %v5074_v58 = vmul.f32 -1.442695, %v2029_v43  ;;  %v8131_v43 = vld [vmem:[#allocation94_spill] sm:$0xff] }
 0x2f0   :  { %v5693_v60 = vpop.eup %5692 }
 0x2f1   :  { %v2035_v59 = vadd.f32 1.0, %v5693_v60  ;;  %5694 = vpow2.f32 %v5074_v58  ;;  %v8132_v58 = vld [vmem:[#allocation92_spill] sm:$0xff] }
 0x2f2   :  { %v1961_v48 = vpop.f32.mrf.mxu2  ;;  %v1974_v8 = vpop.f32.mrf.mxu3  ;;  %v1121_v60 = vsel %vm188_vm2, %v8132_v58, %v1120_v47  ;;  %v1119_v47 = vsel %vm188_vm2, %v6869_v35, %v1118_v38 }
 0x2f3   :  { %5696 = vrcp.f32 %v2035_v59  ;;  %v1985_v52 = vpop.f32.mrf.mxu0  ;;  %v1998_v20 = vpop.f32.mrf.mxu1  ;;  %v1133_v8 = vrot.slane %v8131_v43, 3  ;;  %vm2041_vm6 = vweird.f32 %v2035_v59 }
 0x2f4   :  { %v1999_v42 = vadd.f32 %v1998_v20, %v1985_v52 }
 0x2f5   :  { %v1134_v46 = vsel %vm190_vm3, %v1133_v8, %v1132_v50  ;;  %v2047_v50 = vand.u32 2147483648, %v2035_v59 }
 0x2f7   :  { %v5695_v44 = vpop.eup %5694 }
 0x2f8   :  { %v2054_v57 = vadd.f32 1.0, %v5695_v44  ;;  %v1145_v44 = vsel %vm8133_vm11, %v1121_v60, %v1137_v11 }
 0x2f9   :  { %v5697_v28 = vpop.eup %5696 }
 0x2fa   :  { %v2037_v30 = vmul.f32 %v5697_v28, %v2035_v59  ;;  %5698 = vrcp.f32 %v2054_v57  ;;  %v2011_v63 = vpop.f32.mrf.mxu2  ;;  %v2024_v55 = vpop.f32.mrf.mxu3  ;;  %vm2042_vm4 = vweird.f32 %v5697_v28  ;;  %v2064_v52 = vand.u32 2147483647, %v2054_v57 }
 0x2fb   :  { %v2025_v48 = vadd.f32 %v2024_v55, %v2011_v63  ;;  %v1987_v34 = vpop.f32.mrf.mxu0  ;;  %v2000_v23 = vpop.f32.mrf.mxu1  ;;  %v2066_v55 = vand.u32 2147483648, %v2054_v57  ;;  %vm2060_vm1 = vweird.f32 %v2054_v57  ;;  %vm2043_vm7 = vmor %vm2041_vm6, %vm2042_vm4  ;;  %vm8173_vm4 = vcmask 1041408  }
 0x2fc   :  { %v2038_v53 = vsub.f32 1.0, %v2037_v30  ;;  %v1144_v23 = vsel %vm8135_vm8, %v1119_v47, %v1134_v46  ;;  %vm2065_vm12 = vcmp.eq.f32.partialorder %v2064_v52, 8.507059e+37 }
 0x2fd   :  { %v2031_v49 = vadd.f32 %v2025_v48, %v1145_v44  ;;  %v2030_v63 = vadd.f32 %v1999_v42, %v1144_v23 }
 0x2fe   :  { %v2039_v43 = vmul.f32 %v5697_v28, %v2038_v53  ;;  %v2045_v53 = vand.u32 2147483647, %v2035_v59 }
 0x2ff   :  { %v5075_v54 = vmul.f32 -1.442695, %v2031_v49 }
 0x300   :  { %v5699_v32 = vpop.eup %5698  ;;  %v2040_v60 = vadd.f32 %v5697_v28, %v2039_v43  ;;  %vm2046_vm9 = vcmp.eq.f32.partialorder %v2045_v53, 8.507059e+37 }
 0x301   :  { %v2056_v33 = vmul.f32 %v5699_v32, %v2054_v57  ;;  %5700 = vpow2.f32 %v5075_v54  ;;  %vm2061_vm0 = vweird.f32 %v5699_v32  ;;  %v2067_v54 = vor.u32 1.1754944e-38, %v2066_v55 }
 0x302   :  { %v2013_v34 = vpop.f32.mrf.mxu2  ;;  %v2026_v11 = vpop.f32.mrf.mxu3  ;;  %5702 = vtanh.f32 %v2030_v63  ;;  %vm2062_vm15 = vmor %vm2060_vm1, %vm2061_vm0  ;;  %v2044_v8 = vsel %vm2043_vm7, %v5697_v28, %v2040_v60 }
 0x303   :  { %v2057_v30 = vsub.f32 1.0, %v2056_v33  ;;  %v2048_v33 = vor.u32 1.1754944e-38, %v2047_v50  ;;  %vm8178_vm0 = vmmov %vm8173_vm4 }
 0x304   :  { %vm8183_vm6 = vmmov %vm8178_vm0 }
 0x305   :  { %v2058_v48 = vmul.f32 %v5699_v32, %v2057_v30  ;;  %v2049_v38 = vsel %vm2046_vm9, %v2048_v33, %v2044_v8  ;;  %v8137_v8 = vld [vmem:[#allocation51_spill] sm:$0xff]  ;;  %v8139_v33 = vld [vmem:[#allocation53_spill] sm:$0xff]  ;;  %vm8184_vm1 = vmmov %vm8178_vm0 }
 0x307   :  { %v5701_v20 = vpop.eup %5700  ;;  %v2059_v49 = vadd.f32 %v5699_v32, %v2058_v48 }
 0x308   :  { %v2074_v44 = vadd.f32 1.0, %v5701_v20  ;;  %v5703_v47 = vpop.eup %5702 }
 0x309   :  { %v2063_v42 = vsel %vm2062_vm15, %v5699_v32, %v2059_v49  ;;  %v2091_v59 = vmul.f32 %v5703_v47, %v2049_v38  ;;  %v8142_v38 = vld [vmem:[#allocation56_spill] sm:$0xff]  ;;  %v8144_v47 = vld [vmem:[#allocation58_spill] sm:$0xff] }
 0x30a   :  { %v2068_v43 = vsel %vm2065_vm12, %v2067_v54, %v2063_v42  ;;  %5704 = vrcp.f32 %v2074_v44  ;;  %v2086_v28 = vand.u32 2147483648, %v2074_v44  ;;  %v2084_v32 = vand.u32 2147483647, %v2074_v44  ;;  %v8136_v54 = vld [vmem:[#allocation50_spill] sm:$0xff] }
 0x30b   :  { %v2090_v46 = vmul.f32 %v2068_v43, %v7054_v24  ;;  %vm2080_vm10 = vweird.f32 %v2074_v44  ;;  %v8140_v42 = vld [vmem:[#allocation54_spill] sm:$0xff]  ;;  %v8141_v43 = vld [vmem:[#allocation55_spill] sm:$0xff] }
 0x30c   :  { %v2087_v55 = vor.u32 1.1754944e-38, %v2086_v28  ;;  %vm2085_vm8 = vcmp.eq.f32.partialorder %v2084_v32, 8.507059e+37  ;;  %v8149_v28 = vld [vmem:[#allocation63_spill] sm:$0xff]  ;;  %v8151_v32 = vld [vmem:[#allocation65_spill] sm:$0xff] }
 0x30d   :  { %v7152_v57 = vadd.f32 %v2091_v59, %v2090_v46  ;;  %v8143_v46 = vld [vmem:[#allocation57_spill] sm:$0xff]  ;;  %v8145_v59 = vld [vmem:[#allocation59_spill] sm:$0xff] }
 0x30f   :  { %5706 = vtanh.f32 %v7152_v57 }
 0x310   :  { %v5705_v23 = vpop.eup %5704 }
 0x311   :  { %v2076_v34 = vmul.f32 %v5705_v23, %v2074_v44  ;;  %vm2081_vm5 = vweird.f32 %v5705_v23  ;;  %v8138_v44 = vld [vmem:[#allocation52_spill] sm:$0xff] }
 0x312   :  { %vm2082_vm11 = vmor %vm2080_vm10, %vm2081_vm5 }
 0x313   :  { %v2077_v11 = vsub.f32 1.0, %v2076_v34  ;;  %v8147_v34 = vld [vmem:[#allocation61_spill] sm:$0xff] }
 0x315   :  { %v2078_v30 = vmul.f32 %v5705_v23, %v2077_v11  ;;  %v5707_v24 = vpop.eup %5706  ;;  %v8148_v11 = vld [vmem:[#allocation62_spill] sm:$0xff] }
 0x317   :  { %v2079_v63 = vadd.f32 %v5705_v23, %v2078_v30  ;;  %v8150_v30 = vld [vmem:[#allocation64_spill] sm:$0xff] }
 0x319   :  { %v2083_v60 = vsel %vm2082_vm11, %v5705_v23, %v2079_v63  ;;  %v8146_v23 = vld [vmem:[#allocation60_spill] sm:$0xff]  ;;  %v8152_v63 = vld [vmem:[#allocation66_spill] sm:$0xff] }
 0x31a   :  { %v2088_v48 = vsel %vm2085_vm8, %v2087_v55, %v2083_v60  ;;  %v8153_v55 = vld [vmem:[#allocation67_spill] sm:$0xff]  ;;  %v8154_v60 = vld [vmem:[#allocation68_spill] sm:$0xff] }
 0x31b   :  { %v2094_v50 = vmul.f32 %v5707_v24, %v2088_v48  ;;  %v8155_v24 = vld [vmem:[#allocation69_spill] sm:$0xff]  ;;  %v8156_v48 = vld [vmem:[#allocation70_spill] sm:$0xff] }
 0x31d   :  { %v2095_v52 = vmul.f32 %v8067_v40, %v2094_v50  ;;  %v2096_v53 = vmul.f32 %v8068_v15, %v2094_v50  ;;  %v8157_v50 = vld [vmem:[#allocation71_spill] sm:$0xff] }
 0x31f   :  { %v2097_v20 = vpack.c.bf16 %v2095_v52, %v2095_v52  ;;  %v2098_v49 = vpack.c.bf16 %v2096_v53, %v2096_v53  ;;  %v8158_v52 = vld [vmem:[#allocation72_spill] sm:$0xff]  ;;  %v8159_v53 = vld [vmem:[#allocation73_spill] sm:$0xff] }
 0x321   :  { %2107 = vmatmul.bf16.vlgmr.msrb.gmra.mxu0 %v2097_v20  ;;  %2120 = vmatmul.bf16.vlgmr.msrb.gmra.mxu1 %v2098_v49 }
 0x322   :  { %2133 = vmatmul.bf16.vlgmr.msrb.gmra.mxu2 %v2097_v20  ;;  %2146 = vmatmul.bf16.vlgmr.msrb.gmra.mxu3 %v2098_v49 }
 0x323   :  { %2274 = vmatpush.bf16.msrb.mxu0 %v6195_v61  ;;  %2287 = vmatpush.bf16.msrb.mxu1 %v6197_v62 }
 0x324   :  { %2300 = vmatpush.bf16.msrb.mxu2 %v6199_v1  ;;  %2313 = vmatpush.bf16.msrb.mxu3 %v6201_v2 }
 0x327   :  { %2275 = vmatpush.bf16.msrb.mxu0 %v6205_v9  ;;  %2288 = vmatpush.bf16.msrb.mxu1 %v6207_v10 }
 0x328   :  { %2301 = vmatpush.bf16.msrb.mxu2 %v6211_v13  ;;  %2314 = vmatpush.bf16.msrb.mxu3 %v6213_v14 }
 0x32b   :  { %2276 = vmatpush.bf16.msrb.mxu0 %v6221_v21  ;;  %2289 = vmatpush.bf16.msrb.mxu1 %v6223_v22 }
 0x32c   :  { %2302 = vmatpush.bf16.msrb.mxu2 %v6227_v26  ;;  %2315 = vmatpush.bf16.msrb.mxu3 %v6229_v27 }
 0x32f   :  { %2277 = vmatpush.bf16.msrb.mxu0 %v6233_v36  ;;  %2290 = vmatpush.bf16.msrb.mxu1 %v6235_v37 }
 0x330   :  { %2303 = vmatpush.bf16.msrb.mxu2 %v6241_v41  ;;  %2316 = vmatpush.bf16.msrb.mxu3 %v8069_v4 }
 0x331   :  { %2159 = vmatmul.bf16.vlgmr.msra.gmra.mxu0 %v2097_v20  ;;  %2172 = vmatmul.bf16.vlgmr.msra.gmra.mxu1 %v2098_v49 }
 0x332   :  { %2185 = vmatmul.bf16.vlgmr.msra.gmra.mxu2 %v2097_v20  ;;  %2198 = vmatmul.bf16.vlgmr.msra.gmra.mxu3 %v2098_v49  ;;  %v8160_v20 = vld [vmem:[#allocation74_spill] sm:$0xff]  ;;  %v8161_v49 = vld [vmem:[#allocation75_spill] sm:$0xff] }
 0x333   :  { %2278 = vmatpush.bf16.msrb.mxu0 %v8070_v5  ;;  %2291 = vmatpush.bf16.msrb.mxu1 %v8071_v16 }
 0x334   :  { %2304 = vmatpush.bf16.msrb.mxu2 %v8072_v6  ;;  %2317 = vmatpush.bf16.msrb.mxu3 %v8073_v7 }
 0x337   :  { %2279 = vmatpush.bf16.msrb.mxu0 %v8074_v29  ;;  %2292 = vmatpush.bf16.msrb.mxu1 %v8075_v12 }
 0x338   :  { %2305 = vmatpush.bf16.msrb.mxu2 %v8076_v45  ;;  %2318 = vmatpush.bf16.msrb.mxu3 %v8077_v19 }
 0x33b   :  { %2280 = vmatpush.bf16.msrb.mxu0 %v8078_v3  ;;  %2293 = vmatpush.bf16.msrb.mxu1 %v8079_v17 }
 0x33c   :  { %2306 = vmatpush.bf16.msrb.mxu2 %v8080_v56  ;;  %2319 = vmatpush.bf16.msrb.mxu3 %v8081_v18 }
 0x33f   :  { %2281 = vmatpush.bf16.msrb.mxu0 %v8082_v0  ;;  %2294 = vmatpush.bf16.msrb.mxu1 %v8083_v25 }
 0x340   :  { %2307 = vmatpush.bf16.msrb.mxu2 %v8084_v51  ;;  %2320 = vmatpush.bf16.msrb.mxu3 %v8136_v54 }
 0x343   :  { %2326 = vmatpush.bf16.msra.mxu0 %v8137_v8  ;;  %2339 = vmatpush.bf16.msra.mxu1 %v8138_v44 }
 0x344   :  { %2352 = vmatpush.bf16.msra.mxu2 %v8139_v33  ;;  %2365 = vmatpush.bf16.msra.mxu3 %v8140_v42 }
 0x347   :  { %2327 = vmatpush.bf16.msra.mxu0 %v8141_v43  ;;  %2340 = vmatpush.bf16.msra.mxu1 %v8142_v38 }
 0x348   :  { %2353 = vmatpush.bf16.msra.mxu2 %v8143_v46  ;;  %2366 = vmatpush.bf16.msra.mxu3 %v8144_v47  ;;  %v8175_v47 = vld [vmem:[#allocation84_spill] sm:$0xff]  ;;  %v8176_v46 = vld [vmem:[#allocation89_spill] sm:$0xff] }
 0x34b   :  { %2328 = vmatpush.bf16.msra.mxu0 %v8145_v59  ;;  %2341 = vmatpush.bf16.msra.mxu1 %v8146_v23 }
 0x34c   :  { %2354 = vmatpush.bf16.msra.mxu2 %v8147_v34  ;;  %2367 = vmatpush.bf16.msra.mxu3 %v8148_v11  ;;  %v8172_v11 = vld [vmem:[#allocation87_spill] sm:$0xff] }
 0x34f   :  { %2329 = vmatpush.bf16.msra.mxu0 %v8149_v28  ;;  %2342 = vmatpush.bf16.msra.mxu1 %v8150_v30  ;;  %v8170_v30 = vld [vmem:[#allocation31_spill] sm:$0xff]  ;;  %v8171_v28 = vld [vmem:[#allocation88_spill] sm:$0xff] }
 0x350   :  { %2355 = vmatpush.bf16.msra.mxu2 %v8151_v32  ;;  %2368 = vmatpush.bf16.msra.mxu3 %v8152_v63  ;;  %v8162_v32 = vld [vmem:[#allocation76_spill] sm:$0xff]  ;;  %v8163_v63 = vld [vmem:[#allocation77_spill] sm:$0xff] }
 0x353   :  { %2330 = vmatpush.bf16.msra.mxu0 %v8153_v55  ;;  %2343 = vmatpush.bf16.msra.mxu1 %v8154_v60  ;;  %v8164_v55 = vld [vmem:[#allocation78_spill] sm:$0xff]  ;;  %v8165_v60 = vld [vmem:[#allocation79_spill] sm:$0xff] }
 0x354   :  { %2356 = vmatpush.bf16.msra.mxu2 %v8155_v24  ;;  %2369 = vmatpush.bf16.msra.mxu3 %v8156_v48  ;;  %v8166_v24 = vld [vmem:[#allocation80_spill] sm:$0xff]  ;;  %v8167_v48 = vld [vmem:[#allocation81_spill] sm:$0xff] }
 0x357   :  { %2331 = vmatpush.bf16.msra.mxu0 %v8157_v50  ;;  %2344 = vmatpush.bf16.msra.mxu1 %v8158_v52  ;;  %v8168_v50 = vld [vmem:[#allocation82_spill] sm:$0xff]  ;;  %v8169_v52 = vld [vmem:[#allocation85_spill] sm:$0xff] }
 0x358   :  { %2357 = vmatpush.bf16.msra.mxu2 %v8159_v53  ;;  %2370 = vmatpush.bf16.msra.mxu3 %v8160_v20  ;;  %v1163_v53 = vrot.slane %v8169_v52, 2  ;;  %v1147_v20 = vrot.slane %v8170_v30, 1  ;;  %v1150_v52 = vrot.slane %v8175_v47, 1  ;;  %v1165_v30 = vrot.slane %v8176_v46, 3 }
 0x35b   :  { %2332 = vmatpush.bf16.msra.mxu0 %v8161_v49  ;;  %2345 = vmatpush.bf16.msra.mxu1 %v8162_v32  ;;  %v1162_v49 = vrot.slane %v8171_v28, 3  ;;  %v1146_v32 = vrot.slane %v8172_v11, 2  ;;  %v8177_v28 = vld [vmem:[#allocation90_spill] sm:$0xff] }
 0x35c   :  { %2358 = vmatpush.bf16.msra.mxu2 %v8163_v63  ;;  %2371 = vmatpush.bf16.msra.mxu3 %v8164_v55  ;;  %v1149_v43 = vrot.slane %v8177_v28, 2 }
 0x35d   :  { %v1164_v63 = vsel %vm190_vm3, %v1163_v53, %v1162_v49 }
 0x35f   :  { %2333 = vmatpush.bf16.msra.mxu0 %v8165_v60  ;;  %2346 = vmatpush.bf16.msra.mxu1 %v8166_v24  ;;  %v1148_v60 = vsel %vm188_vm2, %v1147_v20, %v1146_v32  ;;  %v1151_v32 = vsel %vm188_vm2, %v1150_v52, %v1149_v43  ;;  %v1156_v52 = vrot.slane %v8132_v58, 1 }
 0x360   :  { %2359 = vmatpush.bf16.msra.mxu2 %v8167_v48  ;;  %2372 = vmatpush.bf16.msra.mxu3 %v8168_v50  ;;  %v1178_v24 = vsel %vm8173_vm4, %v1148_v60, %v1164_v63  ;;  %v8174_v48 = vld [vmem:[#allocation86_spill] sm:$0xff] }
 0x361   :  { %v1166_v59 = vrot.slane %v8174_v48, 2 }
 0x363   :  { %v1167_v11 = vsel %vm190_vm3, %v1166_v59, %v1165_v30  ;;  %v8179_v30 = vld [vmem:[#allocation95_spill] sm:$0xff] }
 0x364   :  { %v1179_v60 = vsel %vm8178_vm0, %v1151_v32, %v1167_v11  ;;  %v1172_v46 = vrot.slane %v8179_v30, 2 }
 0x39e   :  { %v2108_v34 = vpop.f32.mrf.mxu0  ;;  %v2121_v55 = vpop.f32.mrf.mxu1 }
 0x39f   :  { %v2122_v23 = vadd.f32 %v2121_v55, %v2108_v34 }
 0x3a1   :  { %v2203_v50 = vadd.f32 %v2122_v23, %v1178_v24 }
 0x3a3   :  { %v5076_v38 = vmul.f32 -1.442695, %v2203_v50 }
 0x3a5   :  { %5708 = vpow2.f32 %v5076_v38  ;;  %v2134_v53 = vpop.f32.mrf.mxu2  ;;  %v2147_v49 = vpop.f32.mrf.mxu3 }
 0x3a6   :  { %v2148_v34 = vadd.f32 %v2147_v49, %v2134_v53  ;;  %v2110_v55 = vpop.f32.mrf.mxu0  ;;  %v2123_v63 = vpop.f32.mrf.mxu1  ;;  %v8180_v53 = vld [vmem:[#allocation97_spill] sm:$0xff] }
 0x3a7   :  { %v1171_v49 = vrot.slane %v8180_v53, 3  ;;  %v1153_v53 = vrot.slane %v6869_v35, 1 }
 0x3a8   :  { %v2204_v23 = vadd.f32 %v2148_v34, %v1179_v60  ;;  %v8181_v34 = vld [vmem:[#allocation96_spill] sm:$0xff] }
 0x3a9   :  { %v1155_v55 = vrot.slane %v8181_v34, 2  ;;  %v1173_v63 = vsel %vm190_vm3, %v1172_v46, %v1171_v49  ;;  %v1168_v34 = vrot.slane %v8134_v39, 3  ;;  %v1152_v49 = vrot.slane %v6887_v31, 2 }
 0x3aa   :  { %v5077_v24 = vmul.f32 -1.442695, %v2204_v23 }
 0x3ab   :  { %v5709_v20 = vpop.eup %5708 }
 0x3ac   :  { %v7235_v47 = vadd.f32 1.0, %v5709_v20  ;;  %5710 = vpow2.f32 %v5077_v24  ;;  %v8182_v24 = vld [vmem:[#allocation94_spill] sm:$0xff] }
 0x3ad   :  { %v2136_v50 = vpop.f32.mrf.mxu2  ;;  %v2149_v28 = vpop.f32.mrf.mxu3  ;;  %v1169_v20 = vrot.slane %v8182_v24, 2 }
 0x3ae   :  { %5712 = vrcp.f32 %v7235_v47  ;;  %v2160_v38 = vpop.f32.mrf.mxu0  ;;  %v2173_v59 = vpop.f32.mrf.mxu1  ;;  %v1157_v50 = vsel %vm188_vm2, %v1156_v52, %v1155_v55  ;;  %vm2216_vm12 = vweird.f32 %v7235_v47 }
 0x3af   :  { %v1170_v33 = vsel %vm190_vm3, %v1169_v20, %v1168_v34  ;;  %v2174_v44 = vadd.f32 %v2173_v59, %v2160_v38  ;;  %v2222_v38 = vand.u32 2147483648, %v7235_v47 }
 0x3b2   :  { %v5711_v43 = vpop.eup %5710 }
 0x3b3   :  { %v2229_v11 = vadd.f32 1.0, %v5711_v43  ;;  %v1181_v43 = vsel %vm8183_vm6, %v1157_v50, %v1173_v63 }
 0x3b4   :  { %v5713_v32 = vpop.eup %5712 }
 0x3b5   :  { %v2212_v60 = vmul.f32 %v5713_v32, %v7235_v47  ;;  %5714 = vrcp.f32 %v2229_v11  ;;  %v2186_v28 = vpop.f32.mrf.mxu2  ;;  %v2199_v23 = vpop.f32.mrf.mxu3  ;;  %vm2217_vm7 = vweird.f32 %v5713_v32  ;;  %v2239_v59 = vand.u32 2147483647, %v2229_v11 }
 0x3b6   :  { %v2200_v30 = vadd.f32 %v2199_v23, %v2186_v28  ;;  %v2162_v48 = vpop.f32.mrf.mxu0  ;;  %v2175_v58 = vpop.f32.mrf.mxu1  ;;  %v2241_v23 = vand.u32 2147483648, %v2229_v11  ;;  %vm2235_vm9 = vweird.f32 %v2229_v11  ;;  %vm2218_vm5 = vmor %vm2216_vm12, %vm2217_vm7  ;;  %vm8222_vm7 = vcmask 1041408  }
 0x3b7   :  { %v2213_v42 = vsub.f32 1.0, %v2212_v60  ;;  %v1154_v48 = vsel %vm188_vm2, %v1153_v53, %v1152_v49  ;;  %vm2240_vm11 = vcmp.eq.f32.partialorder %v2239_v59, 8.507059e+37  ;;  %vm8233_vm12 = vmmov %vm8222_vm7 }
 0x3b8   :  { %v2206_v46 = vadd.f32 %v2200_v30, %v1181_v43  ;;  %v1180_v58 = vsel %vm8184_vm1, %v1154_v48, %v1170_v33  ;;  %v2242_v33 = vor.u32 1.1754944e-38, %v2241_v23 }
 0x3b9   :  { %v2214_v54 = vmul.f32 %v5713_v32, %v2213_v42  ;;  %v2205_v28 = vadd.f32 %v2174_v44, %v1180_v58  ;;  %v2220_v42 = vand.u32 2147483647, %v7235_v47 }
 0x3ba   :  { %v5078_v8 = vmul.f32 -1.442695, %v2206_v46 }
 0x3bb   :  { %v5715_v24 = vpop.eup %5714  ;;  %v2215_v30 = vadd.f32 %v5713_v32, %v2214_v54  ;;  %v2223_v54 = vor.u32 1.1754944e-38, %v2222_v38  ;;  %vm2221_vm8 = vcmp.eq.f32.partialorder %v2220_v42, 8.507059e+37 }
 0x3bc   :  { %v2231_v52 = vmul.f32 %v5715_v24, %v2229_v11  ;;  %5716 = vpow2.f32 %v5078_v8  ;;  %vm2236_vm15 = vweird.f32 %v5715_v24 }
 0x3bd   :  { %v2188_v55 = vpop.f32.mrf.mxu2  ;;  %v2201_v63 = vpop.f32.mrf.mxu3  ;;  %5718 = vtanh.f32 %v2205_v28  ;;  %vm2237_vm10 = vmor %vm2235_vm9, %vm2236_vm15  ;;  %v2219_v44 = vsel %vm2218_vm5, %v5713_v32, %v2215_v30 }
 0x3be   :  { %v2232_v60 = vsub.f32 1.0, %v2231_v52  ;;  %v2224_v46 = vsel %vm2221_vm8, %v2223_v54, %v2219_v44  ;;  %v8187_v44 = vld [vmem:[#allocation52_spill] sm:$0xff]  ;;  %v8189_v54 = vld [vmem:[#allocation54_spill] sm:$0xff]  ;;  %vm8227_vm15 = vmmov %vm8222_vm7 }
 0x3bf   :  { %vm8234_vm9 = vmmov %vm8222_vm7 }
 0x3c0   :  { %v2233_v50 = vmul.f32 %v5715_v24, %v2232_v60 }
 0x3c2   :  { %v5717_v53 = vpop.eup %5716  ;;  %v2234_v8 = vadd.f32 %v5715_v24, %v2233_v50 }
 0x3c3   :  { %v2249_v34 = vadd.f32 1.0, %v5717_v53  ;;  %v5719_v52 = vpop.eup %5718 }
 0x3c4   :  { %v2238_v20 = vsel %vm2237_vm10, %v5715_v24, %v2234_v8  ;;  %v2266_v47 = vmul.f32 %v5719_v52, %v2224_v46  ;;  %v8185_v8 = vld [vmem:[#allocation50_spill] sm:$0xff]  ;;  %v8192_v46 = vld [vmem:[#allocation57_spill] sm:$0xff]  ;;  %v8194_v52 = vld [vmem:[#allocation59_spill] sm:$0xff] }
 0x3c5   :  { %v2243_v43 = vsel %vm2240_vm11, %v2242_v33, %v2238_v20  ;;  %5720 = vrcp.f32 %v2249_v34  ;;  %v2261_v32 = vand.u32 2147483648, %v2249_v34  ;;  %v2259_v24 = vand.u32 2147483647, %v2249_v34  ;;  %v8186_v33 = vld [vmem:[#allocation51_spill] sm:$0xff] }
 0x3c6   :  { %v2265_v49 = vmul.f32 %v2243_v43, %v7152_v57  ;;  %vm2255_vm0 = vweird.f32 %v2249_v34  ;;  %v8190_v20 = vld [vmem:[#allocation55_spill] sm:$0xff]  ;;  %v8191_v43 = vld [vmem:[#allocation56_spill] sm:$0xff] }
 0x3c7   :  { %v2262_v28 = vor.u32 1.1754944e-38, %v2261_v32  ;;  %vm2260_vm1 = vcmp.eq.f32.partialorder %v2259_v24, 8.507059e+37  ;;  %v8199_v32 = vld [vmem:[#allocation64_spill] sm:$0xff]  ;;  %v8201_v24 = vld [vmem:[#allocation66_spill] sm:$0xff] }
 0x3c8   :  { %v7257_v11 = vadd.f32 %v2266_v47, %v2265_v49  ;;  %v8193_v49 = vld [vmem:[#allocation58_spill] sm:$0xff]  ;;  %v8195_v47 = vld [vmem:[#allocation60_spill] sm:$0xff] }
 0x3ca   :  { %5722 = vtanh.f32 %v7257_v11 }
 0x3cb   :  { %v5721_v48 = vpop.eup %5720 }
 0x3cc   :  { %v2251_v58 = vmul.f32 %v5721_v48, %v2249_v34  ;;  %vm2256_vm4 = vweird.f32 %v5721_v48  ;;  %v8188_v34 = vld [vmem:[#allocation53_spill] sm:$0xff] }
 0x3cd   :  { %vm2257_vm6 = vmor %vm2255_vm0, %vm2256_vm4 }
 0x3ce   :  { %v2252_v55 = vsub.f32 1.0, %v2251_v58  ;;  %v8197_v58 = vld [vmem:[#allocation62_spill] sm:$0xff] }
 0x3d0   :  { %v2253_v63 = vmul.f32 %v5721_v48, %v2252_v55  ;;  %v5723_v57 = vpop.eup %5722  ;;  %v8198_v55 = vld [vmem:[#allocation63_spill] sm:$0xff] }
 0x3d2   :  { %v2254_v60 = vadd.f32 %v5721_v48, %v2253_v63  ;;  %v8200_v63 = vld [vmem:[#allocation65_spill] sm:$0xff] }
 0x3d4   :  { %v2258_v23 = vsel %vm2257_vm6, %v5721_v48, %v2254_v60  ;;  %v8196_v48 = vld [vmem:[#allocation61_spill] sm:$0xff]  ;;  %v8202_v60 = vld [vmem:[#allocation67_spill] sm:$0xff] }
 0x3d5   :  { %v2263_v30 = vsel %vm2260_vm1, %v2262_v28, %v2258_v23  ;;  %v8203_v28 = vld [vmem:[#allocation68_spill] sm:$0xff]  ;;  %v8204_v23 = vld [vmem:[#allocation69_spill] sm:$0xff] }
 0x3d6   :  { %v2269_v50 = vmul.f32 %v5723_v57, %v2263_v30  ;;  %v8205_v57 = vld [vmem:[#allocation70_spill] sm:$0xff]  ;;  %v8206_v30 = vld [vmem:[#allocation71_spill] sm:$0xff] }
 0x3d8   :  { %v2270_v38 = vmul.f32 %v8067_v40, %v2269_v50  ;;  %v2271_v59 = vmul.f32 %v8068_v15, %v2269_v50  ;;  %v8207_v50 = vld [vmem:[#allocation72_spill] sm:$0xff] }
 0x3da   :  { %v2272_v42 = vpack.c.bf16 %v2270_v38, %v2270_v38  ;;  %v2273_v53 = vpack.c.bf16 %v2271_v59, %v2271_v59  ;;  %v8208_v38 = vld [vmem:[#allocation73_spill] sm:$0xff]  ;;  %v8209_v59 = vld [vmem:[#allocation74_spill] sm:$0xff] }
 0x3dc   :  { %2282 = vmatmul.bf16.vlgmr.msrb.gmra.mxu0 %v2272_v42  ;;  %2295 = vmatmul.bf16.vlgmr.msrb.gmra.mxu1 %v2273_v53 }
 0x3dd   :  { %2308 = vmatmul.bf16.vlgmr.msrb.gmra.mxu2 %v2272_v42  ;;  %2321 = vmatmul.bf16.vlgmr.msrb.gmra.mxu3 %v2273_v53 }
 0x3de   :  { %2449 = vmatpush.bf16.msrb.mxu0 %v6195_v61  ;;  %2462 = vmatpush.bf16.msrb.mxu1 %v6197_v62 }
 0x3df   :  { %2475 = vmatpush.bf16.msrb.mxu2 %v6199_v1  ;;  %2488 = vmatpush.bf16.msrb.mxu3 %v6201_v2 }
 0x3e2   :  { %2450 = vmatpush.bf16.msrb.mxu0 %v6205_v9  ;;  %2463 = vmatpush.bf16.msrb.mxu1 %v6207_v10 }
 0x3e3   :  { %2476 = vmatpush.bf16.msrb.mxu2 %v6211_v13  ;;  %2489 = vmatpush.bf16.msrb.mxu3 %v6213_v14 }
 0x3e6   :  { %2451 = vmatpush.bf16.msrb.mxu0 %v6221_v21  ;;  %2464 = vmatpush.bf16.msrb.mxu1 %v6223_v22 }
 0x3e7   :  { %2477 = vmatpush.bf16.msrb.mxu2 %v6227_v26  ;;  %2490 = vmatpush.bf16.msrb.mxu3 %v6229_v27 }
 0x3ea   :  { %2452 = vmatpush.bf16.msrb.mxu0 %v6233_v36  ;;  %2465 = vmatpush.bf16.msrb.mxu1 %v6235_v37 }
 0x3eb   :  { %2478 = vmatpush.bf16.msrb.mxu2 %v6241_v41  ;;  %2491 = vmatpush.bf16.msrb.mxu3 %v8069_v4 }
 0x3ec   :  { %2334 = vmatmul.bf16.vlgmr.msra.gmra.mxu0 %v2272_v42  ;;  %2347 = vmatmul.bf16.vlgmr.msra.gmra.mxu1 %v2273_v53 }
 0x3ed   :  { %2360 = vmatmul.bf16.vlgmr.msra.gmra.mxu2 %v2272_v42  ;;  %2373 = vmatmul.bf16.vlgmr.msra.gmra.mxu3 %v2273_v53  ;;  %v8210_v42 = vld [vmem:[#allocation75_spill] sm:$0xff]  ;;  %v8211_v53 = vld [vmem:[#allocation76_spill] sm:$0xff] }
 0x3ee   :  { %2453 = vmatpush.bf16.msrb.mxu0 %v8070_v5  ;;  %2466 = vmatpush.bf16.msrb.mxu1 %v8071_v16 }
 0x3ef   :  { %2479 = vmatpush.bf16.msrb.mxu2 %v8072_v6  ;;  %2492 = vmatpush.bf16.msrb.mxu3 %v8073_v7 }
 0x3f2   :  { %2454 = vmatpush.bf16.msrb.mxu0 %v8074_v29  ;;  %2467 = vmatpush.bf16.msrb.mxu1 %v8075_v12 }
 0x3f3   :  { %2480 = vmatpush.bf16.msrb.mxu2 %v8076_v45  ;;  %2493 = vmatpush.bf16.msrb.mxu3 %v8077_v19 }
 0x3f6   :  { %2455 = vmatpush.bf16.msrb.mxu0 %v8078_v3  ;;  %2468 = vmatpush.bf16.msrb.mxu1 %v8079_v17 }
 0x3f7   :  { %2481 = vmatpush.bf16.msrb.mxu2 %v8080_v56  ;;  %2494 = vmatpush.bf16.msrb.mxu3 %v8081_v18 }
 0x3fa   :  { %2456 = vmatpush.bf16.msrb.mxu0 %v8082_v0  ;;  %2469 = vmatpush.bf16.msrb.mxu1 %v8083_v25 }
 0x3fb   :  { %2482 = vmatpush.bf16.msrb.mxu2 %v8084_v51  ;;  %2495 = vmatpush.bf16.msrb.mxu3 %v8185_v8 }
 0x3fe   :  { %2501 = vmatpush.bf16.msra.mxu0 %v8186_v33  ;;  %2514 = vmatpush.bf16.msra.mxu1 %v8187_v44 }
 0x3ff   :  { %2527 = vmatpush.bf16.msra.mxu2 %v8188_v34  ;;  %2540 = vmatpush.bf16.msra.mxu3 %v8189_v54 }
 0x402   :  { %2502 = vmatpush.bf16.msra.mxu0 %v8190_v20  ;;  %2515 = vmatpush.bf16.msra.mxu1 %v8191_v43 }
 0x403   :  { %2528 = vmatpush.bf16.msra.mxu2 %v8192_v46  ;;  %2541 = vmatpush.bf16.msra.mxu3 %v8193_v49  ;;  %v8225_v49 = vld [vmem:[#allocation89_spill] sm:$0xff] }
 0x406   :  { %2503 = vmatpush.bf16.msra.mxu0 %v8194_v52  ;;  %2516 = vmatpush.bf16.msra.mxu1 %v8195_v47  ;;  %v8224_v52 = vld [vmem:[#allocation84_spill] sm:$0xff] }
 0x407   :  { %2529 = vmatpush.bf16.msra.mxu2 %v8196_v48  ;;  %2542 = vmatpush.bf16.msra.mxu3 %v8197_v58 }
 0x40a   :  { %2504 = vmatpush.bf16.msra.mxu0 %v8198_v55  ;;  %2517 = vmatpush.bf16.msra.mxu1 %v8199_v32  ;;  %v8220_v32 = vld [vmem:[#allocation88_spill] sm:$0xff]  ;;  %v8221_v55 = vld [vmem:[#allocation87_spill] sm:$0xff] }
 0x40b   :  { %2530 = vmatpush.bf16.msra.mxu2 %v8200_v63  ;;  %2543 = vmatpush.bf16.msra.mxu3 %v8201_v24  ;;  %v8212_v24 = vld [vmem:[#allocation77_spill] sm:$0xff]  ;;  %v8219_v63 = vld [vmem:[#allocation31_spill] sm:$0xff] }
 0x40e   :  { %2505 = vmatpush.bf16.msra.mxu0 %v8202_v60  ;;  %2518 = vmatpush.bf16.msra.mxu1 %v8203_v28  ;;  %v8213_v60 = vld [vmem:[#allocation78_spill] sm:$0xff]  ;;  %v8214_v28 = vld [vmem:[#allocation79_spill] sm:$0xff] }
 0x40f   :  { %2531 = vmatpush.bf16.msra.mxu2 %v8204_v23  ;;  %2544 = vmatpush.bf16.msra.mxu3 %v8205_v57  ;;  %v8215_v23 = vld [vmem:[#allocation80_spill] sm:$0xff]  ;;  %v8216_v57 = vld [vmem:[#allocation81_spill] sm:$0xff] }
 0x412   :  { %2506 = vmatpush.bf16.msra.mxu0 %v8206_v30  ;;  %2519 = vmatpush.bf16.msra.mxu1 %v8207_v50  ;;  %v8217_v30 = vld [vmem:[#allocation82_spill] sm:$0xff]  ;;  %v8218_v50 = vld [vmem:[#allocation85_spill] sm:$0xff] }
 0x413   :  { %2532 = vmatpush.bf16.msra.mxu2 %v8208_v38  ;;  %2545 = vmatpush.bf16.msra.mxu3 %v8209_v59  ;;  %v1199_v38 = vrot.slane %v8218_v50, 1  ;;  %v1183_v59 = vrot.slane %v8219_v63, 2  ;;  %v1186_v50 = vrot.slane %v8224_v52, 2  ;;  %v1201_v63 = vrot.slane %v8225_v49, 2 }
 0x416   :  { %2507 = vmatpush.bf16.msra.mxu0 %v8210_v42  ;;  %2520 = vmatpush.bf16.msra.mxu1 %v8211_v53  ;;  %v1198_v42 = vrot.slane %v8220_v32, 2  ;;  %v1182_v53 = vrot.slane %v8221_v55, 3  ;;  %v8226_v32 = vld [vmem:[#allocation90_spill] sm:$0xff] }
 0x417   :  { %2533 = vmatpush.bf16.msra.mxu2 %v8212_v24  ;;  %2546 = vmatpush.bf16.msra.mxu3 %v8213_v60  ;;  %v1185_v43 = vrot.slane %v8226_v32, 3 }
 0x418   :  { %v1200_v24 = vsel %vm190_vm3, %v1199_v38, %v1198_v42 }
 0x41a   :  { %2508 = vmatpush.bf16.msra.mxu0 %v8214_v28  ;;  %2521 = vmatpush.bf16.msra.mxu1 %v8215_v23  ;;  %v1184_v28 = vsel %vm188_vm2, %v1183_v59, %v1182_v53  ;;  %v1187_v59 = vsel %vm188_vm2, %v1186_v50, %v1185_v43  ;;  %v8229_v50 = vld [vmem:[#allocation92_spill] sm:$0xff] }
 0x41b   :  { %2534 = vmatpush.bf16.msra.mxu2 %v8216_v57  ;;  %2547 = vmatpush.bf16.msra.mxu3 %v8217_v30  ;;  %v1214_v23 = vsel %vm8222_vm7, %v1184_v28, %v1200_v24  ;;  %v8223_v57 = vld [vmem:[#allocation86_spill] sm:$0xff] }
 0x41c   :  { %v1202_v47 = vrot.slane %v8223_v57, 1 }
 0x41e   :  { %v1203_v55 = vsel %vm190_vm3, %v1202_v47, %v1201_v63  ;;  %v8228_v63 = vld [vmem:[#allocation95_spill] sm:$0xff] }
 0x41f   :  { %v1215_v28 = vsel %vm8227_vm15, %v1187_v59, %v1203_v55  ;;  %v1208_v49 = vrot.slane %v8228_v63, 1 }
 0x459   :  { %v2283_v58 = vpop.f32.mrf.mxu0  ;;  %v2296_v60 = vpop.f32.mrf.mxu1 }
 0x45a   :  { %v2297_v48 = vadd.f32 %v2296_v60, %v2283_v58 }
 0x45c   :  { %v2378_v30 = vadd.f32 %v2297_v48, %v1214_v23 }
 0x45e   :  { %v5079_v46 = vmul.f32 -1.442695, %v2378_v30 }
 0x460   :  { %5724 = vpow2.f32 %v5079_v46  ;;  %v2309_v38 = vpop.f32.mrf.mxu2  ;;  %v2322_v42 = vpop.f32.mrf.mxu3 }
 0x461   :  { %v2323_v58 = vadd.f32 %v2322_v42, %v2309_v38  ;;  %v2285_v60 = vpop.f32.mrf.mxu0  ;;  %v2298_v24 = vpop.f32.mrf.mxu1  ;;  %v1192_v38 = vrot.slane %v8229_v50, 2  ;;  %v8230_v42 = vld [vmem:[#allocation97_spill] sm:$0xff] }
 0x462   :  { %v1207_v60 = vrot.slane %v8230_v42, 2  ;;  %v1189_v42 = vrot.slane %v6869_v35, 2 }
 0x463   :  { %v2379_v48 = vadd.f32 %v2323_v58, %v1215_v28  ;;  %v8231_v58 = vld [vmem:[#allocation96_spill] sm:$0xff] }
 0x464   :  { %v1191_v24 = vrot.slane %v8231_v58, 3  ;;  %v1209_v28 = vsel %vm190_vm3, %v1208_v49, %v1207_v60  ;;  %v1204_v58 = vrot.slane %v8134_v39, 2  ;;  %v1188_v60 = vrot.slane %v6887_v31, 3 }
 0x465   :  { %v5080_v23 = vmul.f32 -1.442695, %v2379_v48 }
 0x466   :  { %v5725_v53 = vpop.eup %5724  ;;  %v1193_v63 = vsel %vm188_vm2, %v1192_v38, %v1191_v24 }
 0x467   :  { %v7340_v57 = vadd.f32 1.0, %v5725_v53  ;;  %5726 = vpow2.f32 %v5080_v23  ;;  %v8232_v53 = vld [vmem:[#allocation94_spill] sm:$0xff] }
 0x468   :  { %v2311_v30 = vpop.f32.mrf.mxu2  ;;  %v2324_v32 = vpop.f32.mrf.mxu3 }
 0x469   :  { %5728 = vrcp.f32 %v7340_v57  ;;  %v2335_v46 = vpop.f32.mrf.mxu0  ;;  %v2348_v47 = vpop.f32.mrf.mxu1  ;;  %v1205_v30 = vrot.slane %v8232_v53, 1  ;;  %vm2391_vm11 = vweird.f32 %v7340_v57 }
 0x46a   :  { %v2349_v44 = vadd.f32 %v2348_v47, %v2335_v46  ;;  %v2397_v46 = vand.u32 2147483648, %v7340_v57 }
 0x46b   :  { %v1206_v34 = vsel %vm190_vm3, %v1205_v30, %v1204_v58 }
 0x46d   :  { %v5727_v43 = vpop.eup %5726 }
 0x46e   :  { %v2404_v55 = vadd.f32 1.0, %v5727_v43  ;;  %v1217_v43 = vsel %vm8233_vm12, %v1193_v63, %v1209_v28 }
 0x46f   :  { %v5729_v59 = vpop.eup %5728 }
 0x470   :  { %v2387_v48 = vmul.f32 %v5729_v59, %v7340_v57  ;;  %5730 = vrcp.f32 %v2404_v55  ;;  %v2361_v32 = vpop.f32.mrf.mxu2  ;;  %v2374_v23 = vpop.f32.mrf.mxu3  ;;  %vm2392_vm5 = vweird.f32 %v5729_v59  ;;  %v2414_v47 = vand.u32 2147483647, %v2404_v55 }
 0x471   :  { %v2375_v52 = vadd.f32 %v2374_v23, %v2361_v32  ;;  %v2337_v20 = vpop.f32.mrf.mxu0  ;;  %v2350_v50 = vpop.f32.mrf.mxu1  ;;  %v2416_v32 = vand.u32 2147483648, %v2404_v55  ;;  %vm2410_vm8 = vweird.f32 %v2404_v55  ;;  %vm2393_vm4 = vmor %vm2391_vm11, %vm2392_vm5  ;;  %vm8272_vm5 = vcmask 1041408  }
 0x472   :  { %v2388_v54 = vsub.f32 1.0, %v2387_v48  ;;  %v1190_v20 = vsel %vm188_vm2, %v1189_v42, %v1188_v60  ;;  %vm2415_vm6 = vcmp.eq.f32.partialorder %v2414_v47, 8.507059e+37  ;;  %vm8282_vm11 = vmmov %vm8272_vm5 }
 0x473   :  { %v2381_v49 = vadd.f32 %v2375_v52, %v1217_v43  ;;  %v1216_v50 = vsel %vm8234_vm9, %v1190_v20, %v1206_v34  ;;  %v2417_v34 = vor.u32 1.1754944e-38, %v2416_v32 }
 0x474   :  { %v2389_v8 = vmul.f32 %v5729_v59, %v2388_v54  ;;  %v2380_v48 = vadd.f32 %v2349_v44, %v1216_v50  ;;  %v2395_v54 = vand.u32 2147483647, %v7340_v57 }
 0x475   :  { %v5081_v33 = vmul.f32 -1.442695, %v2381_v49 }
 0x476   :  { %v5731_v53 = vpop.eup %5730  ;;  %v2390_v52 = vadd.f32 %v5729_v59, %v2389_v8  ;;  %v2398_v8 = vor.u32 1.1754944e-38, %v2397_v46  ;;  %vm2396_vm1 = vcmp.eq.f32.partialorder %v2395_v54, 8.507059e+37 }
 0x477   :  { %v2406_v38 = vmul.f32 %v5731_v53, %v2404_v55  ;;  %5732 = vpow2.f32 %v5081_v33  ;;  %vm2411_vm10 = vweird.f32 %v5731_v53 }
 0x478   :  { %v2363_v63 = vpop.f32.mrf.mxu2  ;;  %v2376_v24 = vpop.f32.mrf.mxu3  ;;  %5734 = vtanh.f32 %v2380_v48  ;;  %vm2412_vm0 = vmor %vm2410_vm8, %vm2411_vm10  ;;  %v2394_v44 = vsel %vm2393_vm4, %v5729_v59, %v2390_v52 }
 0x479   :  { %v2407_v28 = vsub.f32 1.0, %v2406_v38  ;;  %v2399_v49 = vsel %vm2396_vm1, %v2398_v8, %v2394_v44  ;;  %v8237_v44 = vld [vmem:[#allocation52_spill] sm:$0xff]  ;;  %v8239_v8 = vld [vmem:[#allocation54_spill] sm:$0xff]  ;;  %vm8277_vm10 = vmmov %vm8272_vm5 }
 0x47a   :  { %vm8284_vm8 = vmmov %vm8272_vm5 }
 0x47b   :  { %v2408_v23 = vmul.f32 %v5731_v53, %v2407_v28 }
 0x47d   :  { %v5733_v42 = vpop.eup %5732  ;;  %v2409_v33 = vadd.f32 %v5731_v53, %v2408_v23 }
 0x47e   :  { %v2424_v58 = vadd.f32 1.0, %v5733_v42  ;;  %v5735_v38 = vpop.eup %5734 }
 0x47f   :  { %v2413_v30 = vsel %vm2412_vm0, %v5731_v53, %v2409_v33  ;;  %v2441_v57 = vmul.f32 %v5735_v38, %v2399_v49  ;;  %v8235_v33 = vld [vmem:[#allocation50_spill] sm:$0xff]  ;;  %v8242_v49 = vld [vmem:[#allocation57_spill] sm:$0xff]  ;;  %v8244_v38 = vld [vmem:[#allocation59_spill] sm:$0xff] }
 0x480   :  { %v2418_v43 = vsel %vm2415_vm6, %v2417_v34, %v2413_v30  ;;  %5736 = vrcp.f32 %v2424_v58  ;;  %v2436_v59 = vand.u32 2147483648, %v2424_v58  ;;  %v2434_v53 = vand.u32 2147483647, %v2424_v58  ;;  %v8236_v34 = vld [vmem:[#allocation51_spill] sm:$0xff] }
 0x481   :  { %v2440_v60 = vmul.f32 %v2418_v43, %v7257_v11  ;;  %vm2430_vm15 = vweird.f32 %v2424_v58  ;;  %v8240_v30 = vld [vmem:[#allocation55_spill] sm:$0xff]  ;;  %v8241_v43 = vld [vmem:[#allocation56_spill] sm:$0xff] }
 0x482   :  { %v2437_v48 = vor.u32 1.1754944e-38, %v2436_v59  ;;  %vm2435_vm9 = vcmp.eq.f32.partialorder %v2434_v53, 8.507059e+37  ;;  %v8249_v59 = vld [vmem:[#allocation64_spill] sm:$0xff]  ;;  %v8251_v53 = vld [vmem:[#allocation66_spill] sm:$0xff] }
 0x483   :  { %v7362_v55 = vadd.f32 %v2441_v57, %v2440_v60  ;;  %v8243_v60 = vld [vmem:[#allocation58_spill] sm:$0xff]  ;;  %v8245_v57 = vld [vmem:[#allocation60_spill] sm:$0xff] }
 0x485   :  { %5738 = vtanh.f32 %v7362_v55 }
 0x486   :  { %v5737_v20 = vpop.eup %5736 }
 0x487   :  { %v2426_v50 = vmul.f32 %v5737_v20, %v2424_v58  ;;  %vm2431_vm7 = vweird.f32 %v5737_v20  ;;  %v8238_v58 = vld [vmem:[#allocation53_spill] sm:$0xff] }
 0x488   :  { %vm2432_vm12 = vmor %vm2430_vm15, %vm2431_vm7 }
 0x489   :  { %v2427_v63 = vsub.f32 1.0, %v2426_v50  ;;  %v8247_v50 = vld [vmem:[#allocation62_spill] sm:$0xff] }
 0x48b   :  { %v2428_v24 = vmul.f32 %v5737_v20, %v2427_v63  ;;  %v5739_v11 = vpop.eup %5738  ;;  %v8248_v63 = vld [vmem:[#allocation63_spill] sm:$0xff] }
 0x48d   :  { %v2429_v28 = vadd.f32 %v5737_v20, %v2428_v24  ;;  %v8250_v24 = vld [vmem:[#allocation65_spill] sm:$0xff] }
 0x48f   :  { %v2433_v32 = vsel %vm2432_vm12, %v5737_v20, %v2429_v28  ;;  %v8246_v20 = vld [vmem:[#allocation61_spill] sm:$0xff]  ;;  %v8252_v28 = vld [vmem:[#allocation67_spill] sm:$0xff] }
 0x490   :  { %v2438_v52 = vsel %vm2435_vm9, %v2437_v48, %v2433_v32  ;;  %v8253_v48 = vld [vmem:[#allocation68_spill] sm:$0xff]  ;;  %v8254_v32 = vld [vmem:[#allocation69_spill] sm:$0xff] }
 0x491   :  { %v2444_v23 = vmul.f32 %v5739_v11, %v2438_v52  ;;  %v8255_v11 = vld [vmem:[#allocation70_spill] sm:$0xff]  ;;  %v8256_v52 = vld [vmem:[#allocation71_spill] sm:$0xff] }
 0x493   :  { %v2445_v46 = vmul.f32 %v8067_v40, %v2444_v23  ;;  %v2446_v47 = vmul.f32 %v8068_v15, %v2444_v23  ;;  %v8257_v23 = vld [vmem:[#allocation72_spill] sm:$0xff] }
 0x495   :  { %v2447_v54 = vpack.c.bf16 %v2445_v46, %v2445_v46  ;;  %v2448_v42 = vpack.c.bf16 %v2446_v47, %v2446_v47  ;;  %v8258_v46 = vld [vmem:[#allocation73_spill] sm:$0xff]  ;;  %v8259_v47 = vld [vmem:[#allocation74_spill] sm:$0xff] }
 0x497   :  { %2457 = vmatmul.bf16.vlgmr.msrb.gmra.mxu0 %v2447_v54  ;;  %2470 = vmatmul.bf16.vlgmr.msrb.gmra.mxu1 %v2448_v42 }
 0x498   :  { %2483 = vmatmul.bf16.vlgmr.msrb.gmra.mxu2 %v2447_v54  ;;  %2496 = vmatmul.bf16.vlgmr.msrb.gmra.mxu3 %v2448_v42 }
 0x499   :  { %2624 = vmatpush.bf16.msrb.mxu0 %v6195_v61  ;;  %2637 = vmatpush.bf16.msrb.mxu1 %v6197_v62 }
 0x49a   :  { %2650 = vmatpush.bf16.msrb.mxu2 %v6199_v1  ;;  %2663 = vmatpush.bf16.msrb.mxu3 %v6201_v2 }
 0x49d   :  { %2625 = vmatpush.bf16.msrb.mxu0 %v6205_v9  ;;  %2638 = vmatpush.bf16.msrb.mxu1 %v6207_v10 }
 0x49e   :  { %2651 = vmatpush.bf16.msrb.mxu2 %v6211_v13  ;;  %2664 = vmatpush.bf16.msrb.mxu3 %v6213_v14 }
 0x4a1   :  { %2626 = vmatpush.bf16.msrb.mxu0 %v6221_v21  ;;  %2639 = vmatpush.bf16.msrb.mxu1 %v6223_v22 }
 0x4a2   :  { %2652 = vmatpush.bf16.msrb.mxu2 %v6227_v26  ;;  %2665 = vmatpush.bf16.msrb.mxu3 %v6229_v27 }
 0x4a5   :  { %2627 = vmatpush.bf16.msrb.mxu0 %v6233_v36  ;;  %2640 = vmatpush.bf16.msrb.mxu1 %v6235_v37 }
 0x4a6   :  { %2653 = vmatpush.bf16.msrb.mxu2 %v6241_v41  ;;  %2666 = vmatpush.bf16.msrb.mxu3 %v8069_v4 }
 0x4a7   :  { %2509 = vmatmul.bf16.vlgmr.msra.gmra.mxu0 %v2447_v54  ;;  %2522 = vmatmul.bf16.vlgmr.msra.gmra.mxu1 %v2448_v42 }
 0x4a8   :  { %2535 = vmatmul.bf16.vlgmr.msra.gmra.mxu2 %v2447_v54  ;;  %2548 = vmatmul.bf16.vlgmr.msra.gmra.mxu3 %v2448_v42  ;;  %v8260_v54 = vld [vmem:[#allocation75_spill] sm:$0xff]  ;;  %v8261_v42 = vld [vmem:[#allocation76_spill] sm:$0xff] }
 0x4a9   :  { %2628 = vmatpush.bf16.msrb.mxu0 %v8070_v5  ;;  %2641 = vmatpush.bf16.msrb.mxu1 %v8071_v16 }
 0x4aa   :  { %2654 = vmatpush.bf16.msrb.mxu2 %v8072_v6  ;;  %2667 = vmatpush.bf16.msrb.mxu3 %v8073_v7 }
 0x4ad   :  { %2629 = vmatpush.bf16.msrb.mxu0 %v8074_v29  ;;  %2642 = vmatpush.bf16.msrb.mxu1 %v8075_v12 }
 0x4ae   :  { %2655 = vmatpush.bf16.msrb.mxu2 %v8076_v45  ;;  %2668 = vmatpush.bf16.msrb.mxu3 %v8077_v19 }
 0x4b1   :  { %2630 = vmatpush.bf16.msrb.mxu0 %v8078_v3  ;;  %2643 = vmatpush.bf16.msrb.mxu1 %v8079_v17 }
 0x4b2   :  { %2656 = vmatpush.bf16.msrb.mxu2 %v8080_v56  ;;  %2669 = vmatpush.bf16.msrb.mxu3 %v8081_v18 }
 0x4b5   :  { %2631 = vmatpush.bf16.msrb.mxu0 %v8082_v0  ;;  %2644 = vmatpush.bf16.msrb.mxu1 %v8083_v25 }
 0x4b6   :  { %2657 = vmatpush.bf16.msrb.mxu2 %v8084_v51  ;;  %2670 = vmatpush.bf16.msrb.mxu3 %v8235_v33 }
 0x4b9   :  { %2676 = vmatpush.bf16.msra.mxu0 %v8236_v34  ;;  %2689 = vmatpush.bf16.msra.mxu1 %v8237_v44 }
 0x4ba   :  { %2702 = vmatpush.bf16.msra.mxu2 %v8238_v58  ;;  %2715 = vmatpush.bf16.msra.mxu3 %v8239_v8  ;;  %v1224_v8 = vrot.slane %v6887_v31, 4 }
 0x4bd   :  { %2677 = vmatpush.bf16.msra.mxu0 %v8240_v30  ;;  %2690 = vmatpush.bf16.msra.mxu1 %v8241_v43  ;;  %v8279_v30 = vld [vmem:[#allocation97_spill] sm:$0xff] }
 0x4be   :  { %2703 = vmatpush.bf16.msra.mxu2 %v8242_v49  ;;  %2716 = vmatpush.bf16.msra.mxu3 %v8243_v60  ;;  %v8275_v60 = vld [vmem:[#allocation90_spill] sm:$0xff] }
 0x4bf   :  { %v8276_v49 = vld [vmem:[#allocation86_spill] sm:$0xff] }
 0x4c1   :  { %2678 = vmatpush.bf16.msra.mxu0 %v8244_v38  ;;  %2691 = vmatpush.bf16.msra.mxu1 %v8245_v57 }
 0x4c2   :  { %2704 = vmatpush.bf16.msra.mxu2 %v8246_v20  ;;  %2717 = vmatpush.bf16.msra.mxu3 %v8247_v50 }
 0x4c5   :  { %2679 = vmatpush.bf16.msra.mxu0 %v8248_v63  ;;  %2692 = vmatpush.bf16.msra.mxu1 %v8249_v59  ;;  %v8270_v59 = vld [vmem:[#allocation87_spill] sm:$0xff]  ;;  %v8271_v63 = vld [vmem:[#allocation85_spill] sm:$0xff] }
 0x4c6   :  { %2705 = vmatpush.bf16.msra.mxu2 %v8250_v24  ;;  %2718 = vmatpush.bf16.msra.mxu3 %v8251_v53  ;;  %v8262_v53 = vld [vmem:[#allocation77_spill] sm:$0xff]  ;;  %v8269_v24 = vld [vmem:[#allocation88_spill] sm:$0xff] }
 0x4c9   :  { %2680 = vmatpush.bf16.msra.mxu0 %v8252_v28  ;;  %2693 = vmatpush.bf16.msra.mxu1 %v8253_v48  ;;  %v8263_v28 = vld [vmem:[#allocation78_spill] sm:$0xff]  ;;  %v8264_v48 = vld [vmem:[#allocation79_spill] sm:$0xff] }
 0x4ca   :  { %2706 = vmatpush.bf16.msra.mxu2 %v8254_v32  ;;  %2719 = vmatpush.bf16.msra.mxu3 %v8255_v11  ;;  %v8265_v32 = vld [vmem:[#allocation80_spill] sm:$0xff]  ;;  %v8266_v11 = vld [vmem:[#allocation81_spill] sm:$0xff] }
 0x4cd   :  { %2681 = vmatpush.bf16.msra.mxu0 %v8256_v52  ;;  %2694 = vmatpush.bf16.msra.mxu1 %v8257_v23  ;;  %v8267_v52 = vld [vmem:[#allocation82_spill] sm:$0xff]  ;;  %v8268_v23 = vld [vmem:[#allocation31_spill] sm:$0xff] }
 0x4ce   :  { %2707 = vmatpush.bf16.msra.mxu2 %v8258_v46  ;;  %2720 = vmatpush.bf16.msra.mxu3 %v8259_v47  ;;  %v1219_v46 = vrot.slane %v8268_v23, 3  ;;  %v1234_v47 = vrot.slane %v8269_v24, 1  ;;  %v1221_v24 = vrot.slane %v8275_v60, 4 }
 0x4d1   :  { %2682 = vmatpush.bf16.msra.mxu0 %v8260_v54  ;;  %2695 = vmatpush.bf16.msra.mxu1 %v8261_v42  ;;  %v1218_v54 = vrot.slane %v8270_v59, 4  ;;  %v1235_v42 = vsel %vm190_vm3, %v8271_v63, %v1234_v47 }
 0x4d2   :  { %2708 = vmatpush.bf16.msra.mxu2 %v8262_v53  ;;  %2721 = vmatpush.bf16.msra.mxu3 %v8263_v28 }
 0x4d3   :  { %v1220_v28 = vsel %vm188_vm2, %v1219_v46, %v1218_v54 }
 0x4d5   :  { %2683 = vmatpush.bf16.msra.mxu0 %v8264_v48  ;;  %2696 = vmatpush.bf16.msra.mxu1 %v8265_v32  ;;  %v1246_v32 = vsel %vm8272_vm5, %v1220_v28, %v1235_v42 }
 0x4d6   :  { %2709 = vmatpush.bf16.msra.mxu2 %v8266_v11  ;;  %2722 = vmatpush.bf16.msra.mxu3 %v8267_v52  ;;  %v8273_v11 = vld [vmem:[#allocation84_spill] sm:$0xff]  ;;  %v8274_v52 = vld [vmem:[#allocation89_spill] sm:$0xff] }
 0x4d7   :  { %v1222_v57 = vrot.slane %v8273_v11, 3  ;;  %v1236_v38 = vrot.slane %v8274_v52, 1  ;;  %v8278_v11 = vld [vmem:[#allocation92_spill] sm:$0xff] }
 0x4d9   :  { %v1237_v59 = vsel %vm190_vm3, %v8276_v49, %v1236_v38  ;;  %v1223_v43 = vsel %vm188_vm2, %v1222_v57, %v1221_v24  ;;  %v1228_v49 = vrot.slane %v8278_v11, 3  ;;  %v1240_v57 = vrot.slane %v8279_v30, 1 }
 0x4da   :  { %v1247_v28 = vsel %vm8277_vm10, %v1223_v43, %v1237_v59  ;;  %v8281_v43 = vld [vmem:[#allocation95_spill] sm:$0xff]  ;;  %v1238_v30 = vrot.slane %v8134_v39, 1 }
 0x4db   :  { %v1241_v59 = vsel %vm190_vm3, %v8281_v43, %v1240_v57  ;;  %v8283_v57 = vld [vmem:[#allocation94_spill] sm:$0xff] }
 0x4dc   :  { %v1239_v43 = vsel %vm190_vm3, %v8283_v57, %v1238_v30 }
 0x514   :  { %v2458_v53 = vpop.f32.mrf.mxu0  ;;  %v2471_v50 = vpop.f32.mrf.mxu1 }
 0x515   :  { %v2472_v48 = vadd.f32 %v2471_v50, %v2458_v53 }
 0x517   :  { %v2553_v20 = vadd.f32 %v2472_v48, %v1246_v32 }
 0x519   :  { %v5082_v23 = vmul.f32 -1.442695, %v2553_v20 }
 0x51b   :  { %5740 = vpow2.f32 %v5082_v23  ;;  %v2484_v47 = vpop.f32.mrf.mxu2  ;;  %v2497_v63 = vpop.f32.mrf.mxu3 }
 0x51c   :  { %v2498_v46 = vadd.f32 %v2497_v63, %v2484_v47  ;;  %v2460_v50 = vpop.f32.mrf.mxu0  ;;  %v2473_v53 = vpop.f32.mrf.mxu1  ;;  %v8280_v47 = vld [vmem:[#allocation96_spill] sm:$0xff] }
 0x51d   :  { %v1227_v50 = vrot.slane %v8280_v47, 4 }
 0x51e   :  { %v2554_v48 = vadd.f32 %v2498_v46, %v1247_v28 }
 0x520   :  { %v5083_v32 = vmul.f32 -1.442695, %v2554_v48 }
 0x521   :  { %v5741_v54 = vpop.eup %5740 }
 0x522   :  { %v2560_v42 = vadd.f32 1.0, %v5741_v54  ;;  %5742 = vpow2.f32 %v5083_v32 }
 0x523   :  { %v2486_v20 = vpop.f32.mrf.mxu2  ;;  %v2499_v52 = vpop.f32.mrf.mxu3 }
 0x524   :  { %5744 = vrcp.f32 %v2560_v42  ;;  %v2510_v60 = vpop.f32.mrf.mxu0  ;;  %v2523_v38 = vpop.f32.mrf.mxu1  ;;  %v1229_v52 = vsel %vm188_vm2, %v1228_v49, %v1227_v50  ;;  %v2572_v30 = vand.u32 2147483648, %v2560_v42  ;;  %vm2566_vm6 = vweird.f32 %v2560_v42 }
 0x525   :  { %v1249_v11 = vsel %vm8282_vm11, %v1229_v52, %v1241_v59  ;;  %v2524_v58 = vadd.f32 %v2523_v38, %v2510_v60  ;;  %v2570_v38 = vand.u32 2147483647, %v2560_v42 }
 0x527   :  { %vm2571_vm9 = vcmp.eq.f32.partialorder %v2570_v38, 8.507059e+37 }
 0x528   :  { %v5743_v23 = vpop.eup %5742 }
 0x529   :  { %v2579_v63 = vadd.f32 1.0, %v5743_v23  ;;  %v1225_v23 = vrot.slane %v6869_v35, 3 }
 0x52a   :  { %v5745_v24 = vpop.eup %5744 }
 0x52b   :  { %v2562_v46 = vmul.f32 %v5745_v24, %v2560_v42  ;;  %5746 = vrcp.f32 %v2579_v63  ;;  %v2536_v53 = vpop.f32.mrf.mxu2  ;;  %v2549_v28 = vpop.f32.mrf.mxu3  ;;  %vm2567_vm4 = vweird.f32 %v5745_v24  ;;  %v2589_v60 = vand.u32 2147483647, %v2579_v63 }
 0x52c   :  { %v2550_v48 = vadd.f32 %v2549_v28, %v2536_v53  ;;  %v2512_v32 = vpop.f32.mrf.mxu0  ;;  %v2525_v54 = vpop.f32.mrf.mxu1  ;;  %v1226_v53 = vsel %vm188_vm2, %v1225_v23, %v1224_v8  ;;  %vm2585_vm1 = vweird.f32 %v2579_v63  ;;  %vm2568_vm7 = vmor %vm2566_vm6, %vm2567_vm4  ;;  %v2573_v23 = vor.u32 1.1754944e-38, %v2572_v30 }
 0x52d   :  { %v2563_v20 = vsub.f32 1.0, %v2562_v46  ;;  %v1248_v59 = vsel %vm8284_vm8, %v1226_v53, %v1239_v43  ;;  %vm2590_vm12 = vcmp.eq.f32.partialorder %v2589_v60, 8.507059e+37  ;;  %vm8321_vm4 = vcmask 1041408  }
 0x52e   :  { %v2556_v47 = vadd.f32 %v2550_v48, %v1249_v11  ;;  %v2555_v32 = vadd.f32 %v2524_v58, %v1248_v59  ;;  %v2591_v11 = vand.u32 2147483648, %v2579_v63 }
 0x52f   :  { %v2564_v49 = vmul.f32 %v5745_v24, %v2563_v20 }
 0x530   :  { %v5084_v44 = vmul.f32 -1.442695, %v2556_v47 }
 0x531   :  { %v5747_v34 = vpop.eup %5746  ;;  %v2565_v48 = vadd.f32 %v5745_v24, %v2564_v49 }
 0x532   :  { %v2581_v50 = vmul.f32 %v5747_v34, %v2579_v63  ;;  %5748 = vpow2.f32 %v5084_v44  ;;  %vm2586_vm0 = vweird.f32 %v5747_v34  ;;  %v2592_v44 = vor.u32 1.1754944e-38, %v2591_v11 }
 0x533   :  { %v2538_v46 = vpop.f32.mrf.mxu2  ;;  %v2551_v28 = vpop.f32.mrf.mxu3  ;;  %5750 = vtanh.f32 %v2555_v32  ;;  %vm2587_vm15 = vmor %vm2585_vm1, %vm2586_vm0  ;;  %v2569_v43 = vsel %vm2568_vm7, %v5745_v24, %v2565_v48 }
 0x534   :  { %v2582_v52 = vsub.f32 1.0, %v2581_v50  ;;  %v2574_v50 = vsel %vm2571_vm9, %v2573_v23, %v2569_v43  ;;  %v8285_v43 = vld [vmem:[#allocation51_spill] sm:$0xff]  ;;  %v8287_v23 = vld [vmem:[#allocation53_spill] sm:$0xff]  ;;  %vm8326_vm0 = vmmov %vm8321_vm4 }
 0x535   :  { %vm8331_vm6 = vmmov %vm8326_vm0 }
 0x536   :  { %v2583_v54 = vmul.f32 %v5747_v34, %v2582_v52  ;;  %vm8332_vm1 = vmmov %vm8326_vm0 }
 0x538   :  { %v5749_v47 = vpop.eup %5748  ;;  %v2584_v8 = vadd.f32 %v5747_v34, %v2583_v54 }
 0x539   :  { %v2599_v20 = vadd.f32 1.0, %v5749_v47  ;;  %v5751_v59 = vpop.eup %5750 }
 0x53a   :  { %v2588_v58 = vsel %vm2587_vm15, %v5747_v34, %v2584_v8  ;;  %v2616_v42 = vmul.f32 %v5751_v59, %v2574_v50  ;;  %v8290_v50 = vld [vmem:[#allocation56_spill] sm:$0xff]  ;;  %v8292_v59 = vld [vmem:[#allocation58_spill] sm:$0xff] }
 0x53b   :  { %v2593_v49 = vsel %vm2590_vm12, %v2592_v44, %v2588_v58  ;;  %5752 = vrcp.f32 %v2599_v20  ;;  %v2611_v24 = vand.u32 2147483648, %v2599_v20  ;;  %v2609_v34 = vand.u32 2147483647, %v2599_v20  ;;  %v8288_v58 = vld [vmem:[#allocation54_spill] sm:$0xff] }
 0x53c   :  { %v2615_v53 = vmul.f32 %v2593_v49, %v7362_v55  ;;  %vm2605_vm10 = vweird.f32 %v2599_v20  ;;  %v8289_v49 = vld [vmem:[#allocation55_spill] sm:$0xff] }
 0x53d   :  { %v2612_v48 = vor.u32 1.1754944e-38, %v2611_v24  ;;  %vm2610_vm8 = vcmp.eq.f32.partialorder %v2609_v34, 8.507059e+37  ;;  %v8297_v24 = vld [vmem:[#allocation63_spill] sm:$0xff]  ;;  %v8299_v34 = vld [vmem:[#allocation65_spill] sm:$0xff] }
 0x53e   :  { %v7460_v63 = vadd.f32 %v2616_v42, %v2615_v53  ;;  %v8291_v53 = vld [vmem:[#allocation57_spill] sm:$0xff]  ;;  %v8293_v42 = vld [vmem:[#allocation59_spill] sm:$0xff] }
 0x540   :  { %5754 = vtanh.f32 %v7460_v63 }
 0x541   :  { %v5753_v46 = vpop.eup %5752 }
 0x542   :  { %v2601_v28 = vmul.f32 %v5753_v46, %v2599_v20  ;;  %vm2606_vm5 = vweird.f32 %v5753_v46  ;;  %v8286_v20 = vld [vmem:[#allocation52_spill] sm:$0xff] }
 0x543   :  { %vm2607_vm11 = vmor %vm2605_vm10, %vm2606_vm5 }
 0x544   :  { %v2602_v52 = vsub.f32 1.0, %v2601_v28  ;;  %v8295_v28 = vld [vmem:[#allocation61_spill] sm:$0xff] }
 0x546   :  { %v2603_v32 = vmul.f32 %v5753_v46, %v2602_v52  ;;  %v5755_v55 = vpop.eup %5754  ;;  %v8296_v52 = vld [vmem:[#allocation62_spill] sm:$0xff] }
 0x548   :  { %v2604_v11 = vadd.f32 %v5753_v46, %v2603_v32  ;;  %v8298_v32 = vld [vmem:[#allocation64_spill] sm:$0xff] }
 0x54a   :  { %v2608_v54 = vsel %vm2607_vm11, %v5753_v46, %v2604_v11  ;;  %v8294_v46 = vld [vmem:[#allocation60_spill] sm:$0xff]  ;;  %v8300_v11 = vld [vmem:[#allocation66_spill] sm:$0xff] }
 0x54b   :  { %v2613_v30 = vsel %vm2610_vm8, %v2612_v48, %v2608_v54  ;;  %v8301_v48 = vld [vmem:[#allocation67_spill] sm:$0xff]  ;;  %v8302_v54 = vld [vmem:[#allocation68_spill] sm:$0xff] }
 0x54c   :  { %v2619_v60 = vmul.f32 %v5755_v55, %v2613_v30  ;;  %v8303_v55 = vld [vmem:[#allocation69_spill] sm:$0xff]  ;;  %v8304_v30 = vld [vmem:[#allocation70_spill] sm:$0xff] }
 0x54e   :  { %v2620_v38 = vmul.f32 %v8067_v40, %v2619_v60  ;;  %v2621_v47 = vmul.f32 %v8068_v15, %v2619_v60  ;;  %v8305_v60 = vld [vmem:[#allocation71_spill] sm:$0xff] }
 0x550   :  { %v2622_v8 = vpack.c.bf16 %v2620_v38, %v2620_v38  ;;  %v2623_v44 = vpack.c.bf16 %v2621_v47, %v2621_v47  ;;  %v8306_v38 = vld [vmem:[#allocation72_spill] sm:$0xff]  ;;  %v8307_v47 = vld [vmem:[#allocation73_spill] sm:$0xff] }
 0x552   :  { %2632 = vmatmul.bf16.vlgmr.msrb.gmra.mxu0 %v2622_v8  ;;  %2645 = vmatmul.bf16.vlgmr.msrb.gmra.mxu1 %v2623_v44 }
 0x553   :  { %2658 = vmatmul.bf16.vlgmr.msrb.gmra.mxu2 %v2622_v8  ;;  %2671 = vmatmul.bf16.vlgmr.msrb.gmra.mxu3 %v2623_v44 }
 0x554   :  { %2799 = vmatpush.bf16.msrb.mxu0 %v6195_v61  ;;  %2812 = vmatpush.bf16.msrb.mxu1 %v6197_v62 }
 0x555   :  { %2825 = vmatpush.bf16.msrb.mxu2 %v6199_v1  ;;  %2838 = vmatpush.bf16.msrb.mxu3 %v6201_v2 }
 0x558   :  { %2800 = vmatpush.bf16.msrb.mxu0 %v6205_v9  ;;  %2813 = vmatpush.bf16.msrb.mxu1 %v6207_v10 }
 0x559   :  { %2826 = vmatpush.bf16.msrb.mxu2 %v6211_v13  ;;  %2839 = vmatpush.bf16.msrb.mxu3 %v6213_v14 }
 0x55c   :  { %2801 = vmatpush.bf16.msrb.mxu0 %v6221_v21  ;;  %2814 = vmatpush.bf16.msrb.mxu1 %v6223_v22 }
 0x55d   :  { %2827 = vmatpush.bf16.msrb.mxu2 %v6227_v26  ;;  %2840 = vmatpush.bf16.msrb.mxu3 %v6229_v27 }
 0x560   :  { %2802 = vmatpush.bf16.msrb.mxu0 %v6233_v36  ;;  %2815 = vmatpush.bf16.msrb.mxu1 %v6235_v37 }
 0x561   :  { %2828 = vmatpush.bf16.msrb.mxu2 %v6241_v41  ;;  %2841 = vmatpush.bf16.msrb.mxu3 %v8069_v4 }
 0x562   :  { %2684 = vmatmul.bf16.vlgmr.msra.gmra.mxu0 %v2622_v8  ;;  %2697 = vmatmul.bf16.vlgmr.msra.gmra.mxu1 %v2623_v44 }
 0x563   :  { %2710 = vmatmul.bf16.vlgmr.msra.gmra.mxu2 %v2622_v8  ;;  %2723 = vmatmul.bf16.vlgmr.msra.gmra.mxu3 %v2623_v44  ;;  %v8308_v8 = vld [vmem:[#allocation74_spill] sm:$0xff]  ;;  %v8309_v44 = vld [vmem:[#allocation75_spill] sm:$0xff] }
 0x564   :  { %2803 = vmatpush.bf16.msrb.mxu0 %v8070_v5  ;;  %2816 = vmatpush.bf16.msrb.mxu1 %v8071_v16 }
 0x565   :  { %2829 = vmatpush.bf16.msrb.mxu2 %v8072_v6  ;;  %2842 = vmatpush.bf16.msrb.mxu3 %v8073_v7 }
 0x568   :  { %2804 = vmatpush.bf16.msrb.mxu0 %v8074_v29  ;;  %2817 = vmatpush.bf16.msrb.mxu1 %v8075_v12 }
 0x569   :  { %2830 = vmatpush.bf16.msrb.mxu2 %v8076_v45  ;;  %2843 = vmatpush.bf16.msrb.mxu3 %v8077_v19 }
 0x56c   :  { %2805 = vmatpush.bf16.msrb.mxu0 %v8078_v3  ;;  %2818 = vmatpush.bf16.msrb.mxu1 %v8079_v17 }
 0x56d   :  { %2831 = vmatpush.bf16.msrb.mxu2 %v8080_v56  ;;  %2844 = vmatpush.bf16.msrb.mxu3 %v8081_v18 }
 0x570   :  { %2806 = vmatpush.bf16.msrb.mxu0 %v8082_v0  ;;  %2819 = vmatpush.bf16.msrb.mxu1 %v8083_v25 }
 0x571   :  { %2832 = vmatpush.bf16.msrb.mxu2 %v8084_v51  ;;  %2845 = vmatpush.bf16.msrb.mxu3 %v8235_v33 }
 0x574   :  { %2851 = vmatpush.bf16.msra.mxu0 %v8285_v43  ;;  %2864 = vmatpush.bf16.msra.mxu1 %v8286_v20 }
 0x575   :  { %2877 = vmatpush.bf16.msra.mxu2 %v8287_v23  ;;  %2890 = vmatpush.bf16.msra.mxu3 %v8288_v58  ;;  %v8310_v23 = vld [vmem:[#allocation76_spill] sm:$0xff]  ;;  %v8311_v58 = vld [vmem:[#allocation77_spill] sm:$0xff] }
 0x578   :  { %2852 = vmatpush.bf16.msra.mxu0 %v8289_v49  ;;  %2865 = vmatpush.bf16.msra.mxu1 %v8290_v50  ;;  %v8328_v50 = vld [vmem:[#allocation92_spill] sm:$0xff]  ;;  %v1256_v49 = vrot.slane %v6887_v31, 5 }
 0x579   :  { %2878 = vmatpush.bf16.msra.mxu2 %v8291_v53  ;;  %2891 = vmatpush.bf16.msra.mxu3 %v8292_v59  ;;  %v8312_v53 = vld [vmem:[#allocation78_spill] sm:$0xff]  ;;  %v8313_v59 = vld [vmem:[#allocation79_spill] sm:$0xff] }
 0x57c   :  { %2853 = vmatpush.bf16.msra.mxu0 %v8293_v42  ;;  %2866 = vmatpush.bf16.msra.mxu1 %v8294_v46  ;;  %v8325_v46 = vld [vmem:[#allocation89_spill] sm:$0xff] }
 0x57d   :  { %2879 = vmatpush.bf16.msra.mxu2 %v8295_v28  ;;  %2892 = vmatpush.bf16.msra.mxu3 %v8296_v52  ;;  %v8314_v28 = vld [vmem:[#allocation80_spill] sm:$0xff]  ;;  %v8315_v52 = vld [vmem:[#allocation81_spill] sm:$0xff] }
 0x580   :  { %2854 = vmatpush.bf16.msra.mxu0 %v8297_v24  ;;  %2867 = vmatpush.bf16.msra.mxu1 %v8298_v32  ;;  %v8324_v24 = vld [vmem:[#allocation90_spill] sm:$0xff] }
 0x581   :  { %2880 = vmatpush.bf16.msra.mxu2 %v8299_v34  ;;  %2893 = vmatpush.bf16.msra.mxu3 %v8300_v11  ;;  %v8316_v34 = vld [vmem:[#allocation82_spill] sm:$0xff]  ;;  %v8317_v11 = vld [vmem:[#allocation85_spill] sm:$0xff] }
 0x584   :  { %2855 = vmatpush.bf16.msra.mxu0 %v8301_v48  ;;  %2868 = vmatpush.bf16.msra.mxu1 %v8302_v54  ;;  %v8322_v54 = vld [vmem:[#allocation86_spill] sm:$0xff] }
 0x585   :  { %2881 = vmatpush.bf16.msra.mxu2 %v8303_v55  ;;  %2894 = vmatpush.bf16.msra.mxu3 %v8304_v30  ;;  %v1266_v55 = vrot.slane %v8317_v11, 7  ;;  %v8318_v30 = vld [vmem:[#allocation31_spill] sm:$0xff] }
 0x588   :  { %2856 = vmatpush.bf16.msra.mxu0 %v8305_v60  ;;  %2869 = vmatpush.bf16.msra.mxu1 %v8306_v38  ;;  %v8320_v38 = vld [vmem:[#allocation88_spill] sm:$0xff] }
 0x589   :  { %2882 = vmatpush.bf16.msra.mxu2 %v8307_v47  ;;  %2895 = vmatpush.bf16.msra.mxu3 %v8308_v8  ;;  %v1251_v47 = vrot.slane %v8318_v30, 4  ;;  %v8319_v8 = vld [vmem:[#allocation87_spill] sm:$0xff]  ;;  %v1253_v30 = vrot.slane %v8324_v24, 5 }
 0x58c   :  { %2857 = vmatpush.bf16.msra.mxu0 %v8309_v44  ;;  %2870 = vmatpush.bf16.msra.mxu1 %v8310_v23  ;;  %v1250_v44 = vrot.slane %v8319_v8, 5  ;;  %v1267_v23 = vsel %vm190_vm3, %v1266_v55, %v8320_v38 }
 0x58d   :  { %2883 = vmatpush.bf16.msra.mxu2 %v8311_v58  ;;  %2896 = vmatpush.bf16.msra.mxu3 %v8312_v53 }
 0x58e   :  { %v1252_v53 = vsel %vm188_vm2, %v1251_v47, %v1250_v44 }
 0x590   :  { %2858 = vmatpush.bf16.msra.mxu0 %v8313_v59  ;;  %2871 = vmatpush.bf16.msra.mxu1 %v8314_v28  ;;  %v1278_v28 = vsel %vm8321_vm4, %v1252_v53, %v1267_v23 }
 0x591   :  { %2884 = vmatpush.bf16.msra.mxu2 %v8315_v52  ;;  %2897 = vmatpush.bf16.msra.mxu3 %v8316_v34  ;;  %v1268_v52 = vrot.slane %v8322_v54, 7  ;;  %v8323_v34 = vld [vmem:[#allocation84_spill] sm:$0xff] }
 0x592   :  { %v1254_v32 = vrot.slane %v8323_v34, 4 }
 0x593   :  { %v1269_v8 = vsel %vm190_vm3, %v1268_v52, %v8325_v46 }
 0x594   :  { %v1255_v42 = vsel %vm188_vm2, %v1254_v32, %v1253_v30  ;;  %v1260_v32 = vrot.slane %v8328_v50, 4  ;;  %v1257_v50 = vrot.slane %v6869_v35, 4 }
 0x595   :  { %v1279_v23 = vsel %vm8326_vm0, %v1255_v42, %v1269_v8  ;;  %v8330_v42 = vld [vmem:[#allocation97_spill] sm:$0xff] }
 0x5cf   :  { %v2633_v58 = vpop.f32.mrf.mxu0  ;;  %v2646_v60 = vpop.f32.mrf.mxu1 }
 0x5d0   :  { %v2647_v59 = vadd.f32 %v2646_v60, %v2633_v58 }
 0x5d2   :  { %v2728_v48 = vadd.f32 %v2647_v59, %v1278_v28 }
 0x5d4   :  { %v5085_v11 = vmul.f32 -1.442695, %v2728_v48 }
 0x5d6   :  { %5756 = vpow2.f32 %v5085_v11  ;;  %v2659_v55 = vpop.f32.mrf.mxu2  ;;  %v2672_v38 = vpop.f32.mrf.mxu3  ;;  %v8327_v11 = vld [vmem:[#allocation95_spill] sm:$0xff] }
 0x5d7   :  { %v2673_v44 = vadd.f32 %v2672_v38, %v2659_v55  ;;  %v2635_v60 = vpop.f32.mrf.mxu0  ;;  %v2648_v47 = vpop.f32.mrf.mxu1  ;;  %v1272_v46 = vrot.slane %v8327_v11, 7  ;;  %v8329_v55 = vld [vmem:[#allocation96_spill] sm:$0xff] }
 0x5d8   :  { %v1259_v60 = vrot.slane %v8329_v55, 5 }
 0x5d9   :  { %v2729_v58 = vadd.f32 %v2673_v44, %v1279_v23  ;;  %v1273_v8 = vsel %vm190_vm3, %v1272_v46, %v8330_v42 }
 0x5db   :  { %v5086_v59 = vmul.f32 -1.442695, %v2729_v58  ;;  %v1261_v58 = vsel %vm188_vm2, %v1260_v32, %v1259_v60  ;;  %v1258_v32 = vsel %vm188_vm2, %v1257_v50, %v1256_v49 }
 0x5dc   :  { %v5757_v28 = vpop.eup %5756 }
 0x5dd   :  { %v2735_v53 = vadd.f32 1.0, %v5757_v28  ;;  %5758 = vpow2.f32 %v5086_v59 }
 0x5de   :  { %v2661_v48 = vpop.f32.mrf.mxu2  ;;  %v2674_v24 = vpop.f32.mrf.mxu3 }
 0x5df   :  { %5760 = vrcp.f32 %v2735_v53  ;;  %v2685_v34 = vpop.f32.mrf.mxu0  ;;  %v2698_v52 = vpop.f32.mrf.mxu1  ;;  %v1270_v24 = vrot.slane %v8283_v57, 7  ;;  %vm2741_vm12 = vweird.f32 %v2735_v53 }
 0x5e0   :  { %v2699_v42 = vadd.f32 %v2698_v52, %v2685_v34  ;;  %v2745_v52 = vand.u32 2147483647, %v2735_v53 }
 0x5e1   :  { %v1271_v46 = vsel %vm190_vm3, %v1270_v24, %v8134_v39  ;;  %v2747_v24 = vand.u32 2147483648, %v2735_v53 }
 0x5e2   :  { %v1280_v60 = vsel %vm8332_vm1, %v1258_v32, %v1271_v46  ;;  %vm2746_vm8 = vcmp.eq.f32.partialorder %v2745_v52, 8.507059e+37 }
 0x5e3   :  { %v5759_v54 = vpop.eup %5758 }
 0x5e4   :  { %v2754_v38 = vadd.f32 1.0, %v5759_v54  ;;  %v1281_v54 = vsel %vm8331_vm6, %v1261_v58, %v1273_v8 }
 0x5e5   :  { %v5761_v30 = vpop.eup %5760 }
 0x5e6   :  { %v2737_v44 = vmul.f32 %v5761_v30, %v2735_v53  ;;  %5762 = vrcp.f32 %v2754_v38  ;;  %v2711_v47 = vpop.f32.mrf.mxu2  ;;  %v2724_v23 = vpop.f32.mrf.mxu3  ;;  %v2766_v58 = vand.u32 2147483648, %v2754_v38  ;;  %vm2742_vm7 = vweird.f32 %v5761_v30 }
 0x5e7   :  { %v2725_v59 = vadd.f32 %v2724_v23, %v2711_v47  ;;  %v2687_v28 = vpop.f32.mrf.mxu0  ;;  %v2700_v48 = vpop.f32.mrf.mxu1  ;;  %v2730_v23 = vadd.f32 %v2699_v42, %v1280_v60  ;;  %v2764_v34 = vand.u32 2147483647, %v2754_v38  ;;  %vm2760_vm9 = vweird.f32 %v2754_v38  ;;  %vm2743_vm5 = vmor %vm2741_vm12, %vm2742_vm7 }
 0x5e8   :  { %v2738_v11 = vsub.f32 1.0, %v2737_v44  ;;  %vm8354_vm7 = vcmask 1041408  }
 0x5e9   :  { %v2731_v55 = vadd.f32 %v2725_v59, %v1281_v54  ;;  %vm2765_vm11 = vcmp.eq.f32.partialorder %v2764_v34, 8.507059e+37  ;;  %vm8365_vm12 = vmmov %vm8354_vm7 }
 0x5ea   :  { %v2739_v57 = vmul.f32 %v5761_v30, %v2738_v11 }
 0x5eb   :  { %v5087_v33 = vmul.f32 -1.442695, %v2731_v55 }
 0x5ec   :  { %v5763_v51 = vpop.eup %5762  ;;  %v2740_v59 = vadd.f32 %v5761_v30, %v2739_v57 }
 0x5ed   :  { %v2756_v20 = vmul.f32 %v5763_v51, %v2754_v38  ;;  %5764 = vpow2.f32 %v5087_v33  ;;  %vm2761_vm15 = vweird.f32 %v5763_v51  ;;  %v2767_v33 = vor.u32 1.1754944e-38, %v2766_v58 }
 0x5ee   :  { %v2713_v44 = vpop.f32.mrf.mxu2  ;;  %v2726_v8 = vpop.f32.mrf.mxu3  ;;  %5766 = vtanh.f32 %v2730_v23  ;;  %vm2762_vm10 = vmor %vm2760_vm9, %vm2761_vm15  ;;  %v2744_v50 = vsel %vm2743_vm5, %v5761_v30, %v2740_v59 }
 0x5ef   :  { %v2757_v47 = vsub.f32 1.0, %v2756_v20  ;;  %v2748_v20 = vor.u32 1.1754944e-38, %v2747_v24  ;;  %vm8359_vm15 = vmmov %vm8354_vm7 }
 0x5f0   :  { %vm8366_vm9 = vmmov %vm8354_vm7 }
 0x5f1   :  { %v2758_v28 = vmul.f32 %v5763_v51, %v2757_v47  ;;  %v2749_v48 = vsel %vm2746_vm8, %v2748_v20, %v2744_v50 }
 0x5f3   :  { %v5765_v11 = vpop.eup %5764  ;;  %v2759_v49 = vadd.f32 %v5763_v51, %v2758_v28 }
 0x5f4   :  { %v2774_v55 = vadd.f32 1.0, %v5765_v11  ;;  %v5767_v46 = vpop.eup %5766 }
 0x5f5   :  { %v2763_v42 = vsel %vm2762_vm10, %v5763_v51, %v2759_v49  ;;  %v2791_v53 = vmul.f32 %v5767_v46, %v2749_v48  ;;  %v8355_v49 = vld [vmem:[#allocation86_spill] sm:$0xff] }
 0x5f6   :  { %v2768_v57 = vsel %vm2765_vm11, %v2767_v33, %v2763_v42  ;;  %5768 = vrcp.f32 %v2774_v55  ;;  %v2786_v30 = vand.u32 2147483648, %v2774_v55  ;;  %v2784_v51 = vand.u32 2147483647, %v2774_v55  ;;  %v8357_v42 = vld [vmem:[#allocation89_spill] sm:$0xff] }
 0x5f7   :  { %v2790_v54 = vmul.f32 %v2768_v57, %v7460_v63  ;;  %vm2780_vm0 = vweird.f32 %v2774_v55  ;;  %v1302_v33 = vrot.slane %v8355_v49, 6  ;;  %v1301_v57 = vrot.slane %v8357_v42, 7 }
 0x5f8   :  { %v2787_v23 = vor.u32 1.1754944e-38, %v2786_v30  ;;  %vm2785_vm1 = vcmp.eq.f32.partialorder %v2784_v51, 8.507059e+37 }
 0x5f9   :  { %v7558_v38 = vadd.f32 %v2791_v53, %v2790_v54  ;;  %v8358_v54 = vld [vmem:[#allocation90_spill] sm:$0xff]  ;;  %v1303_v53 = vsel %vm190_vm3, %v1302_v33, %v1301_v57 }
 0x5fa   :  { %v1285_v46 = vrot.slane %v8358_v54, 6 }
 0x5fb   :  { %5770 = vtanh.f32 %v7558_v38 }
 0x5fc   :  { %v5769_v32 = vpop.eup %5768 }
 0x5fd   :  { %v2776_v60 = vmul.f32 %v5769_v32, %v2774_v55  ;;  %vm2781_vm4 = vweird.f32 %v5769_v32  ;;  %v8356_v55 = vld [vmem:[#allocation84_spill] sm:$0xff] }
 0x5fe   :  { %vm2782_vm6 = vmor %vm2780_vm0, %vm2781_vm4  ;;  %v1286_v20 = vrot.slane %v8356_v55, 5 }
 0x5ff   :  { %v2777_v44 = vsub.f32 1.0, %v2776_v60 }
 0x601   :  { %v2778_v8 = vmul.f32 %v5769_v32, %v2777_v44  ;;  %v5771_v63 = vpop.eup %5770  ;;  %v1287_v44 = vsel %vm188_vm2, %v1286_v20, %v1285_v46 }
 0x603   :  { %v2779_v47 = vadd.f32 %v5769_v32, %v2778_v8 }
 0x605   :  { %v2783_v58 = vsel %vm2782_vm6, %v5769_v32, %v2779_v47  ;;  %v1315_v47 = vsel %vm8359_vm15, %v1287_v44, %v1303_v53 }
 0x606   :  { %v2788_v59 = vsel %vm2785_vm1, %v2787_v23, %v2783_v58 }
 0x607   :  { %v2794_v28 = vmul.f32 %v5771_v63, %v2788_v59 }
 0x609   :  { %v2795_v24 = vmul.f32 %v8067_v40, %v2794_v28  ;;  %v2796_v34 = vmul.f32 %v8068_v15, %v2794_v28 }
 0x60b   :  { %v2797_v52 = vpack.c.bf16 %v2795_v24, %v2795_v24  ;;  %v2798_v11 = vpack.c.bf16 %v2796_v34, %v2796_v34 }
 0x60d   :  { %2807 = vmatmul.bf16.vlgmr.msrb.gmra.mxu0 %v2797_v52  ;;  %2820 = vmatmul.bf16.vlgmr.msrb.gmra.mxu1 %v2798_v11 }
 0x60e   :  { %2833 = vmatmul.bf16.vlgmr.msrb.gmra.mxu2 %v2797_v52  ;;  %2846 = vmatmul.bf16.vlgmr.msrb.gmra.mxu3 %v2798_v11 }
 0x60f   :  { %2974 = vmatpush.bf16.msrb.mxu0 %v6195_v61  ;;  %2987 = vmatpush.bf16.msrb.mxu1 %v6197_v62  ;;  %v8333_v61 = vld [vmem:[#allocation52_spill] sm:$0xff]  ;;  %v8334_v62 = vld [vmem:[#allocation49_spill] sm:$0xff] }
 0x610   :  { %3000 = vmatpush.bf16.msrb.mxu2 %v6199_v1  ;;  %3013 = vmatpush.bf16.msrb.mxu3 %v6201_v2  ;;  %v8335_v1 = vld [vmem:[#allocation50_spill] sm:$0xff]  ;;  %v8336_v2 = vld [vmem:[#allocation55_spill] sm:$0xff] }
 0x613   :  { %2975 = vmatpush.bf16.msrb.mxu0 %v6205_v9  ;;  %2988 = vmatpush.bf16.msrb.mxu1 %v6207_v10  ;;  %v8337_v9 = vld [vmem:[#allocation56_spill] sm:$0xff]  ;;  %v8338_v10 = vld [vmem:[#allocation59_spill] sm:$0xff] }
 0x614   :  { %3001 = vmatpush.bf16.msrb.mxu2 %v6211_v13  ;;  %3014 = vmatpush.bf16.msrb.mxu3 %v6213_v14  ;;  %v8339_v13 = vld [vmem:[#allocation60_spill] sm:$0xff]  ;;  %v8340_v14 = vld [vmem:[#allocation63_spill] sm:$0xff] }
 0x617   :  { %2976 = vmatpush.bf16.msrb.mxu0 %v6221_v21  ;;  %2989 = vmatpush.bf16.msrb.mxu1 %v6223_v22  ;;  %v8341_v21 = vld [vmem:[#allocation64_spill] sm:$0xff]  ;;  %v8342_v22 = vld [vmem:[#allocation67_spill] sm:$0xff] }
 0x618   :  { %3002 = vmatpush.bf16.msrb.mxu2 %v6227_v26  ;;  %3015 = vmatpush.bf16.msrb.mxu3 %v6229_v27  ;;  %v8343_v26 = vld [vmem:[#allocation68_spill] sm:$0xff]  ;;  %v8344_v27 = vld [vmem:[#allocation71_spill] sm:$0xff] }
 0x61b   :  { %2977 = vmatpush.bf16.msrb.mxu0 %v6233_v36  ;;  %2990 = vmatpush.bf16.msrb.mxu1 %v6235_v37  ;;  %v8345_v36 = vld [vmem:[#allocation72_spill] sm:$0xff]  ;;  %v8346_v37 = vld [vmem:[#allocation75_spill] sm:$0xff] }
 0x61c   :  { %3003 = vmatpush.bf16.msrb.mxu2 %v6241_v41  ;;  %3016 = vmatpush.bf16.msrb.mxu3 %v8069_v4  ;;  %v8347_v41 = vld [vmem:[#allocation76_spill] sm:$0xff]  ;;  %v8348_v4 = vld [vmem:[#allocation79_spill] sm:$0xff] }
 0x61d   :  { %2859 = vmatmul.bf16.vlgmr.msra.gmra.mxu0 %v2797_v52  ;;  %2872 = vmatmul.bf16.vlgmr.msra.gmra.mxu1 %v2798_v11 }
 0x61e   :  { %2885 = vmatmul.bf16.vlgmr.msra.gmra.mxu2 %v2797_v52  ;;  %2898 = vmatmul.bf16.vlgmr.msra.gmra.mxu3 %v2798_v11  ;;  %v8360_v11 = vld [vmem:[#allocation95_spill] sm:$0xff] }
 0x61f   :  { %2978 = vmatpush.bf16.msrb.mxu0 %v8070_v5  ;;  %2991 = vmatpush.bf16.msrb.mxu1 %v8071_v16  ;;  %v8349_v5 = vld [vmem:[#allocation80_spill] sm:$0xff]  ;;  %v8350_v16 = vld [vmem:[#allocation85_spill] sm:$0xff] }
 0x620   :  { %3004 = vmatpush.bf16.msrb.mxu2 %v8072_v6  ;;  %3017 = vmatpush.bf16.msrb.mxu3 %v8073_v7  ;;  %v1299_v6 = vrot.slane %v8350_v16, 6  ;;  %v8351_v7 = vld [vmem:[#allocation31_spill] sm:$0xff] }
 0x623   :  { %2979 = vmatpush.bf16.msrb.mxu0 %v8074_v29  ;;  %2992 = vmatpush.bf16.msrb.mxu1 %v8075_v12  ;;  %v1283_v29 = vrot.slane %v8351_v7, 5  ;;  %v8352_v12 = vld [vmem:[#allocation88_spill] sm:$0xff] }
 0x624   :  { %3005 = vmatpush.bf16.msrb.mxu2 %v8076_v45  ;;  %3018 = vmatpush.bf16.msrb.mxu3 %v8077_v19  ;;  %v1298_v45 = vrot.slane %v8352_v12, 7  ;;  %v8353_v19 = vld [vmem:[#allocation87_spill] sm:$0xff] }
 0x627   :  { %2980 = vmatpush.bf16.msrb.mxu0 %v8078_v3  ;;  %2993 = vmatpush.bf16.msrb.mxu1 %v8079_v17  ;;  %v1282_v3 = vrot.slane %v8353_v19, 6  ;;  %v1300_v17 = vsel %vm190_vm3, %v1299_v6, %v1298_v45 }
 0x628   :  { %3006 = vmatpush.bf16.msrb.mxu2 %v8080_v56  ;;  %3019 = vmatpush.bf16.msrb.mxu3 %v8081_v18 }
 0x62b   :  { %2981 = vmatpush.bf16.msrb.mxu0 %v8082_v0  ;;  %2994 = vmatpush.bf16.msrb.mxu1 %v8083_v25  ;;  %v1284_v0 = vsel %vm188_vm2, %v1283_v29, %v1282_v3 }
 0x62c   :  { %3007 = vmatpush.bf16.msrb.mxu2 %v8334_v62  ;;  %3020 = vmatpush.bf16.msrb.mxu3 %v8335_v1  ;;  %v8361_v1 = vld [vmem:[#allocation92_spill] sm:$0xff] }
 0x62f   :  { %3026 = vmatpush.bf16.msra.mxu0 %v8285_v43  ;;  %3039 = vmatpush.bf16.msra.mxu1 %v8333_v61  ;;  %v1314_v43 = vsel %vm8354_vm7, %v1284_v0, %v1300_v17  ;;  %v1308_v61 = vrot.slane %v8360_v11, 6 }
 0x633   :  { %3027 = vmatpush.bf16.msra.mxu0 %v8336_v2  ;;  %3040 = vmatpush.bf16.msra.mxu1 %v8337_v9  ;;  %v1292_v2 = vrot.slane %v8361_v1, 5  ;;  %v8362_v9 = vld [vmem:[#allocation97_spill] sm:$0xff] }
 0x637   :  { %3028 = vmatpush.bf16.msra.mxu0 %v8338_v10  ;;  %3041 = vmatpush.bf16.msra.mxu1 %v8339_v13  ;;  %v1307_v10 = vrot.slane %v8362_v9, 7 }
 0x63b   :  { %3029 = vmatpush.bf16.msra.mxu0 %v8340_v14  ;;  %3042 = vmatpush.bf16.msra.mxu1 %v8341_v21  ;;  %v8363_v21 = vld [vmem:[#allocation96_spill] sm:$0xff] }
 0x63f   :  { %3030 = vmatpush.bf16.msra.mxu0 %v8342_v22  ;;  %3043 = vmatpush.bf16.msra.mxu1 %v8343_v26  ;;  %v1291_v22 = vrot.slane %v8363_v21, 6  ;;  %v1309_v26 = vsel %vm190_vm3, %v1308_v61, %v1307_v10 }
 0x643   :  { %3031 = vmatpush.bf16.msra.mxu0 %v8344_v27  ;;  %3044 = vmatpush.bf16.msra.mxu1 %v8345_v36 }
 0x647   :  { %3032 = vmatpush.bf16.msra.mxu0 %v8346_v37  ;;  %3045 = vmatpush.bf16.msra.mxu1 %v8347_v41  ;;  %v8364_v41 = vld [vmem:[#allocation94_spill] sm:$0xff] }
 0x64b   :  { %3033 = vmatpush.bf16.msra.mxu0 %v8348_v4  ;;  %3046 = vmatpush.bf16.msra.mxu1 %v8349_v5  ;;  %v1305_v4 = vrot.slane %v8364_v41, 6  ;;  %v1293_v5 = vsel %vm188_vm2, %v1292_v2, %v1291_v22 }
 0x64c   :  { %v1317_v17 = vsel %vm8365_vm12, %v1293_v5, %v1309_v26 }
 0x68a   :  { %v2808_v56 = vpop.f32.mrf.mxu0  ;;  %v2821_v18 = vpop.f32.mrf.mxu1 }
 0x68b   :  { %v2822_v25 = vadd.f32 %v2821_v18, %v2808_v56  ;;  %v1289_v56 = vrot.slane %v6869_v35, 5  ;;  %v1304_v18 = vrot.slane %v8134_v39, 7 }
 0x68d   :  { %v2903_v50 = vadd.f32 %v2822_v25, %v1314_v43  ;;  %v1288_v25 = vrot.slane %v6887_v31, 6  ;;  %v1306_v43 = vsel %vm190_vm3, %v1305_v4, %v1304_v18  ;;  %v1331_v18 = vrot.slane %v8350_v16, 5 }
 0x68e   :  { %v1322_v16 = vrot.slane %v8356_v55, 6 }
 0x68f   :  { %v5088_v48 = vmul.f32 -1.442695, %v2903_v50  ;;  %v1290_v46 = vsel %vm188_vm2, %v1289_v56, %v1288_v25  ;;  %v1330_v25 = vrot.slane %v8352_v12, 6  ;;  %v1321_v12 = vrot.slane %v8358_v54, 7 }
 0x690   :  { %v1316_v53 = vsel %vm8366_vm9, %v1290_v46, %v1306_v43  ;;  %v1318_v43 = vrot.slane %v8353_v19, 7 }
 0x691   :  { %5772 = vpow2.f32 %v5088_v48  ;;  %v2834_v32 = vpop.f32.mrf.mxu2  ;;  %v2847_v60 = vpop.f32.mrf.mxu3 }
 0x692   :  { %v2848_v30 = vadd.f32 %v2847_v60, %v2834_v32  ;;  %v2810_v8 = vpop.f32.mrf.mxu0  ;;  %v2823_v51 = vpop.f32.mrf.mxu1 }
 0x694   :  { %v2904_v23 = vadd.f32 %v2848_v30, %v1315_v47 }
 0x696   :  { %v5089_v58 = vmul.f32 -1.442695, %v2904_v23 }
 0x697   :  { %v5773_v63 = vpop.eup %5772 }
 0x698   :  { %v7625_v59 = vadd.f32 1.0, %v5773_v63  ;;  %5774 = vpow2.f32 %v5089_v58 }
 0x699   :  { %v2836_v28 = vpop.f32.mrf.mxu2  ;;  %v2849_v24 = vpop.f32.mrf.mxu3 }
 0x69a   :  { %5776 = vrcp.f32 %v7625_v59  ;;  %v2860_v34 = vpop.f32.mrf.mxu0  ;;  %v2873_v52 = vpop.f32.mrf.mxu1  ;;  %v2922_v23 = vand.u32 2147483648, %v7625_v59  ;;  %vm2916_vm11 = vweird.f32 %v7625_v59  ;;  %v2920_v63 = vand.u32 2147483647, %v7625_v59 }
 0x69b   :  { %v2874_v33 = vadd.f32 %v2873_v52, %v2860_v34 }
 0x69c   :  { %v2923_v61 = vor.u32 1.1754944e-38, %v2922_v23  ;;  %vm2921_vm1 = vcmp.eq.f32.partialorder %v2920_v63, 8.507059e+37 }
 0x69d   :  { %v2905_v30 = vadd.f32 %v2874_v33, %v1316_v53 }
 0x69e   :  { %v5775_v62 = vpop.eup %5774 }
 0x69f   :  { %v2929_v13 = vadd.f32 1.0, %v5775_v62 }
 0x6a0   :  { %v5777_v14 = vpop.eup %5776 }
 0x6a1   :  { %v2912_v27 = vmul.f32 %v5777_v14, %v7625_v59  ;;  %5778 = vrcp.f32 %v2929_v13  ;;  %v2886_v36 = vpop.f32.mrf.mxu2  ;;  %v2899_v37 = vpop.f32.mrf.mxu3  ;;  %v2941_v8 = vand.u32 2147483648, %v2929_v13  ;;  %vm2917_vm5 = vweird.f32 %v5777_v14 }
 0x6a2   :  { %v2900_v6 = vadd.f32 %v2899_v37, %v2886_v36  ;;  %v2862_v29 = vpop.f32.mrf.mxu0  ;;  %v2875_v45 = vpop.f32.mrf.mxu1  ;;  %v2939_v58 = vand.u32 2147483647, %v2929_v13  ;;  %vm2935_vm8 = vweird.f32 %v2929_v13  ;;  %vm2918_vm4 = vmor %vm2916_vm11, %vm2917_vm5  ;;  %vm8367_vm5 = vcmask 1041408  }
 0x6a3   :  { %v2913_v3 = vsub.f32 1.0, %v2912_v27  ;;  %v2942_v34 = vor.u32 1.1754944e-38, %v2941_v8  ;;  %vm8369_vm11 = vmmov %vm8367_vm5 }
 0x6a4   :  { %v2906_v0 = vadd.f32 %v2900_v6, %v1317_v17  ;;  %vm2940_vm6 = vcmp.eq.f32.partialorder %v2939_v58, 8.507059e+37 }
 0x6a5   :  { %v2914_v57 = vmul.f32 %v5777_v14, %v2913_v3 }
 0x6a6   :  { %v5090_v50 = vmul.f32 -1.442695, %v2906_v0  ;;  %v1319_v0 = vrot.slane %v8351_v7, 6  ;;  %v1333_v7 = vrot.slane %v8357_v42, 6 }
 0x6a7   :  { %v5779_v20 = vpop.eup %5778  ;;  %v2915_v51 = vadd.f32 %v5777_v14, %v2914_v57 }
 0x6a8   :  { %v2931_v48 = vmul.f32 %v5779_v20, %v2929_v13  ;;  %5780 = vpow2.f32 %v5090_v50  ;;  %vm2936_vm10 = vweird.f32 %v5779_v20  ;;  %v1320_v50 = vsel %vm188_vm2, %v1319_v0, %v1318_v43 }
 0x6a9   :  { %v2888_v32 = vpop.f32.mrf.mxu2  ;;  %v2901_v60 = vpop.f32.mrf.mxu3  ;;  %5782 = vtanh.f32 %v2905_v30  ;;  %vm2937_vm0 = vmor %vm2935_vm8, %vm2936_vm10  ;;  %v2919_v52 = vsel %vm2918_vm4, %v5777_v14, %v2915_v51 }
 0x6aa   :  { %v2932_v44 = vsub.f32 1.0, %v2931_v48  ;;  %v2924_v2 = vsel %vm2921_vm1, %v2923_v61, %v2919_v52  ;;  %v1334_v48 = vrot.slane %v8355_v49, 5  ;;  %vm8368_vm10 = vmmov %vm8367_vm5  ;;  %v1337_v52 = vrot.slane %v8364_v41, 5 }
 0x6ac   :  { %v2933_v47 = vmul.f32 %v5779_v20, %v2932_v44  ;;  %v1335_v19 = vsel %vm190_vm3, %v1334_v48, %v1333_v7  ;;  %v1323_v44 = vsel %vm188_vm2, %v1322_v16, %v1321_v12 }
 0x6ad   :  { %v1343_v49 = vsel %vm8368_vm10, %v1323_v44, %v1335_v19 }
 0x6ae   :  { %v5781_v28 = vpop.eup %5780  ;;  %v2934_v24 = vadd.f32 %v5779_v20, %v2933_v47 }
 0x6af   :  { %v2949_v11 = vadd.f32 1.0, %v5781_v28  ;;  %v5783_v10 = vpop.eup %5782 }
 0x6b0   :  { %v2938_v62 = vsel %vm2937_vm0, %v5779_v20, %v2934_v24  ;;  %v2966_v59 = vmul.f32 %v5783_v10, %v2924_v2 }
 0x6b1   :  { %v2943_v1 = vsel %vm2940_vm6, %v2942_v34, %v2938_v62  ;;  %5784 = vrcp.f32 %v2949_v11  ;;  %v2961_v14 = vand.u32 2147483648, %v2949_v11  ;;  %v2959_v36 = vand.u32 2147483647, %v2949_v11 }
 0x6b2   :  { %v2965_v9 = vmul.f32 %v2943_v1, %v7558_v38  ;;  %vm2955_vm15 = vweird.f32 %v2949_v11  ;;  %v1325_v62 = vrot.slane %v6869_v35, 6  ;;  %v1336_v1 = vrot.slane %v8134_v39, 6 }
 0x6b3   :  { %v2962_v4 = vor.u32 1.1754944e-38, %v2961_v14  ;;  %vm2960_vm9 = vcmp.eq.f32.partialorder %v2959_v36, 8.507059e+37 }
 0x6b4   :  { %v7647_v13 = vadd.f32 %v2966_v59, %v2965_v9  ;;  %v1324_v59 = vrot.slane %v6887_v31, 7 }
 0x6b6   :  { %5786 = vtanh.f32 %v7647_v13 }
 0x6b7   :  { %v5785_v21 = vpop.eup %5784 }
 0x6b8   :  { %v2951_v22 = vmul.f32 %v5785_v21, %v2949_v11  ;;  %vm2956_vm7 = vweird.f32 %v5785_v21 }
 0x6b9   :  { %vm2957_vm12 = vmor %vm2955_vm15, %vm2956_vm7 }
 0x6ba   :  { %v2952_v26 = vsub.f32 1.0, %v2951_v22 }
 0x6bc   :  { %v2953_v27 = vmul.f32 %v5785_v21, %v2952_v26  ;;  %v5787_v38 = vpop.eup %5786  ;;  %v1326_v26 = vsel %vm188_vm2, %v1325_v62, %v1324_v59 }
 0x6be   :  { %v2954_v37 = vadd.f32 %v5785_v21, %v2953_v27 }
 0x6c0   :  { %v2958_v5 = vsel %vm2957_vm12, %v5785_v21, %v2954_v37  ;;  %v1338_v21 = vsel %vm190_vm3, %v1337_v52, %v1336_v1 }
 0x6c1   :  { %v2963_v6 = vsel %vm2960_vm9, %v2962_v4, %v2958_v5  ;;  %v1344_v41 = vsel %vm8369_vm11, %v1326_v26, %v1338_v21 }
 0x6c2   :  { %v2969_v29 = vmul.f32 %v5787_v38, %v2963_v6 }
 0x6c4   :  { %v2970_v45 = vmul.f32 %v8067_v40, %v2969_v29  ;;  %v2971_v3 = vmul.f32 %v8068_v15, %v2969_v29  ;;  %v1332_v40 = vsel %vm190_vm3, %v1331_v18, %v1330_v25 }
 0x6c5   :  { %v1342_v57 = vsel %vm8367_vm5, %v1320_v50, %v1332_v40 }
 0x6c6   :  { %v2972_v17 = vpack.c.bf16 %v2970_v45, %v2970_v45  ;;  %v2973_v56 = vpack.c.bf16 %v2971_v3, %v2971_v3 }
 0x6c8   :  { %2982 = vmatmul.bf16.vlgmr.msrb.gmra.mxu0 %v2972_v17  ;;  %2995 = vmatmul.bf16.vlgmr.msrb.gmra.mxu1 %v2973_v56 }
 0x6c9   :  { %3008 = vmatmul.bf16.vlgmr.msrb.gmra.mxu2 %v2972_v17  ;;  %3021 = vmatmul.bf16.vlgmr.msrb.gmra.mxu3 %v2973_v56 }
 0x6d8   :  { %3034 = vmatmul.bf16.vlgmr.msra.gmra.mxu0 %v2972_v17  ;;  %3047 = vmatmul.bf16.vlgmr.msra.gmra.mxu1 %v2973_v56 }
 0x745   :  { %v2983_v33 = vpop.f32.mrf.mxu0  ;;  %v2996_v15 = vpop.f32.mrf.mxu1 }
 0x746   :  { %v2997_v20 = vadd.f32 %v2996_v15, %v2983_v33 }
 0x748   :  { %v3052_v46 = vadd.f32 %v2997_v20, %v1342_v57 }
 0x74a   :  { %v5091_v53 = vmul.f32 -1.442695, %v3052_v46 }
 0x74c   :  { %5788 = vpow2.f32 %v5091_v53  ;;  %v3009_v32 = vpop.f32.mrf.mxu2  ;;  %v3022_v60 = vpop.f32.mrf.mxu3 }
 0x74d   :  { %v3023_v30 = vadd.f32 %v3022_v60, %v3009_v32  ;;  %v2985_v8 = vpop.f32.mrf.mxu0  ;;  %v2998_v51 = vpop.f32.mrf.mxu1 }
 0x74f   :  { %v3053_v47 = vadd.f32 %v3023_v30, %v1343_v49 }
 0x751   :  { %v5092_v23 = vmul.f32 -1.442695, %v3053_v47 }
 0x752   :  { %v5789_v55 = vpop.eup %5788 }
 0x753   :  { %v3058_v58 = vadd.f32 1.0, %v5789_v55  ;;  %5790 = vpow2.f32 %v5092_v23 }
 0x754   :  { %v3011_v42 = vpop.f32.mrf.mxu2  ;;  %v3024_v63 = vpop.f32.mrf.mxu3 }
 0x755   :  { %5792 = vrcp.f32 %v3058_v58  ;;  %v3035_v54 = vpop.f32.mrf.mxu0  ;;  %v3048_v28 = vpop.f32.mrf.mxu1  ;;  %v3070_v35 = vand.u32 2147483648, %v3058_v58  ;;  %vm3064_vm4 = vweird.f32 %v3058_v58  ;;  %v3068_v5 = vand.u32 2147483647, %v3058_v58 }
 0x756   :  { %v3049_v22 = vadd.f32 %v3048_v28, %v3035_v54 }
 0x757   :  { %v3071_v45 = vor.u32 1.1754944e-38, %v3070_v35  ;;  %vm3069_vm1 = vcmp.eq.f32.partialorder %v3068_v5, 8.507059e+37 }
 0x758   :  { %v3054_v36 = vadd.f32 %v3049_v22, %v1344_v41 }
 0x759   :  { %v5791_v24 = vpop.eup %5790 }
 0x75a   :  { %v3077_v34 = vadd.f32 1.0, %v5791_v24 }
 0x75b   :  { %v5793_v11 = vpop.eup %5792 }
 0x75c   :  { %v3060_v61 = vmul.f32 %v5793_v11, %v3058_v58  ;;  %5794 = vrcp.f32 %v3077_v34  ;;  %vm3065_vm8 = vweird.f32 %v5793_v11  ;;  %v3089_v38 = vand.u32 2147483648, %v3077_v34 }
 0x75d   :  { %v3037_v2 = vpop.f32.mrf.mxu0  ;;  %v3050_v9 = vpop.f32.mrf.mxu1  ;;  %vm3066_vm0 = vmor %vm3064_vm4, %vm3065_vm8  ;;  %5796 = vtanh.f32 %v3054_v36  ;;  %v3087_v29 = vand.u32 2147483647, %v3077_v34  ;;  %vm3083_vm6 = vweird.f32 %v3077_v34 }
 0x75e   :  { %v3061_v10 = vsub.f32 1.0, %v3060_v61  ;;  %v3090_v17 = vor.u32 1.1754944e-38, %v3089_v38 }
 0x75f   :  { %vm3088_vm15 = vcmp.eq.f32.partialorder %v3087_v29, 8.507059e+37 }
 0x760   :  { %v3062_v14 = vmul.f32 %v5793_v11, %v3061_v10 }
 0x762   :  { %v5795_v27 = vpop.eup %5794  ;;  %v3063_v4 = vadd.f32 %v5793_v11, %v3062_v14 }
 0x763   :  { %v3079_v37 = vmul.f32 %v5795_v27, %v3077_v34  ;;  %vm3084_vm3 = vweird.f32 %v5795_v27  ;;  %v5797_v0 = vpop.eup %5796 }
 0x764   :  { %v3067_v6 = vsel %vm3066_vm0, %v5793_v11, %v3063_v4  ;;  %vm3085_vm7 = vmor %vm3083_vm6, %vm3084_vm3 }
 0x765   :  { %v3080_v39 = vsub.f32 1.0, %v3079_v37  ;;  %v3072_v56 = vsel %vm3069_vm1, %v3071_v45, %v3067_v6 }
 0x766   :  { %v3095_v40 = vmul.f32 %v5797_v0, %v3072_v56 }
 0x767   :  { %v3081_v31 = vmul.f32 %v5795_v27, %v3080_v39 }
 0x769   :  { %v3082_v3 = vadd.f32 %v5795_v27, %v3081_v31 }
 0x76b   :  { %v3086_v18 = vsel %vm3085_vm7, %v5795_v27, %v3082_v3 }
 0x76c   :  { %v3091_v25 = vsel %vm3088_vm15, %v3090_v17, %v3086_v18 }
 0x76d   :  { %v3094_v43 = vmul.f32 %v3091_v25, %v7647_v13 }
 0x76f   :  { %v7674_v33 = vadd.f32 %v3095_v40, %v3094_v43 }
 0x771   :  { %v3098_v15 = vrot.slane %v7674_v33, 2 }
 0x772   :  { %6017 = dma.done.wait [#allocation5], 5120 }
 0x773   :  { %6018 = vsyncadd [#allocation5], 4294962176 }
 0x774   :  { %6019 = dma.done.wait [#allocation5 + $0x1], 2048 }
 0x775   :  { %6020 = vsyncadd [#allocation5 + $0x1], 4294965248 }
 0x776   :  { %6021 = dma.done.wait [#allocation5 + $0x2], 1024 }
 0x777   :  { %6022 = vsyncadd [#allocation5 + $0x2], 4294966272  ;;  %v5569_v50 = vld [vmem:[#allocation2 + $0x38] sm:$0xff]  ;;  %v5568_v46 = vld [vmem:[#allocation2 + $0x30] sm:$0xff]  ;;  %vm4219_vm10 = vcmask 15360   ;;  %vm4221_vm11 = vcmask 17408  }
 0x778   :  { %v5577_v20 = vld [vmem:[#allocation2 + $0x78] sm:$0xff]  ;;  %3847 = vmatpush.bf16.msra.mxu2 %v5569_v50  ;;  %v5576_v16 = vld [vmem:[#allocation2 + $0x70] sm:$0xff]  ;;  %v5567_v53 = vld [vmem:[#allocation2 + $0x28] sm:$0xff]  ;;  %s6045_s2 = smov 2   ;;  %s6046_s7 = smov [#allocation15]   ;;  %vm4382_vm15 = vcmask 39936  }
 0x779   :  { %v5585_v57 = vld [vmem:[#allocation2 + $0xb8] sm:$0xff]  ;;  %3860 = vmatpush.bf16.msra.mxu3 %v5577_v20  ;;  %v5584_v13 = vld [vmem:[#allocation2 + $0xb0] sm:$0xff]  ;;  %v5575_v12 = vld [vmem:[#allocation2 + $0x68] sm:$0xff]  ;;  %s4390_s12 = sshll.u32 %s6046_s7, 4  ;;  %s4392_s14 = sshll.u32 %s7758_s10, 4  ;;  %s4391_s12 = int_to_ptr.vmem [resolvable:$true] %s4390_s12  ;;  %s4393_s14 = int_to_ptr.hbm [resolvable:$true] %s4392_s14 }
 0x77a   :  { %v5593_v48 = vld [vmem:[#allocation2 + $0xf8] sm:$0xff]  ;;  %3873 = vmatpush.bf16.msrb.mxu0 %v5585_v57  ;;  %v5592_v7 = vld [vmem:[#allocation2 + $0xf0] sm:$0xff]  ;;  %v5583_v19 = vld [vmem:[#allocation2 + $0xa8] sm:$0xff] }
 0x77b   :  { %3886 = vmatpush.bf16.msrb.mxu1 %v5593_v48  ;;  %v5591_v32 = vld [vmem:[#allocation2 + $0xe8] sm:$0xff]  ;;  %v5566_v60 = vld [vmem:[#allocation2 + $0x20] sm:$0xff]  ;;  %v5565_v51 = vld [vmem:[#allocation2 + $0x18] sm:$0xff] }
 0x77c   :  { %3848 = vmatpush.bf16.msra.mxu2 %v5568_v46  ;;  %v5574_v44 = vld [vmem:[#allocation2 + $0x60] sm:$0xff]  ;;  %v5573_v49 = vld [vmem:[#allocation2 + $0x58] sm:$0xff]  ;;  %v5564_v55 = vld [vmem:[#allocation2 + $0x10] sm:$0xff] }
 0x77d   :  { %3861 = vmatpush.bf16.msra.mxu3 %v5576_v16  ;;  %v5582_v30 = vld [vmem:[#allocation2 + $0xa0] sm:$0xff]  ;;  %v5581_v47 = vld [vmem:[#allocation2 + $0x98] sm:$0xff]  ;;  %v5572_v58 = vld [vmem:[#allocation2 + $0x50] sm:$0xff] }
 0x77e   :  { %3874 = vmatpush.bf16.msrb.mxu0 %v5584_v13  ;;  %v5590_v8 = vld [vmem:[#allocation2 + $0xe0] sm:$0xff]  ;;  %v5589_v23 = vld [vmem:[#allocation2 + $0xd8] sm:$0xff]  ;;  %v5580_v42 = vld [vmem:[#allocation2 + $0x90] sm:$0xff] }
 0x77f   :  { %3887 = vmatpush.bf16.msrb.mxu1 %v5592_v7  ;;  %v5588_v63 = vld [vmem:[#allocation2 + $0xd0] sm:$0xff]  ;;  %v5563_v54 = vld [vmem:[#allocation2 + $0x8] sm:$0xff]  ;;  %v5562_v52 = vld [vmem:[#allocation2] sm:$0xff] }
 0x780   :  { %3849 = vmatpush.bf16.msra.mxu2 %v5567_v53  ;;  %v5571_v28 = vld [vmem:[#allocation2 + $0x48] sm:$0xff]  ;;  %v5570_v11 = vld [vmem:[#allocation2 + $0x40] sm:$0xff]  ;;  %v5601_v1 = vld [vmem:[#allocation2 + $0x138] sm:$0xff] }
 0x781   :  { %3862 = vmatpush.bf16.msra.mxu3 %v5575_v12  ;;  %v5579_v24 = vld [vmem:[#allocation2 + $0x88] sm:$0xff]  ;;  %v5578_v61 = vld [vmem:[#allocation2 + $0x80] sm:$0xff]  ;;  %v5609_v2 = vld [vmem:[#allocation3 + $0x38] sm:$0xff] }
 0x782   :  { %3875 = vmatpush.bf16.msrb.mxu0 %v5583_v19  ;;  %v5587_v34 = vld [vmem:[#allocation2 + $0xc8] sm:$0xff]  ;;  %v5586_v62 = vld [vmem:[#allocation2 + $0xc0] sm:$0xff]  ;;  %v5617_v9 = vld [vmem:[#allocation3 + $0x78] sm:$0xff] }
 0x783   :  { %3888 = vmatpush.bf16.msrb.mxu1 %v5591_v32  ;;  %v5625_v10 = vld [vmem:[#allocation4 + $0x38] sm:$0xff]  ;;  %v8370_v59 = vld [vmem:[#allocation99_spill] sm:$0xff]  ;;  %v8371_v22 = vld [vmem:[#allocation98_spill] sm:$0xff] }
 0x784   :  { %3850 = vmatpush.bf16.msra.mxu2 %v5566_v60  ;;  %v3519_v21 = vpack.c.bf16 %v8370_v59, %v8370_v59  ;;  %v3518_v26 = vpack.c.bf16 %v8371_v22, %v8371_v22  ;;  %v8372_v14 = vld [vmem:[#allocation100_spill] sm:$0xff]  ;;  %v8373_v27 = vld [vmem:[#allocation101_spill] sm:$0xff]  ;;  %v5624_v39 = vld [vmem:[#allocation4 + $0x28] sm:$0xff] }
 0x785   :  { %3863 = vmatpush.bf16.msra.mxu3 %v5574_v44  ;;  %v3520_v41 = vpack.c.bf16 %v8372_v14, %v8372_v14  ;;  %v3521_v36 = vpack.c.bf16 %v8373_v27, %v8373_v27  ;;  %v5600_v37 = vld [vmem:[#allocation2 + $0x130] sm:$0xff]  ;;  %v5599_v5 = vld [vmem:[#allocation2 + $0x128] sm:$0xff]  ;;  %v5623_v6 = vld [vmem:[#allocation4 + $0x20] sm:$0xff] }
 0x786   :  { %3876 = vmatpush.bf16.msrb.mxu0 %v5582_v30  ;;  %v5608_v4 = vld [vmem:[#allocation3 + $0x30] sm:$0xff]  ;;  %v5607_v38 = vld [vmem:[#allocation3 + $0x28] sm:$0xff]  ;;  %v5598_v29 = vld [vmem:[#allocation2 + $0x120] sm:$0xff] }
 0x787   :  { %3889 = vmatpush.bf16.msrb.mxu1 %v5590_v8  ;;  %v5616_v35 = vld [vmem:[#allocation3 + $0x70] sm:$0xff]  ;;  %v5615_v31 = vld [vmem:[#allocation3 + $0x68] sm:$0xff]  ;;  %v5606_v45 = vld [vmem:[#allocation3 + $0x20] sm:$0xff] }
 0x788   :  { %3851 = vmatpush.bf16.msra.mxu2 %v5565_v51  ;;  %v5614_v3 = vld [vmem:[#allocation3 + $0x60] sm:$0xff]  ;;  %v5622_v17 = vld [vmem:[#allocation4 + $0x8] sm:$0xff]  ;;  %v5597_v56 = vld [vmem:[#allocation2 + $0x118] sm:$0xff] }
 0x789   :  { %3864 = vmatpush.bf16.msra.mxu3 %v5573_v49  ;;  %v5605_v18 = vld [vmem:[#allocation3 + $0x18] sm:$0xff]  ;;  %v5621_v25 = vld [vmem:[#allocation4 + $0x10] sm:$0xff]  ;;  %v5595_v7 = vld [vmem:[#allocation2 + $0x108] sm:$0xff] }
 0x78a   :  { %3877 = vmatpush.bf16.msrb.mxu0 %v5581_v47  ;;  %v5613_v0 = vld [vmem:[#allocation3 + $0x58] sm:$0xff]  ;;  %v8374_v43 = vld [vmem:[#allocation91_spill] sm:$0xff]  ;;  %v5619_v19 = vld [vmem:[#allocation4] sm:$0xff] }
 0x78b   :  { %3890 = vmatpush.bf16.msrb.mxu1 %v5589_v23  ;;  %v4073_v40 = vpack.c.bf16 %v8374_v43, %v8374_v43  ;;  %v5596_v50 = vld [vmem:[#allocation2 + $0x110] sm:$0xff]  ;;  %v5620_v48 = vld [vmem:[#allocation4 + $0x18] sm:$0xff]  ;;  %v5603_v53 = vld [vmem:[#allocation3 + $0x8] sm:$0xff] }
 0x78c   :  { %3852 = vmatpush.bf16.msra.mxu2 %v5564_v55  ;;  %v5604_v20 = vld [vmem:[#allocation3 + $0x10] sm:$0xff]  ;;  %v5611_v12 = vld [vmem:[#allocation3 + $0x48] sm:$0xff]  ;;  %v5594_v44 = vld [vmem:[#allocation2 + $0x100] sm:$0xff]  ;;  %v3912_v55 = vpack.c.bf16 %v7674_v33, %v7674_v33 }
 0x78d   :  { %3865 = vmatpush.bf16.msra.mxu3 %v5572_v58  ;;  %v5612_v57 = vld [vmem:[#allocation3 + $0x50] sm:$0xff]  ;;  %v4097_v13 = vunpack.c.l.b16 %v4073_v40  ;;  %v5602_v30 = vld [vmem:[#allocation3] sm:$0xff]  ;;  %v3913_v58 = vpack.c.bf16 %v3098_v15, %v3098_v15 }
 0x78e   :  { %3878 = vmatpush.bf16.msrb.mxu0 %v5580_v42  ;;  %v8375_v46 = vld [vmem:[#allocation83_spill] sm:$0xff]  ;;  %v5610_v8 = vld [vmem:[#allocation3 + $0x40] sm:$0xff] }
 0x78f   :  { %3891 = vmatpush.bf16.msrb.mxu1 %v5588_v63  ;;  %v4072_v16 = vpack.c.bf16 %v8375_v46, %v8375_v46  ;;  %v4098_v60 = vrot.slane %v4097_v13, 7  ;;  %v5618_v51 = vld [vmem:[#allocation4 + $0x30] sm:$0xff]  ;;  %v8376_v47 = vld [vmem:[#allocation102_spill] sm:$0xff] }
 0x790   :  { %3853 = vmatpush.bf16.msra.mxu2 %v5563_v54  ;;  %v3522_v23 = vpack.c.bf16 %v8376_v47, %v8376_v47  ;;  %v5805_v13 = vld [vmem:[#allocation11 + $0x7] ss:$0 sm:$0xff] }
 0x791   :  { %3866 = vmatpush.bf16.msra.mxu3 %v5571_v28  ;;  %v4096_v32 = vunpack.c.l.b16 %v4072_v16 }
 0x792   :  { %3879 = vmatpush.bf16.msrb.mxu0 %v5579_v24 }
 0x793   :  { %3892 = vmatpush.bf16.msrb.mxu1 %v5587_v34  ;;  %v4099_v49 = vsel %vm188_vm2, %v4098_v60, %v4096_v32  ;;  %vm8377_vm2 = vmmov %vm8367_vm5  ;;  %v5807_v32 = vld [vmem:[#allocation11 + $0x9] ss:$0 sm:$0xff]  ;;  %vm4217_vm5 = vcmask 7168  }
 0x794   :  { %3854 = vmatpush.bf16.msra.mxu2 %v5562_v52  ;;  %v4100_v42 = vpack.c.b16 %v4099_v49, %v4099_v49 }
 0x795   :  { %3867 = vmatpush.bf16.msra.mxu3 %v5570_v11 }
 0x796   :  { %3880 = vmatpush.bf16.msrb.mxu0 %v5578_v61 }
 0x797   :  { %3893 = vmatpush.bf16.msrb.mxu1 %v5586_v62  ;;  %3855 = vmatmul.bf16.vlgmr.msra.gmra.mxu2 %v3518_v26  ;;  %v5802_v62 = vld [vmem:[#allocation11 + $0x4] ss:$0 sm:$0xff] }
 0x798   :  { %3899 = vmatpush.bf16.msrb.mxu2 %v5601_v1  ;;  %3868 = vmatmul.bf16.vlgmr.msra.gmra.mxu3 %v3519_v21 }
 0x799   :  { %4046 = vmatpush.bf16.msrb.mxu3 %v5609_v2  ;;  %3881 = vmatmul.bf16.vlgmr.msrb.gmra.mxu0 %v3520_v41 }
 0x79a   :  { %4059 = vmatpush.bf16.msra.mxu0 %v5617_v9  ;;  %3894 = vmatmul.bf16.vlgmr.msrb.gmra.mxu1 %v3521_v36  ;;  %v5803_v9 = vld [vmem:[#allocation11 + $0x6] ss:$0 sm:$0xff] }
 0x79b   :  { %4150 = vmatpush.bf16.msra.mxu1 %v5625_v10  ;;  %v5804_v10 = vld [vmem:[#allocation11 + $0x5] ss:$0 sm:$0xff] }
 0x79c   :  { %3900 = vmatpush.bf16.msrb.mxu2 %v5600_v37 }
 0x79d   :  { %4047 = vmatpush.bf16.msrb.mxu3 %v5608_v4 }
 0x79e   :  { %4060 = vmatpush.bf16.msra.mxu0 %v5616_v35 }
 0x79f   :  { %4151 = vmatpush.bf16.msra.mxu1 %v5624_v39 }
 0x7a0   :  { %3901 = vmatpush.bf16.msrb.mxu2 %v5599_v5 }
 0x7a1   :  { %4048 = vmatpush.bf16.msrb.mxu3 %v5607_v38 }
 0x7a2   :  { %4061 = vmatpush.bf16.msra.mxu0 %v5615_v31 }
 0x7a3   :  { %4152 = vmatpush.bf16.msra.mxu1 %v5623_v6 }
 0x7a4   :  { %3902 = vmatpush.bf16.msrb.mxu2 %v5598_v29 }
 0x7a5   :  { %4049 = vmatpush.bf16.msrb.mxu3 %v5606_v45 }
 0x7a6   :  { %4062 = vmatpush.bf16.msra.mxu0 %v5614_v3  ;;  %v8378_v3 = vld [vmem:[#allocation30_spill] sm:$0xff] }
 0x7a7   :  { %4153 = vmatpush.bf16.msra.mxu1 %v5622_v17 }
 0x7a8   :  { %3903 = vmatpush.bf16.msrb.mxu2 %v5597_v56 }
 0x7a9   :  { %4050 = vmatpush.bf16.msrb.mxu3 %v5605_v18 }
 0x7aa   :  { %4063 = vmatpush.bf16.msra.mxu0 %v5613_v0 }
 0x7ab   :  { %4154 = vmatpush.bf16.msra.mxu1 %v5621_v25 }
 0x7ac   :  { %3904 = vmatpush.bf16.msrb.mxu2 %v5596_v50 }
 0x7ad   :  { %4051 = vmatpush.bf16.msrb.mxu3 %v5604_v20 }
 0x7ae   :  { %4064 = vmatpush.bf16.msra.mxu0 %v5612_v57 }
 0x7af   :  { %4155 = vmatpush.bf16.msra.mxu1 %v5620_v48 }
 0x7b0   :  { %3905 = vmatpush.bf16.msrb.mxu2 %v5595_v7 }
 0x7b1   :  { %4052 = vmatpush.bf16.msrb.mxu3 %v5603_v53 }
 0x7b2   :  { %4065 = vmatpush.bf16.msra.mxu0 %v5611_v12  ;;  %v5806_v12 = vld [vmem:[#allocation11 + $0x8] ss:$0 sm:$0xff] }
 0x7b3   :  { %4156 = vmatpush.bf16.msra.mxu1 %v5619_v19 }
 0x7b4   :  { %3906 = vmatpush.bf16.msrb.mxu2 %v5594_v44 }
 0x7b5   :  { %4053 = vmatpush.bf16.msrb.mxu3 %v5602_v30 }
 0x7b6   :  { %4066 = vmatpush.bf16.msra.mxu0 %v5610_v8 }
 0x7b7   :  { %4157 = vmatpush.bf16.msra.mxu1 %v5618_v51  ;;  %3907 = vmatmul.bf16.vlgmr.msrb.gmra.mxu2 %v3522_v23 }
 0x7b8   :  { %4054 = vmatmul.bf16.vlgmr.msrb.gmra.mxu3 %v3912_v55 }
 0x7b9   :  { %4067 = vmatmul.bf16.vlgmr.msra.gmra.mxu0 %v3913_v58 }
 0x7ba   :  { %4158 = vmatmul.bf16.vlgmr.msra.gmra.mxu1 %v4100_v42 }
 0x816   :  { %v3882_v63 = vpop.f32.mrf.mxu0 }
 0x817   :  { %v3895_v54 = vpop.f32.mrf.mxu1 }
 0x81a   :  { %v3856_v24 = vpop.f32.mrf.mxu2 }
 0x81b   :  { %v3869_v28 = vpop.f32.mrf.mxu3  ;;  %v3857_v1 = vadd.f32 %v5802_v62, %v3856_v24 }
 0x81d   :  { %v3870_v33 = vadd.f32 %v3869_v28, %v3857_v1 }
 0x81e   :  { %v3884_v34 = vpop.f32.mrf.mxu0 }
 0x81f   :  { %v3897_v52 = vpop.f32.mrf.mxu1  ;;  %v3883_v59 = vadd.f32 %v3882_v63, %v3870_v33 }
 0x821   :  { %v3896_v41 = vadd.f32 %v3895_v54, %v3883_v59 }
 0x822   :  { %v3858_v61 = vpop.f32.mrf.mxu2 }
 0x823   :  { %v3871_v11 = vpop.f32.mrf.mxu3 }
 0x836   :  { %v4068_v2 = vpop.f32.mrf.mxu0 }
 0x837   :  { %v4159_v15 = vpop.f32.mrf.mxu1 }
 0x838   :  { %v7697_v21 = vadd.f32 %v5803_v9, %v4159_v15 }
 0x83a   :  { %v3908_v22 = vpop.f32.mrf.mxu2  ;;  %v4167_v4 = vrot.slane %v7697_v21, 4 }
 0x83b   :  { %v4055_v26 = vpop.f32.mrf.mxu3  ;;  %v7702_v35 = vadd.f32 %v3908_v22, %v3896_v41  ;;  %v6044_v41 = vmov 0  }
 0x83c   :  { %v4056_v14 = vadd.f32 %v5804_v10, %v4055_v26  ;;  %v6042_v26 = vmov 2   ;;  %5798 = vset.pattern.permute.xlu2 %v6044_v41 }
 0x83d   :  { %5800 = vset.pattern.permute.xlu1 %v6042_v26 }
 0x83e   :  { %v7699_v27 = vadd.f32 %v4068_v2, %v4056_v14  ;;  %v4070_v36 = vpop.f32.mrf.mxu0  ;;  %v6043_v14 = vmov 1  }
 0x83f   :  { %v4161_v37 = vpop.f32.mrf.mxu1  ;;  %5799 = vset.pattern.permute.xlu0 %v6043_v14 }
 0x840   :  { %v4164_v39 = vrot.slane %v7699_v27, 6 }
 0x842   :  { %v4169_v5 = vsel %vm8377_vm2, %v7702_v35, %v4164_v39  ;;  %v3910_v38 = vpop.f32.mrf.mxu2 }
 0x843   :  { %v4057_v31 = vpop.f32.mrf.mxu3  ;;  %v4170_v6 = vsel %vm3395_vm13, %v4169_v5, %v4167_v4 }
 0x844   :  { %v4173_v29 = vsel %vm3401_vm14, %v4170_v6, 0.0 }
 0x845   :  { %4174 = vadd.xlane.f32.xlu0 %v4173_v29 }
 0x8b8   :  { %v4175_v45 = vpop.xlane.xlu0 %4174 }
 0x8b9   :  { %v4176_v17 = vmul.f32 %v4175_v45, %v8378_v3 }
 0x8bb   :  { %v4177_v56 = vsub.f32 %v4170_v6, %v4176_v17 }
 0x8bd   :  { %v4178_v18 = vmul.f32 %v4177_v56, %v4177_v56 }
 0x8bf   :  { %v4179_v0 = vsel %vm3401_vm14, %v4178_v18, 0.0 }
 0x8c0   :  { %4180 = vadd.xlane.f32.xlu0 %v4179_v0 }
 0x933   :  { %v4181_v25 = vpop.xlane.xlu0 %4180 }
 0x934   :  { %v4182_v43 = vmul.f32 %v4181_v25, %v8378_v3 }
 0x936   :  { %v4183_v40 = vadd.f32 1e-05, %v4182_v43 }
 0x938   :  { %5809 = vrsqrt.f32 %v4183_v40  ;;  %vm4190_vm12 = vweird.f32 %v4183_v40 }
 0x93e   :  { %v5810_v50 = vpop.eup %5809 }
 0x93f   :  { %v4185_v20 = vmul.f32 %v5810_v50, %v4183_v40  ;;  %vm4191_vm13 = vweird.f32 %v5810_v50 }
 0x940   :  { %vm4192_vm9 = vmor %vm4190_vm12, %vm4191_vm13 }
 0x941   :  { %v4186_v57 = vmul.f32 %v5810_v50, %v4185_v20 }
 0x943   :  { %v4187_v48 = vmul.f32 0.5, %v4186_v57 }
 0x945   :  { %v4188_v46 = vsub.f32 1.5, %v4187_v48 }
 0x947   :  { %v4189_v16 = vmul.f32 %v5810_v50, %v4188_v46 }
 0x949   :  { %v4193_v7 = vsel %vm4192_vm9, %v5810_v50, %v4189_v16 }
 0x94a   :  { %v4194_v53 = vmul.f32 %v4193_v7, %v4177_v56 }
 0x94c   :  { %v4198_v19 = vmul.f32 %v5805_v13, %v4194_v53  ;;  %v5633_v53 = vld [vmem:[%s7757_s9 + $0x38] sm:$0xff] }
 0x94d   :  { %4333 = vmatpush.bf16.msra.mxu2 %v5633_v53 }
 0x94e   :  { %v4202_v60 = vadd.f32 %v5806_v12, %v4198_v19  ;;  %v5632_v12 = vld [vmem:[%s7757_s9 + $0x30] sm:$0xff]  ;;  %v5631_v19 = vld [vmem:[%s7757_s9 + $0x28] sm:$0xff] }
 0x950   :  { %v4207_v44 = vmul.f32 %v5807_v32, %v4202_v60  ;;  %v5630_v32 = vld [vmem:[%s7757_s9 + $0x20] sm:$0xff]  ;;  %v5629_v60 = vld [vmem:[%s7757_s9 + $0x18] sm:$0xff] }
 0x951   :  { %4334 = vmatpush.bf16.msra.mxu2 %v5632_v12 }
 0x952   :  { %v4208_v30 = vsel %vm3401_vm14, %v4207_v44, 0.0  ;;  %v5628_v44 = vld [vmem:[%s7757_s9 + $0x10] sm:$0xff] }
 0x953   :  { %4209 = vadd.xlane.f32.xlu1 %v4208_v30  ;;  %v5627_v30 = vld [vmem:[%s7757_s9 + $0x8] sm:$0xff] }
 0x955   :  { %4335 = vmatpush.bf16.msra.mxu2 %v5631_v19 }
 0x959   :  { %4336 = vmatpush.bf16.msra.mxu2 %v5630_v32 }
 0x95d   :  { %4337 = vmatpush.bf16.msra.mxu2 %v5629_v60 }
 0x961   :  { %4338 = vmatpush.bf16.msra.mxu2 %v5628_v44 }
 0x965   :  { %4339 = vmatpush.bf16.msra.mxu2 %v5627_v30 }
 0x9c6   :  { %v4210_v8 = vpop.xlane.xlu1 %4209 }
 0x9c7   :  { %v4211_v51 = vmul.f32 0.57735026, %v4210_v8  ;;  %v5626_v8 = vld [vmem:[%s7757_s9] sm:$0xff] }
 0x9c8   :  { %4340 = vmatpush.bf16.msra.mxu2 %v5626_v8 }
 0x9c9   :  { %v4213_v49 = vrot.slane %v4211_v51, 2  ;;  %v4215_v47 = vrot.slane %v4211_v51, 4 }
 0x9cb   :  { %v4218_v23 = vsel %vm4217_vm5, %v4211_v51, %v4213_v49 }
 0x9cc   :  { %v4220_v55 = vsel %vm4219_vm10, %v4218_v23, %v4215_v47 }
 0x9cd   :  { %v4222_v58 = vsel %vm4221_vm11, %v4220_v55, -inf }
 0x9ce   :  { %4223 = vmax.xlane.f32.xlu1 %v4222_v58  ;;  %v4346_v34 = vrot.slane %v4222_v58, 4 }
 0x9d0   :  { %v4347_v52 = vmax.f32 %v4222_v58, %v4346_v34 }
 0x9d2   :  { %v4348_v11 = vrot.slane %v4347_v52, 2 }
 0x9d4   :  { %v4349_v61 = vmax.f32 %v4347_v52, %v4348_v11 }
 0x9d6   :  { %v4350_v62 = vrot.slane %v4349_v61, 1 }
 0x9d8   :  { %v4351_v1 = vmax.f32 %v4349_v61, %v4350_v62 }
 0x9da   :  { %v4352_v33 = vsub.f32 %v4220_v55, %v4351_v1 }
 0x9dc   :  { %v4353_v2 = vmul.f32 1.442695, %v4352_v33 }
 0xa41   :  { %v4224_v42 = vpop.xlane.xlu1 %4223 }
 0xa42   :  { %v4225_v63 = vsub.f32 %v4220_v55, %v4224_v42 }
 0xa44   :  { %v4226_v54 = vmul.f32 1.442695, %v4225_v63 }
 0xa46   :  { %5811 = vpow2.f32 %v4226_v54 }
 0xa47   :  { %5813 = vpow2.f32 %v4353_v2 }
 0xa4c   :  { %v5812_v28 = vpop.eup %5811 }
 0xa4d   :  { %v4228_v24 = vsel %vm4221_vm11, %v5812_v28, 0.0  ;;  %v5814_v15 = vpop.eup %5813 }
 0xa4e   :  { %4229 = vadd.xlane.f32.xlu2 %v4228_v24  ;;  %v4355_v9 = vsel %vm4221_vm11, %v5814_v15, 0.0 }
 0xa4f   :  { %v4356_v10 = vrot.slane %v4355_v9, 4 }
 0xa51   :  { %v4357_v59 = vadd.f32 %v4356_v10, %v4355_v9 }
 0xa53   :  { %v4358_v22 = vrot.slane %v4357_v59, 2 }
 0xa55   :  { %v4359_v36 = vadd.f32 %v4358_v22, %v4357_v59 }
 0xa57   :  { %v4360_v37 = vrot.slane %v4359_v36, 1 }
 0xa59   :  { %v4361_v4 = vadd.f32 %v4360_v37, %v4359_v36 }
 0xa5b   :  { %5815 = vrcp.f32 %v4361_v4  ;;  %v4373_v57 = vand.u32 2147483648, %v4361_v4  ;;  %vm4367_vm6 = vweird.f32 %v4361_v4  ;;  %v4371_v48 = vand.u32 2147483647, %v4361_v4 }
 0xa5d   :  { %v4374_v16 = vor.u32 1.1754944e-38, %v4373_v57  ;;  %vm4372_vm7 = vcmp.eq.f32.partialorder %v4371_v48, 8.507059e+37 }
 0xa61   :  { %v5816_v5 = vpop.eup %5815 }
 0xa62   :  { %v4363_v38 = vmul.f32 %v5816_v5, %v4361_v4  ;;  %vm4368_vm3 = vweird.f32 %v5816_v5 }
 0xa63   :  { %vm4369_vm1 = vmor %vm4367_vm6, %vm4368_vm3 }
 0xa64   :  { %v4364_v29 = vsub.f32 1.0, %v4363_v38 }
 0xa66   :  { %v4365_v18 = vmul.f32 %v5816_v5, %v4364_v29 }
 0xa68   :  { %v4366_v50 = vadd.f32 %v5816_v5, %v4365_v18 }
 0xa6a   :  { %v4370_v46 = vsel %vm4369_vm1, %v5816_v5, %v4366_v50 }
 0xa6b   :  { %v4375_v13 = vsel %vm4372_vm7, %v4374_v16, %v4370_v46 }
 0xa6c   :  { %v4376_v7 = vmul.f32 %v5814_v15, %v4375_v13 }
 0xac1   :  { %v4230_v39 = vpop.xlane.xlu2 %4229 }
 0xac2   :  { %5817 = vrcp.f32 %v4230_v39  ;;  %v4242_v3 = vand.u32 2147483648, %v4230_v39  ;;  %v4240_v56 = vand.u32 2147483647, %v4230_v39  ;;  %vm4236_vm8 = vweird.f32 %v4230_v39 }
 0xac4   :  { %v4243_v25 = vor.u32 1.1754944e-38, %v4242_v3  ;;  %vm4241_vm0 = vcmp.eq.f32.partialorder %v4240_v56, 8.507059e+37 }
 0xac8   :  { %v5818_v31 = vpop.eup %5817 }
 0xac9   :  { %v4232_v6 = vmul.f32 %v5818_v31, %v4230_v39  ;;  %vm4237_vm14 = vweird.f32 %v5818_v31 }
 0xaca   :  { %vm4238_vm4 = vmor %vm4236_vm8, %vm4237_vm14 }
 0xacb   :  { %v4233_v45 = vsub.f32 1.0, %v4232_v6 }
 0xacd   :  { %v4234_v17 = vmul.f32 %v5818_v31, %v4233_v45 }
 0xacf   :  { %v4235_v0 = vadd.f32 %v5818_v31, %v4234_v17 }
 0xad1   :  { %v4239_v43 = vsel %vm4238_vm4, %v5818_v31, %v4235_v0 }
 0xad2   :  { %v4244_v40 = vsel %vm4241_vm0, %v4243_v25, %v4239_v43 }
 0xad3   :  { %v4245_v20 = vmul.f32 %v5812_v28, %v4244_v40  ;;  %v5808_v28 = vld [vmem:[#allocation11 + $0xa] ss:$0 sm:$0xff] }
 0xad5   :  { %4259 = vperm.xlu1 %5800, %v4245_v20   ;;  %4253 = vperm.xlu0 %5799, %v4245_v20  }
 0xad6   :  { %4248 = vperm.xlu2 %5798, %v4245_v20  }
 0xadd   :  { %5801 = vset.pattern.permute.xlu0 %v6042_v26 }
 0xade   :  { %4378 = vrot.lane.b32.xlu2 %v4376_v7, %s6045_s2 }
 0xb30   :  { %v4249_v51 = vpop.permute.xlu2 %4248 }
 0xb31   :  { %v4251_v23 = vmul.f32 %v4249_v51, %v7702_v35 }
 0xb38   :  { %v4379_v52 = vpop.permute.xlu2 %4378 }
 0xb47   :  { %v4260_v49 = vpop.permute.xlu1 %4259  ;;  %v4254_v47 = vpop.permute.xlu0 %4253 }
 0xb48   :  { %v4256_v55 = vmul.f32 %v4254_v47, %v7699_v27  ;;  %v4262_v58 = vmul.f32 %v4260_v49, %v7697_v21 }
 0xb4a   :  { %v4257_v42 = vadd.f32 %v4256_v55, %v4251_v23 }
 0xb4c   :  { %v4263_v63 = vadd.f32 %v4262_v58, %v4257_v42 }
 0xb4e   :  { %v4264_v54 = vpack.c.bf16 %v4263_v63, %v4263_v63 }
 0xb50   :  { %4341 = vmatmul.bf16.vlgmr.msra.gmra.mxu2 %v4264_v54 }
 0xbd3   :  { %v4342_v24 = vpop.f32.mrf.mxu2 }
 0xbd4   :  { %v4343_v34 = vadd.f32 %v5808_v28, %v4342_v24 }
 0xbd6   :  { %v4381_v35 = vsel %vm4219_vm10, %v4343_v34, %v4379_v52 }
 0xbd7   :  { %v4383_v21 = vsel %vm4382_vm15, %v4381_v35, 0.0 }
 0xbd8   :  { %4384 = vst [vmem:[#allocation15] sm:$0x3] %v4383_v21 }
 0xbd9   :  { %4395 = dma.vmem_to_hbm [thread:$0]  %s4391_s12, 32, %s4393_s14, [#allocation8]  }
 0xbdb   :  { %v4344_v27 = vpop.f32.mrf.mxu2 }
 0xbdc   :  { %6023 = dma.done.wait [#allocation8], 32  }
 0xbdd   :  { %6024 = vsyncadd [#allocation8], 4294967264 }
 0xbde   :  { %4400 = vsyncpa [#allocation7], 1 }
 0xbdf   :  { %4401 = vsyncpa [#allocation10], 1 }
 0xbe0   :  { %4402 = vsyncpa [#allocation13], 1 }
 0xbe1   :  { %4403 = vsyncpa [#allocation8], 1 }
 0xbe2   :  { %4404 = vsyncmov [#allocation5] }
 0xbe5   :  { %s4405_s15 = vpop.sfrf %4404 }
 0xbe6   :  { %p5399_p0 = scmp.ne.s32.totalorder %s4405_s15, 0 }
 0xbe8   :  { %4409 = shalt.err (%p5399_p0)  }
 0xbe9   :  { %4411 = vsyncmov [#allocation5 + $0x1] }
 0xbec   :  { %s4412_s10 = vpop.sfrf %4411 }
 0xbed   :  { %p5400_p1 = scmp.ne.s32.totalorder %s4412_s10, 0 }
 0xbef   :  { %4416 = shalt.err (%p5400_p1)  }
 0xbf0   :  { %4418 = vsyncmov [#allocation5 + $0x2] }
 0xbf3   :  { %s4419_s16 = vpop.sfrf %4418 }
 0xbf4   :  { %p5401_p2 = scmp.ne.s32.totalorder %s4419_s16, 0 }
 0xbf6   :  { %4423 = shalt.err (%p5401_p2)  }

</bundles_post_ra>
